<compile_context>
chip_gen: v7x
topology: tpu7x:2x2x1
jax: 0.10.0
libtpu: 0.0.40
codegen_flags: <defaults>
</compile_context>

<pallas_src>
import functools

import jax
import jax.numpy as jnp
from jax.experimental import pallas as pl
from jax.experimental.pallas import tpu as pltpu

BN_EPS = 1e-5
# BatchNorm2d eval mode with default params (gamma=1, beta=0, mean=0, var=1)
# reduces to a per-channel scale, folded into conv weights/bias at init time.
# TODO(synk): training-mode BatchNorm (batch statistics) is not reproduced.
BN_SCALE = 1.0 / (1.0 + BN_EPS) ** 0.5

VMEM_LIMIT = 32 * 1024 * 1024   # explicit scoped-VMEM budget (safe on v5e/v6e/v7x)
_LM = 8                         # left halo margin -> sublane-aligned scratch store


def _round_up(x, m):
    return (x + m - 1) // m * m


def _choose_tm(m):
    # Largest row tile that still yields >= 2 grid steps (keeps both v7x
    # TensorCores busy and double-buffering alive).  K/N stay whole here since
    # channel counts are small.  TODO(synk): add K/N tiling for very wide nets.
    for tm in (512, 256, 128, 64, 32, 16):
        if m >= 2 * tm:
            return tm
    return _round_up(max(m, 8), 8)


def _compiler_params(n_axes=1):
    return pltpu.CompilerParams(
        dimension_semantics=("parallel",) * n_axes,
        vmem_limit_bytes=VMEM_LIMIT)


# ----------------------------------------------------------------------------
# Kernel 1: fused matmul + bias + activation  (1x1 conv / transposed conv)
# ----------------------------------------------------------------------------
def _mm_kernel(x_ref, w_ref, b_ref, o_ref, *, act):
    acc = jnp.dot(x_ref[...], w_ref[...], preferred_element_type=jnp.float32)
    acc = acc + b_ref[...]
    if act == "relu":
        acc = jnp.maximum(acc, 0.0)
    elif act == "sigmoid":
        acc = jax.nn.sigmoid(acc)
    o_ref[...] = acc.astype(o_ref.dtype)


def matmul_bias_act(x, w, b, act="none", out_dtype=jnp.bfloat16):
    """(M,K)bf16 @ (K,N)bf16 + b(N)f32 -> act, f32 accumulate, out_dtype result."""
    M, K = x.shape
    N = w.shape[1]
    TM = _choose_tm(M)
    Mp = _round_up(M, TM)
    if Mp != M:
        x = jnp.pad(x, ((0, Mp - M), (0, 0)))
    y = pl.pallas_call(
        functools.partial(_mm_kernel, act=act),
        out_shape=jax.ShapeDtypeStruct((Mp, N), out_dtype),
        grid_spec=pltpu.PrefetchScalarGridSpec(
            num_scalar_prefetch=0,
            grid=(Mp // TM,),
            in_specs=[
                pl.BlockSpec((TM, K), lambda i: (i, 0)),
                pl.BlockSpec((K, N), lambda i: (0, 0)),
                pl.BlockSpec((1, N), lambda i: (0, 0)),
            ],
            out_specs=pl.BlockSpec((TM, N), lambda i: (i, 0)),
        ),
        compiler_params=_compiler_params(),
    )(x, w, b.reshape(1, N))
    return y[:M] if Mp != M else y


def conv1x1(x, w, b, act="none", out_dtype=jnp.bfloat16):
    B, H, W, C = x.shape
    y = matmul_bias_act(x.reshape(-1, C), w, b, act, out_dtype)
    return y.reshape(B, H, W, -1)


def conv_transpose2x2(x, w2, b4):
    # ConvTranspose2d(k=2, s=2) collapsed into ONE matmul:
    # w2: (Cin, 4*Cout) with columns ordered (ky, kx, co); since stride == kernel
    # each output pixel gets exactly one tap, so the tiled bias is added once.
    B, H, W, Cin = x.shape
    Cout = w2.shape[1] // 4
    y = matmul_bias_act(x.reshape(-1, Cin), w2, b4)
    y = y.reshape(B, H, W, 2, 2, Cout).transpose(0, 1, 3, 2, 4, 5)
    return y.reshape(B, 2 * H, 2 * W, Cout)


def maxpool2x2(x):
    # TODO(synk): could be fused into the following conv's prologue.
    B, H, W, C = x.shape
    return x.reshape(B, H // 2, 2, W // 2, 2, C).max(axis=(2, 4))


# ----------------------------------------------------------------------------
# Kernel 2: implicit-GEMM 3x3 conv (pad=1) + folded BN + ReLU, fused adds
# ----------------------------------------------------------------------------
def _conv3x3_kernel(*refs, H, W, C, Cout, act, has_add, has_res):
    it = iter(refs)
    x_ref = next(it)
    add_ref = next(it) if has_add else None
    w_ref = next(it)
    b_ref = next(it)
    res_ref = next(it) if has_res else None
    o_ref = next(it)
    xp_ref = next(it)           # (H+2, W+2*_LM, C) f32 halo scratch (VMEM only)

    xin = x_ref[0].astype(jnp.float32)
    if has_add:                 # fused recurrent prologue: conv(x + x1)
        xin = xin + add_ref[0].astype(jnp.float32)

    xp_ref[...] = jnp.zeros(xp_ref.shape, xp_ref.dtype)
    xp_ref[1:H + 1, _LM:_LM + W, :] = xin   # sublane-aligned interior store

    acc = jnp.zeros((H * W, Cout), jnp.float32)
    for dy in range(3):
        for dx in range(3):
            c0 = _LM + dx - 1
            patch = xp_ref[dy:dy + H, c0:c0 + W, :]
            patch = patch.reshape(H * W, C).astype(jnp.bfloat16)
            acc = acc + jnp.dot(patch, w_ref[dy * 3 + dx],
                                preferred_element_type=jnp.float32)
    acc = acc + b_ref[...]
    if act == "relu":
        acc = jnp.maximum(acc, 0.0)
    if has_res:                 # fused RConv residual epilogue
        acc = acc + res_ref[0].reshape(H * W, Cout).astype(jnp.float32)
    o_ref[0] = acc.astype(o_ref.dtype)


def conv3x3(x, w9, b, act="relu", add=None, res=None):
    """3x3 conv, padding=1. `add` is summed to the input before the conv,
    `res` is summed to the activated output (both fused into the kernel)."""
    B, H, W, C = x.shape
    Cout = w9.shape[-1]
    has_add = add is not None
    has_res = res is not None

    inputs = [x]
    in_specs = [pl.BlockSpec((1, H, W, C), lambda n: (n, 0, 0, 0))]
    if has_add:
        inputs.append(add)
        in_specs.append(pl.BlockSpec((1, H, W, C), lambda n: (n, 0, 0, 0)))
    inputs += [w9, b.reshape(1, Cout)]
    in_specs += [pl.BlockSpec((9, C, Cout), lambda n: (0, 0, 0)),
                 pl.BlockSpec((1, Cout), lambda n: (0, 0))]
    if has_res:
        inputs.append(res)
        in_specs.append(pl.BlockSpec((1, H, W, Cout), lambda n: (n, 0, 0, 0)))

    y = pl.pallas_call(
        functools.partial(_conv3x3_kernel, H=H, W=W, C=C, Cout=Cout,
                          act=act, has_add=has_add, has_res=has_res),
        out_shape=jax.ShapeDtypeStruct((B, H * W, Cout), jnp.bfloat16),
        grid_spec=pltpu.PrefetchScalarGridSpec(
            num_scalar_prefetch=0,
            grid=(B,),
            in_specs=in_specs,
            out_specs=pl.BlockSpec((1, H * W, Cout), lambda n: (n, 0, 0)),
            scratch_shapes=[pltpu.VMEM((H + 2, W + 2 * _LM, C), jnp.float32)],
        ),
        compiler_params=_compiler_params(),
    )(*inputs)
    return y.reshape(B, H, W, Cout)


# ----------------------------------------------------------------------------
# Kernel 3: fused attention gate
# ----------------------------------------------------------------------------
def _att_kernel(g_ref, x_ref, wg_ref, bg_ref, wx_ref, bx_ref,
                wpsi_ref, bpsi_ref, o_ref):
    g1 = jnp.dot(g_ref[...], wg_ref[...],
                 preferred_element_type=jnp.float32) + bg_ref[...]
    x1 = jnp.dot(x_ref[...], wx_ref[...],
                 preferred_element_type=jnp.float32) + bx_ref[...]
    a = jnp.maximum(g1 + x1, 0.0).astype(jnp.bfloat16)
    psi = jax.nn.sigmoid(
        jnp.dot(a, wpsi_ref[...], preferred_element_type=jnp.float32)
        + bpsi_ref[...])                                  # (TM, 1), stays on-chip
    o_ref[...] = (x_ref[...].astype(jnp.float32) * psi).astype(o_ref.dtype)


def att_fused(p, g, x):
    B, H, W, Cg = g.shape
    Cx = x.shape[-1]
    Fint = p["wg"].shape[1]
    M = B * H * W
    gf, xf = g.reshape(M, Cg), x.reshape(M, Cx)
    TM = _choose_tm(M)
    Mp = _round_up(M, TM)
    if Mp != M:
        gf = jnp.pad(gf, ((0, Mp - M), (0, 0)))
        xf = jnp.pad(xf, ((0, Mp - M), (0, 0)))
    y = pl.pallas_call(
        _att_kernel,
        out_shape=jax.ShapeDtypeStruct((Mp, Cx), jnp.bfloat16),
        grid_spec=pltpu.PrefetchScalarGridSpec(
            num_scalar_prefetch=0,
            grid=(Mp // TM,),
            in_specs=[
                pl.BlockSpec((TM, Cg), lambda i: (i, 0)),
                pl.BlockSpec((TM, Cx), lambda i: (i, 0)),
                pl.BlockSpec((Cg, Fint), lambda i: (0, 0)),
                pl.BlockSpec((1, Fint), lambda i: (0, 0)),
                pl.BlockSpec((Cx, Fint), lambda i: (0, 0)),
                pl.BlockSpec((1, Fint), lambda i: (0, 0)),
                pl.BlockSpec((Fint, 1), lambda i: (0, 0)),
                pl.BlockSpec((1, 1), lambda i: (0, 0)),
            ],
            out_specs=pl.BlockSpec((TM, Cx), lambda i: (i, 0)),
        ),
        compiler_params=_compiler_params(),
    )(gf, xf, p["wg"], p["bg"].reshape(1, Fint),
      p["wx"], p["bx"].reshape(1, Fint),
      p["wpsi"], p["bpsi"].reshape(1, 1))
    if Mp != M:
        y = y[:M]
    return y.reshape(B, H, W, Cx)


# ----------------------------------------------------------------------------
# Model blocks
# ----------------------------------------------------------------------------
def rblock_fwd(p, x, t, res=None):
    # Recurrent block: shared conv3x3 + (folded) BN + ReLU; the recurrence add
    # (x + x1) is fused into the conv prologue; `res` (the RConv residual) is
    # fused into the last conv's epilogue.
    w9, b = p
    x1 = conv3x3(x, w9, b, act="relu", res=res if t == 0 else None)
    for i in range(t):
        x1 = conv3x3(x, w9, b, act="relu", add=x1,
                     res=res if i == t - 1 else None)
    return x1


def rconv_fwd(p, x, t):
    x = conv1x1(x, p["c1x1_w"], p["c1x1_b"])
    if not p["rblocks"]:
        return x + x
    x1 = x
    last_j = len(p["rblocks"]) - 1
    for j, rp in enumerate(p["rblocks"]):
        x1 = rblock_fwd(rp, x1, t, res=x if j == last_j else None)
    return x1


def attrup_fwd(p, x1, x2, t):
    x1 = conv_transpose2x2(x1, p["up_w"], p["up_b"])
    x3 = att_fused(p["att"], x1, x2)
    x = jnp.concatenate([x3, x1], axis=-1)   # torch.cat([x3, x1], dim=1)
    return rconv_fwd(p["rconv"], x, t)


def attrunet_fwd(params, x_nchw, n_recursions):
    x = jnp.transpose(x_nchw, (0, 2, 3, 1)).astype(jnp.bfloat16)  # NCHW -> NHWC
    x = rconv_fwd(params["conv1"], x, n_recursions)
    xn = []
    for dp in params["downs"]:
        xn.append(x)
        x = rconv_fwd(dp, maxpool2x2(x), n_recursions)
    for i, up in enumerate(params["ups"]):
        x = attrup_fwd(up, x, xn[-(i + 1)], n_recursions)
    y = conv1x1(x, params["conv2_w"], params["conv2_b"], out_dtype=jnp.float32)
    return jnp.transpose(y, (0, 3, 1, 2))    # NHWC -> NCHW


# ----------------------------------------------------------------------------
# Deterministic parameter init (BN scale + layout folding done here, once)
# ----------------------------------------------------------------------------
class KeyGen:
    def __init__(self, key):
        self.key = key

    def __call__(self, shape, scale=0.05):
        self.key, sub = jax.random.split(self.key)
        return scale * jax.random.normal(sub, shape, jnp.float32)


def init_rconv(kg, cin, cout, n_rblocks):
    return {
        "c1x1_w": kg((cin, cout)).astype(jnp.bfloat16),
        "c1x1_b": kg((cout,)),
        "rblocks": [
            ((kg((3, 3, cout, cout)) * BN_SCALE)
             .reshape(9, cout, cout).astype(jnp.bfloat16),
             kg((cout,)) * BN_SCALE)
            for _ in range(n_rblocks)
        ],
    }


def init_att(kg, Fg, Fl, Fint):
    return {
        "wg": (kg((Fg, Fint)) * BN_SCALE).astype(jnp.bfloat16),
        "bg": kg((Fint,)) * BN_SCALE,
        "wx": (kg((Fl, Fint)) * BN_SCALE).astype(jnp.bfloat16),
        "bx": kg((Fint,)) * BN_SCALE,
        "wpsi": (kg((Fint, 1)) * BN_SCALE).astype(jnp.bfloat16),
        "bpsi": kg((1,)) * BN_SCALE,
    }


def init_attrup(kg, cin, cout, n_rblocks):
    w = kg((2, 2, cin, cout))        # (ky, kx, Cin, Cout)
    b = kg((cout,))
    return {
        # collapse to (Cin, 4*Cout), columns ordered (ky, kx, co)
        "up_w": jnp.transpose(w, (2, 0, 1, 3)).reshape(cin, 4 * cout)
                .astype(jnp.bfloat16),
        "up_b": jnp.tile(b, 4),
        "att": init_att(kg, cout, cout, cout // 2),
        "rconv": init_rconv(kg, cin, cout, n_rblocks),
    }


def init_attrunet(key, n_channels, n_classes, n_rblocks):
    kg = KeyGen(key)
    return {
        "conv1": init_rconv(kg, n_channels[0], n_channels[1], n_rblocks),
        "downs": [init_rconv(kg, n_channels[i - 1], n_channels[i], n_rblocks)
                  for i in range(2, len(n_channels))],
        "ups": [init_attrup(kg, n_channels[-i], n_channels[-(i + 1)], n_rblocks)
                for i in range(1, len(n_channels) - 1)],
        "conv2_w": kg((n_channels[1], n_classes)).astype(jnp.bfloat16),
        "conv2_b": kg((n_classes,)),
    }


# ----------------------------------------------------------------------------
if __name__ == "__main__":
    n_channels = [4, 8, 16]          # encoder channel plan
    n_classes = 3
    n_rblocks, n_recursions = 2, 2

    key = jax.random.PRNGKey(0)
    pkey, xkey = jax.random.split(key)
    params = init_attrunet(pkey, n_channels, n_classes, n_rblocks)
    x = jax.random.normal(xkey, (2, n_channels[0], 16, 16), jnp.float32)  # NCHW

    fwd = jax.jit(functools.partial(attrunet_fwd, n_recursions=n_recursions))
    y = fwd(params, x)
    jax.block_until_ready(y)
    assert y.shape == (2, n_classes, 16, 16), y.shape
    assert jnp.all(jnp.isfinite(y))
    print("KERNEL_OK")
</pallas_src>

<mosaic_0001>
module attributes {stable_mosaic.version = 11 : i64} {
  func.func @_mm_kernel(%arg0: i32, %arg1: memref<256x4xbf16, #tpu.memory_space<vmem>>, %arg2: memref<4x8xbf16, #tpu.memory_space<vmem>>, %arg3: memref<1x8xf32, #tpu.memory_space<vmem>>, %arg4: memref<256x8xbf16, #tpu.memory_space<vmem>>) attributes {dimension_semantics = [#tpu.dimension_semantics<parallel>], iteration_bounds = array<i64: 2>, scalar_prefetch = 0 : i64, scratch_operands = 0 : i64, tpu.core_type = #tpu.core_type<tc>, window_params = [{transform_indices = @transform_0, window_bounds = array<i64: 256, 4>}, {pipeline_mode = #tpu.pipeline_mode<synchronous>, transform_indices = @transform_1, window_bounds = array<i64: 4, 8>}, {pipeline_mode = #tpu.pipeline_mode<synchronous>, transform_indices = @transform_2, window_bounds = array<i64: 1, 8>}, {transform_indices = @transform_3, window_bounds = array<i64: 256, 8>}]} {
    %c0 = arith.constant 0 : index
    %c0_0 = arith.constant 0 : index
    %0 = vector.load %arg1[%c0, %c0_0] : memref<256x4xbf16, #tpu.memory_space<vmem>>, vector<256x4xbf16>
    %c0_1 = arith.constant 0 : index
    %c0_2 = arith.constant 0 : index
    %1 = vector.load %arg2[%c0_1, %c0_2] : memref<4x8xbf16, #tpu.memory_space<vmem>>, vector<4x8xbf16>
    %cst = arith.constant dense<0.000000e+00> : vector<256x8xf32>
    %2 = tpu.matmul %0, %1, %cst {dimension_numbers = #tpu.dot_dimension_numbers<[1], [0], [0], [1], [0, 0, 1, 1], [], []>} : vector<256x4xbf16>, vector<4x8xbf16>, vector<256x8xf32> -> vector<256x8xf32>
    %c0_3 = arith.constant 0 : index
    %c0_4 = arith.constant 0 : index
    %3 = vector.load %arg3[%c0_3, %c0_4] : memref<1x8xf32, #tpu.memory_space<vmem>>, vector<1x8xf32>
    %4 = vector.broadcast %3 : vector<1x8xf32> to vector<256x8xf32>
    %5 = arith.addf %2, %4 : vector<256x8xf32>
    %6 = arith.truncf %5 : vector<256x8xf32> to vector<256x8xbf16>
    %c0_5 = arith.constant 0 : index
    %c0_6 = arith.constant 0 : index
    %7 = vector.load %arg4[%c0_5, %c0_6] : memref<256x8xbf16, #tpu.memory_space<vmem>>, vector<256x8xbf16>
    tpu.vector_store %arg4[%c0_5, %c0_6], %6 {strides = array<i32>} : memref<256x8xbf16, #tpu.memory_space<vmem>>, vector<256x8xbf16>,
    return
  }
  func.func @transform_0(%arg0: i32) -> (i32, i32) {
    %c0_i32 = arith.constant 0 : i32
    %c0_i32_0 = arith.constant 0 : i32
    return %arg0, %c0_i32 : i32, i32
  }
  func.func @transform_1(%arg0: i32) -> (i32, i32) {
    %c0_i32 = arith.constant 0 : i32
    %c0_i32_0 = arith.constant 0 : i32
    %c0_i32_1 = arith.constant 0 : i32
    return %c0_i32, %c0_i32_0 : i32, i32
  }
  func.func @transform_2(%arg0: i32) -> (i32, i32) {
    %c0_i32 = arith.constant 0 : i32
    %c0_i32_0 = arith.constant 0 : i32
    %c0_i32_1 = arith.constant 0 : i32
    return %c0_i32, %c0_i32_0 : i32, i32
  }
  func.func @transform_3(%arg0: i32) -> (i32, i32) {
    %c0_i32 = arith.constant 0 : i32
    %c0_i32_0 = arith.constant 0 : i32
    return %arg0, %c0_i32 : i32, i32
  }
}

module attributes {stable_mosaic.version = 11 : i64} {
  func.func @_conv3x3_kernel(%arg0: i32, %arg1: memref<1x16x16x8xbf16, #tpu.memory_space<vmem>>, %arg2: memref<9x8x8xbf16, #tpu.memory_space<vmem>>, %arg3: memref<1x8xf32, #tpu.memory_space<vmem>>, %arg4: memref<1x256x8xbf16, #tpu.memory_space<vmem>>, %arg5: memref<18x32x8xf32, #tpu.memory_space<vmem>>) attributes {dimension_semantics = [#tpu.dimension_semantics<parallel>], iteration_bounds = array<i64: 2>, scalar_prefetch = 0 : i64, scratch_operands = 1 : i64, tpu.core_type = #tpu.core_type<tc>, window_params = [{transform_indices = @transform_0, window_bounds = array<i64: 1, 16, 16, 8>}, {pipeline_mode = #tpu.pipeline_mode<synchronous>, transform_indices = @transform_1, window_bounds = array<i64: 9, 8, 8>}, {pipeline_mode = #tpu.pipeline_mode<synchronous>, transform_indices = @transform_2, window_bounds = array<i64: 1, 8>}, {transform_indices = @transform_3, window_bounds = array<i64: 1, 256, 8>}]} {
    %c0 = arith.constant 0 : index
    %c0_0 = arith.constant 0 : index
    %c0_1 = arith.constant 0 : index
    %c0_2 = arith.constant 0 : index
    %0 = vector.load %arg1[%c0, %c0_0, %c0_1, %c0_2] : memref<1x16x16x8xbf16, #tpu.memory_space<vmem>>, vector<1x16x16x8xbf16>
    %1 = vector.shape_cast %0 : vector<1x16x16x8xbf16> to vector<16x16x8xbf16>
    %2 = arith.extf %1 : vector<16x16x8xbf16> to vector<16x16x8xf32>
    %cst = arith.constant 0.000000e+00 : f32
    %3 = vector.broadcast %cst : f32 to vector<18x32x8xf32>
    %c0_3 = arith.constant 0 : index
    %c0_4 = arith.constant 0 : index
    %c0_5 = arith.constant 0 : index
    %4 = vector.load %arg5[%c0_3, %c0_4, %c0_5] : memref<18x32x8xf32, #tpu.memory_space<vmem>>, vector<18x32x8xf32>
    tpu.vector_store %arg5[%c0_3, %c0_4, %c0_5], %3 {strides = array<i32>} : memref<18x32x8xf32, #tpu.memory_space<vmem>>, vector<18x32x8xf32>,
    %c1 = arith.constant 1 : index
    %c8 = arith.constant 8 : index
    %c0_6 = arith.constant 0 : index
    %5 = vector.load %arg5[%c1, %c8, %c0_6] : memref<18x32x8xf32, #tpu.memory_space<vmem>>, vector<16x16x8xf32>
    tpu.vector_store %arg5[%c1, %c8, %c0_6], %2 {strides = array<i32>} : memref<18x32x8xf32, #tpu.memory_space<vmem>>, vector<16x16x8xf32>,
    %cst_7 = arith.constant 0.000000e+00 : f32
    %6 = vector.broadcast %cst_7 : f32 to vector<256x8xf32>
    %c0_8 = arith.constant 0 : index
    %c7 = arith.constant 7 : index
    %c0_9 = arith.constant 0 : index
    %7 = vector.load %arg5[%c0_8, %c7, %c0_9] : memref<18x32x8xf32, #tpu.memory_space<vmem>>, vector<16x16x8xf32>
    %8 = vector.shape_cast %7 : vector<16x16x8xf32> to vector<256x8xf32>
    %9 = arith.truncf %8 : vector<256x8xf32> to vector<256x8xbf16>
    %c0_10 = arith.constant 0 : index
    %c0_11 = arith.constant 0 : index
    %c0_12 = arith.constant 0 : index
    %10 = vector.load %arg2[%c0_10, %c0_11, %c0_12] : memref<9x8x8xbf16, #tpu.memory_space<vmem>>, vector<1x8x8xbf16>
    %11 = vector.shape_cast %10 : vector<1x8x8xbf16> to vector<8x8xbf16>
    %cst_13 = arith.constant dense<0.000000e+00> : vector<256x8xf32>
    %12 = tpu.matmul %9, %11, %cst_13 {dimension_numbers = #tpu.dot_dimension_numbers<[1], [0], [0], [1], [0, 0, 1, 1], [], []>} : vector<256x8xbf16>, vector<8x8xbf16>, vector<256x8xf32> -> vector<256x8xf32>
    %13 = arith.addf %6, %12 : vector<256x8xf32>
    %c0_14 = arith.constant 0 : index
    %c8_15 = arith.constant 8 : index
    %c0_16 = arith.constant 0 : index
    %14 = vector.load %arg5[%c0_14, %c8_15, %c0_16] : memref<18x32x8xf32, #tpu.memory_space<vmem>>, vector<16x16x8xf32>
    %15 = vector.shape_cast %14 : vector<16x16x8xf32> to vector<256x8xf32>
    %16 = arith.truncf %15 : vector<256x8xf32> to vector<256x8xbf16>
    %c1_17 = arith.constant 1 : index
    %c0_18 = arith.constant 0 : index
    %c0_19 = arith.constant 0 : index
    %17 = vector.load %arg2[%c1_17, %c0_18, %c0_19] : memref<9x8x8xbf16, #tpu.memory_space<vmem>>, vector<1x8x8xbf16>
    %18 = vector.shape_cast %17 : vector<1x8x8xbf16> to vector<8x8xbf16>
    %cst_20 = arith.constant dense<0.000000e+00> : vector<256x8xf32>
    %19 = tpu.matmul %16, %18, %cst_20 {dimension_numbers = #tpu.dot_dimension_numbers<[1], [0], [0], [1], [0, 0, 1, 1], [], []>} : vector<256x8xbf16>, vector<8x8xbf16>, vector<256x8xf32> -> vector<256x8xf32>
    %20 = arith.addf %13, %19 : vector<256x8xf32>
    %c0_21 = arith.constant 0 : index
    %c9 = arith.constant 9 : index
    %c0_22 = arith.constant 0 : index
    %21 = vector.load %arg5[%c0_21, %c9, %c0_22] : memref<18x32x8xf32, #tpu.memory_space<vmem>>, vector<16x16x8xf32>
    %22 = vector.shape_cast %21 : vector<16x16x8xf32> to vector<256x8xf32>
    %23 = arith.truncf %22 : vector<256x8xf32> to vector<256x8xbf16>
    %c2 = arith.constant 2 : index
    %c0_23 = arith.constant 0 : index
    %c0_24 = arith.constant 0 : index
    %24 = vector.load %arg2[%c2, %c0_23, %c0_24] : memref<9x8x8xbf16, #tpu.memory_space<vmem>>, vector<1x8x8xbf16>
    %25 = vector.shape_cast %24 : vector<1x8x8xbf16> to vector<8x8xbf16>
    %cst_25 = arith.constant dense<0.000000e+00> : vector<256x8xf32>
    %26 = tpu.matmul %23, %25, %cst_25 {dimension_numbers = #tpu.dot_dimension_numbers<[1], [0], [0], [1], [0, 0, 1, 1], [], []>} : vector<256x8xbf16>, vector<8x8xbf16>, vector<256x8xf32> -> vector<256x8xf32>
    %27 = arith.addf %20, %26 : vector<256x8xf32>
    %c1_26 = arith.constant 1 : index
    %c7_27 = arith.constant 7 : index
    %c0_28 = arith.constant 0 : index
    %28 = vector.load %arg5[%c1_26, %c7_27, %c0_28] : memref<18x32x8xf32, #tpu.memory_space<vmem>>, vector<16x16x8xf32>
    %29 = vector.shape_cast %28 : vector<16x16x8xf32> to vector<256x8xf32>
    %30 = arith.truncf %29 : vector<256x8xf32> to vector<256x8xbf16>
    %c3 = arith.constant 3 : index
    %c0_29 = arith.constant 0 : index
    %c0_30 = arith.constant 0 : index
    %31 = vector.load %arg2[%c3, %c0_29, %c0_30] : memref<9x8x8xbf16, #tpu.memory_space<vmem>>, vector<1x8x8xbf16>
    %32 = vector.shape_cast %31 : vector<1x8x8xbf16> to vector<8x8xbf16>
    %cst_31 = arith.constant dense<0.000000e+00> : vector<256x8xf32>
    %33 = tpu.matmul %30, %32, %cst_31 {dimension_numbers = #tpu.dot_dimension_numbers<[1], [0], [0], [1], [0, 0, 1, 1], [], []>} : vector<256x8xbf16>, vector<8x8xbf16>, vector<256x8xf32> -> vector<256x8xf32>
    %34 = arith.addf %27, %33 : vector<256x8xf32>
    %c1_32 = arith.constant 1 : index
    %c8_33 = arith.constant 8 : index
    %c0_34 = arith.constant 0 : index
    %35 = vector.load %arg5[%c1_32, %c8_33, %c0_34] : memref<18x32x8xf32, #tpu.memory_space<vmem>>, vector<16x16x8xf32>
    %36 = vector.shape_cast %35 : vector<16x16x8xf32> to vector<256x8xf32>
    %37 = arith.truncf %36 : vector<256x8xf32> to vector<256x8xbf16>
    %c4 = arith.constant 4 : index
    %c0_35 = arith.constant 0 : index
    %c0_36 = arith.constant 0 : index
    %38 = vector.load %arg2[%c4, %c0_35, %c0_36] : memref<9x8x8xbf16, #tpu.memory_space<vmem>>, vector<1x8x8xbf16>
    %39 = vector.shape_cast %38 : vector<1x8x8xbf16> to vector<8x8xbf16>
    %cst_37 = arith.constant dense<0.000000e+00> : vector<256x8xf32>
    %40 = tpu.matmul %37, %39, %cst_37 {dimension_numbers = #tpu.dot_dimension_numbers<[1], [0], [0], [1], [0, 0, 1, 1], [], []>} : vector<256x8xbf16>, vector<8x8xbf16>, vector<256x8xf32> -> vector<256x8xf32>
    %41 = arith.addf %34, %40 : vector<256x8xf32>
    %c1_38 = arith.constant 1 : index
    %c9_39 = arith.constant 9 : index
    %c0_40 = arith.constant 0 : index
    %42 = vector.load %arg5[%c1_38, %c9_39, %c0_40] : memref<18x32x8xf32, #tpu.memory_space<vmem>>, vector<16x16x8xf32>
    %43 = vector.shape_cast %42 : vector<16x16x8xf32> to vector<256x8xf32>
    %44 = arith.truncf %43 : vector<256x8xf32> to vector<256x8xbf16>
    %c5 = arith.constant 5 : index
    %c0_41 = arith.constant 0 : index
    %c0_42 = arith.constant 0 : index
    %45 = vector.load %arg2[%c5, %c0_41, %c0_42] : memref<9x8x8xbf16, #tpu.memory_space<vmem>>, vector<1x8x8xbf16>
    %46 = vector.shape_cast %45 : vector<1x8x8xbf16> to vector<8x8xbf16>
    %cst_43 = arith.constant dense<0.000000e+00> : vector<256x8xf32>
    %47 = tpu.matmul %44, %46, %cst_43 {dimension_numbers = #tpu.dot_dimension_numbers<[1], [0], [0], [1], [0, 0, 1, 1], [], []>} : vector<256x8xbf16>, vector<8x8xbf16>, vector<256x8xf32> -> vector<256x8xf32>
    %48 = arith.addf %41, %47 : vector<256x8xf32>
    %c2_44 = arith.constant 2 : index
    %c7_45 = arith.constant 7 : index
    %c0_46 = arith.constant 0 : index
    %49 = vector.load %arg5[%c2_44, %c7_45, %c0_46] : memref<18x32x8xf32, #tpu.memory_space<vmem>>, vector<16x16x8xf32>
    %50 = vector.shape_cast %49 : vector<16x16x8xf32> to vector<256x8xf32>
    %51 = arith.truncf %50 : vector<256x8xf32> to vector<256x8xbf16>
    %c6 = arith.constant 6 : index
    %c0_47 = arith.constant 0 : index
    %c0_48 = arith.constant 0 : index
    %52 = vector.load %arg2[%c6, %c0_47, %c0_48] : memref<9x8x8xbf16, #tpu.memory_space<vmem>>, vector<1x8x8xbf16>
    %53 = vector.shape_cast %52 : vector<1x8x8xbf16> to vector<8x8xbf16>
    %cst_49 = arith.constant dense<0.000000e+00> : vector<256x8xf32>
    %54 = tpu.matmul %51, %53, %cst_49 {dimension_numbers = #tpu.dot_dimension_numbers<[1], [0], [0], [1], [0, 0, 1, 1], [], []>} : vector<256x8xbf16>, vector<8x8xbf16>, vector<256x8xf32> -> vector<256x8xf32>
    %55 = arith.addf %48, %54 : vector<256x8xf32>
    %c2_50 = arith.constant 2 : index
    %c8_51 = arith.constant 8 : index
    %c0_52 = arith.constant 0 : index
    %56 = vector.load %arg5[%c2_50, %c8_51, %c0_52] : memref<18x32x8xf32, #tpu.memory_space<vmem>>, vector<16x16x8xf32>
    %57 = vector.shape_cast %56 : vector<16x16x8xf32> to vector<256x8xf32>
    %58 = arith.truncf %57 : vector<256x8xf32> to vector<256x8xbf16>
    %c7_53 = arith.constant 7 : index
    %c0_54 = arith.constant 0 : index
    %c0_55 = arith.constant 0 : index
    %59 = vector.load %arg2[%c7_53, %c0_54, %c0_55] : memref<9x8x8xbf16, #tpu.memory_space<vmem>>, vector<1x8x8xbf16>
    %60 = vector.shape_cast %59 : vector<1x8x8xbf16> to vector<8x8xbf16>
    %cst_56 = arith.constant dense<0.000000e+00> : vector<256x8xf32>
    %61 = tpu.matmul %58, %60, %cst_56 {dimension_numbers = #tpu.dot_dimension_numbers<[1], [0], [0], [1], [0, 0, 1, 1], [], []>} : vector<256x8xbf16>, vector<8x8xbf16>, vector<256x8xf32> -> vector<256x8xf32>
    %62 = arith.addf %55, %61 : vector<256x8xf32>
    %c2_57 = arith.constant 2 : index
    %c9_58 = arith.constant 9 : index
    %c0_59 = arith.constant 0 : index
    %63 = vector.load %arg5[%c2_57, %c9_58, %c0_59] : memref<18x32x8xf32, #tpu.memory_space<vmem>>, vector<16x16x8xf32>
    %64 = vector.shape_cast %63 : vector<16x16x8xf32> to vector<256x8xf32>
    %65 = arith.truncf %64 : vector<256x8xf32> to vector<256x8xbf16>
    %c8_60 = arith.constant 8 : index
    %c0_61 = arith.constant 0 : index
    %c0_62 = arith.constant 0 : index
    %66 = vector.load %arg2[%c8_60, %c0_61, %c0_62] : memref<9x8x8xbf16, #tpu.memory_space<vmem>>, vector<1x8x8xbf16>
    %67 = vector.shape_cast %66 : vector<1x8x8xbf16> to vector<8x8xbf16>
    %cst_63 = arith.constant dense<0.000000e+00> : vector<256x8xf32>
    %68 = tpu.matmul %65, %67, %cst_63 {dimension_numbers = #tpu.dot_dimension_numbers<[1], [0], [0], [1], [0, 0, 1, 1], [], []>} : vector<256x8xbf16>, vector<8x8xbf16>, vector<256x8xf32> -> vector<256x8xf32>
    %69 = arith.addf %62, %68 : vector<256x8xf32>
    %c0_64 = arith.constant 0 : index
    %c0_65 = arith.constant 0 : index
    %70 = vector.load %arg3[%c0_64, %c0_65] : memref<1x8xf32, #tpu.memory_space<vmem>>, vector<1x8xf32>
    %71 = vector.broadcast %70 : vector<1x8xf32> to vector<256x8xf32>
    %72 = arith.addf %69, %71 : vector<256x8xf32>
    %cst_66 = arith.constant 0.000000e+00 : f32
    %73 = vector.broadcast %cst_66 : f32 to vector<256x8xf32>
    %74 = arith.maximumf %72, %73 : vector<256x8xf32>
    %75 = arith.truncf %74 : vector<256x8xf32> to vector<256x8xbf16>
    %c0_67 = arith.constant 0 : index
    %c0_68 = arith.constant 0 : index
    %c0_69 = arith.constant 0 : index
    %76 = vector.load %arg4[%c0_67, %c0_68, %c0_69] : memref<1x256x8xbf16, #tpu.memory_space<vmem>>, vector<1x256x8xbf16>
    %77 = vector.shape_cast %76 : vector<1x256x8xbf16> to vector<256x8xbf16>
    %78 = vector.shape_cast %75 : vector<256x8xbf16> to vector<1x256x8xbf16>
    tpu.vector_store %arg4[%c0_67, %c0_68, %c0_69], %78 {strides = array<i32>} : memref<1x256x8xbf16, #tpu.memory_space<vmem>>, vector<1x256x8xbf16>,
    return
  }
  func.func @transform_0(%arg0: i32) -> (i32, i32, i32, i32) {
    %c0_i32 = arith.constant 0 : i32
    %c0_i32_0 = arith.constant 0 : i32
    %c0_i32_1 = arith.constant 0 : i32
    %c0_i32_2 = arith.constant 0 : i32
    return %arg0, %c0_i32, %c0_i32_0, %c0_i32_1 : i32, i32, i32, i32
  }
  func.func @transform_1(%arg0: i32) -> (i32, i32, i32) {
    %c0_i32 = arith.constant 0 : i32
    %c0_i32_0 = arith.constant 0 : i32
    %c0_i32_1 = arith.constant 0 : i32
    %c0_i32_2 = arith.constant 0 : i32
    return %c0_i32, %c0_i32_0, %c0_i32_1 : i32, i32, i32
  }
  func.func @transform_2(%arg0: i32) -> (i32, i32) {
    %c0_i32 = arith.constant 0 : i32
    %c0_i32_0 = arith.constant 0 : i32
    %c0_i32_1 = arith.constant 0 : i32
    return %c0_i32, %c0_i32_0 : i32, i32
  }
  func.func @transform_3(%arg0: i32) -> (i32, i32, i32) {
    %c0_i32 = arith.constant 0 : i32
    %c0_i32_0 = arith.constant 0 : i32
    %c0_i32_1 = arith.constant 0 : i32
    return %arg0, %c0_i32, %c0_i32_0 : i32, i32, i32
  }
}

module attributes {stable_mosaic.version = 11 : i64} {
  func.func @_conv3x3_kernel(%arg0: i32, %arg1: memref<1x16x16x8xbf16, #tpu.memory_space<vmem>>, %arg2: memref<1x16x16x8xbf16, #tpu.memory_space<vmem>>, %arg3: memref<9x8x8xbf16, #tpu.memory_space<vmem>>, %arg4: memref<1x8xf32, #tpu.memory_space<vmem>>, %arg5: memref<1x256x8xbf16, #tpu.memory_space<vmem>>, %arg6: memref<18x32x8xf32, #tpu.memory_space<vmem>>) attributes {dimension_semantics = [#tpu.dimension_semantics<parallel>], iteration_bounds = array<i64: 2>, scalar_prefetch = 0 : i64, scratch_operands = 1 : i64, tpu.core_type = #tpu.core_type<tc>, window_params = [{transform_indices = @transform_0, window_bounds = array<i64: 1, 16, 16, 8>}, {transform_indices = @transform_1, window_bounds = array<i64: 1, 16, 16, 8>}, {pipeline_mode = #tpu.pipeline_mode<synchronous>, transform_indices = @transform_2, window_bounds = array<i64: 9, 8, 8>}, {pipeline_mode = #tpu.pipeline_mode<synchronous>, transform_indices = @transform_3, window_bounds = array<i64: 1, 8>}, {transform_indices = @transform_4, window_bounds = array<i64: 1, 256, 8>}]} {
    %c0 = arith.constant 0 : index
    %c0_0 = arith.constant 0 : index
    %c0_1 = arith.constant 0 : index
    %c0_2 = arith.constant 0 : index
    %0 = vector.load %arg1[%c0, %c0_0, %c0_1, %c0_2] : memref<1x16x16x8xbf16, #tpu.memory_space<vmem>>, vector<1x16x16x8xbf16>
    %1 = vector.shape_cast %0 : vector<1x16x16x8xbf16> to vector<16x16x8xbf16>
    %2 = arith.extf %1 : vector<16x16x8xbf16> to vector<16x16x8xf32>
    %c0_3 = arith.constant 0 : index
    %c0_4 = arith.constant 0 : index
    %c0_5 = arith.constant 0 : index
    %c0_6 = arith.constant 0 : index
    %3 = vector.load %arg2[%c0_3, %c0_4, %c0_5, %c0_6] : memref<1x16x16x8xbf16, #tpu.memory_space<vmem>>, vector<1x16x16x8xbf16>
    %4 = vector.shape_cast %3 : vector<1x16x16x8xbf16> to vector<16x16x8xbf16>
    %5 = arith.extf %4 : vector<16x16x8xbf16> to vector<16x16x8xf32>
    %6 = arith.addf %2, %5 : vector<16x16x8xf32>
    %cst = arith.constant 0.000000e+00 : f32
    %7 = vector.broadcast %cst : f32 to vector<18x32x8xf32>
    %c0_7 = arith.constant 0 : index
    %c0_8 = arith.constant 0 : index
    %c0_9 = arith.constant 0 : index
    %8 = vector.load %arg6[%c0_7, %c0_8, %c0_9] : memref<18x32x8xf32, #tpu.memory_space<vmem>>, vector<18x32x8xf32>
    tpu.vector_store %arg6[%c0_7, %c0_8, %c0_9], %7 {strides = array<i32>} : memref<18x32x8xf32, #tpu.memory_space<vmem>>, vector<18x32x8xf32>,
    %c1 = arith.constant 1 : index
    %c8 = arith.constant 8 : index
    %c0_10 = arith.constant 0 : index
    %9 = vector.load %arg6[%c1, %c8, %c0_10] : memref<18x32x8xf32, #tpu.memory_space<vmem>>, vector<16x16x8xf32>
    tpu.vector_store %arg6[%c1, %c8, %c0_10], %6 {strides = array<i32>} : memref<18x32x8xf32, #tpu.memory_space<vmem>>, vector<16x16x8xf32>,
    %cst_11 = arith.constant 0.000000e+00 : f32
    %10 = vector.broadcast %cst_11 : f32 to vector<256x8xf32>
    %c0_12 = arith.constant 0 : index
    %c7 = arith.constant 7 : index
    %c0_13 = arith.constant 0 : index
    %11 = vector.load %arg6[%c0_12, %c7, %c0_13] : memref<18x32x8xf32, #tpu.memory_space<vmem>>, vector<16x16x8xf32>
    %12 = vector.shape_cast %11 : vector<16x16x8xf32> to vector<256x8xf32>
    %13 = arith.truncf %12 : vector<256x8xf32> to vector<256x8xbf16>
    %c0_14 = arith.constant 0 : index
    %c0_15 = arith.constant 0 : index
    %c0_16 = arith.constant 0 : index
    %14 = vector.load %arg3[%c0_14, %c0_15, %c0_16] : memref<9x8x8xbf16, #tpu.memory_space<vmem>>, vector<1x8x8xbf16>
    %15 = vector.shape_cast %14 : vector<1x8x8xbf16> to vector<8x8xbf16>
    %cst_17 = arith.constant dense<0.000000e+00> : vector<256x8xf32>
    %16 = tpu.matmul %13, %15, %cst_17 {dimension_numbers = #tpu.dot_dimension_numbers<[1], [0], [0], [1], [0, 0, 1, 1], [], []>} : vector<256x8xbf16>, vector<8x8xbf16>, vector<256x8xf32> -> vector<256x8xf32>
    %17 = arith.addf %10, %16 : vector<256x8xf32>
    %c0_18 = arith.constant 0 : index
    %c8_19 = arith.constant 8 : index
    %c0_20 = arith.constant 0 : index
    %18 = vector.load %arg6[%c0_18, %c8_19, %c0_20] : memref<18x32x8xf32, #tpu.memory_space<vmem>>, vector<16x16x8xf32>
    %19 = vector.shape_cast %18 : vector<16x16x8xf32> to vector<256x8xf32>
    %20 = arith.truncf %19 : vector<256x8xf32> to vector<256x8xbf16>
    %c1_21 = arith.constant 1 : index
    %c0_22 = arith.constant 0 : index
    %c0_23 = arith.constant 0 : index
    %21 = vector.load %arg3[%c1_21, %c0_22, %c0_23] : memref<9x8x8xbf16, #tpu.memory_space<vmem>>, vector<1x8x8xbf16>
    %22 = vector.shape_cast %21 : vector<1x8x8xbf16> to vector<8x8xbf16>
    %cst_24 = arith.constant dense<0.000000e+00> : vector<256x8xf32>
    %23 = tpu.matmul %20, %22, %cst_24 {dimension_numbers = #tpu.dot_dimension_numbers<[1], [0], [0], [1], [0, 0, 1, 1], [], []>} : vector<256x8xbf16>, vector<8x8xbf16>, vector<256x8xf32> -> vector<256x8xf32>
    %24 = arith.addf %17, %23 : vector<256x8xf32>
    %c0_25 = arith.constant 0 : index
    %c9 = arith.constant 9 : index
    %c0_26 = arith.constant 0 : index
    %25 = vector.load %arg6[%c0_25, %c9, %c0_26] : memref<18x32x8xf32, #tpu.memory_space<vmem>>, vector<16x16x8xf32>
    %26 = vector.shape_cast %25 : vector<16x16x8xf32> to vector<256x8xf32>
    %27 = arith.truncf %26 : vector<256x8xf32> to vector<256x8xbf16>
    %c2 = arith.constant 2 : index
    %c0_27 = arith.constant 0 : index
    %c0_28 = arith.constant 0 : index
    %28 = vector.load %arg3[%c2, %c0_27, %c0_28] : memref<9x8x8xbf16, #tpu.memory_space<vmem>>, vector<1x8x8xbf16>
    %29 = vector.shape_cast %28 : vector<1x8x8xbf16> to vector<8x8xbf16>
    %cst_29 = arith.constant dense<0.000000e+00> : vector<256x8xf32>
    %30 = tpu.matmul %27, %29, %cst_29 {dimension_numbers = #tpu.dot_dimension_numbers<[1], [0], [0], [1], [0, 0, 1, 1], [], []>} : vector<256x8xbf16>, vector<8x8xbf16>, vector<256x8xf32> -> vector<256x8xf32>
    %31 = arith.addf %24, %30 : vector<256x8xf32>
    %c1_30 = arith.constant 1 : index
    %c7_31 = arith.constant 7 : index
    %c0_32 = arith.constant 0 : index
    %32 = vector.load %arg6[%c1_30, %c7_31, %c0_32] : memref<18x32x8xf32, #tpu.memory_space<vmem>>, vector<16x16x8xf32>
    %33 = vector.shape_cast %32 : vector<16x16x8xf32> to vector<256x8xf32>
    %34 = arith.truncf %33 : vector<256x8xf32> to vector<256x8xbf16>
    %c3 = arith.constant 3 : index
    %c0_33 = arith.constant 0 : index
    %c0_34 = arith.constant 0 : index
    %35 = vector.load %arg3[%c3, %c0_33, %c0_34] : memref<9x8x8xbf16, #tpu.memory_space<vmem>>, vector<1x8x8xbf16>
    %36 = vector.shape_cast %35 : vector<1x8x8xbf16> to vector<8x8xbf16>
    %cst_35 = arith.constant dense<0.000000e+00> : vector<256x8xf32>
    %37 = tpu.matmul %34, %36, %cst_35 {dimension_numbers = #tpu.dot_dimension_numbers<[1], [0], [0], [1], [0, 0, 1, 1], [], []>} : vector<256x8xbf16>, vector<8x8xbf16>, vector<256x8xf32> -> vector<256x8xf32>
    %38 = arith.addf %31, %37 : vector<256x8xf32>
    %c1_36 = arith.constant 1 : index
    %c8_37 = arith.constant 8 : index
    %c0_38 = arith.constant 0 : index
    %39 = vector.load %arg6[%c1_36, %c8_37, %c0_38] : memref<18x32x8xf32, #tpu.memory_space<vmem>>, vector<16x16x8xf32>
    %40 = vector.shape_cast %39 : vector<16x16x8xf32> to vector<256x8xf32>
    %41 = arith.truncf %40 : vector<256x8xf32> to vector<256x8xbf16>
    %c4 = arith.constant 4 : index
    %c0_39 = arith.constant 0 : index
    %c0_40 = arith.constant 0 : index
    %42 = vector.load %arg3[%c4, %c0_39, %c0_40] : memref<9x8x8xbf16, #tpu.memory_space<vmem>>, vector<1x8x8xbf16>
    %43 = vector.shape_cast %42 : vector<1x8x8xbf16> to vector<8x8xbf16>
    %cst_41 = arith.constant dense<0.000000e+00> : vector<256x8xf32>
    %44 = tpu.matmul %41, %43, %cst_41 {dimension_numbers = #tpu.dot_dimension_numbers<[1], [0], [0], [1], [0, 0, 1, 1], [], []>} : vector<256x8xbf16>, vector<8x8xbf16>, vector<256x8xf32> -> vector<256x8xf32>
    %45 = arith.addf %38, %44 : vector<256x8xf32>
    %c1_42 = arith.constant 1 : index
    %c9_43 = arith.constant 9 : index
    %c0_44 = arith.constant 0 : index
    %46 = vector.load %arg6[%c1_42, %c9_43, %c0_44] : memref<18x32x8xf32, #tpu.memory_space<vmem>>, vector<16x16x8xf32>
    %47 = vector.shape_cast %46 : vector<16x16x8xf32> to vector<256x8xf32>
    %48 = arith.truncf %47 : vector<256x8xf32> to vector<256x8xbf16>
    %c5 = arith.constant 5 : index
    %c0_45 = arith.constant 0 : index
    %c0_46 = arith.constant 0 : index
    %49 = vector.load %arg3[%c5, %c0_45, %c0_46] : memref<9x8x8xbf16, #tpu.memory_space<vmem>>, vector<1x8x8xbf16>
    %50 = vector.shape_cast %49 : vector<1x8x8xbf16> to vector<8x8xbf16>
    %cst_47 = arith.constant dense<0.000000e+00> : vector<256x8xf32>
    %51 = tpu.matmul %48, %50, %cst_47 {dimension_numbers = #tpu.dot_dimension_numbers<[1], [0], [0], [1], [0, 0, 1, 1], [], []>} : vector<256x8xbf16>, vector<8x8xbf16>, vector<256x8xf32> -> vector<256x8xf32>
    %52 = arith.addf %45, %51 : vector<256x8xf32>
    %c2_48 = arith.constant 2 : index
    %c7_49 = arith.constant 7 : index
    %c0_50 = arith.constant 0 : index
    %53 = vector.load %arg6[%c2_48, %c7_49, %c0_50] : memref<18x32x8xf32, #tpu.memory_space<vmem>>, vector<16x16x8xf32>
    %54 = vector.shape_cast %53 : vector<16x16x8xf32> to vector<256x8xf32>
    %55 = arith.truncf %54 : vector<256x8xf32> to vector<256x8xbf16>
    %c6 = arith.constant 6 : index
    %c0_51 = arith.constant 0 : index
    %c0_52 = arith.constant 0 : index
    %56 = vector.load %arg3[%c6, %c0_51, %c0_52] : memref<9x8x8xbf16, #tpu.memory_space<vmem>>, vector<1x8x8xbf16>
    %57 = vector.shape_cast %56 : vector<1x8x8xbf16> to vector<8x8xbf16>
    %cst_53 = arith.constant dense<0.000000e+00> : vector<256x8xf32>
    %58 = tpu.matmul %55, %57, %cst_53 {dimension_numbers = #tpu.dot_dimension_numbers<[1], [0], [0], [1], [0, 0, 1, 1], [], []>} : vector<256x8xbf16>, vector<8x8xbf16>, vector<256x8xf32> -> vector<256x8xf32>
    %59 = arith.addf %52, %58 : vector<256x8xf32>
    %c2_54 = arith.constant 2 : index
    %c8_55 = arith.constant 8 : index
    %c0_56 = arith.constant 0 : index
    %60 = vector.load %arg6[%c2_54, %c8_55, %c0_56] : memref<18x32x8xf32, #tpu.memory_space<vmem>>, vector<16x16x8xf32>
    %61 = vector.shape_cast %60 : vector<16x16x8xf32> to vector<256x8xf32>
    %62 = arith.truncf %61 : vector<256x8xf32> to vector<256x8xbf16>
    %c7_57 = arith.constant 7 : index
    %c0_58 = arith.constant 0 : index
    %c0_59 = arith.constant 0 : index
    %63 = vector.load %arg3[%c7_57, %c0_58, %c0_59] : memref<9x8x8xbf16, #tpu.memory_space<vmem>>, vector<1x8x8xbf16>
    %64 = vector.shape_cast %63 : vector<1x8x8xbf16> to vector<8x8xbf16>
    %cst_60 = arith.constant dense<0.000000e+00> : vector<256x8xf32>
    %65 = tpu.matmul %62, %64, %cst_60 {dimension_numbers = #tpu.dot_dimension_numbers<[1], [0], [0], [1], [0, 0, 1, 1], [], []>} : vector<256x8xbf16>, vector<8x8xbf16>, vector<256x8xf32> -> vector<256x8xf32>
    %66 = arith.addf %59, %65 : vector<256x8xf32>
    %c2_61 = arith.constant 2 : index
    %c9_62 = arith.constant 9 : index
    %c0_63 = arith.constant 0 : index
    %67 = vector.load %arg6[%c2_61, %c9_62, %c0_63] : memref<18x32x8xf32, #tpu.memory_space<vmem>>, vector<16x16x8xf32>
    %68 = vector.shape_cast %67 : vector<16x16x8xf32> to vector<256x8xf32>
    %69 = arith.truncf %68 : vector<256x8xf32> to vector<256x8xbf16>
    %c8_64 = arith.constant 8 : index
    %c0_65 = arith.constant 0 : index
    %c0_66 = arith.constant 0 : index
    %70 = vector.load %arg3[%c8_64, %c0_65, %c0_66] : memref<9x8x8xbf16, #tpu.memory_space<vmem>>, vector<1x8x8xbf16>
    %71 = vector.shape_cast %70 : vector<1x8x8xbf16> to vector<8x8xbf16>
    %cst_67 = arith.constant dense<0.000000e+00> : vector<256x8xf32>
    %72 = tpu.matmul %69, %71, %cst_67 {dimension_numbers = #tpu.dot_dimension_numbers<[1], [0], [0], [1], [0, 0, 1, 1], [], []>} : vector<256x8xbf16>, vector<8x8xbf16>, vector<256x8xf32> -> vector<256x8xf32>
    %73 = arith.addf %66, %72 : vector<256x8xf32>
    %c0_68 = arith.constant 0 : index
    %c0_69 = arith.constant 0 : index
    %74 = vector.load %arg4[%c0_68, %c0_69] : memref<1x8xf32, #tpu.memory_space<vmem>>, vector<1x8xf32>
    %75 = vector.broadcast %74 : vector<1x8xf32> to vector<256x8xf32>
    %76 = arith.addf %73, %75 : vector<256x8xf32>
    %cst_70 = arith.constant 0.000000e+00 : f32
    %77 = vector.broadcast %cst_70 : f32 to vector<256x8xf32>
    %78 = arith.maximumf %76, %77 : vector<256x8xf32>
    %79 = arith.truncf %78 : vector<256x8xf32> to vector<256x8xbf16>
    %c0_71 = arith.constant 0 : index
    %c0_72 = arith.constant 0 : index
    %c0_73 = arith.constant 0 : index
    %80 = vector.load %arg5[%c0_71, %c0_72, %c0_73] : memref<1x256x8xbf16, #tpu.memory_space<vmem>>, vector<1x256x8xbf16>
    %81 = vector.shape_cast %80 : vector<1x256x8xbf16> to vector<256x8xbf16>
    %82 = vector.shape_cast %79 : vector<256x8xbf16> to vector<1x256x8xbf16>
    tpu.vector_store %arg5[%c0_71, %c0_72, %c0_73], %82 {strides = array<i32>} : memref<1x256x8xbf16, #tpu.memory_space<vmem>>, vector<1x256x8xbf16>,
    return
  }
  func.func @transform_0(%arg0: i32) -> (i32, i32, i32, i32) {
    %c0_i32 = arith.constant 0 : i32
    %c0_i32_0 = arith.constant 0 : i32
    %c0_i32_1 = arith.constant 0 : i32
    %c0_i32_2 = arith.constant 0 : i32
    return %arg0, %c0_i32, %c0_i32_0, %c0_i32_1 : i32, i32, i32, i32
  }
  func.func @transform_1(%arg0: i32) -> (i32, i32, i32, i32) {
    %c0_i32 = arith.constant 0 : i32
    %c0_i32_0 = arith.constant 0 : i32
    %c0_i32_1 = arith.constant 0 : i32
    %c0_i32_2 = arith.constant 0 : i32
    return %arg0, %c0_i32, %c0_i32_0, %c0_i32_1 : i32, i32, i32, i32
  }
  func.func @transform_2(%arg0: i32) -> (i32, i32, i32) {
    %c0_i32 = arith.constant 0 : i32
    %c0_i32_0 = arith.constant 0 : i32
    %c0_i32_1 = arith.constant 0 : i32
    %c0_i32_2 = arith.constant 0 : i32
    return %c0_i32, %c0_i32_0, %c0_i32_1 : i32, i32, i32
  }
  func.func @transform_3(%arg0: i32) -> (i32, i32) {
    %c0_i32 = arith.constant 0 : i32
    %c0_i32_0 = arith.constant 0 : i32
    %c0_i32_1 = arith.constant 0 : i32
    return %c0_i32, %c0_i32_0 : i32, i32
  }
  func.func @transform_4(%arg0: i32) -> (i32, i32, i32) {
    %c0_i32 = arith.constant 0 : i32
    %c0_i32_0 = arith.constant 0 : i32
    %c0_i32_1 = arith.constant 0 : i32
    return %arg0, %c0_i32, %c0_i32_0 : i32, i32, i32
  }
}

module attributes {stable_mosaic.version = 11 : i64} {
  func.func @_conv3x3_kernel(%arg0: i32, %arg1: memref<1x16x16x8xbf16, #tpu.memory_space<vmem>>, %arg2: memref<1x16x16x8xbf16, #tpu.memory_space<vmem>>, %arg3: memref<9x8x8xbf16, #tpu.memory_space<vmem>>, %arg4: memref<1x8xf32, #tpu.memory_space<vmem>>, %arg5: memref<1x16x16x8xbf16, #tpu.memory_space<vmem>>, %arg6: memref<1x256x8xbf16, #tpu.memory_space<vmem>>, %arg7: memref<18x32x8xf32, #tpu.memory_space<vmem>>) attributes {dimension_semantics = [#tpu.dimension_semantics<parallel>], iteration_bounds = array<i64: 2>, scalar_prefetch = 0 : i64, scratch_operands = 1 : i64, tpu.core_type = #tpu.core_type<tc>, window_params = [{transform_indices = @transform_0, window_bounds = array<i64: 1, 16, 16, 8>}, {transform_indices = @transform_1, window_bounds = array<i64: 1, 16, 16, 8>}, {pipeline_mode = #tpu.pipeline_mode<synchronous>, transform_indices = @transform_2, window_bounds = array<i64: 9, 8, 8>}, {pipeline_mode = #tpu.pipeline_mode<synchronous>, transform_indices = @transform_3, window_bounds = array<i64: 1, 8>}, {transform_indices = @transform_4, window_bounds = array<i64: 1, 16, 16, 8>}, {transform_indices = @transform_5, window_bounds = array<i64: 1, 256, 8>}]} {
    %c0 = arith.constant 0 : index
    %c0_0 = arith.constant 0 : index
    %c0_1 = arith.constant 0 : index
    %c0_2 = arith.constant 0 : index
    %0 = vector.load %arg1[%c0, %c0_0, %c0_1, %c0_2] : memref<1x16x16x8xbf16, #tpu.memory_space<vmem>>, vector<1x16x16x8xbf16>
    %1 = vector.shape_cast %0 : vector<1x16x16x8xbf16> to vector<16x16x8xbf16>
    %2 = arith.extf %1 : vector<16x16x8xbf16> to vector<16x16x8xf32>
    %c0_3 = arith.constant 0 : index
    %c0_4 = arith.constant 0 : index
    %c0_5 = arith.constant 0 : index
    %c0_6 = arith.constant 0 : index
    %3 = vector.load %arg2[%c0_3, %c0_4, %c0_5, %c0_6] : memref<1x16x16x8xbf16, #tpu.memory_space<vmem>>, vector<1x16x16x8xbf16>
    %4 = vector.shape_cast %3 : vector<1x16x16x8xbf16> to vector<16x16x8xbf16>
    %5 = arith.extf %4 : vector<16x16x8xbf16> to vector<16x16x8xf32>
    %6 = arith.addf %2, %5 : vector<16x16x8xf32>
    %cst = arith.constant 0.000000e+00 : f32
    %7 = vector.broadcast %cst : f32 to vector<18x32x8xf32>
    %c0_7 = arith.constant 0 : index
    %c0_8 = arith.constant 0 : index
    %c0_9 = arith.constant 0 : index
    %8 = vector.load %arg7[%c0_7, %c0_8, %c0_9] : memref<18x32x8xf32, #tpu.memory_space<vmem>>, vector<18x32x8xf32>
    tpu.vector_store %arg7[%c0_7, %c0_8, %c0_9], %7 {strides = array<i32>} : memref<18x32x8xf32, #tpu.memory_space<vmem>>, vector<18x32x8xf32>,
    %c1 = arith.constant 1 : index
    %c8 = arith.constant 8 : index
    %c0_10 = arith.constant 0 : index
    %9 = vector.load %arg7[%c1, %c8, %c0_10] : memref<18x32x8xf32, #tpu.memory_space<vmem>>, vector<16x16x8xf32>
    tpu.vector_store %arg7[%c1, %c8, %c0_10], %6 {strides = array<i32>} : memref<18x32x8xf32, #tpu.memory_space<vmem>>, vector<16x16x8xf32>,
    %cst_11 = arith.constant 0.000000e+00 : f32
    %10 = vector.broadcast %cst_11 : f32 to vector<256x8xf32>
    %c0_12 = arith.constant 0 : index
    %c7 = arith.constant 7 : index
    %c0_13 = arith.constant 0 : index
    %11 = vector.load %arg7[%c0_12, %c7, %c0_13] : memref<18x32x8xf32, #tpu.memory_space<vmem>>, vector<16x16x8xf32>
    %12 = vector.shape_cast %11 : vector<16x16x8xf32> to vector<256x8xf32>
    %13 = arith.truncf %12 : vector<256x8xf32> to vector<256x8xbf16>
    %c0_14 = arith.constant 0 : index
    %c0_15 = arith.constant 0 : index
    %c0_16 = arith.constant 0 : index
    %14 = vector.load %arg3[%c0_14, %c0_15, %c0_16] : memref<9x8x8xbf16, #tpu.memory_space<vmem>>, vector<1x8x8xbf16>
    %15 = vector.shape_cast %14 : vector<1x8x8xbf16> to vector<8x8xbf16>
    %cst_17 = arith.constant dense<0.000000e+00> : vector<256x8xf32>
    %16 = tpu.matmul %13, %15, %cst_17 {dimension_numbers = #tpu.dot_dimension_numbers<[1], [0], [0], [1], [0, 0, 1, 1], [], []>} : vector<256x8xbf16>, vector<8x8xbf16>, vector<256x8xf32> -> vector<256x8xf32>
    %17 = arith.addf %10, %16 : vector<256x8xf32>
    %c0_18 = arith.constant 0 : index
    %c8_19 = arith.constant 8 : index
    %c0_20 = arith.constant 0 : index
    %18 = vector.load %arg7[%c0_18, %c8_19, %c0_20] : memref<18x32x8xf32, #tpu.memory_space<vmem>>, vector<16x16x8xf32>
    %19 = vector.shape_cast %18 : vector<16x16x8xf32> to vector<256x8xf32>
    %20 = arith.truncf %19 : vector<256x8xf32> to vector<256x8xbf16>
    %c1_21 = arith.constant 1 : index
    %c0_22 = arith.constant 0 : index
    %c0_23 = arith.constant 0 : index
    %21 = vector.load %arg3[%c1_21, %c0_22, %c0_23] : memref<9x8x8xbf16, #tpu.memory_space<vmem>>, vector<1x8x8xbf16>
    %22 = vector.shape_cast %21 : vector<1x8x8xbf16> to vector<8x8xbf16>
    %cst_24 = arith.constant dense<0.000000e+00> : vector<256x8xf32>
    %23 = tpu.matmul %20, %22, %cst_24 {dimension_numbers = #tpu.dot_dimension_numbers<[1], [0], [0], [1], [0, 0, 1, 1], [], []>} : vector<256x8xbf16>, vector<8x8xbf16>, vector<256x8xf32> -> vector<256x8xf32>
    %24 = arith.addf %17, %23 : vector<256x8xf32>
    %c0_25 = arith.constant 0 : index
    %c9 = arith.constant 9 : index
    %c0_26 = arith.constant 0 : index
    %25 = vector.load %arg7[%c0_25, %c9, %c0_26] : memref<18x32x8xf32, #tpu.memory_space<vmem>>, vector<16x16x8xf32>
    %26 = vector.shape_cast %25 : vector<16x16x8xf32> to vector<256x8xf32>
    %27 = arith.truncf %26 : vector<256x8xf32> to vector<256x8xbf16>
    %c2 = arith.constant 2 : index
    %c0_27 = arith.constant 0 : index
    %c0_28 = arith.constant 0 : index
    %28 = vector.load %arg3[%c2, %c0_27, %c0_28] : memref<9x8x8xbf16, #tpu.memory_space<vmem>>, vector<1x8x8xbf16>
    %29 = vector.shape_cast %28 : vector<1x8x8xbf16> to vector<8x8xbf16>
    %cst_29 = arith.constant dense<0.000000e+00> : vector<256x8xf32>
    %30 = tpu.matmul %27, %29, %cst_29 {dimension_numbers = #tpu.dot_dimension_numbers<[1], [0], [0], [1], [0, 0, 1, 1], [], []>} : vector<256x8xbf16>, vector<8x8xbf16>, vector<256x8xf32> -> vector<256x8xf32>
    %31 = arith.addf %24, %30 : vector<256x8xf32>
    %c1_30 = arith.constant 1 : index
    %c7_31 = arith.constant 7 : index
    %c0_32 = arith.constant 0 : index
    %32 = vector.load %arg7[%c1_30, %c7_31, %c0_32] : memref<18x32x8xf32, #tpu.memory_space<vmem>>, vector<16x16x8xf32>
    %33 = vector.shape_cast %32 : vector<16x16x8xf32> to vector<256x8xf32>
    %34 = arith.truncf %33 : vector<256x8xf32> to vector<256x8xbf16>
    %c3 = arith.constant 3 : index
    %c0_33 = arith.constant 0 : index
    %c0_34 = arith.constant 0 : index
    %35 = vector.load %arg3[%c3, %c0_33, %c0_34] : memref<9x8x8xbf16, #tpu.memory_space<vmem>>, vector<1x8x8xbf16>
    %36 = vector.shape_cast %35 : vector<1x8x8xbf16> to vector<8x8xbf16>
    %cst_35 = arith.constant dense<0.000000e+00> : vector<256x8xf32>
    %37 = tpu.matmul %34, %36, %cst_35 {dimension_numbers = #tpu.dot_dimension_numbers<[1], [0], [0], [1], [0, 0, 1, 1], [], []>} : vector<256x8xbf16>, vector<8x8xbf16>, vector<256x8xf32> -> vector<256x8xf32>
    %38 = arith.addf %31, %37 : vector<256x8xf32>
    %c1_36 = arith.constant 1 : index
    %c8_37 = arith.constant 8 : index
    %c0_38 = arith.constant 0 : index
    %39 = vector.load %arg7[%c1_36, %c8_37, %c0_38] : memref<18x32x8xf32, #tpu.memory_space<vmem>>, vector<16x16x8xf32>
    %40 = vector.shape_cast %39 : vector<16x16x8xf32> to vector<256x8xf32>
    %41 = arith.truncf %40 : vector<256x8xf32> to vector<256x8xbf16>
    %c4 = arith.constant 4 : index
    %c0_39 = arith.constant 0 : index
    %c0_40 = arith.constant 0 : index
    %42 = vector.load %arg3[%c4, %c0_39, %c0_40] : memref<9x8x8xbf16, #tpu.memory_space<vmem>>, vector<1x8x8xbf16>
    %43 = vector.shape_cast %42 : vector<1x8x8xbf16> to vector<8x8xbf16>
    %cst_41 = arith.constant dense<0.000000e+00> : vector<256x8xf32>
    %44 = tpu.matmul %41, %43, %cst_41 {dimension_numbers = #tpu.dot_dimension_numbers<[1], [0], [0], [1], [0, 0, 1, 1], [], []>} : vector<256x8xbf16>, vector<8x8xbf16>, vector<256x8xf32> -> vector<256x8xf32>
    %45 = arith.addf %38, %44 : vector<256x8xf32>
    %c1_42 = arith.constant 1 : index
    %c9_43 = arith.constant 9 : index
    %c0_44 = arith.constant 0 : index
    %46 = vector.load %arg7[%c1_42, %c9_43, %c0_44] : memref<18x32x8xf32, #tpu.memory_space<vmem>>, vector<16x16x8xf32>
    %47 = vector.shape_cast %46 : vector<16x16x8xf32> to vector<256x8xf32>
    %48 = arith.truncf %47 : vector<256x8xf32> to vector<256x8xbf16>
    %c5 = arith.constant 5 : index
    %c0_45 = arith.constant 0 : index
    %c0_46 = arith.constant 0 : index
    %49 = vector.load %arg3[%c5, %c0_45, %c0_46] : memref<9x8x8xbf16, #tpu.memory_space<vmem>>, vector<1x8x8xbf16>
    %50 = vector.shape_cast %49 : vector<1x8x8xbf16> to vector<8x8xbf16>
    %cst_47 = arith.constant dense<0.000000e+00> : vector<256x8xf32>
    %51 = tpu.matmul %48, %50, %cst_47 {dimension_numbers = #tpu.dot_dimension_numbers<[1], [0], [0], [1], [0, 0, 1, 1], [], []>} : vector<256x8xbf16>, vector<8x8xbf16>, vector<256x8xf32> -> vector<256x8xf32>
    %52 = arith.addf %45, %51 : vector<256x8xf32>
    %c2_48 = arith.constant 2 : index
    %c7_49 = arith.constant 7 : index
    %c0_50 = arith.constant 0 : index
    %53 = vector.load %arg7[%c2_48, %c7_49, %c0_50] : memref<18x32x8xf32, #tpu.memory_space<vmem>>, vector<16x16x8xf32>
    %54 = vector.shape_cast %53 : vector<16x16x8xf32> to vector<256x8xf32>
    %55 = arith.truncf %54 : vector<256x8xf32> to vector<256x8xbf16>
    %c6 = arith.constant 6 : index
    %c0_51 = arith.constant 0 : index
    %c0_52 = arith.constant 0 : index
    %56 = vector.load %arg3[%c6, %c0_51, %c0_52] : memref<9x8x8xbf16, #tpu.memory_space<vmem>>, vector<1x8x8xbf16>
    %57 = vector.shape_cast %56 : vector<1x8x8xbf16> to vector<8x8xbf16>
    %cst_53 = arith.constant dense<0.000000e+00> : vector<256x8xf32>
    %58 = tpu.matmul %55, %57, %cst_53 {dimension_numbers = #tpu.dot_dimension_numbers<[1], [0], [0], [1], [0, 0, 1, 1], [], []>} : vector<256x8xbf16>, vector<8x8xbf16>, vector<256x8xf32> -> vector<256x8xf32>
    %59 = arith.addf %52, %58 : vector<256x8xf32>
    %c2_54 = arith.constant 2 : index
    %c8_55 = arith.constant 8 : index
    %c0_56 = arith.constant 0 : index
    %60 = vector.load %arg7[%c2_54, %c8_55, %c0_56] : memref<18x32x8xf32, #tpu.memory_space<vmem>>, vector<16x16x8xf32>
    %61 = vector.shape_cast %60 : vector<16x16x8xf32> to vector<256x8xf32>
    %62 = arith.truncf %61 : vector<256x8xf32> to vector<256x8xbf16>
    %c7_57 = arith.constant 7 : index
    %c0_58 = arith.constant 0 : index
    %c0_59 = arith.constant 0 : index
    %63 = vector.load %arg3[%c7_57, %c0_58, %c0_59] : memref<9x8x8xbf16, #tpu.memory_space<vmem>>, vector<1x8x8xbf16>
    %64 = vector.shape_cast %63 : vector<1x8x8xbf16> to vector<8x8xbf16>
    %cst_60 = arith.constant dense<0.000000e+00> : vector<256x8xf32>
    %65 = tpu.matmul %62, %64, %cst_60 {dimension_numbers = #tpu.dot_dimension_numbers<[1], [0], [0], [1], [0, 0, 1, 1], [], []>} : vector<256x8xbf16>, vector<8x8xbf16>, vector<256x8xf32> -> vector<256x8xf32>
    %66 = arith.addf %59, %65 : vector<256x8xf32>
    %c2_61 = arith.constant 2 : index
    %c9_62 = arith.constant 9 : index
    %c0_63 = arith.constant 0 : index
    %67 = vector.load %arg7[%c2_61, %c9_62, %c0_63] : memref<18x32x8xf32, #tpu.memory_space<vmem>>, vector<16x16x8xf32>
    %68 = vector.shape_cast %67 : vector<16x16x8xf32> to vector<256x8xf32>
    %69 = arith.truncf %68 : vector<256x8xf32> to vector<256x8xbf16>
    %c8_64 = arith.constant 8 : index
    %c0_65 = arith.constant 0 : index
    %c0_66 = arith.constant 0 : index
    %70 = vector.load %arg3[%c8_64, %c0_65, %c0_66] : memref<9x8x8xbf16, #tpu.memory_space<vmem>>, vector<1x8x8xbf16>
    %71 = vector.shape_cast %70 : vector<1x8x8xbf16> to vector<8x8xbf16>
    %cst_67 = arith.constant dense<0.000000e+00> : vector<256x8xf32>
    %72 = tpu.matmul %69, %71, %cst_67 {dimension_numbers = #tpu.dot_dimension_numbers<[1], [0], [0], [1], [0, 0, 1, 1], [], []>} : vector<256x8xbf16>, vector<8x8xbf16>, vector<256x8xf32> -> vector<256x8xf32>
    %73 = arith.addf %66, %72 : vector<256x8xf32>
    %c0_68 = arith.constant 0 : index
    %c0_69 = arith.constant 0 : index
    %74 = vector.load %arg4[%c0_68, %c0_69] : memref<1x8xf32, #tpu.memory_space<vmem>>, vector<1x8xf32>
    %75 = vector.broadcast %74 : vector<1x8xf32> to vector<256x8xf32>
    %76 = arith.addf %73, %75 : vector<256x8xf32>
    %cst_70 = arith.constant 0.000000e+00 : f32
    %77 = vector.broadcast %cst_70 : f32 to vector<256x8xf32>
    %78 = arith.maximumf %76, %77 : vector<256x8xf32>
    %c0_71 = arith.constant 0 : index
    %c0_72 = arith.constant 0 : index
    %c0_73 = arith.constant 0 : index
    %c0_74 = arith.constant 0 : index
    %79 = vector.load %arg5[%c0_71, %c0_72, %c0_73, %c0_74] : memref<1x16x16x8xbf16, #tpu.memory_space<vmem>>, vector<1x16x16x8xbf16>
    %80 = vector.shape_cast %79 : vector<1x16x16x8xbf16> to vector<16x16x8xbf16>
    %81 = vector.shape_cast %80 : vector<16x16x8xbf16> to vector<256x8xbf16>
    %82 = arith.extf %81 : vector<256x8xbf16> to vector<256x8xf32>
    %83 = arith.addf %78, %82 : vector<256x8xf32>
    %84 = arith.truncf %83 : vector<256x8xf32> to vector<256x8xbf16>
    %c0_75 = arith.constant 0 : index
    %c0_76 = arith.constant 0 : index
    %c0_77 = arith.constant 0 : index
    %85 = vector.load %arg6[%c0_75, %c0_76, %c0_77] : memref<1x256x8xbf16, #tpu.memory_space<vmem>>, vector<1x256x8xbf16>
    %86 = vector.shape_cast %85 : vector<1x256x8xbf16> to vector<256x8xbf16>
    %87 = vector.shape_cast %84 : vector<256x8xbf16> to vector<1x256x8xbf16>
    tpu.vector_store %arg6[%c0_75, %c0_76, %c0_77], %87 {strides = array<i32>} : memref<1x256x8xbf16, #tpu.memory_space<vmem>>, vector<1x256x8xbf16>,
    return
  }
  func.func @transform_0(%arg0: i32) -> (i32, i32, i32, i32) {
    %c0_i32 = arith.constant 0 : i32
    %c0_i32_0 = arith.constant 0 : i32
    %c0_i32_1 = arith.constant 0 : i32
    %c0_i32_2 = arith.constant 0 : i32
    return %arg0, %c0_i32, %c0_i32_0, %c0_i32_1 : i32, i32, i32, i32
  }
  func.func @transform_1(%arg0: i32) -> (i32, i32, i32, i32) {
    %c0_i32 = arith.constant 0 : i32
    %c0_i32_0 = arith.constant 0 : i32
    %c0_i32_1 = arith.constant 0 : i32
    %c0_i32_2 = arith.constant 0 : i32
    return %arg0, %c0_i32, %c0_i32_0, %c0_i32_1 : i32, i32, i32, i32
  }
  func.func @transform_2(%arg0: i32) -> (i32, i32, i32) {
    %c0_i32 = arith.constant 0 : i32
    %c0_i32_0 = arith.constant 0 : i32
    %c0_i32_1 = arith.constant 0 : i32
    %c0_i32_2 = arith.constant 0 : i32
    return %c0_i32, %c0_i32_0, %c0_i32_1 : i32, i32, i32
  }
  func.func @transform_3(%arg0: i32) -> (i32, i32) {
    %c0_i32 = arith.constant 0 : i32
    %c0_i32_0 = arith.constant 0 : i32
    %c0_i32_1 = arith.constant 0 : i32
    return %c0_i32, %c0_i32_0 : i32, i32
  }
  func.func @transform_4(%arg0: i32) -> (i32, i32, i32, i32) {
    %c0_i32 = arith.constant 0 : i32
    %c0_i32_0 = arith.constant 0 : i32
    %c0_i32_1 = arith.constant 0 : i32
    %c0_i32_2 = arith.constant 0 : i32
    return %arg0, %c0_i32, %c0_i32_0, %c0_i32_1 : i32, i32, i32, i32
  }
  func.func @transform_5(%arg0: i32) -> (i32, i32, i32) {
    %c0_i32 = arith.constant 0 : i32
    %c0_i32_0 = arith.constant 0 : i32
    %c0_i32_1 = arith.constant 0 : i32
    return %arg0, %c0_i32, %c0_i32_0 : i32, i32, i32
  }
}

module attributes {stable_mosaic.version = 11 : i64} {
  func.func @_mm_kernel(%arg0: i32, %arg1: memref<64x8xbf16, #tpu.memory_space<vmem>>, %arg2: memref<8x16xbf16, #tpu.memory_space<vmem>>, %arg3: memref<1x16xf32, #tpu.memory_space<vmem>>, %arg4: memref<64x16xbf16, #tpu.memory_space<vmem>>) attributes {dimension_semantics = [#tpu.dimension_semantics<parallel>], iteration_bounds = array<i64: 2>, scalar_prefetch = 0 : i64, scratch_operands = 0 : i64, tpu.core_type = #tpu.core_type<tc>, window_params = [{transform_indices = @transform_0, window_bounds = array<i64: 64, 8>}, {pipeline_mode = #tpu.pipeline_mode<synchronous>, transform_indices = @transform_1, window_bounds = array<i64: 8, 16>}, {pipeline_mode = #tpu.pipeline_mode<synchronous>, transform_indices = @transform_2, window_bounds = array<i64: 1, 16>}, {transform_indices = @transform_3, window_bounds = array<i64: 64, 16>}]} {
    %c0 = arith.constant 0 : index
    %c0_0 = arith.constant 0 : index
    %0 = vector.load %arg1[%c0, %c0_0] : memref<64x8xbf16, #tpu.memory_space<vmem>>, vector<64x8xbf16>
    %c0_1 = arith.constant 0 : index
    %c0_2 = arith.constant 0 : index
    %1 = vector.load %arg2[%c0_1, %c0_2] : memref<8x16xbf16, #tpu.memory_space<vmem>>, vector<8x16xbf16>
    %cst = arith.constant dense<0.000000e+00> : vector<64x16xf32>
    %2 = tpu.matmul %0, %1, %cst {dimension_numbers = #tpu.dot_dimension_numbers<[1], [0], [0], [1], [0, 0, 1, 1], [], []>} : vector<64x8xbf16>, vector<8x16xbf16>, vector<64x16xf32> -> vector<64x16xf32>
    %c0_3 = arith.constant 0 : index
    %c0_4 = arith.constant 0 : index
    %3 = vector.load %arg3[%c0_3, %c0_4] : memref<1x16xf32, #tpu.memory_space<vmem>>, vector<1x16xf32>
    %4 = vector.broadcast %3 : vector<1x16xf32> to vector<64x16xf32>
    %5 = arith.addf %2, %4 : vector<64x16xf32>
    %6 = arith.truncf %5 : vector<64x16xf32> to vector<64x16xbf16>
    %c0_5 = arith.constant 0 : index
    %c0_6 = arith.constant 0 : index
    %7 = vector.load %arg4[%c0_5, %c0_6] : memref<64x16xbf16, #tpu.memory_space<vmem>>, vector<64x16xbf16>
    tpu.vector_store %arg4[%c0_5, %c0_6], %6 {strides = array<i32>} : memref<64x16xbf16, #tpu.memory_space<vmem>>, vector<64x16xbf16>,
    return
  }
  func.func @transform_0(%arg0: i32) -> (i32, i32) {
    %c0_i32 = arith.constant 0 : i32
    %c0_i32_0 = arith.constant 0 : i32
    return %arg0, %c0_i32 : i32, i32
  }
  func.func @transform_1(%arg0: i32) -> (i32, i32) {
    %c0_i32 = arith.constant 0 : i32
    %c0_i32_0 = arith.constant 0 : i32
    %c0_i32_1 = arith.constant 0 : i32
    return %c0_i32, %c0_i32_0 : i32, i32
  }
  func.func @transform_2(%arg0: i32) -> (i32, i32) {
    %c0_i32 = arith.constant 0 : i32
    %c0_i32_0 = arith.constant 0 : i32
    %c0_i32_1 = arith.constant 0 : i32
    return %c0_i32, %c0_i32_0 : i32, i32
  }
  func.func @transform_3(%arg0: i32) -> (i32, i32) {
    %c0_i32 = arith.constant 0 : i32
    %c0_i32_0 = arith.constant 0 : i32
    return %arg0, %c0_i32 : i32, i32
  }
}

module attributes {stable_mosaic.version = 11 : i64} {
  func.func @_conv3x3_kernel(%arg0: i32, %arg1: memref<1x8x8x16xbf16, #tpu.memory_space<vmem>>, %arg2: memref<9x16x16xbf16, #tpu.memory_space<vmem>>, %arg3: memref<1x16xf32, #tpu.memory_space<vmem>>, %arg4: memref<1x64x16xbf16, #tpu.memory_space<vmem>>, %arg5: memref<10x24x16xf32, #tpu.memory_space<vmem>>) attributes {dimension_semantics = [#tpu.dimension_semantics<parallel>], iteration_bounds = array<i64: 2>, scalar_prefetch = 0 : i64, scratch_operands = 1 : i64, tpu.core_type = #tpu.core_type<tc>, window_params = [{transform_indices = @transform_0, window_bounds = array<i64: 1, 8, 8, 16>}, {pipeline_mode = #tpu.pipeline_mode<synchronous>, transform_indices = @transform_1, window_bounds = array<i64: 9, 16, 16>}, {pipeline_mode = #tpu.pipeline_mode<synchronous>, transform_indices = @transform_2, window_bounds = array<i64: 1, 16>}, {transform_indices = @transform_3, window_bounds = array<i64: 1, 64, 16>}]} {
    %c0 = arith.constant 0 : index
    %c0_0 = arith.constant 0 : index
    %c0_1 = arith.constant 0 : index
    %c0_2 = arith.constant 0 : index
    %0 = vector.load %arg1[%c0, %c0_0, %c0_1, %c0_2] : memref<1x8x8x16xbf16, #tpu.memory_space<vmem>>, vector<1x8x8x16xbf16>
    %1 = vector.shape_cast %0 : vector<1x8x8x16xbf16> to vector<8x8x16xbf16>
    %2 = arith.extf %1 : vector<8x8x16xbf16> to vector<8x8x16xf32>
    %cst = arith.constant 0.000000e+00 : f32
    %3 = vector.broadcast %cst : f32 to vector<10x24x16xf32>
    %c0_3 = arith.constant 0 : index
    %c0_4 = arith.constant 0 : index
    %c0_5 = arith.constant 0 : index
    %4 = vector.load %arg5[%c0_3, %c0_4, %c0_5] : memref<10x24x16xf32, #tpu.memory_space<vmem>>, vector<10x24x16xf32>
    tpu.vector_store %arg5[%c0_3, %c0_4, %c0_5], %3 {strides = array<i32>} : memref<10x24x16xf32, #tpu.memory_space<vmem>>, vector<10x24x16xf32>,
    %c1 = arith.constant 1 : index
    %c8 = arith.constant 8 : index
    %c0_6 = arith.constant 0 : index
    %5 = vector.load %arg5[%c1, %c8, %c0_6] : memref<10x24x16xf32, #tpu.memory_space<vmem>>, vector<8x8x16xf32>
    tpu.vector_store %arg5[%c1, %c8, %c0_6], %2 {strides = array<i32>} : memref<10x24x16xf32, #tpu.memory_space<vmem>>, vector<8x8x16xf32>,
    %cst_7 = arith.constant 0.000000e+00 : f32
    %6 = vector.broadcast %cst_7 : f32 to vector<64x16xf32>
    %c0_8 = arith.constant 0 : index
    %c7 = arith.constant 7 : index
    %c0_9 = arith.constant 0 : index
    %7 = vector.load %arg5[%c0_8, %c7, %c0_9] : memref<10x24x16xf32, #tpu.memory_space<vmem>>, vector<8x8x16xf32>
    %8 = vector.shape_cast %7 : vector<8x8x16xf32> to vector<64x16xf32>
    %9 = arith.truncf %8 : vector<64x16xf32> to vector<64x16xbf16>
    %c0_10 = arith.constant 0 : index
    %c0_11 = arith.constant 0 : index
    %c0_12 = arith.constant 0 : index
    %10 = vector.load %arg2[%c0_10, %c0_11, %c0_12] : memref<9x16x16xbf16, #tpu.memory_space<vmem>>, vector<1x16x16xbf16>
    %11 = vector.shape_cast %10 : vector<1x16x16xbf16> to vector<16x16xbf16>
    %cst_13 = arith.constant dense<0.000000e+00> : vector<64x16xf32>
    %12 = tpu.matmul %9, %11, %cst_13 {dimension_numbers = #tpu.dot_dimension_numbers<[1], [0], [0], [1], [0, 0, 1, 1], [], []>} : vector<64x16xbf16>, vector<16x16xbf16>, vector<64x16xf32> -> vector<64x16xf32>
    %13 = arith.addf %6, %12 : vector<64x16xf32>
    %c0_14 = arith.constant 0 : index
    %c8_15 = arith.constant 8 : index
    %c0_16 = arith.constant 0 : index
    %14 = vector.load %arg5[%c0_14, %c8_15, %c0_16] : memref<10x24x16xf32, #tpu.memory_space<vmem>>, vector<8x8x16xf32>
    %15 = vector.shape_cast %14 : vector<8x8x16xf32> to vector<64x16xf32>
    %16 = arith.truncf %15 : vector<64x16xf32> to vector<64x16xbf16>
    %c1_17 = arith.constant 1 : index
    %c0_18 = arith.constant 0 : index
    %c0_19 = arith.constant 0 : index
    %17 = vector.load %arg2[%c1_17, %c0_18, %c0_19] : memref<9x16x16xbf16, #tpu.memory_space<vmem>>, vector<1x16x16xbf16>
    %18 = vector.shape_cast %17 : vector<1x16x16xbf16> to vector<16x16xbf16>
    %cst_20 = arith.constant dense<0.000000e+00> : vector<64x16xf32>
    %19 = tpu.matmul %16, %18, %cst_20 {dimension_numbers = #tpu.dot_dimension_numbers<[1], [0], [0], [1], [0, 0, 1, 1], [], []>} : vector<64x16xbf16>, vector<16x16xbf16>, vector<64x16xf32> -> vector<64x16xf32>
    %20 = arith.addf %13, %19 : vector<64x16xf32>
    %c0_21 = arith.constant 0 : index
    %c9 = arith.constant 9 : index
    %c0_22 = arith.constant 0 : index
    %21 = vector.load %arg5[%c0_21, %c9, %c0_22] : memref<10x24x16xf32, #tpu.memory_space<vmem>>, vector<8x8x16xf32>
    %22 = vector.shape_cast %21 : vector<8x8x16xf32> to vector<64x16xf32>
    %23 = arith.truncf %22 : vector<64x16xf32> to vector<64x16xbf16>
    %c2 = arith.constant 2 : index
    %c0_23 = arith.constant 0 : index
    %c0_24 = arith.constant 0 : index
    %24 = vector.load %arg2[%c2, %c0_23, %c0_24] : memref<9x16x16xbf16, #tpu.memory_space<vmem>>, vector<1x16x16xbf16>
    %25 = vector.shape_cast %24 : vector<1x16x16xbf16> to vector<16x16xbf16>
    %cst_25 = arith.constant dense<0.000000e+00> : vector<64x16xf32>
    %26 = tpu.matmul %23, %25, %cst_25 {dimension_numbers = #tpu.dot_dimension_numbers<[1], [0], [0], [1], [0, 0, 1, 1], [], []>} : vector<64x16xbf16>, vector<16x16xbf16>, vector<64x16xf32> -> vector<64x16xf32>
    %27 = arith.addf %20, %26 : vector<64x16xf32>
    %c1_26 = arith.constant 1 : index
    %c7_27 = arith.constant 7 : index
    %c0_28 = arith.constant 0 : index
    %28 = vector.load %arg5[%c1_26, %c7_27, %c0_28] : memref<10x24x16xf32, #tpu.memory_space<vmem>>, vector<8x8x16xf32>
    %29 = vector.shape_cast %28 : vector<8x8x16xf32> to vector<64x16xf32>
    %30 = arith.truncf %29 : vector<64x16xf32> to vector<64x16xbf16>
    %c3 = arith.constant 3 : index
    %c0_29 = arith.constant 0 : index
    %c0_30 = arith.constant 0 : index
    %31 = vector.load %arg2[%c3, %c0_29, %c0_30] : memref<9x16x16xbf16, #tpu.memory_space<vmem>>, vector<1x16x16xbf16>
    %32 = vector.shape_cast %31 : vector<1x16x16xbf16> to vector<16x16xbf16>
    %cst_31 = arith.constant dense<0.000000e+00> : vector<64x16xf32>
    %33 = tpu.matmul %30, %32, %cst_31 {dimension_numbers = #tpu.dot_dimension_numbers<[1], [0], [0], [1], [0, 0, 1, 1], [], []>} : vector<64x16xbf16>, vector<16x16xbf16>, vector<64x16xf32> -> vector<64x16xf32>
    %34 = arith.addf %27, %33 : vector<64x16xf32>
    %c1_32 = arith.constant 1 : index
    %c8_33 = arith.constant 8 : index
    %c0_34 = arith.constant 0 : index
    %35 = vector.load %arg5[%c1_32, %c8_33, %c0_34] : memref<10x24x16xf32, #tpu.memory_space<vmem>>, vector<8x8x16xf32>
    %36 = vector.shape_cast %35 : vector<8x8x16xf32> to vector<64x16xf32>
    %37 = arith.truncf %36 : vector<64x16xf32> to vector<64x16xbf16>
    %c4 = arith.constant 4 : index
    %c0_35 = arith.constant 0 : index
    %c0_36 = arith.constant 0 : index
    %38 = vector.load %arg2[%c4, %c0_35, %c0_36] : memref<9x16x16xbf16, #tpu.memory_space<vmem>>, vector<1x16x16xbf16>
    %39 = vector.shape_cast %38 : vector<1x16x16xbf16> to vector<16x16xbf16>
    %cst_37 = arith.constant dense<0.000000e+00> : vector<64x16xf32>
    %40 = tpu.matmul %37, %39, %cst_37 {dimension_numbers = #tpu.dot_dimension_numbers<[1], [0], [0], [1], [0, 0, 1, 1], [], []>} : vector<64x16xbf16>, vector<16x16xbf16>, vector<64x16xf32> -> vector<64x16xf32>
    %41 = arith.addf %34, %40 : vector<64x16xf32>
    %c1_38 = arith.constant 1 : index
    %c9_39 = arith.constant 9 : index
    %c0_40 = arith.constant 0 : index
    %42 = vector.load %arg5[%c1_38, %c9_39, %c0_40] : memref<10x24x16xf32, #tpu.memory_space<vmem>>, vector<8x8x16xf32>
    %43 = vector.shape_cast %42 : vector<8x8x16xf32> to vector<64x16xf32>
    %44 = arith.truncf %43 : vector<64x16xf32> to vector<64x16xbf16>
    %c5 = arith.constant 5 : index
    %c0_41 = arith.constant 0 : index
    %c0_42 = arith.constant 0 : index
    %45 = vector.load %arg2[%c5, %c0_41, %c0_42] : memref<9x16x16xbf16, #tpu.memory_space<vmem>>, vector<1x16x16xbf16>
    %46 = vector.shape_cast %45 : vector<1x16x16xbf16> to vector<16x16xbf16>
    %cst_43 = arith.constant dense<0.000000e+00> : vector<64x16xf32>
    %47 = tpu.matmul %44, %46, %cst_43 {dimension_numbers = #tpu.dot_dimension_numbers<[1], [0], [0], [1], [0, 0, 1, 1], [], []>} : vector<64x16xbf16>, vector<16x16xbf16>, vector<64x16xf32> -> vector<64x16xf32>
    %48 = arith.addf %41, %47 : vector<64x16xf32>
    %c2_44 = arith.constant 2 : index
    %c7_45 = arith.constant 7 : index
    %c0_46 = arith.constant 0 : index
    %49 = vector.load %arg5[%c2_44, %c7_45, %c0_46] : memref<10x24x16xf32, #tpu.memory_space<vmem>>, vector<8x8x16xf32>
    %50 = vector.shape_cast %49 : vector<8x8x16xf32> to vector<64x16xf32>
    %51 = arith.truncf %50 : vector<64x16xf32> to vector<64x16xbf16>
    %c6 = arith.constant 6 : index
    %c0_47 = arith.constant 0 : index
    %c0_48 = arith.constant 0 : index
    %52 = vector.load %arg2[%c6, %c0_47, %c0_48] : memref<9x16x16xbf16, #tpu.memory_space<vmem>>, vector<1x16x16xbf16>
    %53 = vector.shape_cast %52 : vector<1x16x16xbf16> to vector<16x16xbf16>
    %cst_49 = arith.constant dense<0.000000e+00> : vector<64x16xf32>
    %54 = tpu.matmul %51, %53, %cst_49 {dimension_numbers = #tpu.dot_dimension_numbers<[1], [0], [0], [1], [0, 0, 1, 1], [], []>} : vector<64x16xbf16>, vector<16x16xbf16>, vector<64x16xf32> -> vector<64x16xf32>
    %55 = arith.addf %48, %54 : vector<64x16xf32>
    %c2_50 = arith.constant 2 : index
    %c8_51 = arith.constant 8 : index
    %c0_52 = arith.constant 0 : index
    %56 = vector.load %arg5[%c2_50, %c8_51, %c0_52] : memref<10x24x16xf32, #tpu.memory_space<vmem>>, vector<8x8x16xf32>
    %57 = vector.shape_cast %56 : vector<8x8x16xf32> to vector<64x16xf32>
    %58 = arith.truncf %57 : vector<64x16xf32> to vector<64x16xbf16>
    %c7_53 = arith.constant 7 : index
    %c0_54 = arith.constant 0 : index
    %c0_55 = arith.constant 0 : index
    %59 = vector.load %arg2[%c7_53, %c0_54, %c0_55] : memref<9x16x16xbf16, #tpu.memory_space<vmem>>, vector<1x16x16xbf16>
    %60 = vector.shape_cast %59 : vector<1x16x16xbf16> to vector<16x16xbf16>
    %cst_56 = arith.constant dense<0.000000e+00> : vector<64x16xf32>
    %61 = tpu.matmul %58, %60, %cst_56 {dimension_numbers = #tpu.dot_dimension_numbers<[1], [0], [0], [1], [0, 0, 1, 1], [], []>} : vector<64x16xbf16>, vector<16x16xbf16>, vector<64x16xf32> -> vector<64x16xf32>
    %62 = arith.addf %55, %61 : vector<64x16xf32>
    %c2_57 = arith.constant 2 : index
    %c9_58 = arith.constant 9 : index
    %c0_59 = arith.constant 0 : index
    %63 = vector.load %arg5[%c2_57, %c9_58, %c0_59] : memref<10x24x16xf32, #tpu.memory_space<vmem>>, vector<8x8x16xf32>
    %64 = vector.shape_cast %63 : vector<8x8x16xf32> to vector<64x16xf32>
    %65 = arith.truncf %64 : vector<64x16xf32> to vector<64x16xbf16>
    %c8_60 = arith.constant 8 : index
    %c0_61 = arith.constant 0 : index
    %c0_62 = arith.constant 0 : index
    %66 = vector.load %arg2[%c8_60, %c0_61, %c0_62] : memref<9x16x16xbf16, #tpu.memory_space<vmem>>, vector<1x16x16xbf16>
    %67 = vector.shape_cast %66 : vector<1x16x16xbf16> to vector<16x16xbf16>
    %cst_63 = arith.constant dense<0.000000e+00> : vector<64x16xf32>
    %68 = tpu.matmul %65, %67, %cst_63 {dimension_numbers = #tpu.dot_dimension_numbers<[1], [0], [0], [1], [0, 0, 1, 1], [], []>} : vector<64x16xbf16>, vector<16x16xbf16>, vector<64x16xf32> -> vector<64x16xf32>
    %69 = arith.addf %62, %68 : vector<64x16xf32>
    %c0_64 = arith.constant 0 : index
    %c0_65 = arith.constant 0 : index
    %70 = vector.load %arg3[%c0_64, %c0_65] : memref<1x16xf32, #tpu.memory_space<vmem>>, vector<1x16xf32>
    %71 = vector.broadcast %70 : vector<1x16xf32> to vector<64x16xf32>
    %72 = arith.addf %69, %71 : vector<64x16xf32>
    %cst_66 = arith.constant 0.000000e+00 : f32
    %73 = vector.broadcast %cst_66 : f32 to vector<64x16xf32>
    %74 = arith.maximumf %72, %73 : vector<64x16xf32>
    %75 = arith.truncf %74 : vector<64x16xf32> to vector<64x16xbf16>
    %c0_67 = arith.constant 0 : index
    %c0_68 = arith.constant 0 : index
    %c0_69 = arith.constant 0 : index
    %76 = vector.load %arg4[%c0_67, %c0_68, %c0_69] : memref<1x64x16xbf16, #tpu.memory_space<vmem>>, vector<1x64x16xbf16>
    %77 = vector.shape_cast %76 : vector<1x64x16xbf16> to vector<64x16xbf16>
    %78 = vector.shape_cast %75 : vector<64x16xbf16> to vector<1x64x16xbf16>
    tpu.vector_store %arg4[%c0_67, %c0_68, %c0_69], %78 {strides = array<i32>} : memref<1x64x16xbf16, #tpu.memory_space<vmem>>, vector<1x64x16xbf16>,
    return
  }
  func.func @transform_0(%arg0: i32) -> (i32, i32, i32, i32) {
    %c0_i32 = arith.constant 0 : i32
    %c0_i32_0 = arith.constant 0 : i32
    %c0_i32_1 = arith.constant 0 : i32
    %c0_i32_2 = arith.constant 0 : i32
    return %arg0, %c0_i32, %c0_i32_0, %c0_i32_1 : i32, i32, i32, i32
  }
  func.func @transform_1(%arg0: i32) -> (i32, i32, i32) {
    %c0_i32 = arith.constant 0 : i32
    %c0_i32_0 = arith.constant 0 : i32
    %c0_i32_1 = arith.constant 0 : i32
    %c0_i32_2 = arith.constant 0 : i32
    return %c0_i32, %c0_i32_0, %c0_i32_1 : i32, i32, i32
  }
  func.func @transform_2(%arg0: i32) -> (i32, i32) {
    %c0_i32 = arith.constant 0 : i32
    %c0_i32_0 = arith.constant 0 : i32
    %c0_i32_1 = arith.constant 0 : i32
    return %c0_i32, %c0_i32_0 : i32, i32
  }
  func.func @transform_3(%arg0: i32) -> (i32, i32, i32) {
    %c0_i32 = arith.constant 0 : i32
    %c0_i32_0 = arith.constant 0 : i32
    %c0_i32_1 = arith.constant 0 : i32
    return %arg0, %c0_i32, %c0_i32_0 : i32, i32, i32
  }
}

module attributes {stable_mosaic.version = 11 : i64} {
  func.func @_conv3x3_kernel(%arg0: i32, %arg1: memref<1x8x8x16xbf16, #tpu.memory_space<vmem>>, %arg2: memref<1x8x8x16xbf16, #tpu.memory_space<vmem>>, %arg3: memref<9x16x16xbf16, #tpu.memory_space<vmem>>, %arg4: memref<1x16xf32, #tpu.memory_space<vmem>>, %arg5: memref<1x64x16xbf16, #tpu.memory_space<vmem>>, %arg6: memref<10x24x16xf32, #tpu.memory_space<vmem>>) attributes {dimension_semantics = [#tpu.dimension_semantics<parallel>], iteration_bounds = array<i64: 2>, scalar_prefetch = 0 : i64, scratch_operands = 1 : i64, tpu.core_type = #tpu.core_type<tc>, window_params = [{transform_indices = @transform_0, window_bounds = array<i64: 1, 8, 8, 16>}, {transform_indices = @transform_1, window_bounds = array<i64: 1, 8, 8, 16>}, {pipeline_mode = #tpu.pipeline_mode<synchronous>, transform_indices = @transform_2, window_bounds = array<i64: 9, 16, 16>}, {pipeline_mode = #tpu.pipeline_mode<synchronous>, transform_indices = @transform_3, window_bounds = array<i64: 1, 16>}, {transform_indices = @transform_4, window_bounds = array<i64: 1, 64, 16>}]} {
    %c0 = arith.constant 0 : index
    %c0_0 = arith.constant 0 : index
    %c0_1 = arith.constant 0 : index
    %c0_2 = arith.constant 0 : index
    %0 = vector.load %arg1[%c0, %c0_0, %c0_1, %c0_2] : memref<1x8x8x16xbf16, #tpu.memory_space<vmem>>, vector<1x8x8x16xbf16>
    %1 = vector.shape_cast %0 : vector<1x8x8x16xbf16> to vector<8x8x16xbf16>
    %2 = arith.extf %1 : vector<8x8x16xbf16> to vector<8x8x16xf32>
    %c0_3 = arith.constant 0 : index
    %c0_4 = arith.constant 0 : index
    %c0_5 = arith.constant 0 : index
    %c0_6 = arith.constant 0 : index
    %3 = vector.load %arg2[%c0_3, %c0_4, %c0_5, %c0_6] : memref<1x8x8x16xbf16, #tpu.memory_space<vmem>>, vector<1x8x8x16xbf16>
    %4 = vector.shape_cast %3 : vector<1x8x8x16xbf16> to vector<8x8x16xbf16>
    %5 = arith.extf %4 : vector<8x8x16xbf16> to vector<8x8x16xf32>
    %6 = arith.addf %2, %5 : vector<8x8x16xf32>
    %cst = arith.constant 0.000000e+00 : f32
    %7 = vector.broadcast %cst : f32 to vector<10x24x16xf32>
    %c0_7 = arith.constant 0 : index
    %c0_8 = arith.constant 0 : index
    %c0_9 = arith.constant 0 : index
    %8 = vector.load %arg6[%c0_7, %c0_8, %c0_9] : memref<10x24x16xf32, #tpu.memory_space<vmem>>, vector<10x24x16xf32>
    tpu.vector_store %arg6[%c0_7, %c0_8, %c0_9], %7 {strides = array<i32>} : memref<10x24x16xf32, #tpu.memory_space<vmem>>, vector<10x24x16xf32>,
    %c1 = arith.constant 1 : index
    %c8 = arith.constant 8 : index
    %c0_10 = arith.constant 0 : index
    %9 = vector.load %arg6[%c1, %c8, %c0_10] : memref<10x24x16xf32, #tpu.memory_space<vmem>>, vector<8x8x16xf32>
    tpu.vector_store %arg6[%c1, %c8, %c0_10], %6 {strides = array<i32>} : memref<10x24x16xf32, #tpu.memory_space<vmem>>, vector<8x8x16xf32>,
    %cst_11 = arith.constant 0.000000e+00 : f32
    %10 = vector.broadcast %cst_11 : f32 to vector<64x16xf32>
    %c0_12 = arith.constant 0 : index
    %c7 = arith.constant 7 : index
    %c0_13 = arith.constant 0 : index
    %11 = vector.load %arg6[%c0_12, %c7, %c0_13] : memref<10x24x16xf32, #tpu.memory_space<vmem>>, vector<8x8x16xf32>
    %12 = vector.shape_cast %11 : vector<8x8x16xf32> to vector<64x16xf32>
    %13 = arith.truncf %12 : vector<64x16xf32> to vector<64x16xbf16>
    %c0_14 = arith.constant 0 : index
    %c0_15 = arith.constant 0 : index
    %c0_16 = arith.constant 0 : index
    %14 = vector.load %arg3[%c0_14, %c0_15, %c0_16] : memref<9x16x16xbf16, #tpu.memory_space<vmem>>, vector<1x16x16xbf16>
    %15 = vector.shape_cast %14 : vector<1x16x16xbf16> to vector<16x16xbf16>
    %cst_17 = arith.constant dense<0.000000e+00> : vector<64x16xf32>
    %16 = tpu.matmul %13, %15, %cst_17 {dimension_numbers = #tpu.dot_dimension_numbers<[1], [0], [0], [1], [0, 0, 1, 1], [], []>} : vector<64x16xbf16>, vector<16x16xbf16>, vector<64x16xf32> -> vector<64x16xf32>
    %17 = arith.addf %10, %16 : vector<64x16xf32>
    %c0_18 = arith.constant 0 : index
    %c8_19 = arith.constant 8 : index
    %c0_20 = arith.constant 0 : index
    %18 = vector.load %arg6[%c0_18, %c8_19, %c0_20] : memref<10x24x16xf32, #tpu.memory_space<vmem>>, vector<8x8x16xf32>
    %19 = vector.shape_cast %18 : vector<8x8x16xf32> to vector<64x16xf32>
    %20 = arith.truncf %19 : vector<64x16xf32> to vector<64x16xbf16>
    %c1_21 = arith.constant 1 : index
    %c0_22 = arith.constant 0 : index
    %c0_23 = arith.constant 0 : index
    %21 = vector.load %arg3[%c1_21, %c0_22, %c0_23] : memref<9x16x16xbf16, #tpu.memory_space<vmem>>, vector<1x16x16xbf16>
    %22 = vector.shape_cast %21 : vector<1x16x16xbf16> to vector<16x16xbf16>
    %cst_24 = arith.constant dense<0.000000e+00> : vector<64x16xf32>
    %23 = tpu.matmul %20, %22, %cst_24 {dimension_numbers = #tpu.dot_dimension_numbers<[1], [0], [0], [1], [0, 0, 1, 1], [], []>} : vector<64x16xbf16>, vector<16x16xbf16>, vector<64x16xf32> -> vector<64x16xf32>
    %24 = arith.addf %17, %23 : vector<64x16xf32>
    %c0_25 = arith.constant 0 : index
    %c9 = arith.constant 9 : index
    %c0_26 = arith.constant 0 : index
    %25 = vector.load %arg6[%c0_25, %c9, %c0_26] : memref<10x24x16xf32, #tpu.memory_space<vmem>>, vector<8x8x16xf32>
    %26 = vector.shape_cast %25 : vector<8x8x16xf32> to vector<64x16xf32>
    %27 = arith.truncf %26 : vector<64x16xf32> to vector<64x16xbf16>
    %c2 = arith.constant 2 : index
    %c0_27 = arith.constant 0 : index
    %c0_28 = arith.constant 0 : index
    %28 = vector.load %arg3[%c2, %c0_27, %c0_28] : memref<9x16x16xbf16, #tpu.memory_space<vmem>>, vector<1x16x16xbf16>
    %29 = vector.shape_cast %28 : vector<1x16x16xbf16> to vector<16x16xbf16>
    %cst_29 = arith.constant dense<0.000000e+00> : vector<64x16xf32>
    %30 = tpu.matmul %27, %29, %cst_29 {dimension_numbers = #tpu.dot_dimension_numbers<[1], [0], [0], [1], [0, 0, 1, 1], [], []>} : vector<64x16xbf16>, vector<16x16xbf16>, vector<64x16xf32> -> vector<64x16xf32>
    %31 = arith.addf %24, %30 : vector<64x16xf32>
    %c1_30 = arith.constant 1 : index
    %c7_31 = arith.constant 7 : index
    %c0_32 = arith.constant 0 : index
    %32 = vector.load %arg6[%c1_30, %c7_31, %c0_32] : memref<10x24x16xf32, #tpu.memory_space<vmem>>, vector<8x8x16xf32>
    %33 = vector.shape_cast %32 : vector<8x8x16xf32> to vector<64x16xf32>
    %34 = arith.truncf %33 : vector<64x16xf32> to vector<64x16xbf16>
    %c3 = arith.constant 3 : index
    %c0_33 = arith.constant 0 : index
    %c0_34 = arith.constant 0 : index
    %35 = vector.load %arg3[%c3, %c0_33, %c0_34] : memref<9x16x16xbf16, #tpu.memory_space<vmem>>, vector<1x16x16xbf16>
    %36 = vector.shape_cast %35 : vector<1x16x16xbf16> to vector<16x16xbf16>
    %cst_35 = arith.constant dense<0.000000e+00> : vector<64x16xf32>
    %37 = tpu.matmul %34, %36, %cst_35 {dimension_numbers = #tpu.dot_dimension_numbers<[1], [0], [0], [1], [0, 0, 1, 1], [], []>} : vector<64x16xbf16>, vector<16x16xbf16>, vector<64x16xf32> -> vector<64x16xf32>
    %38 = arith.addf %31, %37 : vector<64x16xf32>
    %c1_36 = arith.constant 1 : index
    %c8_37 = arith.constant 8 : index
    %c0_38 = arith.constant 0 : index
    %39 = vector.load %arg6[%c1_36, %c8_37, %c0_38] : memref<10x24x16xf32, #tpu.memory_space<vmem>>, vector<8x8x16xf32>
    %40 = vector.shape_cast %39 : vector<8x8x16xf32> to vector<64x16xf32>
    %41 = arith.truncf %40 : vector<64x16xf32> to vector<64x16xbf16>
    %c4 = arith.constant 4 : index
    %c0_39 = arith.constant 0 : index
    %c0_40 = arith.constant 0 : index
    %42 = vector.load %arg3[%c4, %c0_39, %c0_40] : memref<9x16x16xbf16, #tpu.memory_space<vmem>>, vector<1x16x16xbf16>
    %43 = vector.shape_cast %42 : vector<1x16x16xbf16> to vector<16x16xbf16>
    %cst_41 = arith.constant dense<0.000000e+00> : vector<64x16xf32>
    %44 = tpu.matmul %41, %43, %cst_41 {dimension_numbers = #tpu.dot_dimension_numbers<[1], [0], [0], [1], [0, 0, 1, 1], [], []>} : vector<64x16xbf16>, vector<16x16xbf16>, vector<64x16xf32> -> vector<64x16xf32>
    %45 = arith.addf %38, %44 : vector<64x16xf32>
    %c1_42 = arith.constant 1 : index
    %c9_43 = arith.constant 9 : index
    %c0_44 = arith.constant 0 : index
    %46 = vector.load %arg6[%c1_42, %c9_43, %c0_44] : memref<10x24x16xf32, #tpu.memory_space<vmem>>, vector<8x8x16xf32>
    %47 = vector.shape_cast %46 : vector<8x8x16xf32> to vector<64x16xf32>
    %48 = arith.truncf %47 : vector<64x16xf32> to vector<64x16xbf16>
    %c5 = arith.constant 5 : index
    %c0_45 = arith.constant 0 : index
    %c0_46 = arith.constant 0 : index
    %49 = vector.load %arg3[%c5, %c0_45, %c0_46] : memref<9x16x16xbf16, #tpu.memory_space<vmem>>, vector<1x16x16xbf16>
    %50 = vector.shape_cast %49 : vector<1x16x16xbf16> to vector<16x16xbf16>
    %cst_47 = arith.constant dense<0.000000e+00> : vector<64x16xf32>
    %51 = tpu.matmul %48, %50, %cst_47 {dimension_numbers = #tpu.dot_dimension_numbers<[1], [0], [0], [1], [0, 0, 1, 1], [], []>} : vector<64x16xbf16>, vector<16x16xbf16>, vector<64x16xf32> -> vector<64x16xf32>
    %52 = arith.addf %45, %51 : vector<64x16xf32>
    %c2_48 = arith.constant 2 : index
    %c7_49 = arith.constant 7 : index
    %c0_50 = arith.constant 0 : index
    %53 = vector.load %arg6[%c2_48, %c7_49, %c0_50] : memref<10x24x16xf32, #tpu.memory_space<vmem>>, vector<8x8x16xf32>
    %54 = vector.shape_cast %53 : vector<8x8x16xf32> to vector<64x16xf32>
    %55 = arith.truncf %54 : vector<64x16xf32> to vector<64x16xbf16>
    %c6 = arith.constant 6 : index
    %c0_51 = arith.constant 0 : index
    %c0_52 = arith.constant 0 : index
    %56 = vector.load %arg3[%c6, %c0_51, %c0_52] : memref<9x16x16xbf16, #tpu.memory_space<vmem>>, vector<1x16x16xbf16>
    %57 = vector.shape_cast %56 : vector<1x16x16xbf16> to vector<16x16xbf16>
    %cst_53 = arith.constant dense<0.000000e+00> : vector<64x16xf32>
    %58 = tpu.matmul %55, %57, %cst_53 {dimension_numbers = #tpu.dot_dimension_numbers<[1], [0], [0], [1], [0, 0, 1, 1], [], []>} : vector<64x16xbf16>, vector<16x16xbf16>, vector<64x16xf32> -> vector<64x16xf32>
    %59 = arith.addf %52, %58 : vector<64x16xf32>
    %c2_54 = arith.constant 2 : index
    %c8_55 = arith.constant 8 : index
    %c0_56 = arith.constant 0 : index
    %60 = vector.load %arg6[%c2_54, %c8_55, %c0_56] : memref<10x24x16xf32, #tpu.memory_space<vmem>>, vector<8x8x16xf32>
    %61 = vector.shape_cast %60 : vector<8x8x16xf32> to vector<64x16xf32>
    %62 = arith.truncf %61 : vector<64x16xf32> to vector<64x16xbf16>
    %c7_57 = arith.constant 7 : index
    %c0_58 = arith.constant 0 : index
    %c0_59 = arith.constant 0 : index
    %63 = vector.load %arg3[%c7_57, %c0_58, %c0_59] : memref<9x16x16xbf16, #tpu.memory_space<vmem>>, vector<1x16x16xbf16>
    %64 = vector.shape_cast %63 : vector<1x16x16xbf16> to vector<16x16xbf16>
    %cst_60 = arith.constant dense<0.000000e+00> : vector<64x16xf32>
    %65 = tpu.matmul %62, %64, %cst_60 {dimension_numbers = #tpu.dot_dimension_numbers<[1], [0], [0], [1], [0, 0, 1, 1], [], []>} : vector<64x16xbf16>, vector<16x16xbf16>, vector<64x16xf32> -> vector<64x16xf32>
    %66 = arith.addf %59, %65 : vector<64x16xf32>
    %c2_61 = arith.constant 2 : index
    %c9_62 = arith.constant 9 : index
    %c0_63 = arith.constant 0 : index
    %67 = vector.load %arg6[%c2_61, %c9_62, %c0_63] : memref<10x24x16xf32, #tpu.memory_space<vmem>>, vector<8x8x16xf32>
    %68 = vector.shape_cast %67 : vector<8x8x16xf32> to vector<64x16xf32>
    %69 = arith.truncf %68 : vector<64x16xf32> to vector<64x16xbf16>
    %c8_64 = arith.constant 8 : index
    %c0_65 = arith.constant 0 : index
    %c0_66 = arith.constant 0 : index
    %70 = vector.load %arg3[%c8_64, %c0_65, %c0_66] : memref<9x16x16xbf16, #tpu.memory_space<vmem>>, vector<1x16x16xbf16>
    %71 = vector.shape_cast %70 : vector<1x16x16xbf16> to vector<16x16xbf16>
    %cst_67 = arith.constant dense<0.000000e+00> : vector<64x16xf32>
    %72 = tpu.matmul %69, %71, %cst_67 {dimension_numbers = #tpu.dot_dimension_numbers<[1], [0], [0], [1], [0, 0, 1, 1], [], []>} : vector<64x16xbf16>, vector<16x16xbf16>, vector<64x16xf32> -> vector<64x16xf32>
    %73 = arith.addf %66, %72 : vector<64x16xf32>
    %c0_68 = arith.constant 0 : index
    %c0_69 = arith.constant 0 : index
    %74 = vector.load %arg4[%c0_68, %c0_69] : memref<1x16xf32, #tpu.memory_space<vmem>>, vector<1x16xf32>
    %75 = vector.broadcast %74 : vector<1x16xf32> to vector<64x16xf32>
    %76 = arith.addf %73, %75 : vector<64x16xf32>
    %cst_70 = arith.constant 0.000000e+00 : f32
    %77 = vector.broadcast %cst_70 : f32 to vector<64x16xf32>
    %78 = arith.maximumf %76, %77 : vector<64x16xf32>
    %79 = arith.truncf %78 : vector<64x16xf32> to vector<64x16xbf16>
    %c0_71 = arith.constant 0 : index
    %c0_72 = arith.constant 0 : index
    %c0_73 = arith.constant 0 : index
    %80 = vector.load %arg5[%c0_71, %c0_72, %c0_73] : memref<1x64x16xbf16, #tpu.memory_space<vmem>>, vector<1x64x16xbf16>
    %81 = vector.shape_cast %80 : vector<1x64x16xbf16> to vector<64x16xbf16>
    %82 = vector.shape_cast %79 : vector<64x16xbf16> to vector<1x64x16xbf16>
    tpu.vector_store %arg5[%c0_71, %c0_72, %c0_73], %82 {strides = array<i32>} : memref<1x64x16xbf16, #tpu.memory_space<vmem>>, vector<1x64x16xbf16>,
    return
  }
  func.func @transform_0(%arg0: i32) -> (i32, i32, i32, i32) {
    %c0_i32 = arith.constant 0 : i32
    %c0_i32_0 = arith.constant 0 : i32
    %c0_i32_1 = arith.constant 0 : i32
    %c0_i32_2 = arith.constant 0 : i32
    return %arg0, %c0_i32, %c0_i32_0, %c0_i32_1 : i32, i32, i32, i32
  }
  func.func @transform_1(%arg0: i32) -> (i32, i32, i32, i32) {
    %c0_i32 = arith.constant 0 : i32
    %c0_i32_0 = arith.constant 0 : i32
    %c0_i32_1 = arith.constant 0 : i32
    %c0_i32_2 = arith.constant 0 : i32
    return %arg0, %c0_i32, %c0_i32_0, %c0_i32_1 : i32, i32, i32, i32
  }
  func.func @transform_2(%arg0: i32) -> (i32, i32, i32) {
    %c0_i32 = arith.constant 0 : i32
    %c0_i32_0 = arith.constant 0 : i32
    %c0_i32_1 = arith.constant 0 : i32
    %c0_i32_2 = arith.constant 0 : i32
    return %c0_i32, %c0_i32_0, %c0_i32_1 : i32, i32, i32
  }
  func.func @transform_3(%arg0: i32) -> (i32, i32) {
    %c0_i32 = arith.constant 0 : i32
    %c0_i32_0 = arith.constant 0 : i32
    %c0_i32_1 = arith.constant 0 : i32
    return %c0_i32, %c0_i32_0 : i32, i32
  }
  func.func @transform_4(%arg0: i32) -> (i32, i32, i32) {
    %c0_i32 = arith.constant 0 : i32
    %c0_i32_0 = arith.constant 0 : i32
    %c0_i32_1 = arith.constant 0 : i32
    return %arg0, %c0_i32, %c0_i32_0 : i32, i32, i32
  }
}

module attributes {stable_mosaic.version = 11 : i64} {
  func.func @_conv3x3_kernel(%arg0: i32, %arg1: memref<1x8x8x16xbf16, #tpu.memory_space<vmem>>, %arg2: memref<1x8x8x16xbf16, #tpu.memory_space<vmem>>, %arg3: memref<9x16x16xbf16, #tpu.memory_space<vmem>>, %arg4: memref<1x16xf32, #tpu.memory_space<vmem>>, %arg5: memref<1x8x8x16xbf16, #tpu.memory_space<vmem>>, %arg6: memref<1x64x16xbf16, #tpu.memory_space<vmem>>, %arg7: memref<10x24x16xf32, #tpu.memory_space<vmem>>) attributes {dimension_semantics = [#tpu.dimension_semantics<parallel>], iteration_bounds = array<i64: 2>, scalar_prefetch = 0 : i64, scratch_operands = 1 : i64, tpu.core_type = #tpu.core_type<tc>, window_params = [{transform_indices = @transform_0, window_bounds = array<i64: 1, 8, 8, 16>}, {transform_indices = @transform_1, window_bounds = array<i64: 1, 8, 8, 16>}, {pipeline_mode = #tpu.pipeline_mode<synchronous>, transform_indices = @transform_2, window_bounds = array<i64: 9, 16, 16>}, {pipeline_mode = #tpu.pipeline_mode<synchronous>, transform_indices = @transform_3, window_bounds = array<i64: 1, 16>}, {transform_indices = @transform_4, window_bounds = array<i64: 1, 8, 8, 16>}, {transform_indices = @transform_5, window_bounds = array<i64: 1, 64, 16>}]} {
    %c0 = arith.constant 0 : index
    %c0_0 = arith.constant 0 : index
    %c0_1 = arith.constant 0 : index
    %c0_2 = arith.constant 0 : index
    %0 = vector.load %arg1[%c0, %c0_0, %c0_1, %c0_2] : memref<1x8x8x16xbf16, #tpu.memory_space<vmem>>, vector<1x8x8x16xbf16>
    %1 = vector.shape_cast %0 : vector<1x8x8x16xbf16> to vector<8x8x16xbf16>
    %2 = arith.extf %1 : vector<8x8x16xbf16> to vector<8x8x16xf32>
    %c0_3 = arith.constant 0 : index
    %c0_4 = arith.constant 0 : index
    %c0_5 = arith.constant 0 : index
    %c0_6 = arith.constant 0 : index
    %3 = vector.load %arg2[%c0_3, %c0_4, %c0_5, %c0_6] : memref<1x8x8x16xbf16, #tpu.memory_space<vmem>>, vector<1x8x8x16xbf16>
    %4 = vector.shape_cast %3 : vector<1x8x8x16xbf16> to vector<8x8x16xbf16>
    %5 = arith.extf %4 : vector<8x8x16xbf16> to vector<8x8x16xf32>
    %6 = arith.addf %2, %5 : vector<8x8x16xf32>
    %cst = arith.constant 0.000000e+00 : f32
    %7 = vector.broadcast %cst : f32 to vector<10x24x16xf32>
    %c0_7 = arith.constant 0 : index
    %c0_8 = arith.constant 0 : index
    %c0_9 = arith.constant 0 : index
    %8 = vector.load %arg7[%c0_7, %c0_8, %c0_9] : memref<10x24x16xf32, #tpu.memory_space<vmem>>, vector<10x24x16xf32>
    tpu.vector_store %arg7[%c0_7, %c0_8, %c0_9], %7 {strides = array<i32>} : memref<10x24x16xf32, #tpu.memory_space<vmem>>, vector<10x24x16xf32>,
    %c1 = arith.constant 1 : index
    %c8 = arith.constant 8 : index
    %c0_10 = arith.constant 0 : index
    %9 = vector.load %arg7[%c1, %c8, %c0_10] : memref<10x24x16xf32, #tpu.memory_space<vmem>>, vector<8x8x16xf32>
    tpu.vector_store %arg7[%c1, %c8, %c0_10], %6 {strides = array<i32>} : memref<10x24x16xf32, #tpu.memory_space<vmem>>, vector<8x8x16xf32>,
    %cst_11 = arith.constant 0.000000e+00 : f32
    %10 = vector.broadcast %cst_11 : f32 to vector<64x16xf32>
    %c0_12 = arith.constant 0 : index
    %c7 = arith.constant 7 : index
    %c0_13 = arith.constant 0 : index
    %11 = vector.load %arg7[%c0_12, %c7, %c0_13] : memref<10x24x16xf32, #tpu.memory_space<vmem>>, vector<8x8x16xf32>
    %12 = vector.shape_cast %11 : vector<8x8x16xf32> to vector<64x16xf32>
    %13 = arith.truncf %12 : vector<64x16xf32> to vector<64x16xbf16>
    %c0_14 = arith.constant 0 : index
    %c0_15 = arith.constant 0 : index
    %c0_16 = arith.constant 0 : index
    %14 = vector.load %arg3[%c0_14, %c0_15, %c0_16] : memref<9x16x16xbf16, #tpu.memory_space<vmem>>, vector<1x16x16xbf16>
    %15 = vector.shape_cast %14 : vector<1x16x16xbf16> to vector<16x16xbf16>
    %cst_17 = arith.constant dense<0.000000e+00> : vector<64x16xf32>
    %16 = tpu.matmul %13, %15, %cst_17 {dimension_numbers = #tpu.dot_dimension_numbers<[1], [0], [0], [1], [0, 0, 1, 1], [], []>} : vector<64x16xbf16>, vector<16x16xbf16>, vector<64x16xf32> -> vector<64x16xf32>
    %17 = arith.addf %10, %16 : vector<64x16xf32>
    %c0_18 = arith.constant 0 : index
    %c8_19 = arith.constant 8 : index
    %c0_20 = arith.constant 0 : index
    %18 = vector.load %arg7[%c0_18, %c8_19, %c0_20] : memref<10x24x16xf32, #tpu.memory_space<vmem>>, vector<8x8x16xf32>
    %19 = vector.shape_cast %18 : vector<8x8x16xf32> to vector<64x16xf32>
    %20 = arith.truncf %19 : vector<64x16xf32> to vector<64x16xbf16>
    %c1_21 = arith.constant 1 : index
    %c0_22 = arith.constant 0 : index
    %c0_23 = arith.constant 0 : index
    %21 = vector.load %arg3[%c1_21, %c0_22, %c0_23] : memref<9x16x16xbf16, #tpu.memory_space<vmem>>, vector<1x16x16xbf16>
    %22 = vector.shape_cast %21 : vector<1x16x16xbf16> to vector<16x16xbf16>
    %cst_24 = arith.constant dense<0.000000e+00> : vector<64x16xf32>
    %23 = tpu.matmul %20, %22, %cst_24 {dimension_numbers = #tpu.dot_dimension_numbers<[1], [0], [0], [1], [0, 0, 1, 1], [], []>} : vector<64x16xbf16>, vector<16x16xbf16>, vector<64x16xf32> -> vector<64x16xf32>
    %24 = arith.addf %17, %23 : vector<64x16xf32>
    %c0_25 = arith.constant 0 : index
    %c9 = arith.constant 9 : index
    %c0_26 = arith.constant 0 : index
    %25 = vector.load %arg7[%c0_25, %c9, %c0_26] : memref<10x24x16xf32, #tpu.memory_space<vmem>>, vector<8x8x16xf32>
    %26 = vector.shape_cast %25 : vector<8x8x16xf32> to vector<64x16xf32>
    %27 = arith.truncf %26 : vector<64x16xf32> to vector<64x16xbf16>
    %c2 = arith.constant 2 : index
    %c0_27 = arith.constant 0 : index
    %c0_28 = arith.constant 0 : index
    %28 = vector.load %arg3[%c2, %c0_27, %c0_28] : memref<9x16x16xbf16, #tpu.memory_space<vmem>>, vector<1x16x16xbf16>
    %29 = vector.shape_cast %28 : vector<1x16x16xbf16> to vector<16x16xbf16>
    %cst_29 = arith.constant dense<0.000000e+00> : vector<64x16xf32>
    %30 = tpu.matmul %27, %29, %cst_29 {dimension_numbers = #tpu.dot_dimension_numbers<[1], [0], [0], [1], [0, 0, 1, 1], [], []>} : vector<64x16xbf16>, vector<16x16xbf16>, vector<64x16xf32> -> vector<64x16xf32>
    %31 = arith.addf %24, %30 : vector<64x16xf32>
    %c1_30 = arith.constant 1 : index
    %c7_31 = arith.constant 7 : index
    %c0_32 = arith.constant 0 : index
    %32 = vector.load %arg7[%c1_30, %c7_31, %c0_32] : memref<10x24x16xf32, #tpu.memory_space<vmem>>, vector<8x8x16xf32>
    %33 = vector.shape_cast %32 : vector<8x8x16xf32> to vector<64x16xf32>
    %34 = arith.truncf %33 : vector<64x16xf32> to vector<64x16xbf16>
    %c3 = arith.constant 3 : index
    %c0_33 = arith.constant 0 : index
    %c0_34 = arith.constant 0 : index
    %35 = vector.load %arg3[%c3, %c0_33, %c0_34] : memref<9x16x16xbf16, #tpu.memory_space<vmem>>, vector<1x16x16xbf16>
    %36 = vector.shape_cast %35 : vector<1x16x16xbf16> to vector<16x16xbf16>
    %cst_35 = arith.constant dense<0.000000e+00> : vector<64x16xf32>
    %37 = tpu.matmul %34, %36, %cst_35 {dimension_numbers = #tpu.dot_dimension_numbers<[1], [0], [0], [1], [0, 0, 1, 1], [], []>} : vector<64x16xbf16>, vector<16x16xbf16>, vector<64x16xf32> -> vector<64x16xf32>
    %38 = arith.addf %31, %37 : vector<64x16xf32>
    %c1_36 = arith.constant 1 : index
    %c8_37 = arith.constant 8 : index
    %c0_38 = arith.constant 0 : index
    %39 = vector.load %arg7[%c1_36, %c8_37, %c0_38] : memref<10x24x16xf32, #tpu.memory_space<vmem>>, vector<8x8x16xf32>
    %40 = vector.shape_cast %39 : vector<8x8x16xf32> to vector<64x16xf32>
    %41 = arith.truncf %40 : vector<64x16xf32> to vector<64x16xbf16>
    %c4 = arith.constant 4 : index
    %c0_39 = arith.constant 0 : index
    %c0_40 = arith.constant 0 : index
    %42 = vector.load %arg3[%c4, %c0_39, %c0_40] : memref<9x16x16xbf16, #tpu.memory_space<vmem>>, vector<1x16x16xbf16>
    %43 = vector.shape_cast %42 : vector<1x16x16xbf16> to vector<16x16xbf16>
    %cst_41 = arith.constant dense<0.000000e+00> : vector<64x16xf32>
    %44 = tpu.matmul %41, %43, %cst_41 {dimension_numbers = #tpu.dot_dimension_numbers<[1], [0], [0], [1], [0, 0, 1, 1], [], []>} : vector<64x16xbf16>, vector<16x16xbf16>, vector<64x16xf32> -> vector<64x16xf32>
    %45 = arith.addf %38, %44 : vector<64x16xf32>
    %c1_42 = arith.constant 1 : index
    %c9_43 = arith.constant 9 : index
    %c0_44 = arith.constant 0 : index
    %46 = vector.load %arg7[%c1_42, %c9_43, %c0_44] : memref<10x24x16xf32, #tpu.memory_space<vmem>>, vector<8x8x16xf32>
    %47 = vector.shape_cast %46 : vector<8x8x16xf32> to vector<64x16xf32>
    %48 = arith.truncf %47 : vector<64x16xf32> to vector<64x16xbf16>
    %c5 = arith.constant 5 : index
    %c0_45 = arith.constant 0 : index
    %c0_46 = arith.constant 0 : index
    %49 = vector.load %arg3[%c5, %c0_45, %c0_46] : memref<9x16x16xbf16, #tpu.memory_space<vmem>>, vector<1x16x16xbf16>
    %50 = vector.shape_cast %49 : vector<1x16x16xbf16> to vector<16x16xbf16>
    %cst_47 = arith.constant dense<0.000000e+00> : vector<64x16xf32>
    %51 = tpu.matmul %48, %50, %cst_47 {dimension_numbers = #tpu.dot_dimension_numbers<[1], [0], [0], [1], [0, 0, 1, 1], [], []>} : vector<64x16xbf16>, vector<16x16xbf16>, vector<64x16xf32> -> vector<64x16xf32>
    %52 = arith.addf %45, %51 : vector<64x16xf32>
    %c2_48 = arith.constant 2 : index
    %c7_49 = arith.constant 7 : index
    %c0_50 = arith.constant 0 : index
    %53 = vector.load %arg7[%c2_48, %c7_49, %c0_50] : memref<10x24x16xf32, #tpu.memory_space<vmem>>, vector<8x8x16xf32>
    %54 = vector.shape_cast %53 : vector<8x8x16xf32> to vector<64x16xf32>
    %55 = arith.truncf %54 : vector<64x16xf32> to vector<64x16xbf16>
    %c6 = arith.constant 6 : index
    %c0_51 = arith.constant 0 : index
    %c0_52 = arith.constant 0 : index
    %56 = vector.load %arg3[%c6, %c0_51, %c0_52] : memref<9x16x16xbf16, #tpu.memory_space<vmem>>, vector<1x16x16xbf16>
    %57 = vector.shape_cast %56 : vector<1x16x16xbf16> to vector<16x16xbf16>
    %cst_53 = arith.constant dense<0.000000e+00> : vector<64x16xf32>
    %58 = tpu.matmul %55, %57, %cst_53 {dimension_numbers = #tpu.dot_dimension_numbers<[1], [0], [0], [1], [0, 0, 1, 1], [], []>} : vector<64x16xbf16>, vector<16x16xbf16>, vector<64x16xf32> -> vector<64x16xf32>
    %59 = arith.addf %52, %58 : vector<64x16xf32>
    %c2_54 = arith.constant 2 : index
    %c8_55 = arith.constant 8 : index
    %c0_56 = arith.constant 0 : index
    %60 = vector.load %arg7[%c2_54, %c8_55, %c0_56] : memref<10x24x16xf32, #tpu.memory_space<vmem>>, vector<8x8x16xf32>
    %61 = vector.shape_cast %60 : vector<8x8x16xf32> to vector<64x16xf32>
    %62 = arith.truncf %61 : vector<64x16xf32> to vector<64x16xbf16>
    %c7_57 = arith.constant 7 : index
    %c0_58 = arith.constant 0 : index
    %c0_59 = arith.constant 0 : index
    %63 = vector.load %arg3[%c7_57, %c0_58, %c0_59] : memref<9x16x16xbf16, #tpu.memory_space<vmem>>, vector<1x16x16xbf16>
    %64 = vector.shape_cast %63 : vector<1x16x16xbf16> to vector<16x16xbf16>
    %cst_60 = arith.constant dense<0.000000e+00> : vector<64x16xf32>
    %65 = tpu.matmul %62, %64, %cst_60 {dimension_numbers = #tpu.dot_dimension_numbers<[1], [0], [0], [1], [0, 0, 1, 1], [], []>} : vector<64x16xbf16>, vector<16x16xbf16>, vector<64x16xf32> -> vector<64x16xf32>
    %66 = arith.addf %59, %65 : vector<64x16xf32>
    %c2_61 = arith.constant 2 : index
    %c9_62 = arith.constant 9 : index
    %c0_63 = arith.constant 0 : index
    %67 = vector.load %arg7[%c2_61, %c9_62, %c0_63] : memref<10x24x16xf32, #tpu.memory_space<vmem>>, vector<8x8x16xf32>
    %68 = vector.shape_cast %67 : vector<8x8x16xf32> to vector<64x16xf32>
    %69 = arith.truncf %68 : vector<64x16xf32> to vector<64x16xbf16>
    %c8_64 = arith.constant 8 : index
    %c0_65 = arith.constant 0 : index
    %c0_66 = arith.constant 0 : index
    %70 = vector.load %arg3[%c8_64, %c0_65, %c0_66] : memref<9x16x16xbf16, #tpu.memory_space<vmem>>, vector<1x16x16xbf16>
    %71 = vector.shape_cast %70 : vector<1x16x16xbf16> to vector<16x16xbf16>
    %cst_67 = arith.constant dense<0.000000e+00> : vector<64x16xf32>
    %72 = tpu.matmul %69, %71, %cst_67 {dimension_numbers = #tpu.dot_dimension_numbers<[1], [0], [0], [1], [0, 0, 1, 1], [], []>} : vector<64x16xbf16>, vector<16x16xbf16>, vector<64x16xf32> -> vector<64x16xf32>
    %73 = arith.addf %66, %72 : vector<64x16xf32>
    %c0_68 = arith.constant 0 : index
    %c0_69 = arith.constant 0 : index
    %74 = vector.load %arg4[%c0_68, %c0_69] : memref<1x16xf32, #tpu.memory_space<vmem>>, vector<1x16xf32>
    %75 = vector.broadcast %74 : vector<1x16xf32> to vector<64x16xf32>
    %76 = arith.addf %73, %75 : vector<64x16xf32>
    %cst_70 = arith.constant 0.000000e+00 : f32
    %77 = vector.broadcast %cst_70 : f32 to vector<64x16xf32>
    %78 = arith.maximumf %76, %77 : vector<64x16xf32>
    %c0_71 = arith.constant 0 : index
    %c0_72 = arith.constant 0 : index
    %c0_73 = arith.constant 0 : index
    %c0_74 = arith.constant 0 : index
    %79 = vector.load %arg5[%c0_71, %c0_72, %c0_73, %c0_74] : memref<1x8x8x16xbf16, #tpu.memory_space<vmem>>, vector<1x8x8x16xbf16>
    %80 = vector.shape_cast %79 : vector<1x8x8x16xbf16> to vector<8x8x16xbf16>
    %81 = vector.shape_cast %80 : vector<8x8x16xbf16> to vector<64x16xbf16>
    %82 = arith.extf %81 : vector<64x16xbf16> to vector<64x16xf32>
    %83 = arith.addf %78, %82 : vector<64x16xf32>
    %84 = arith.truncf %83 : vector<64x16xf32> to vector<64x16xbf16>
    %c0_75 = arith.constant 0 : index
    %c0_76 = arith.constant 0 : index
    %c0_77 = arith.constant 0 : index
    %85 = vector.load %arg6[%c0_75, %c0_76, %c0_77] : memref<1x64x16xbf16, #tpu.memory_space<vmem>>, vector<1x64x16xbf16>
    %86 = vector.shape_cast %85 : vector<1x64x16xbf16> to vector<64x16xbf16>
    %87 = vector.shape_cast %84 : vector<64x16xbf16> to vector<1x64x16xbf16>
    tpu.vector_store %arg6[%c0_75, %c0_76, %c0_77], %87 {strides = array<i32>} : memref<1x64x16xbf16, #tpu.memory_space<vmem>>, vector<1x64x16xbf16>,
    return
  }
  func.func @transform_0(%arg0: i32) -> (i32, i32, i32, i32) {
    %c0_i32 = arith.constant 0 : i32
    %c0_i32_0 = arith.constant 0 : i32
    %c0_i32_1 = arith.constant 0 : i32
    %c0_i32_2 = arith.constant 0 : i32
    return %arg0, %c0_i32, %c0_i32_0, %c0_i32_1 : i32, i32, i32, i32
  }
  func.func @transform_1(%arg0: i32) -> (i32, i32, i32, i32) {
    %c0_i32 = arith.constant 0 : i32
    %c0_i32_0 = arith.constant 0 : i32
    %c0_i32_1 = arith.constant 0 : i32
    %c0_i32_2 = arith.constant 0 : i32
    return %arg0, %c0_i32, %c0_i32_0, %c0_i32_1 : i32, i32, i32, i32
  }
  func.func @transform_2(%arg0: i32) -> (i32, i32, i32) {
    %c0_i32 = arith.constant 0 : i32
    %c0_i32_0 = arith.constant 0 : i32
    %c0_i32_1 = arith.constant 0 : i32
    %c0_i32_2 = arith.constant 0 : i32
    return %c0_i32, %c0_i32_0, %c0_i32_1 : i32, i32, i32
  }
  func.func @transform_3(%arg0: i32) -> (i32, i32) {
    %c0_i32 = arith.constant 0 : i32
    %c0_i32_0 = arith.constant 0 : i32
    %c0_i32_1 = arith.constant 0 : i32
    return %c0_i32, %c0_i32_0 : i32, i32
  }
  func.func @transform_4(%arg0: i32) -> (i32, i32, i32, i32) {
    %c0_i32 = arith.constant 0 : i32
    %c0_i32_0 = arith.constant 0 : i32
    %c0_i32_1 = arith.constant 0 : i32
    %c0_i32_2 = arith.constant 0 : i32
    return %arg0, %c0_i32, %c0_i32_0, %c0_i32_1 : i32, i32, i32, i32
  }
  func.func @transform_5(%arg0: i32) -> (i32, i32, i32) {
    %c0_i32 = arith.constant 0 : i32
    %c0_i32_0 = arith.constant 0 : i32
    %c0_i32_1 = arith.constant 0 : i32
    return %arg0, %c0_i32, %c0_i32_0 : i32, i32, i32
  }
}

module attributes {stable_mosaic.version = 11 : i64} {
  func.func @_mm_kernel(%arg0: i32, %arg1: memref<64x16xbf16, #tpu.memory_space<vmem>>, %arg2: memref<16x32xbf16, #tpu.memory_space<vmem>>, %arg3: memref<1x32xf32, #tpu.memory_space<vmem>>, %arg4: memref<64x32xbf16, #tpu.memory_space<vmem>>) attributes {dimension_semantics = [#tpu.dimension_semantics<parallel>], iteration_bounds = array<i64: 2>, scalar_prefetch = 0 : i64, scratch_operands = 0 : i64, tpu.core_type = #tpu.core_type<tc>, window_params = [{transform_indices = @transform_0, window_bounds = array<i64: 64, 16>}, {pipeline_mode = #tpu.pipeline_mode<synchronous>, transform_indices = @transform_1, window_bounds = array<i64: 16, 32>}, {pipeline_mode = #tpu.pipeline_mode<synchronous>, transform_indices = @transform_2, window_bounds = array<i64: 1, 32>}, {transform_indices = @transform_3, window_bounds = array<i64: 64, 32>}]} {
    %c0 = arith.constant 0 : index
    %c0_0 = arith.constant 0 : index
    %0 = vector.load %arg1[%c0, %c0_0] : memref<64x16xbf16, #tpu.memory_space<vmem>>, vector<64x16xbf16>
    %c0_1 = arith.constant 0 : index
    %c0_2 = arith.constant 0 : index
    %1 = vector.load %arg2[%c0_1, %c0_2] : memref<16x32xbf16, #tpu.memory_space<vmem>>, vector<16x32xbf16>
    %cst = arith.constant dense<0.000000e+00> : vector<64x32xf32>
    %2 = tpu.matmul %0, %1, %cst {dimension_numbers = #tpu.dot_dimension_numbers<[1], [0], [0], [1], [0, 0, 1, 1], [], []>} : vector<64x16xbf16>, vector<16x32xbf16>, vector<64x32xf32> -> vector<64x32xf32>
    %c0_3 = arith.constant 0 : index
    %c0_4 = arith.constant 0 : index
    %3 = vector.load %arg3[%c0_3, %c0_4] : memref<1x32xf32, #tpu.memory_space<vmem>>, vector<1x32xf32>
    %4 = vector.broadcast %3 : vector<1x32xf32> to vector<64x32xf32>
    %5 = arith.addf %2, %4 : vector<64x32xf32>
    %6 = arith.truncf %5 : vector<64x32xf32> to vector<64x32xbf16>
    %c0_5 = arith.constant 0 : index
    %c0_6 = arith.constant 0 : index
    %7 = vector.load %arg4[%c0_5, %c0_6] : memref<64x32xbf16, #tpu.memory_space<vmem>>, vector<64x32xbf16>
    tpu.vector_store %arg4[%c0_5, %c0_6], %6 {strides = array<i32>} : memref<64x32xbf16, #tpu.memory_space<vmem>>, vector<64x32xbf16>,
    return
  }
  func.func @transform_0(%arg0: i32) -> (i32, i32) {
    %c0_i32 = arith.constant 0 : i32
    %c0_i32_0 = arith.constant 0 : i32
    return %arg0, %c0_i32 : i32, i32
  }
  func.func @transform_1(%arg0: i32) -> (i32, i32) {
    %c0_i32 = arith.constant 0 : i32
    %c0_i32_0 = arith.constant 0 : i32
    %c0_i32_1 = arith.constant 0 : i32
    return %c0_i32, %c0_i32_0 : i32, i32
  }
  func.func @transform_2(%arg0: i32) -> (i32, i32) {
    %c0_i32 = arith.constant 0 : i32
    %c0_i32_0 = arith.constant 0 : i32
    %c0_i32_1 = arith.constant 0 : i32
    return %c0_i32, %c0_i32_0 : i32, i32
  }
  func.func @transform_3(%arg0: i32) -> (i32, i32) {
    %c0_i32 = arith.constant 0 : i32
    %c0_i32_0 = arith.constant 0 : i32
    return %arg0, %c0_i32 : i32, i32
  }
}

module attributes {stable_mosaic.version = 11 : i64} {
  func.func @_att_kernel(%arg0: i32, %arg1: memref<256x8xbf16, #tpu.memory_space<vmem>>, %arg2: memref<256x8xbf16, #tpu.memory_space<vmem>>, %arg3: memref<8x4xbf16, #tpu.memory_space<vmem>>, %arg4: memref<1x4xf32, #tpu.memory_space<vmem>>, %arg5: memref<8x4xbf16, #tpu.memory_space<vmem>>, %arg6: memref<1x4xf32, #tpu.memory_space<vmem>>, %arg7: memref<4x1xbf16, #tpu.memory_space<vmem>>, %arg8: memref<1x1xf32, #tpu.memory_space<vmem>>, %arg9: memref<256x8xbf16, #tpu.memory_space<vmem>>) attributes {dimension_semantics = [#tpu.dimension_semantics<parallel>], iteration_bounds = array<i64: 2>, scalar_prefetch = 0 : i64, scratch_operands = 0 : i64, tpu.core_type = #tpu.core_type<tc>, window_params = [{transform_indices = @transform_0, window_bounds = array<i64: 256, 8>}, {transform_indices = @transform_1, window_bounds = array<i64: 256, 8>}, {pipeline_mode = #tpu.pipeline_mode<synchronous>, transform_indices = @transform_2, window_bounds = array<i64: 8, 4>}, {pipeline_mode = #tpu.pipeline_mode<synchronous>, transform_indices = @transform_3, window_bounds = array<i64: 1, 4>}, {pipeline_mode = #tpu.pipeline_mode<synchronous>, transform_indices = @transform_4, window_bounds = array<i64: 8, 4>}, {pipeline_mode = #tpu.pipeline_mode<synchronous>, transform_indices = @transform_5, window_bounds = array<i64: 1, 4>}, {pipeline_mode = #tpu.pipeline_mode<synchronous>, transform_indices = @transform_6, window_bounds = array<i64: 4, 1>}, {pipeline_mode = #tpu.pipeline_mode<synchronous>, transform_indices = @transform_7, window_bounds = array<i64: 1, 1>}, {transform_indices = @transform_8, window_bounds = array<i64: 256, 8>}]} {
    %c0 = arith.constant 0 : index
    %c0_0 = arith.constant 0 : index
    %0 = vector.load %arg1[%c0, %c0_0] : memref<256x8xbf16, #tpu.memory_space<vmem>>, vector<256x8xbf16>
    %c0_1 = arith.constant 0 : index
    %c0_2 = arith.constant 0 : index
    %1 = vector.load %arg3[%c0_1, %c0_2] : memref<8x4xbf16, #tpu.memory_space<vmem>>, vector<8x4xbf16>
    %cst = arith.constant dense<0.000000e+00> : vector<256x4xf32>
    %2 = tpu.matmul %0, %1, %cst {dimension_numbers = #tpu.dot_dimension_numbers<[1], [0], [0], [1], [0, 0, 1, 1], [], []>} : vector<256x8xbf16>, vector<8x4xbf16>, vector<256x4xf32> -> vector<256x4xf32>
    %c0_3 = arith.constant 0 : index
    %c0_4 = arith.constant 0 : index
    %3 = vector.load %arg4[%c0_3, %c0_4] : memref<1x4xf32, #tpu.memory_space<vmem>>, vector<1x4xf32>
    %4 = vector.broadcast %3 : vector<1x4xf32> to vector<256x4xf32>
    %5 = arith.addf %2, %4 : vector<256x4xf32>
    %c0_5 = arith.constant 0 : index
    %c0_6 = arith.constant 0 : index
    %6 = vector.load %arg2[%c0_5, %c0_6] : memref<256x8xbf16, #tpu.memory_space<vmem>>, vector<256x8xbf16>
    %c0_7 = arith.constant 0 : index
    %c0_8 = arith.constant 0 : index
    %7 = vector.load %arg5[%c0_7, %c0_8] : memref<8x4xbf16, #tpu.memory_space<vmem>>, vector<8x4xbf16>
    %cst_9 = arith.constant dense<0.000000e+00> : vector<256x4xf32>
    %8 = tpu.matmul %6, %7, %cst_9 {dimension_numbers = #tpu.dot_dimension_numbers<[1], [0], [0], [1], [0, 0, 1, 1], [], []>} : vector<256x8xbf16>, vector<8x4xbf16>, vector<256x4xf32> -> vector<256x4xf32>
    %c0_10 = arith.constant 0 : index
    %c0_11 = arith.constant 0 : index
    %9 = vector.load %arg6[%c0_10, %c0_11] : memref<1x4xf32, #tpu.memory_space<vmem>>, vector<1x4xf32>
    %10 = vector.broadcast %9 : vector<1x4xf32> to vector<256x4xf32>
    %11 = arith.addf %8, %10 : vector<256x4xf32>
    %12 = arith.addf %5, %11 : vector<256x4xf32>
    %cst_12 = arith.constant 0.000000e+00 : f32
    %13 = vector.broadcast %cst_12 : f32 to vector<256x4xf32>
    %14 = arith.maximumf %12, %13 : vector<256x4xf32>
    %15 = arith.truncf %14 : vector<256x4xf32> to vector<256x4xbf16>
    %c0_13 = arith.constant 0 : index
    %c0_14 = arith.constant 0 : index
    %16 = vector.load %arg7[%c0_13, %c0_14] : memref<4x1xbf16, #tpu.memory_space<vmem>>, vector<4x1xbf16>
    %cst_15 = arith.constant dense<0.000000e+00> : vector<256x1xf32>
    %17 = tpu.matmul %15, %16, %cst_15 {dimension_numbers = #tpu.dot_dimension_numbers<[1], [0], [0], [1], [0, 0, 1, 1], [], []>} : vector<256x4xbf16>, vector<4x1xbf16>, vector<256x1xf32> -> vector<256x1xf32>
    %c0_16 = arith.constant 0 : index
    %c0_17 = arith.constant 0 : index
    %18 = vector.load %arg8[%c0_16, %c0_17] : memref<1x1xf32, #tpu.memory_space<vmem>>, vector<1x1xf32>
    %19 = vector.broadcast %18 : vector<1x1xf32> to vector<256x1xf32>
    %20 = arith.addf %17, %19 : vector<256x1xf32>
    %21 = arith.negf %20 : vector<256x1xf32>
    %22 = math.exp %21 : vector<256x1xf32>
    %cst_18 = arith.constant 1.000000e+00 : f32
    %23 = vector.broadcast %cst_18 : f32 to vector<256x1xf32>
    %24 = arith.addf %23, %22 : vector<256x1xf32>
    %25 = arith.divf %23, %24 : vector<256x1xf32>
    %c0_19 = arith.constant 0 : index
    %c0_20 = arith.constant 0 : index
    %26 = vector.load %arg2[%c0_19, %c0_20] : memref<256x8xbf16, #tpu.memory_space<vmem>>, vector<256x8xbf16>
    %27 = arith.extf %26 : vector<256x8xbf16> to vector<256x8xf32>
    %28 = vector.broadcast %25 : vector<256x1xf32> to vector<256x8xf32>
    %29 = arith.mulf %27, %28 : vector<256x8xf32>
    %30 = arith.truncf %29 : vector<256x8xf32> to vector<256x8xbf16>
    %c0_21 = arith.constant 0 : index
    %c0_22 = arith.constant 0 : index
    %31 = vector.load %arg9[%c0_21, %c0_22] : memref<256x8xbf16, #tpu.memory_space<vmem>>, vector<256x8xbf16>
    tpu.vector_store %arg9[%c0_21, %c0_22], %30 {strides = array<i32>} : memref<256x8xbf16, #tpu.memory_space<vmem>>, vector<256x8xbf16>,
    return
  }
  func.func @transform_0(%arg0: i32) -> (i32, i32) {
    %c0_i32 = arith.constant 0 : i32
    %c0_i32_0 = arith.constant 0 : i32
    return %arg0, %c0_i32 : i32, i32
  }
  func.func @transform_1(%arg0: i32) -> (i32, i32) {
    %c0_i32 = arith.constant 0 : i32
    %c0_i32_0 = arith.constant 0 : i32
    return %arg0, %c0_i32 : i32, i32
  }
  func.func @transform_2(%arg0: i32) -> (i32, i32) {
    %c0_i32 = arith.constant 0 : i32
    %c0_i32_0 = arith.constant 0 : i32
    %c0_i32_1 = arith.constant 0 : i32
    return %c0_i32, %c0_i32_0 : i32, i32
  }
  func.func @transform_3(%arg0: i32) -> (i32, i32) {
    %c0_i32 = arith.constant 0 : i32
    %c0_i32_0 = arith.constant 0 : i32
    %c0_i32_1 = arith.constant 0 : i32
    return %c0_i32, %c0_i32_0 : i32, i32
  }
  func.func @transform_4(%arg0: i32) -> (i32, i32) {
    %c0_i32 = arith.constant 0 : i32
    %c0_i32_0 = arith.constant 0 : i32
    %c0_i32_1 = arith.constant 0 : i32
    return %c0_i32, %c0_i32_0 : i32, i32
  }
  func.func @transform_5(%arg0: i32) -> (i32, i32) {
    %c0_i32 = arith.constant 0 : i32
    %c0_i32_0 = arith.constant 0 : i32
    %c0_i32_1 = arith.constant 0 : i32
    return %c0_i32, %c0_i32_0 : i32, i32
  }
  func.func @transform_6(%arg0: i32) -> (i32, i32) {
    %c0_i32 = arith.constant 0 : i32
    %c0_i32_0 = arith.constant 0 : i32
    %c0_i32_1 = arith.constant 0 : i32
    return %c0_i32, %c0_i32_0 : i32, i32
  }
  func.func @transform_7(%arg0: i32) -> (i32, i32) {
    %c0_i32 = arith.constant 0 : i32
    %c0_i32_0 = arith.constant 0 : i32
    %c0_i32_1 = arith.constant 0 : i32
    return %c0_i32, %c0_i32_0 : i32, i32
  }
  func.func @transform_8(%arg0: i32) -> (i32, i32) {
    %c0_i32 = arith.constant 0 : i32
    %c0_i32_0 = arith.constant 0 : i32
    return %arg0, %c0_i32 : i32, i32
  }
}

module attributes {stable_mosaic.version = 11 : i64} {
  func.func @_mm_kernel(%arg0: i32, %arg1: memref<256x16xbf16, #tpu.memory_space<vmem>>, %arg2: memref<16x8xbf16, #tpu.memory_space<vmem>>, %arg3: memref<1x8xf32, #tpu.memory_space<vmem>>, %arg4: memref<256x8xbf16, #tpu.memory_space<vmem>>) attributes {dimension_semantics = [#tpu.dimension_semantics<parallel>], iteration_bounds = array<i64: 2>, scalar_prefetch = 0 : i64, scratch_operands = 0 : i64, tpu.core_type = #tpu.core_type<tc>, window_params = [{transform_indices = @transform_0, window_bounds = array<i64: 256, 16>}, {pipeline_mode = #tpu.pipeline_mode<synchronous>, transform_indices = @transform_1, window_bounds = array<i64: 16, 8>}, {pipeline_mode = #tpu.pipeline_mode<synchronous>, transform_indices = @transform_2, window_bounds = array<i64: 1, 8>}, {transform_indices = @transform_3, window_bounds = array<i64: 256, 8>}]} {
    %c0 = arith.constant 0 : index
    %c0_0 = arith.constant 0 : index
    %0 = vector.load %arg1[%c0, %c0_0] : memref<256x16xbf16, #tpu.memory_space<vmem>>, vector<256x16xbf16>
    %c0_1 = arith.constant 0 : index
    %c0_2 = arith.constant 0 : index
    %1 = vector.load %arg2[%c0_1, %c0_2] : memref<16x8xbf16, #tpu.memory_space<vmem>>, vector<16x8xbf16>
    %cst = arith.constant dense<0.000000e+00> : vector<256x8xf32>
    %2 = tpu.matmul %0, %1, %cst {dimension_numbers = #tpu.dot_dimension_numbers<[1], [0], [0], [1], [0, 0, 1, 1], [], []>} : vector<256x16xbf16>, vector<16x8xbf16>, vector<256x8xf32> -> vector<256x8xf32>
    %c0_3 = arith.constant 0 : index
    %c0_4 = arith.constant 0 : index
    %3 = vector.load %arg3[%c0_3, %c0_4] : memref<1x8xf32, #tpu.memory_space<vmem>>, vector<1x8xf32>
    %4 = vector.broadcast %3 : vector<1x8xf32> to vector<256x8xf32>
    %5 = arith.addf %2, %4 : vector<256x8xf32>
    %6 = arith.truncf %5 : vector<256x8xf32> to vector<256x8xbf16>
    %c0_5 = arith.constant 0 : index
    %c0_6 = arith.constant 0 : index
    %7 = vector.load %arg4[%c0_5, %c0_6] : memref<256x8xbf16, #tpu.memory_space<vmem>>, vector<256x8xbf16>
    tpu.vector_store %arg4[%c0_5, %c0_6], %6 {strides = array<i32>} : memref<256x8xbf16, #tpu.memory_space<vmem>>, vector<256x8xbf16>,
    return
  }
  func.func @transform_0(%arg0: i32) -> (i32, i32) {
    %c0_i32 = arith.constant 0 : i32
    %c0_i32_0 = arith.constant 0 : i32
    return %arg0, %c0_i32 : i32, i32
  }
  func.func @transform_1(%arg0: i32) -> (i32, i32) {
    %c0_i32 = arith.constant 0 : i32
    %c0_i32_0 = arith.constant 0 : i32
    %c0_i32_1 = arith.constant 0 : i32
    return %c0_i32, %c0_i32_0 : i32, i32
  }
  func.func @transform_2(%arg0: i32) -> (i32, i32) {
    %c0_i32 = arith.constant 0 : i32
    %c0_i32_0 = arith.constant 0 : i32
    %c0_i32_1 = arith.constant 0 : i32
    return %c0_i32, %c0_i32_0 : i32, i32
  }
  func.func @transform_3(%arg0: i32) -> (i32, i32) {
    %c0_i32 = arith.constant 0 : i32
    %c0_i32_0 = arith.constant 0 : i32
    return %arg0, %c0_i32 : i32, i32
  }
}

module attributes {stable_mosaic.version = 11 : i64} {
  func.func @_mm_kernel(%arg0: i32, %arg1: memref<256x8xbf16, #tpu.memory_space<vmem>>, %arg2: memref<8x3xbf16, #tpu.memory_space<vmem>>, %arg3: memref<1x3xf32, #tpu.memory_space<vmem>>, %arg4: memref<256x3xf32, #tpu.memory_space<vmem>>) attributes {dimension_semantics = [#tpu.dimension_semantics<parallel>], iteration_bounds = array<i64: 2>, scalar_prefetch = 0 : i64, scratch_operands = 0 : i64, tpu.core_type = #tpu.core_type<tc>, window_params = [{transform_indices = @transform_0, window_bounds = array<i64: 256, 8>}, {pipeline_mode = #tpu.pipeline_mode<synchronous>, transform_indices = @transform_1, window_bounds = array<i64: 8, 3>}, {pipeline_mode = #tpu.pipeline_mode<synchronous>, transform_indices = @transform_2, window_bounds = array<i64: 1, 3>}, {transform_indices = @transform_3, window_bounds = array<i64: 256, 3>}]} {
    %c0 = arith.constant 0 : index
    %c0_0 = arith.constant 0 : index
    %0 = vector.load %arg1[%c0, %c0_0] : memref<256x8xbf16, #tpu.memory_space<vmem>>, vector<256x8xbf16>
    %c0_1 = arith.constant 0 : index
    %c0_2 = arith.constant 0 : index
    %1 = vector.load %arg2[%c0_1, %c0_2] : memref<8x3xbf16, #tpu.memory_space<vmem>>, vector<8x3xbf16>
    %cst = arith.constant dense<0.000000e+00> : vector<256x3xf32>
    %2 = tpu.matmul %0, %1, %cst {dimension_numbers = #tpu.dot_dimension_numbers<[1], [0], [0], [1], [0, 0, 1, 1], [], []>} : vector<256x8xbf16>, vector<8x3xbf16>, vector<256x3xf32> -> vector<256x3xf32>
    %c0_3 = arith.constant 0 : index
    %c0_4 = arith.constant 0 : index
    %3 = vector.load %arg3[%c0_3, %c0_4] : memref<1x3xf32, #tpu.memory_space<vmem>>, vector<1x3xf32>
    %4 = vector.broadcast %3 : vector<1x3xf32> to vector<256x3xf32>
    %5 = arith.addf %2, %4 : vector<256x3xf32>
    %c0_5 = arith.constant 0 : index
    %c0_6 = arith.constant 0 : index
    %6 = vector.load %arg4[%c0_5, %c0_6] : memref<256x3xf32, #tpu.memory_space<vmem>>, vector<256x3xf32>
    tpu.vector_store %arg4[%c0_5, %c0_6], %5 {strides = array<i32>} : memref<256x3xf32, #tpu.memory_space<vmem>>, vector<256x3xf32>,
    return
  }
  func.func @transform_0(%arg0: i32) -> (i32, i32) {
    %c0_i32 = arith.constant 0 : i32
    %c0_i32_0 = arith.constant 0 : i32
    return %arg0, %c0_i32 : i32, i32
  }
  func.func @transform_1(%arg0: i32) -> (i32, i32) {
    %c0_i32 = arith.constant 0 : i32
    %c0_i32_0 = arith.constant 0 : i32
    %c0_i32_1 = arith.constant 0 : i32
    return %c0_i32, %c0_i32_0 : i32, i32
  }
  func.func @transform_2(%arg0: i32) -> (i32, i32) {
    %c0_i32 = arith.constant 0 : i32
    %c0_i32_0 = arith.constant 0 : i32
    %c0_i32_1 = arith.constant 0 : i32
    return %c0_i32, %c0_i32_0 : i32, i32
  }
  func.func @transform_3(%arg0: i32) -> (i32, i32) {
    %c0_i32 = arith.constant 0 : i32
    %c0_i32_0 = arith.constant 0 : i32
    return %arg0, %c0_i32 : i32, i32
  }
}

</mosaic_0001>

<bundles_post_ra>
// kernel: attrunet_fwd.24
= control target key start
LH: loop header
LB: loop body
LE: loop exit
PB: predicated region body
PF: predicated region fallthrough
CT: control target
= control target key end

     0   :  { %s941_s12 = smov 0   ;;  %s1105_s0 = inlined_call_operand.vmem [shape: bf16[512,4], index: 0, kind: input, shape index: {}]   ;;  %s1106_s1 = inlined_call_operand.vmem [shape: bf16[4,8], index: 1, kind: input, shape index: {}]   ;;  %s1107_s2 = inlined_call_operand.vmem [shape: f32[1,8], index: 2, kind: input, shape index: {}]   ;;  %s1108_s3 = inlined_call_operand.vmem [shape: bf16[512,8], index: 3, kind: output, shape index: {}]  }
   0x1 LB: > { %s726_s13 = sadd.s32 4294967295, %s919_s12   ;;  %p730_p0 = scmp.ge.s32.totalorder %s919_s12, 1  ;;  %s919_s12 = sphi %s941_s12, %s13_s12  }
   0x2   : > { %p138_p1 = scmp.lt.s32.totalorder %s919_s12, 3 }
   0x4   : > { %p139_p2 = pnand %p730_p0, %p138_p1 }
   0x5   : > { %v207_v0 = vld [vmem:[%s1106_s1] sm:$0x3] (!%p139_p2)  ;;  %vm344_vm0 = vcmask (!%p139_p2), 1041408   ;;  %s731_s16 = sshll.u32 (!%p139_p2), %s726_s13, 5  ;;  %vm295_vm1 = vcmask (!%p139_p2), 31744   ;;  %vm637_vm2 = vcmask (!%p139_p2), 60416  }
   0x6   : > { %142 = sbr.rel (%p139_p2) target bundleno = 263 (0x107), region = 32  ;;  %887 = vmatprep.subr.msk.bf16.mxu0 (!%p139_p2), %vm344_vm0, %v207_v0  ;;  %888 = vmatprep.subr.msk.bf16.mxu1 (!%p139_p2), %vm344_vm0, %v207_v0  ;;  %v346_v1 = vsel (!%p139_p2), %vm344_vm0, %v207_v0, 0  ;;  %p163_p3 = scmp.lt.s32.totalorder (!%p139_p2), %s731_s16, 63  ;;  %v997_v18 = vld [vmem:[%s1107_s2] ss:$0 sm:$0xff] (!%p139_p2) }
   0x7   : > { %852 = vmatpush3.bf16.msra.mxu0 (!%p139_p2), %v346_v1  ;;  %886 = vmatpush3.bf16.msra.mxu1 (!%p139_p2), %v346_v1 }
   0xd   : > { %s1110_s16 = smov (!%p163_p3, %s731_s16), 63 }
   0xe   : > { %s732_s17 = sshll.u32 %s1110_s16, 2 }
   0xf   : > { %s960_s20 = scalar_lea.vmem %s1105_s0, %s732_s17  ;;  %s1005_s25 = scalar_lea.vmem %s1108_s3, %s732_s17 }
  0x10   : > { %v897_v2 = vld [vmem:[%s960_s20] sm:$0xff]   ;;  %v899_v4 = vld [vmem:[%s960_s20 + $0x8] sm:$0xff]   ;;  %v901_v6 = vld [vmem:[%s960_s20 + $0x10] sm:$0xff]  }
  0x11   : > { %v898_v3 = vld [vmem:[%s960_s20 + $0x40] sm:$0xff]   ;;  %853 = vmatprep.mubr.msk.bf16.mxu0 %vm295_vm1, %v897_v2  ;;  %v900_v5 = vld [vmem:[%s960_s20 + $0x48] sm:$0xff]   ;;  %v902_v7 = vld [vmem:[%s960_s20 + $0x50] sm:$0xff]  }
  0x12   : > { %869 = vmatprep.mubr.msk.bf16.mxu1 %vm295_vm1, %v898_v3  ;;  %854 = vmatmul.mubr.msk.bf16.vlgmr.msra.gmra.mrb[0].mxu0 %vm295_vm1, %v899_v4  ;;  %v903_v8 = vld [vmem:[%s960_s20 + $0x18] sm:$0xff]   ;;  %v905_v10 = vld [vmem:[%s960_s20 + $0x20] sm:$0xff]   ;;  %v907_v12 = vld [vmem:[%s960_s20 + $0x28] sm:$0xff]  }
  0x13   : > { %870 = vmatmul.mubr.msk.bf16.vlgmr.msra.gmra.mrb[0].mxu1 %vm295_vm1, %v900_v5  ;;  %857 = vmatprep.mubr.msk.bf16.mxu0 %vm295_vm1, %v901_v6  ;;  %v904_v9 = vld [vmem:[%s960_s20 + $0x58] sm:$0xff]   ;;  %v906_v11 = vld [vmem:[%s960_s20 + $0x60] sm:$0xff]   ;;  %v908_v13 = vld [vmem:[%s960_s20 + $0x68] sm:$0xff]  }
  0x14   : > { %873 = vmatprep.mubr.msk.bf16.mxu1 %vm295_vm1, %v902_v7  ;;  %v909_v14 = vld [vmem:[%s960_s20 + $0x30] sm:$0xff]   ;;  %v911_v16 = vld [vmem:[%s960_s20 + $0x38] sm:$0xff]  }
  0x15   : > { %v910_v15 = vld [vmem:[%s960_s20 + $0x70] sm:$0xff]   ;;  %v912_v17 = vld [vmem:[%s960_s20 + $0x78] sm:$0xff]  }
  0x1a   : > { %858 = vmatmul.mubr.msk.bf16.gmra.mrb[4].mxu0 %vm295_vm1, %v903_v8 }
  0x1b   : > { %874 = vmatmul.mubr.msk.bf16.gmra.mrb[4].mxu1 %vm295_vm1, %v904_v9  ;;  %861 = vmatprep.mubr.msk.bf16.mxu0 %vm295_vm1, %v905_v10 }
  0x1c   : > { %877 = vmatprep.mubr.msk.bf16.mxu1 %vm295_vm1, %v906_v11 }
  0x22   : > { %862 = vmatmul.mubr.msk.bf16.gmra.mrb[8].mxu0 %vm295_vm1, %v907_v12 }
  0x23   : > { %878 = vmatmul.mubr.msk.bf16.gmra.mrb[8].mxu1 %vm295_vm1, %v908_v13  ;;  %865 = vmatprep.mubr.msk.bf16.mxu0 %vm295_vm1, %v909_v14 }
  0x24   : > { %881 = vmatprep.mubr.msk.bf16.mxu1 %vm295_vm1, %v910_v15 }
  0x2a   : > { %866 = vmatmul.mubr.msk.bf16.gmra.mrb[12].mxu0 %vm295_vm1, %v911_v16 }
  0x2b   : > { %882 = vmatmul.mubr.msk.bf16.gmra.mrb[12].mxu1 %vm295_vm1, %v912_v17 }
  0xe5   : > { %v855_v19 = vpop.f32.mrb[0].mxu0 }
  0xe6   : > { %v391_v20 = vadd.f32 %v855_v19, %v997_v18  ;;  %v871_v21 = vpop.f32.mrb[0].mxu1  ;;  %v382_v22 = vpop.f32.mrb[1].mxu0 }
  0xe7   : > { %v455_v23 = vadd.f32 %v871_v21, %v997_v18  ;;  %v383_v24 = vadd.f32 %v997_v18, %v382_v22  ;;  %v446_v25 = vpop.f32.mrb[1].mxu1  ;;  %v856_v26 = vpop.f32.mrb[2].mxu0 }
  0xe8   : > { %v804_v27 = vpack.c.bf16 %v391_v20, %v391_v20  ;;  %v447_v28 = vadd.f32 %v997_v18, %v446_v25  ;;  %v394_v29 = vadd.f32 %v856_v26, %v997_v18  ;;  %v872_v30 = vpop.f32.mrb[2].mxu1  ;;  %v385_v31 = vpop.f32.mrb[3].mxu0 }
  0xe9   : > { %v820_v32 = vpack.c.bf16 %v455_v23, %v455_v23  ;;  %v802_v33 = vpack.c.bf16 %v383_v24, %v383_v24  ;;  %v458_v34 = vadd.f32 %v872_v30, %v997_v18  ;;  %v386_v35 = vadd.f32 %v997_v18, %v385_v31  ;;  %v449_v36 = vpop.f32.mrb[3].mxu1 }
  0xea   : > { %640 = vst.msk [vmem:[%s1005_s25 + $0x8] sm:$0xf] %vm637_vm2, %v804_v27  ;;  %v818_v37 = vpack.c.bf16 %v447_v28, %v447_v28  ;;  %v805_v38 = vpack.c.bf16 %v394_v29, %v394_v29  ;;  %v450_v39 = vadd.f32 %v997_v18, %v449_v36 }
  0xeb   : > { %656 = vst.msk [vmem:[%s1005_s25 + $0x48] sm:$0xf] %vm637_vm2, %v820_v32  ;;  %638 = vst.msk [vmem:[%s1005_s25] sm:$0xf] %vm637_vm2, %v802_v33  ;;  %v821_v40 = vpack.c.bf16 %v458_v34, %v458_v34  ;;  %v803_v41 = vpack.c.bf16 %v386_v35, %v386_v35 }
  0xec   : > { %654 = vst.msk [vmem:[%s1005_s25 + $0x40] sm:$0xf] %vm637_vm2, %v818_v37  ;;  %641 = vst.msk [vmem:[%s1005_s25 + $0xc] sm:$0xf] %vm637_vm2, %v805_v38  ;;  %v819_v42 = vpack.c.bf16 %v450_v39, %v450_v39 }
  0xed   : > { %657 = vst.msk [vmem:[%s1005_s25 + $0x4c] sm:$0xf] %vm637_vm2, %v821_v40  ;;  %639 = vst.msk [vmem:[%s1005_s25 + $0x4] sm:$0xf] %vm637_vm2, %v803_v41  ;;  %v859_v43 = vpop.f32.mrb[4].mxu0 }
  0xee   : > { %655 = vst.msk [vmem:[%s1005_s25 + $0x44] sm:$0xf] %vm637_vm2, %v819_v42  ;;  %v407_v44 = vadd.f32 %v859_v43, %v997_v18  ;;  %v875_v45 = vpop.f32.mrb[4].mxu1  ;;  %v398_v46 = vpop.f32.mrb[5].mxu0 }
  0xef   : > { %v471_v47 = vadd.f32 %v875_v45, %v997_v18  ;;  %v399_v48 = vadd.f32 %v997_v18, %v398_v46  ;;  %v462_v49 = vpop.f32.mrb[5].mxu1  ;;  %v860_v50 = vpop.f32.mrb[6].mxu0 }
  0xf0   : > { %v808_v51 = vpack.c.bf16 %v407_v44, %v407_v44  ;;  %v463_v52 = vadd.f32 %v997_v18, %v462_v49  ;;  %v410_v53 = vadd.f32 %v860_v50, %v997_v18  ;;  %v876_v54 = vpop.f32.mrb[6].mxu1  ;;  %v401_v55 = vpop.f32.mrb[7].mxu0 }
  0xf1   : > { %v824_v56 = vpack.c.bf16 %v471_v47, %v471_v47  ;;  %v806_v57 = vpack.c.bf16 %v399_v48, %v399_v48  ;;  %v474_v58 = vadd.f32 %v876_v54, %v997_v18  ;;  %v402_v59 = vadd.f32 %v997_v18, %v401_v55  ;;  %v465_v60 = vpop.f32.mrb[7].mxu1 }
  0xf2   : > { %644 = vst.msk [vmem:[%s1005_s25 + $0x18] sm:$0xf] %vm637_vm2, %v808_v51  ;;  %v822_v61 = vpack.c.bf16 %v463_v52, %v463_v52  ;;  %v809_v62 = vpack.c.bf16 %v410_v53, %v410_v53  ;;  %v466_v63 = vadd.f32 %v997_v18, %v465_v60 }
  0xf3   : > { %660 = vst.msk [vmem:[%s1005_s25 + $0x58] sm:$0xf] %vm637_vm2, %v824_v56  ;;  %642 = vst.msk [vmem:[%s1005_s25 + $0x10] sm:$0xf] %vm637_vm2, %v806_v57  ;;  %v825_v0 = vpack.c.bf16 %v474_v58, %v474_v58  ;;  %v807_v1 = vpack.c.bf16 %v402_v59, %v402_v59 }
  0xf4   : > { %658 = vst.msk [vmem:[%s1005_s25 + $0x50] sm:$0xf] %vm637_vm2, %v822_v61  ;;  %645 = vst.msk [vmem:[%s1005_s25 + $0x1c] sm:$0xf] %vm637_vm2, %v809_v62  ;;  %v823_v2 = vpack.c.bf16 %v466_v63, %v466_v63 }
  0xf5   : > { %661 = vst.msk [vmem:[%s1005_s25 + $0x5c] sm:$0xf] %vm637_vm2, %v825_v0  ;;  %643 = vst.msk [vmem:[%s1005_s25 + $0x14] sm:$0xf] %vm637_vm2, %v807_v1  ;;  %v863_v3 = vpop.f32.mrb[8].mxu0 }
  0xf6   : > { %659 = vst.msk [vmem:[%s1005_s25 + $0x54] sm:$0xf] %vm637_vm2, %v823_v2  ;;  %v423_v4 = vadd.f32 %v863_v3, %v997_v18  ;;  %v879_v5 = vpop.f32.mrb[8].mxu1  ;;  %v414_v6 = vpop.f32.mrb[9].mxu0 }
  0xf7   : > { %v487_v7 = vadd.f32 %v879_v5, %v997_v18  ;;  %v415_v8 = vadd.f32 %v997_v18, %v414_v6  ;;  %v478_v9 = vpop.f32.mrb[9].mxu1  ;;  %v864_v10 = vpop.f32.mrb[10].mxu0 }
  0xf8   : > { %v812_v11 = vpack.c.bf16 %v423_v4, %v423_v4  ;;  %v479_v12 = vadd.f32 %v997_v18, %v478_v9  ;;  %v426_v13 = vadd.f32 %v864_v10, %v997_v18  ;;  %v880_v14 = vpop.f32.mrb[10].mxu1  ;;  %v417_v15 = vpop.f32.mrb[11].mxu0 }
  0xf9   : > { %v828_v16 = vpack.c.bf16 %v487_v7, %v487_v7  ;;  %v810_v17 = vpack.c.bf16 %v415_v8, %v415_v8  ;;  %v490_v19 = vadd.f32 %v880_v14, %v997_v18  ;;  %v418_v20 = vadd.f32 %v997_v18, %v417_v15  ;;  %v481_v21 = vpop.f32.mrb[11].mxu1 }
  0xfa   : > { %648 = vst.msk [vmem:[%s1005_s25 + $0x28] sm:$0xf] %vm637_vm2, %v812_v11  ;;  %v826_v22 = vpack.c.bf16 %v479_v12, %v479_v12  ;;  %v813_v23 = vpack.c.bf16 %v426_v13, %v426_v13  ;;  %v482_v24 = vadd.f32 %v997_v18, %v481_v21 }
  0xfb   : > { %664 = vst.msk [vmem:[%s1005_s25 + $0x68] sm:$0xf] %vm637_vm2, %v828_v16  ;;  %646 = vst.msk [vmem:[%s1005_s25 + $0x20] sm:$0xf] %vm637_vm2, %v810_v17  ;;  %v829_v25 = vpack.c.bf16 %v490_v19, %v490_v19  ;;  %v811_v26 = vpack.c.bf16 %v418_v20, %v418_v20 }
  0xfc   : > { %662 = vst.msk [vmem:[%s1005_s25 + $0x60] sm:$0xf] %vm637_vm2, %v826_v22  ;;  %649 = vst.msk [vmem:[%s1005_s25 + $0x2c] sm:$0xf] %vm637_vm2, %v813_v23  ;;  %v827_v27 = vpack.c.bf16 %v482_v24, %v482_v24 }
  0xfd   : > { %665 = vst.msk [vmem:[%s1005_s25 + $0x6c] sm:$0xf] %vm637_vm2, %v829_v25  ;;  %647 = vst.msk [vmem:[%s1005_s25 + $0x24] sm:$0xf] %vm637_vm2, %v811_v26  ;;  %v867_v28 = vpop.f32.mrb[12].mxu0 }
  0xfe   : > { %663 = vst.msk [vmem:[%s1005_s25 + $0x64] sm:$0xf] %vm637_vm2, %v827_v27  ;;  %v439_v29 = vadd.f32 %v867_v28, %v997_v18  ;;  %v883_v30 = vpop.f32.mrb[12].mxu1  ;;  %v430_v31 = vpop.f32.mrb[13].mxu0 }
  0xff   : > { %v503_v32 = vadd.f32 %v883_v30, %v997_v18  ;;  %v431_v33 = vadd.f32 %v997_v18, %v430_v31  ;;  %v494_v34 = vpop.f32.mrb[13].mxu1  ;;  %v868_v35 = vpop.f32.mrb[14].mxu0 }
 0x100   : > { %v816_v36 = vpack.c.bf16 %v439_v29, %v439_v29  ;;  %v495_v37 = vadd.f32 %v997_v18, %v494_v34  ;;  %v442_v38 = vadd.f32 %v868_v35, %v997_v18  ;;  %v884_v39 = vpop.f32.mrb[14].mxu1  ;;  %v433_v40 = vpop.f32.mrb[15].mxu0 }
 0x101   : > { %v832_v41 = vpack.c.bf16 %v503_v32, %v503_v32  ;;  %v814_v42 = vpack.c.bf16 %v431_v33, %v431_v33  ;;  %v506_v43 = vadd.f32 %v884_v39, %v997_v18  ;;  %v434_v44 = vadd.f32 %v997_v18, %v433_v40  ;;  %v497_v45 = vpop.f32.mrb[15].mxu1 }
 0x102   : > { %652 = vst.msk [vmem:[%s1005_s25 + $0x38] sm:$0xf] %vm637_vm2, %v816_v36  ;;  %v830_v46 = vpack.c.bf16 %v495_v37, %v495_v37  ;;  %v817_v47 = vpack.c.bf16 %v442_v38, %v442_v38  ;;  %v498_v48 = vadd.f32 %v997_v18, %v497_v45 }
 0x103   : > { %668 = vst.msk [vmem:[%s1005_s25 + $0x78] sm:$0xf] %vm637_vm2, %v832_v41  ;;  %650 = vst.msk [vmem:[%s1005_s25 + $0x30] sm:$0xf] %vm637_vm2, %v814_v42  ;;  %v833_v49 = vpack.c.bf16 %v506_v43, %v506_v43  ;;  %v815_v50 = vpack.c.bf16 %v434_v44, %v434_v44 }
 0x104   : > { %666 = vst.msk [vmem:[%s1005_s25 + $0x70] sm:$0xf] %vm637_vm2, %v830_v46  ;;  %653 = vst.msk [vmem:[%s1005_s25 + $0x3c] sm:$0xf] %vm637_vm2, %v817_v47  ;;  %v831_v51 = vpack.c.bf16 %v498_v48, %v498_v48 }
 0x105   : > { %669 = vst.msk [vmem:[%s1005_s25 + $0x7c] sm:$0xf] %vm637_vm2, %v833_v49  ;;  %651 = vst.msk [vmem:[%s1005_s25 + $0x34] sm:$0xf] %vm637_vm2, %v815_v50 }
 0x106   : > { %667 = vst.msk [vmem:[%s1005_s25 + $0x74] sm:$0xf] %vm637_vm2, %v831_v51 }
 0x107 PF: > { %s13_s12 = sadd.s32 1, %s919_s12  }
 0x108   : > { %p10_p4 = scmp.ge.s32.totalorder %s13_s12, 4  }
 0x10a   :  { %12 = sbr.rel (!%p10_p4) target bundleno = 1 (0x1), region = 62 }

// kernel: attrunet_fwd.30
= control target key start
LH: loop header
LB: loop body
LE: loop exit
PB: predicated region body
PF: predicated region fallthrough
CT: control target
= control target key end

     0   :  { %s4770_s18 = smov 0   ;;  %s5616_s0 = inlined_call_operand.vmem [shape: bf16[2,16,16,8], index: 0, kind: input, shape index: {}]   ;;  %s5617_s1 = inlined_call_operand.vmem [shape: bf16[2,16,16,8], index: 1, kind: input, shape index: {}]   ;;  %s5618_s2 = inlined_call_operand.vmem [shape: bf16[9,8,8], index: 2, kind: input, shape index: {}]   ;;  %s5619_s3 = inlined_call_operand.vmem [shape: f32[1,8], index: 3, kind: input, shape index: {}]   ;;  %s5620_s4 = inlined_call_operand.vmem [shape: bf16[2,16,16,8], index: 4, kind: input, shape index: {}]   ;;  %s5621_s5 = inlined_call_operand.vmem [shape: bf16[2,256,8], index: 5, kind: output, shape index: {}]  }
   0x1 LB: > { %s3522_s19 = sadd.s32 4294967295, %s4737_s18   ;;  %p3526_p0 = scmp.ge.s32.totalorder %s4737_s18, 1  ;;  %s4737_s18 = sphi %s4770_s18, %s15_s18  }
   0x2   : > { %p207_p1 = scmp.lt.s32.totalorder %s4737_s18, 3 }
   0x4   : > { %p208_p2 = pnand %p3526_p0, %p207_p1 }
   0x5   : > { %v3535_v0 = vld [vmem:[%s5618_s2 + $0x4] sm:$0xf] (!%p208_p2)  ;;  %vm679_vm0 = vcmask (!%p208_p2), 1043456   ;;  %v4784_v1 = vld [vmem:[%s5618_s2 + $0x10] sm:$0xf] (!%p208_p2)  ;;  %vm426_vm1 = vcmask (!%p208_p2), 64512  }
   0x6   : > { %211 = sbr.rel (%p208_p2) target bundleno = 561 (0x231), region = 40  ;;  %4712 = vmatprep.subr.msk.bf16.mxu1 (!%p208_p2), %vm679_vm0, %v3535_v0  ;;  %4716 = vmatprep.subr.msk.bf16.mxu0 (!%p208_p2), %vm679_vm0, %v4784_v1  ;;  %v681_v2 = vsel (!%p208_p2), %vm679_vm0, %v3535_v0, 0  ;;  %v4792_v3 = vsel (!%p208_p2), %vm679_vm0, %v4784_v1, 0  ;;  %p4796_p3 = scmp.lt.s32.totalorder (!%p208_p2), %s3522_s19, 1  ;;  %v4803_v4 = vld [vmem:[%s5618_s2] sm:$0xf] (!%p208_p2) }
   0x7   : > { %4149 = vmatpush3.bf16.msra.mxu1 (!%p208_p2), %v681_v2  ;;  %4285 = vmatpush3.bf16.msra.mxu0 (!%p208_p2), %v4792_v3  ;;  %v4739_v5 = vmov (!%p208_p2), 0.0   ;;  %v4953_v6 = vld [vmem:[%s5618_s2 + $0x14] sm:$0xf] (!%p208_p2)  ;;  %v4981_v9 = vsel (!%p208_p2), %vm679_vm0, %v4803_v4, 0  ;;  %vm3410_vm2 = vcmask (!%p208_p2), 60416  }
   0x8   : > { %428 = vst.msk [vmem:[#allocation2 + $0x8] sm:$0xff] (!%p208_p2), %vm426_vm1, %v4739_v5  ;;  %429 = vst.msk [vmem:[#allocation2 + $0x10] sm:$0xff] (!%p208_p2), %vm426_vm1, %v4739_v5  ;;  %4713 = vmatprep.subr.msk.bf16.mxu1 (!%p208_p2), %vm679_vm0, %v4803_v4  ;;  %4718 = vmatprep.subr.msk.bf16.mxu0 (!%p208_p2), %vm679_vm0, %v4953_v6 }
   0x9   : > { %427 = vst.msk [vmem:[#allocation2] sm:$0xff] (!%p208_p2), %vm426_vm1, %v4739_v5  ;;  %430 = vst.msk [vmem:[#allocation2 + $0x18] sm:$0xff] (!%p208_p2), %vm426_vm1, %v4739_v5 }
   0xa   : > { %431 = vst.msk [vmem:[#allocation2 + $0x20] sm:$0xff] (!%p208_p2), %vm426_vm1, %v4739_v5  ;;  %432 = vst.msk [vmem:[#allocation2 + $0x28] sm:$0xff] (!%p208_p2), %vm426_vm1, %v4739_v5 }
   0xb   : > { %433 = vst.msk [vmem:[#allocation2 + $0x30] sm:$0xff] (!%p208_p2), %vm426_vm1, %v4739_v5  ;;  %434 = vst.msk [vmem:[#allocation2 + $0x38] sm:$0xff] (!%p208_p2), %vm426_vm1, %v4739_v5 }
   0xc   : > { %435 = vst.msk [vmem:[#allocation2 + $0x40] sm:$0xff] (!%p208_p2), %vm426_vm1, %v4739_v5  ;;  %436 = vst.msk [vmem:[#allocation2 + $0x48] sm:$0xff] (!%p208_p2), %vm426_vm1, %v4739_v5 }
   0xd   : > { %437 = vst.msk [vmem:[#allocation2 + $0x50] sm:$0xff] %vm426_vm1, %v4739_v5  ;;  %438 = vst.msk [vmem:[#allocation2 + $0x58] sm:$0xff] %vm426_vm1, %v4739_v5  ;;  %s5624_s19 = smov (!%p4796_p3, %s3522_s19), 1 }
   0xe   : > { %439 = vst.msk [vmem:[#allocation2 + $0x60] sm:$0xff] %vm426_vm1, %v4739_v5  ;;  %440 = vst.msk [vmem:[#allocation2 + $0x68] sm:$0xff] %vm426_vm1, %v4739_v5  ;;  %s4963_s29 = sshll.u32 %s5624_s19, 7 }
   0xf   : > { %441 = vst.msk [vmem:[#allocation2 + $0x70] sm:$0xff] %vm426_vm1, %v4739_v5  ;;  %442 = vst.msk [vmem:[#allocation2 + $0x78] sm:$0xff] %vm426_vm1, %v4739_v5  ;;  %s4969_s7 = scalar_lea.vmem %s5616_s0, %s4963_s29  ;;  %s4975_s10 = scalar_lea.vmem %s5617_s1, %s4963_s29  ;;  %v581_v18 = vld [vmem:[#allocation2 + $0x8] sm:$0xff]  ;;  %v582_v19 = vld [vmem:[#allocation2 + $0x10] sm:$0xff] }
  0x10   : > { %443 = vst.msk [vmem:[#allocation2 + $0x80] sm:$0xff] %vm426_vm1, %v4739_v5  ;;  %444 = vst.msk [vmem:[#allocation2 + $0x88] sm:$0xff] %vm426_vm1, %v4739_v5  ;;  %v3759_v7 = vld [vmem:[%s4969_s7] sm:$0xff]   ;;  %v3950_v10 = vld [vmem:[%s4969_s7 + $0x8] sm:$0xff]   ;;  %v613_v25 = vpack.c.bf16 %v582_v19, %v581_v18  ;;  %s5480_s24 = scalar_lea.vmem %s5620_s4, %s4963_s29  ;;  %s5497_s30 = scalar_lea.vmem %s5621_s5, %s4963_s29 }
  0x11   : > { %445 = vst.msk [vmem:[#allocation2 + $0x90] sm:$0xff] %vm426_vm1, %v4739_v5  ;;  %446 = vst.msk [vmem:[#allocation2 + $0x98] sm:$0xff] %vm426_vm1, %v4739_v5  ;;  %v3823_v8 = vld [vmem:[%s4975_s10] sm:$0xff]   ;;  %v3760_v11 = vunpack.c.l.bf16 %v3759_v7  ;;  %v3761_v12 = vunpack.c.h.bf16 %v3759_v7  ;;  %v3965_v15 = vld [vmem:[%s4975_s10 + $0x8] sm:$0xff]   ;;  %v3764_v20 = vunpack.c.l.bf16 %v3950_v10  ;;  %v3765_v21 = vunpack.c.h.bf16 %v3950_v10 }
  0x12   : > { %447 = vst.msk [vmem:[#allocation2 + $0xa0] sm:$0xff] %vm426_vm1, %v4739_v5  ;;  %448 = vst.msk [vmem:[#allocation2 + $0xa8] sm:$0xff] %vm426_vm1, %v4739_v5  ;;  %v3824_v13 = vunpack.c.l.bf16 %v3823_v8  ;;  %v3825_v14 = vunpack.c.h.bf16 %v3823_v8  ;;  %v3951_v16 = vld [vmem:[%s4969_s7 + $0x10] sm:$0xff]   ;;  %v3828_v22 = vunpack.c.l.bf16 %v3965_v15  ;;  %v3829_v23 = vunpack.c.h.bf16 %v3965_v15  ;;  %v3952_v24 = vld [vmem:[%s4969_s7 + $0x18] sm:$0xff]   ;;  %4150 = vmatprep.mubr.msk.bf16.mxu1 %vm426_vm1, %v613_v25 }
  0x13   : > { %449 = vst.msk [vmem:[#allocation2 + $0xb0] sm:$0xff] %vm426_vm1, %v4739_v5  ;;  %450 = vst.msk [vmem:[#allocation2 + $0xb8] sm:$0xff] %vm426_vm1, %v4739_v5  ;;  %v3966_v17 = vld [vmem:[%s4975_s10 + $0x10] sm:$0xff]   ;;  %v3768_v28 = vunpack.c.l.bf16 %v3951_v16  ;;  %v3967_v29 = vld [vmem:[%s4975_s10 + $0x18] sm:$0xff]   ;;  %v3769_v33 = vunpack.c.h.bf16 %v3951_v16  ;;  %v3772_v37 = vunpack.c.l.bf16 %v3952_v24  ;;  %v3773_v38 = vunpack.c.h.bf16 %v3952_v24 }
  0x14   : > { %451 = vst.msk [vmem:[#allocation2 + $0xc0] sm:$0xff] %vm426_vm1, %v4739_v5  ;;  %452 = vst.msk [vmem:[#allocation2 + $0xc8] sm:$0xff] %vm426_vm1, %v4739_v5  ;;  %v394_v26 = vadd.f32 %v3824_v13, %v3760_v11  ;;  %v395_v27 = vadd.f32 %v3825_v14, %v3761_v12  ;;  %v3953_v30 = vld [vmem:[%s4969_s7 + $0x20] sm:$0xff]   ;;  %v396_v31 = vadd.f32 %v3828_v22, %v3764_v20  ;;  %v3832_v34 = vunpack.c.l.bf16 %v3966_v17  ;;  %v3954_v40 = vld [vmem:[%s4969_s7 + $0x28] sm:$0xff]  }
  0x15   : > { %453 = vst.msk [vmem:[#allocation2 + $0xd0] sm:$0xff] %vm426_vm1, %v4739_v5  ;;  %454 = vst.msk [vmem:[#allocation2 + $0xd8] sm:$0xff] %vm426_vm1, %v4739_v5  ;;  %v397_v32 = vadd.f32 %v3829_v23, %v3765_v21  ;;  %v3968_v35 = vld [vmem:[%s4975_s10 + $0x20] sm:$0xff]   ;;  %v3833_v36 = vunpack.c.h.bf16 %v3966_v17  ;;  %v3836_v39 = vunpack.c.l.bf16 %v3967_v29  ;;  %v3969_v41 = vld [vmem:[%s4975_s10 + $0x28] sm:$0xff]   ;;  %v3837_v43 = vunpack.c.h.bf16 %v3967_v29 }
  0x16   : > { %455 = vst.msk [vmem:[#allocation2 + $0xe0] sm:$0xff] %vm426_vm1, %v4739_v5  ;;  %456 = vst.msk [vmem:[#allocation2 + $0xe8] sm:$0xff] %vm426_vm1, %v4739_v5  ;;  %v398_v42 = vadd.f32 %v3832_v34, %v3768_v28  ;;  %v3776_v44 = vunpack.c.l.bf16 %v3953_v30  ;;  %v3777_v45 = vunpack.c.h.bf16 %v3953_v30  ;;  %v3955_v46 = vld [vmem:[%s4969_s7 + $0x30] sm:$0xff]   ;;  %v3840_v49 = vunpack.c.l.bf16 %v3968_v35  ;;  %v3956_v56 = vld [vmem:[%s4969_s7 + $0x38] sm:$0xff]  }
  0x17   : > { %457 = vst.msk [vmem:[#allocation2 + $0xf0] sm:$0xff] %vm426_vm1, %v4739_v5  ;;  %458 = vst.msk [vmem:[#allocation2 + $0xf8] sm:$0xff] %vm426_vm1, %v4739_v5  ;;  %v399_v47 = vadd.f32 %v3833_v36, %v3769_v33  ;;  %v400_v48 = vadd.f32 %v3836_v39, %v3772_v37  ;;  %v3841_v50 = vunpack.c.h.bf16 %v3968_v35  ;;  %v3970_v51 = vld [vmem:[%s4975_s10 + $0x30] sm:$0xff]   ;;  %v401_v52 = vadd.f32 %v3837_v43, %v3773_v38  ;;  %v3971_v57 = vld [vmem:[%s4975_s10 + $0x38] sm:$0xff]  }
  0x18   : > { %459 = vst.msk [vmem:[#allocation2 + $0x100] sm:$0xff] %vm426_vm1, %v4739_v5  ;;  %460 = vst.msk [vmem:[#allocation2 + $0x108] sm:$0xff] %vm426_vm1, %v4739_v5  ;;  %v3780_v53 = vunpack.c.l.bf16 %v3954_v40  ;;  %v3781_v54 = vunpack.c.h.bf16 %v3954_v40  ;;  %v3844_v55 = vunpack.c.l.bf16 %v3969_v41  ;;  %v402_v58 = vadd.f32 %v3840_v49, %v3776_v44  ;;  %v3957_v62 = vld [vmem:[%s4969_s7 + $0x40] sm:$0xff]   ;;  %v3958_v12 = vld [vmem:[%s4969_s7 + $0x48] sm:$0xff]  }
  0x19   : > { %461 = vst.msk [vmem:[#allocation2 + $0x110] sm:$0xff] %vm426_vm1, %v4739_v5  ;;  %462 = vst.msk [vmem:[#allocation2 + $0x118] sm:$0xff] %vm426_vm1, %v4739_v5  ;;  %v403_v59 = vadd.f32 %v3841_v50, %v3777_v45  ;;  %v3845_v60 = vunpack.c.h.bf16 %v3969_v41  ;;  %v3784_v61 = vunpack.c.l.bf16 %v3955_v46  ;;  %v3785_v0 = vunpack.c.h.bf16 %v3955_v46  ;;  %v3973_v19 = vld [vmem:[%s4975_s10 + $0x48] sm:$0xff]   ;;  %v3960_v43 = vld [vmem:[%s4969_s7 + $0x58] sm:$0xff]  }
  0x1a   : > { %463 = vst.msk [vmem:[#allocation2 + $0x120] sm:$0xff] %vm426_vm1, %v4739_v5  ;;  %464 = vst.msk [vmem:[#allocation2 + $0x128] sm:$0xff] %vm426_vm1, %v4739_v5  ;;  %v404_v63 = vadd.f32 %v3844_v55, %v3780_v53  ;;  %v3848_v2 = vunpack.c.l.bf16 %v3970_v51  ;;  %v3849_v4 = vunpack.c.h.bf16 %v3970_v51  ;;  %v3788_v8 = vunpack.c.l.bf16 %v3956_v56  ;;  %v5033_v36 = vld [vmem:[%s5618_s2 + $0x8] sm:$0xf]  ;;  %v3961_v49 = vld [vmem:[%s4969_s7 + $0x60] sm:$0xff]  }
  0x1b   : > { %465 = vst.msk [vmem:[#allocation2 + $0x130] sm:$0xff] %vm426_vm1, %v4739_v5  ;;  %466 = vst.msk [vmem:[#allocation2 + $0x138] sm:$0xff] %vm426_vm1, %v4739_v5  ;;  %v405_v7 = vadd.f32 %v3845_v60, %v3781_v54  ;;  %v3789_v10 = vunpack.c.h.bf16 %v3956_v56  ;;  %v3852_v11 = vunpack.c.l.bf16 %v3971_v57  ;;  %v3853_v17 = vunpack.c.h.bf16 %v3971_v57  ;;  %v3976_v54 = vld [vmem:[%s4975_s10 + $0x60] sm:$0xff]  }
  0x1c   : > { %467 = vst.msk [vmem:[#allocation2 + $0x140] sm:$0xff] %vm426_vm1, %v4739_v5  ;;  %468 = vst.msk [vmem:[#allocation2 + $0x148] sm:$0xff] %vm426_vm1, %v4739_v5  ;;  %v406_v15 = vadd.f32 %v3848_v2, %v3784_v61  ;;  %v407_v16 = vadd.f32 %v3849_v4, %v3785_v0  ;;  %v3792_v18 = vunpack.c.l.bf16 %v3957_v62  ;;  %v3793_v24 = vunpack.c.h.bf16 %v3957_v62  ;;  %v3962_v62 = vld [vmem:[%s4969_s7 + $0x68] sm:$0xff]  }
  0x1d   : > { %469 = vst.msk [vmem:[#allocation2 + $0x150] sm:$0xff] %vm426_vm1, %v4739_v5  ;;  %470 = vst.msk [vmem:[#allocation2 + $0x158] sm:$0xff] %vm426_vm1, %v4739_v5  ;;  %v408_v23 = vadd.f32 %v3852_v11, %v3788_v8  ;;  %v2037_v28 = vsel %vm679_vm0, %v4953_v6, 0  ;;  %v409_v29 = vadd.f32 %v3853_v17, %v3789_v10  ;;  %v5028_v6 = vld [vmem:[%s5618_s2 + $0x18] sm:$0xf]  ;;  %v3796_v34 = vunpack.c.l.bf16 %v3958_v12  ;;  %v3963_v11 = vld [vmem:[%s4969_s7 + $0x70] sm:$0xff]  }
  0x1e   : > { %471 = vst.msk [vmem:[#allocation2 + $0x160] sm:$0xff] %vm426_vm1, %v4739_v5  ;;  %472 = vst.msk [vmem:[#allocation2 + $0x168] sm:$0xff] %vm426_vm1, %v4739_v5  ;;  %v3797_v35 = vunpack.c.h.bf16 %v3958_v12  ;;  %v3860_v40 = vunpack.c.l.bf16 %v3973_v19  ;;  %v3861_v41 = vunpack.c.h.bf16 %v3973_v19  ;;  %v3808_v0 = vunpack.c.l.bf16 %v3961_v49  ;;  %v3978_v12 = vld [vmem:[%s4975_s10 + $0x70] sm:$0xff]  }
  0x1f   : > { %473 = vst.msk [vmem:[#allocation2 + $0x170] sm:$0xff] %vm426_vm1, %v4739_v5  ;;  %474 = vst.msk [vmem:[#allocation2 + $0x178] sm:$0xff] %vm426_vm1, %v4739_v5  ;;  %v3809_v2 = vunpack.c.h.bf16 %v3961_v49  ;;  %v3872_v4 = vunpack.c.l.bf16 %v3976_v54  ;;  %v3873_v10 = vunpack.c.h.bf16 %v3976_v54 }
  0x20   : > { %475 = vst.msk [vmem:[#allocation2 + $0x180] sm:$0xff] %vm426_vm1, %v4739_v5  ;;  %476 = vst.msk [vmem:[#allocation2 + $0x188] sm:$0xff] %vm426_vm1, %v4739_v5  ;;  %v413_v53 = vadd.f32 %v3861_v41, %v3797_v35 }
  0x21   : > { %477 = vst.msk [vmem:[#allocation2 + $0x190] sm:$0xff] %vm426_vm1, %v4739_v5  ;;  %478 = vst.msk [vmem:[#allocation2 + $0x198] sm:$0xff] %vm426_vm1, %v4739_v5 }
  0x22   : > { %479 = vst.msk [vmem:[#allocation2 + $0x1a0] sm:$0xff] %vm426_vm1, %v4739_v5  ;;  %480 = vst.msk [vmem:[#allocation2 + $0x1a8] sm:$0xff] %vm426_vm1, %v4739_v5 }
  0x23   : > { %481 = vst.msk [vmem:[#allocation2 + $0x1b0] sm:$0xff] %vm426_vm1, %v4739_v5  ;;  %482 = vst.msk [vmem:[#allocation2 + $0x1b8] sm:$0xff] %vm426_vm1, %v4739_v5 }
  0x24   : > { %483 = vst.msk [vmem:[#allocation2 + $0x1c0] sm:$0xff] %vm426_vm1, %v4739_v5  ;;  %484 = vst.msk [vmem:[#allocation2 + $0x1c8] sm:$0xff] %vm426_vm1, %v4739_v5 }
  0x25   : > { %485 = vst.msk [vmem:[#allocation2 + $0x1d0] sm:$0xff] %vm426_vm1, %v4739_v5  ;;  %486 = vst.msk [vmem:[#allocation2 + $0x1d8] sm:$0xff] %vm426_vm1, %v4739_v5 }
  0x26   : > { %487 = vst.msk [vmem:[#allocation2 + $0x1e0] sm:$0xff] %vm426_vm1, %v4739_v5  ;;  %488 = vst.msk [vmem:[#allocation2 + $0x1e8] sm:$0xff] %vm426_vm1, %v4739_v5 }
  0x27   : > { %489 = vst.msk [vmem:[#allocation2 + $0x1f0] sm:$0xff] %vm426_vm1, %v4739_v5  ;;  %490 = vst.msk [vmem:[#allocation2 + $0x1f8] sm:$0xff] %vm426_vm1, %v4739_v5 }
  0x28   : > { %491 = vst.msk [vmem:[#allocation2 + $0x200] sm:$0xff] %vm426_vm1, %v4739_v5  ;;  %492 = vst.msk [vmem:[#allocation2 + $0x208] sm:$0xff] %vm426_vm1, %v4739_v5 }
  0x29   : > { %493 = vst.msk [vmem:[#allocation2 + $0x210] sm:$0xff] %vm426_vm1, %v4739_v5  ;;  %494 = vst.msk [vmem:[#allocation2 + $0x218] sm:$0xff] %vm426_vm1, %v4739_v5 }
  0x2a   : > { %495 = vst.msk [vmem:[#allocation2 + $0x220] sm:$0xff] %vm426_vm1, %v4739_v5  ;;  %496 = vst.msk [vmem:[#allocation2 + $0x228] sm:$0xff] %vm426_vm1, %v4739_v5 }
  0x2b   : > { %497 = vst.msk [vmem:[#allocation2 + $0x230] sm:$0xff] %vm426_vm1, %v4739_v5  ;;  %498 = vst.msk [vmem:[#allocation2 + $0x238] sm:$0xff] %vm426_vm1, %v4739_v5  ;;  %v3972_v5 = vld [vmem:[%s4975_s10 + $0x40] sm:$0xff]  }
  0x2c   : > { %500 = vst.msk [vmem:[#allocation2 + $0x28] sm:$0xff] %vm426_vm1, %v394_v26  ;;  %501 = vst.msk [vmem:[#allocation2 + $0x30] sm:$0xff] %vm426_vm1, %v395_v27  ;;  %v3856_v25 = vunpack.c.l.bf16 %v3972_v5  ;;  %v3959_v26 = vld [vmem:[%s4969_s7 + $0x50] sm:$0xff]   ;;  %v3857_v30 = vunpack.c.h.bf16 %v3972_v5  ;;  %v3977_v5 = vld [vmem:[%s4975_s10 + $0x68] sm:$0xff]  }
  0x2d   : > { %502 = vst.msk [vmem:[#allocation2 + $0x48] sm:$0xff] %vm426_vm1, %v396_v31  ;;  %503 = vst.msk [vmem:[#allocation2 + $0x50] sm:$0xff] %vm426_vm1, %v397_v32  ;;  %v3974_v31 = vld [vmem:[%s4975_s10 + $0x50] sm:$0xff]   ;;  %v3801_v45 = vunpack.c.h.bf16 %v3959_v26  ;;  %v3876_v17 = vunpack.c.l.bf16 %v3977_v5 }
  0x2e   : > { %504 = vst.msk [vmem:[#allocation2 + $0x68] sm:$0xff] %vm426_vm1, %v398_v42  ;;  %505 = vst.msk [vmem:[#allocation2 + $0x70] sm:$0xff] %vm426_vm1, %v399_v47  ;;  %v410_v33 = vadd.f32 %v3856_v25, %v3792_v18  ;;  %v411_v39 = vadd.f32 %v3857_v30, %v3793_v24  ;;  %v3800_v42 = vunpack.c.l.bf16 %v3959_v26  ;;  %v3864_v46 = vunpack.c.l.bf16 %v3974_v31 }
  0x2f   : > { %506 = vst.msk [vmem:[#allocation2 + $0x88] sm:$0xff] %vm426_vm1, %v400_v48  ;;  %507 = vst.msk [vmem:[#allocation2 + $0x90] sm:$0xff] %vm426_vm1, %v401_v52  ;;  %v3865_v47 = vunpack.c.h.bf16 %v3974_v31  ;;  %v3975_v48 = vld [vmem:[%s4975_s10 + $0x58] sm:$0xff]   ;;  %v412_v52 = vadd.f32 %v3860_v40, %v3796_v34 }
  0x30   : > { %508 = vst.msk [vmem:[#allocation2 + $0xa8] sm:$0xff] %vm426_vm1, %v402_v58  ;;  %509 = vst.msk [vmem:[#allocation2 + $0xb0] sm:$0xff] %vm426_vm1, %v403_v59  ;;  %v414_v56 = vadd.f32 %v3864_v46, %v3800_v42  ;;  %v3804_v58 = vunpack.c.l.bf16 %v3960_v43  ;;  %v3805_v59 = vunpack.c.h.bf16 %v3960_v43  ;;  %v3868_v60 = vunpack.c.l.bf16 %v3975_v48  ;;  %v3964_v31 = vld [vmem:[%s4969_s7 + $0x78] sm:$0xff]  }
  0x31   : > { %510 = vst.msk [vmem:[#allocation2 + $0xc8] sm:$0xff] %vm426_vm1, %v404_v63  ;;  %511 = vst.msk [vmem:[#allocation2 + $0xd0] sm:$0xff] %vm426_vm1, %v405_v7  ;;  %v415_v57 = vadd.f32 %v3865_v47, %v3801_v45  ;;  %v3869_v61 = vunpack.c.h.bf16 %v3975_v48  ;;  %v3979_v34 = vld [vmem:[%s4975_s10 + $0x78] sm:$0xff]  }
  0x32   : > { %512 = vst.msk [vmem:[#allocation2 + $0xe8] sm:$0xff] %vm426_vm1, %v406_v15  ;;  %513 = vst.msk [vmem:[#allocation2 + $0xf0] sm:$0xff] %vm426_vm1, %v407_v16  ;;  %v416_v7 = vadd.f32 %v3868_v60, %v3804_v58  ;;  %v419_v15 = vadd.f32 %v3873_v10, %v3809_v2  ;;  %v3813_v16 = vunpack.c.h.bf16 %v3962_v62  ;;  %v3885_v40 = vunpack.c.h.bf16 %v3979_v34 }
  0x33   : > { %v583_v13 = vld [vmem:[#allocation2 + $0x28] sm:$0xff]  ;;  %v584_v14 = vld [vmem:[#allocation2 + $0x30] sm:$0xff]  ;;  %514 = vst.msk [vmem:[#allocation2 + $0x108] sm:$0xff] %vm426_vm1, %v408_v23  ;;  %515 = vst.msk [vmem:[#allocation2 + $0x110] sm:$0xff] %vm426_vm1, %v409_v29  ;;  %v417_v8 = vadd.f32 %v3869_v61, %v3805_v59  ;;  %v3880_v23 = vunpack.c.l.bf16 %v3978_v12 }
  0x34   : > { %v614_v20 = vpack.c.bf16 %v584_v14, %v583_v13  ;;  %v1646_v21 = vld [vmem:[#allocation2 + $0x48] sm:$0xff]  ;;  %v1647_v22 = vld [vmem:[#allocation2 + $0x50] sm:$0xff]  ;;  %516 = vst.msk [vmem:[#allocation2 + $0x128] sm:$0xff] %vm426_vm1, %v410_v33  ;;  %517 = vst.msk [vmem:[#allocation2 + $0x130] sm:$0xff] %vm426_vm1, %v411_v39  ;;  %v418_v13 = vadd.f32 %v3872_v4, %v3808_v0  ;;  %v3812_v14 = vunpack.c.l.bf16 %v3962_v62  ;;  %v3884_v39 = vunpack.c.l.bf16 %v3979_v34 }
  0x35   : > { %v5015_v27 = vpack.c.bf16 %v1647_v22, %v1646_v21  ;;  %v587_v32 = vld [vmem:[#allocation2 + $0x68] sm:$0xff]  ;;  %v588_v37 = vld [vmem:[#allocation2 + $0x70] sm:$0xff]  ;;  %518 = vst.msk [vmem:[#allocation2 + $0x148] sm:$0xff] %vm426_vm1, %v412_v52  ;;  %519 = vst.msk [vmem:[#allocation2 + $0x150] sm:$0xff] %vm426_vm1, %v413_v53  ;;  %v3816_v21 = vunpack.c.l.bf16 %v3963_v11  ;;  %v3817_v22 = vunpack.c.h.bf16 %v3963_v11  ;;  %v2332_v62 = vsel %vm679_vm0, %v5028_v6, 0 }
  0x36   : > { %4151 = vmatmul.mubr.msk.bf16.vlgmr.msra.gmra.mrb[0].mxu1 %vm426_vm1, %v614_v20  ;;  %4286 = vmatprep.mubr.msk.bf16.mxu0 %vm426_vm1, %v614_v20  ;;  %v1650_v38 = vld [vmem:[#allocation2 + $0x88] sm:$0xff]  ;;  %v1651_v44 = vld [vmem:[#allocation2 + $0x90] sm:$0xff]  ;;  %520 = vst.msk [vmem:[#allocation2 + $0x168] sm:$0xff] %vm426_vm1, %v414_v56  ;;  %521 = vst.msk [vmem:[#allocation2 + $0x170] sm:$0xff] %vm426_vm1, %v415_v57  ;;  %v3877_v20 = vunpack.c.h.bf16 %v3977_v5  ;;  %v420_v26 = vadd.f32 %v3876_v17, %v3812_v14 }
  0x37   : > { %4183 = vmatpush3.bf16.msra.mxu1 %v4981_v9  ;;  %4287 = vmatmul.mubr.msk.bf16.vlgmr.msra.gmra.mrb[0].mxu0 %vm426_vm1, %v5015_v27  ;;  %v5042_v9 = vpack.c.bf16 %v588_v37, %v587_v32  ;;  %v591_v50 = vld [vmem:[#allocation2 + $0xa8] sm:$0xff]  ;;  %v592_v51 = vld [vmem:[#allocation2 + $0xb0] sm:$0xff]  ;;  %v5053_v55 = vpack.c.bf16 %v1651_v44, %v1650_v38  ;;  %522 = vst.msk [vmem:[#allocation2 + $0x188] sm:$0xff] %vm426_vm1, %v416_v7  ;;  %523 = vst.msk [vmem:[#allocation2 + $0x190] sm:$0xff] %vm426_vm1, %v417_v8  ;;  %v3820_v37 = vunpack.c.l.bf16 %v3964_v31 }
  0x38   : > { %4319 = vmatpush3.bf16.msra.mxu0 %v2037_v28  ;;  %4154 = vmatprep.mubr.msk.bf16.mxu1 %vm426_vm1, %v5015_v27  ;;  %v5060_v63 = vpack.c.bf16 %v592_v51, %v591_v50  ;;  %v1654_v18 = vld [vmem:[#allocation2 + $0xc8] sm:$0xff]  ;;  %v1655_v19 = vld [vmem:[#allocation2 + $0xd0] sm:$0xff]  ;;  %524 = vst.msk [vmem:[#allocation2 + $0x1a8] sm:$0xff] %vm426_vm1, %v418_v13  ;;  %525 = vst.msk [vmem:[#allocation2 + $0x1b0] sm:$0xff] %vm426_vm1, %v419_v15  ;;  %v3881_v28 = vunpack.c.h.bf16 %v3978_v12  ;;  %v421_v29 = vadd.f32 %v3877_v20, %v3813_v16 }
  0x39   : > { %4719 = vmatprep.subr.msk.bf16.mxu0 %vm679_vm0, %v5028_v6  ;;  %4290 = vmatprep.mubr.msk.bf16.mxu0 %vm426_vm1, %v5042_v9  ;;  %v595_v24 = vld [vmem:[#allocation2 + $0xe8] sm:$0xff]  ;;  %v596_v25 = vld [vmem:[#allocation2 + $0xf0] sm:$0xff]  ;;  %v422_v30 = vadd.f32 %v3880_v23, %v3816_v21  ;;  %v5080_v32 = vpack.c.bf16 %v1655_v19, %v1654_v18  ;;  %526 = vst.msk [vmem:[#allocation2 + $0x1c8] sm:$0xff] %vm426_vm1, %v420_v26  ;;  %v3821_v38 = vunpack.c.h.bf16 %v3964_v31  ;;  %v5126_v0 = vld [vmem:[%s5618_s2 + $0x1c] sm:$0xf] }
  0x3a   : > { %4714 = vmatprep.subr.msk.bf16.mxu1 %vm679_vm0, %v5033_v36  ;;  %v423_v33 = vadd.f32 %v3881_v28, %v3817_v22  ;;  %v5084_v35 = vpack.c.bf16 %v596_v25, %v595_v24  ;;  %527 = vst.msk [vmem:[#allocation2 + $0x1d0] sm:$0xff] %vm426_vm1, %v421_v29  ;;  %v1658_v41 = vld [vmem:[#allocation2 + $0x108] sm:$0xff]  ;;  %v1659_v42 = vld [vmem:[#allocation2 + $0x110] sm:$0xff]  ;;  %v424_v43 = vadd.f32 %v3884_v39, %v3820_v37 }
  0x3b   : > { %528 = vst.msk [vmem:[#allocation2 + $0x1e8] sm:$0xff] %vm426_vm1, %v422_v30  ;;  %v425_v44 = vadd.f32 %v3885_v40, %v3821_v38  ;;  %v1938_v45 = vld [vmem:[#allocation2 + $0x29] sm:$0xff]  ;;  %v1939_v46 = vld [vmem:[#allocation2 + $0x31] sm:$0xff]  ;;  %v5099_v47 = vpack.c.bf16 %v1659_v42, %v1658_v41 }
  0x3c   : > { %529 = vst.msk [vmem:[#allocation2 + $0x1f0] sm:$0xff] %vm426_vm1, %v423_v33  ;;  %530 = vst.msk [vmem:[#allocation2 + $0x208] sm:$0xff] %vm426_vm1, %v424_v43  ;;  %v5101_v48 = vpack.c.bf16 %v1939_v46, %v1938_v45  ;;  %v599_v49 = vld [vmem:[#allocation2 + $0x128] sm:$0xff]  ;;  %v600_v50 = vld [vmem:[#allocation2 + $0x130] sm:$0xff] }
  0x3d   : > { %531 = vst.msk [vmem:[#allocation2 + $0x210] sm:$0xff] %vm426_vm1, %v425_v44  ;;  %v1940_v51 = vld [vmem:[#allocation2 + $0x49] sm:$0xff]  ;;  %v1941_v52 = vld [vmem:[#allocation2 + $0x51] sm:$0xff]  ;;  %v5111_v58 = vpack.c.bf16 %v600_v50, %v599_v49 }
  0x3e   : > { %4155 = vmatmul.mubr.msk.bf16.gmra.mrb[4].mxu1 %vm426_vm1, %v5042_v9  ;;  %v601_v53 = vld [vmem:[#allocation2 + $0x148] sm:$0xff]  ;;  %v602_v54 = vld [vmem:[#allocation2 + $0x150] sm:$0xff]  ;;  %v5113_v59 = vpack.c.bf16 %v1941_v52, %v1940_v51 }
  0x3f   : > { %4291 = vmatmul.mubr.msk.bf16.gmra.mrb[4].mxu0 %vm426_vm1, %v5053_v55  ;;  %4158 = vmatprep.mubr.msk.bf16.mxu1 %vm426_vm1, %v5053_v55  ;;  %v1942_v56 = vld [vmem:[#allocation2 + $0x69] sm:$0xff]  ;;  %v1943_v57 = vld [vmem:[#allocation2 + $0x71] sm:$0xff]  ;;  %v5115_v60 = vpack.c.bf16 %v602_v54, %v601_v53 }
  0x40   : > { %4294 = vmatprep.mubr.msk.bf16.mxu0 %vm426_vm1, %v5060_v63  ;;  %v5117_v61 = vpack.c.bf16 %v1943_v57, %v1942_v56  ;;  %v603_v2 = vld [vmem:[#allocation2 + $0x168] sm:$0xff]  ;;  %v604_v4 = vld [vmem:[#allocation2 + $0x170] sm:$0xff]  ;;  %v1155_v57 = vsel %vm679_vm0, %v5033_v36, 0 }
  0x41   : > { %v1944_v5 = vld [vmem:[#allocation2 + $0x89] sm:$0xff]  ;;  %v1945_v6 = vld [vmem:[#allocation2 + $0x91] sm:$0xff]  ;;  %v5136_v12 = vpack.c.bf16 %v604_v4, %v603_v2 }
  0x42   : > { %v605_v7 = vld [vmem:[#allocation2 + $0x188] sm:$0xff]  ;;  %v606_v8 = vld [vmem:[#allocation2 + $0x190] sm:$0xff]  ;;  %v5138_v13 = vpack.c.bf16 %v1945_v6, %v1944_v5 }
  0x43   : > { %v1946_v10 = vld [vmem:[#allocation2 + $0xa9] sm:$0xff]  ;;  %v1947_v11 = vld [vmem:[#allocation2 + $0xb1] sm:$0xff]  ;;  %v5140_v14 = vpack.c.bf16 %v606_v8, %v605_v7 }
  0x44   : > { %v5142_v15 = vpack.c.bf16 %v1947_v11, %v1946_v10  ;;  %v607_v16 = vld [vmem:[#allocation2 + $0x1a8] sm:$0xff]  ;;  %v608_v17 = vld [vmem:[#allocation2 + $0x1b0] sm:$0xff] }
  0x45   : > { %v1948_v18 = vld [vmem:[#allocation2 + $0xc9] sm:$0xff]  ;;  %v1949_v19 = vld [vmem:[#allocation2 + $0xd1] sm:$0xff]  ;;  %v5152_v24 = vpack.c.bf16 %v608_v17, %v607_v16 }
  0x46   : > { %4159 = vmatmul.mubr.msk.bf16.gmra.mrb[8].mxu1 %vm426_vm1, %v5060_v63  ;;  %v609_v20 = vld [vmem:[#allocation2 + $0x1c8] sm:$0xff]  ;;  %v610_v21 = vld [vmem:[#allocation2 + $0x1d0] sm:$0xff]  ;;  %v5154_v25 = vpack.c.bf16 %v1949_v19, %v1948_v18 }
  0x47   : > { %4295 = vmatmul.mubr.msk.bf16.gmra.mrb[8].mxu0 %vm426_vm1, %v5080_v32  ;;  %4162 = vmatprep.mubr.msk.bf16.mxu1 %vm426_vm1, %v5080_v32  ;;  %v1950_v22 = vld [vmem:[#allocation2 + $0xe9] sm:$0xff]  ;;  %v1951_v23 = vld [vmem:[#allocation2 + $0xf1] sm:$0xff]  ;;  %v5156_v26 = vpack.c.bf16 %v610_v21, %v609_v20 }
  0x48   : > { %4298 = vmatprep.mubr.msk.bf16.mxu0 %vm426_vm1, %v5084_v35  ;;  %v5158_v28 = vpack.c.bf16 %v1951_v23, %v1950_v22  ;;  %v611_v29 = vld [vmem:[#allocation2 + $0x1e8] sm:$0xff]  ;;  %v612_v30 = vld [vmem:[#allocation2 + $0x1f0] sm:$0xff] }
  0x49   : > { %v532_v31 = vld [vmem:[#allocation2 + $0x7] sm:$0xff]  ;;  %v1953_v34 = vld [vmem:[#allocation2 + $0x111] sm:$0xff]  ;;  %v5168_v40 = vpack.c.bf16 %v612_v30, %v611_v29 }
  0x4a   : > { %v1952_v33 = vld [vmem:[#allocation2 + $0x109] sm:$0xff]  ;;  %v1955_v39 = vld [vmem:[#allocation2 + $0x131] sm:$0xff] }
  0x4b   : > { %v533_v37 = vld [vmem:[#allocation2 + $0xf] sm:$0xff]  ;;  %v5170_v41 = vpack.c.bf16 %v1953_v34, %v1952_v33  ;;  %v534_v44 = vld [vmem:[#allocation2 + $0x27] sm:$0xff] }
  0x4c   : > { %v1954_v38 = vld [vmem:[#allocation2 + $0x129] sm:$0xff]  ;;  %v564_v42 = vpack.c.bf16 %v533_v37, %v532_v31  ;;  %v1957_v49 = vld [vmem:[#allocation2 + $0x151] sm:$0xff] }
  0x4d   : > { %v5172_v43 = vpack.c.bf16 %v1955_v39, %v1954_v38  ;;  %v535_v45 = vld [vmem:[#allocation2 + $0x2f] sm:$0xff]  ;;  %v536_v50 = vld [vmem:[#allocation2 + $0x47] sm:$0xff] }
  0x4e   : > { %4163 = vmatmul.mubr.msk.bf16.gmra.mrb[12].mxu1 %vm426_vm1, %v5084_v35  ;;  %v1956_v46 = vld [vmem:[#allocation2 + $0x149] sm:$0xff]  ;;  %v1959_v53 = vld [vmem:[#allocation2 + $0x171] sm:$0xff]  ;;  %v5181_v54 = vpack.c.bf16 %v535_v45, %v534_v44 }
  0x4f   : > { %4299 = vmatmul.mubr.msk.bf16.gmra.mrb[12].mxu0 %vm426_vm1, %v5099_v47  ;;  %4166 = vmatprep.mubr.msk.bf16.mxu1 %vm426_vm1, %v5099_v47  ;;  %v537_v51 = vld [vmem:[#allocation2 + $0x4f] sm:$0xff]  ;;  %v5183_v56 = vpack.c.bf16 %v1957_v49, %v1956_v46  ;;  %v538_v5 = vld [vmem:[#allocation2 + $0x67] sm:$0xff] }
  0x50   : > { %4320 = vmatprep.mubr.msk.bf16.mxu0 %vm426_vm1, %v5101_v48  ;;  %v1958_v52 = vld [vmem:[#allocation2 + $0x169] sm:$0xff]  ;;  %v1961_v8 = vld [vmem:[#allocation2 + $0x191] sm:$0xff] }
  0x51   : > { %v5189_v2 = vpack.c.bf16 %v1959_v53, %v1958_v52  ;;  %v5196_v4 = vld [vmem:[%s5618_s2 + $0xc] sm:$0xf]  ;;  %v1963_v16 = vld [vmem:[#allocation2 + $0x1b1] sm:$0xff] }
  0x52   : > { %v539_v6 = vld [vmem:[#allocation2 + $0x6f] sm:$0xff]  ;;  %v540_v7 = vld [vmem:[#allocation2 + $0x87] sm:$0xff] }
  0x53   : > { %v1960_v36 = vld [vmem:[#allocation2 + $0x189] sm:$0xff]  ;;  %v5206_v17 = vpack.c.bf16 %v539_v6, %v538_v5  ;;  %v1965_v30 = vld [vmem:[#allocation2 + $0x1d1] sm:$0xff] }
  0x54   : > { %v541_v10 = vld [vmem:[#allocation2 + $0x8f] sm:$0xff]  ;;  %v5208_v18 = vpack.c.bf16 %v1961_v8, %v1960_v36  ;;  %v542_v21 = vld [vmem:[#allocation2 + $0xa7] sm:$0xff] }
  0x55   : > { %v1962_v11 = vld [vmem:[#allocation2 + $0x1a9] sm:$0xff]  ;;  %v5210_v19 = vpack.c.bf16 %v541_v10, %v540_v7  ;;  %v1967_v34 = vld [vmem:[#allocation2 + $0x1f1] sm:$0xff] }
  0x56   : > { %4167 = vmatmul.mubr.msk.bf16.gmra.mrb[16].mxu1 %vm426_vm1, %v5111_v58  ;;  %v5212_v20 = vpack.c.bf16 %v1963_v16, %v1962_v11  ;;  %v543_v22 = vld [vmem:[#allocation2 + $0xaf] sm:$0xff]  ;;  %v544_v23 = vld [vmem:[#allocation2 + $0xc7] sm:$0xff]  ;;  %v2626_v11 = vsel %vm679_vm0, %v5126_v0, 0  ;;  %v3670_v16 = vld [vmem:[%s5618_s2 + $0x20] sm:$0xf] }
  0x57   : > { %4321 = vmatmul.mubr.msk.bf16.vlgmr.msra.gmra.mrb[0].mxu0 %vm426_vm1, %v5113_v59  ;;  %4170 = vmatprep.mubr.msk.bf16.mxu1 %vm426_vm1, %v5115_v60  ;;  %v1964_v29 = vld [vmem:[#allocation2 + $0x1c9] sm:$0xff]  ;;  %v5222_v37 = vpack.c.bf16 %v543_v22, %v542_v21 }
  0x58   : > { %4353 = vmatpush3.bf16.msra.mxu0 %v2332_v62  ;;  %4324 = vmatprep.mubr.msk.bf16.mxu0 %vm426_vm1, %v5117_v61  ;;  %v5187_v62 = vpack.c.bf16 %v537_v51, %v536_v50  ;;  %v545_v31 = vld [vmem:[#allocation2 + $0xcf] sm:$0xff]  ;;  %v5224_v38 = vpack.c.bf16 %v1965_v30, %v1964_v29  ;;  %v546_v44 = vld [vmem:[#allocation2 + $0xe7] sm:$0xff] }
  0x59   : > { %4720 = vmatprep.subr.msk.bf16.mxu0 %vm679_vm0, %v5126_v0  ;;  %v1966_v33 = vld [vmem:[#allocation2 + $0x1e9] sm:$0xff]  ;;  %v5226_v39 = vpack.c.bf16 %v545_v31, %v544_v23  ;;  %v1969_v50 = vld [vmem:[#allocation2 + $0x211] sm:$0xff] }
  0x5a   : > { %v547_v45 = vld [vmem:[#allocation2 + $0xef] sm:$0xff]  ;;  %v548_v46 = vld [vmem:[#allocation2 + $0x107] sm:$0xff] }
  0x5b   : > { %v1968_v49 = vld [vmem:[#allocation2 + $0x209] sm:$0xff]  ;;  %v5238_v52 = vpack.c.bf16 %v547_v45, %v546_v44 }
  0x5c   : > { %v549_v51 = vld [vmem:[#allocation2 + $0x10f] sm:$0xff]  ;;  %v5240_v53 = vpack.c.bf16 %v1969_v50, %v1968_v49  ;;  %v550_v5 = vld [vmem:[#allocation2 + $0x127] sm:$0xff] }
  0x5d   : > { %v551_v6 = vld [vmem:[#allocation2 + $0x12f] sm:$0xff]  ;;  %v552_v7 = vld [vmem:[#allocation2 + $0x147] sm:$0xff] }
  0x5e   : > { %4171 = vmatmul.mubr.msk.bf16.gmra.mrb[20].mxu1 %vm426_vm1, %v5136_v12  ;;  %v553_v36 = vld [vmem:[#allocation2 + $0x14f] sm:$0xff]  ;;  %v5252_v8 = vpack.c.bf16 %v551_v6, %v550_v5  ;;  %v554_v21 = vld [vmem:[#allocation2 + $0x167] sm:$0xff] }
  0x5f   : > { %4325 = vmatmul.mubr.msk.bf16.gmra.mrb[4].mxu0 %vm426_vm1, %v5138_v13  ;;  %4174 = vmatprep.mubr.msk.bf16.mxu1 %vm426_vm1, %v5140_v14  ;;  %v5254_v10 = vpack.c.bf16 %v553_v36, %v552_v7  ;;  %v555_v22 = vld [vmem:[#allocation2 + $0x16f] sm:$0xff]  ;;  %v556_v0 = vld [vmem:[#allocation2 + $0x187] sm:$0xff]  ;;  %v1449_v36 = vsel %vm679_vm0, %v5196_v4, 0 }
  0x60   : > { %4328 = vmatprep.mubr.msk.bf16.mxu0 %vm426_vm1, %v5142_v15  ;;  %v557_v23 = vld [vmem:[#allocation2 + $0x18f] sm:$0xff]  ;;  %v5270_v29 = vpack.c.bf16 %v555_v22, %v554_v21  ;;  %v558_v31 = vld [vmem:[#allocation2 + $0x1a7] sm:$0xff] }
  0x61   : > { %v5272_v30 = vpack.c.bf16 %v557_v23, %v556_v0  ;;  %v561_v44 = vld [vmem:[#allocation2 + $0x1cf] sm:$0xff]  ;;  %v562_v49 = vld [vmem:[#allocation2 + $0x1e7] sm:$0xff]  ;;  %v2920_v0 = vsel %vm679_vm0, %v3670_v16, 0 }
  0x62   : > { %v563_v50 = vld [vmem:[#allocation2 + $0x1ef] sm:$0xff] }
  0x63   : > { %v1057_v5 = vld [vmem:[#allocation2 + $0x11] sm:$0xff]  ;;  %v5294_v6 = vpack.c.bf16 %v563_v50, %v562_v49 }
  0x64   : > { %v2264_v21 = vld [vmem:[#allocation2 + $0x22f] sm:$0xff] }
  0x66   : > { %4175 = vmatmul.mubr.msk.bf16.gmra.mrb[24].mxu1 %vm426_vm1, %v5152_v24 }
  0x67   : > { %4329 = vmatmul.mubr.msk.bf16.gmra.mrb[8].mxu0 %vm426_vm1, %v5154_v25  ;;  %4178 = vmatprep.mubr.msk.bf16.mxu1 %vm426_vm1, %v5156_v26 }
  0x68   : > { %4332 = vmatprep.mubr.msk.bf16.mxu0 %vm426_vm1, %v5158_v28 }
  0x6e   : > { %4179 = vmatmul.mubr.msk.bf16.gmra.mrb[28].mxu1 %vm426_vm1, %v5168_v40 }
  0x6f   : > { %4333 = vmatmul.mubr.msk.bf16.gmra.mrb[12].mxu0 %vm426_vm1, %v5170_v41  ;;  %4184 = vmatprep.mubr.msk.bf16.mxu1 %vm426_vm1, %v564_v42  ;;  %v5228_v42 = vpack.c.bf16 %v1967_v34, %v1966_v33  ;;  %v559_v33 = vld [vmem:[#allocation2 + $0x1af] sm:$0xff]  ;;  %v560_v34 = vld [vmem:[#allocation2 + $0x1c7] sm:$0xff] }
  0x70   : > { %4336 = vmatprep.mubr.msk.bf16.mxu0 %vm426_vm1, %v5172_v43  ;;  %v5282_v45 = vpack.c.bf16 %v559_v33, %v558_v31 }
  0x76   : > { %4185 = vmatmul.mubr.msk.bf16.vlgmr.msra.gmra.mrb[0].mxu1 %vm426_vm1, %v5181_v54 }
  0x77   : > { %4217 = vmatpush3.bf16.msra.mxu1 %v1155_v57  ;;  %4337 = vmatmul.mubr.msk.bf16.gmra.mrb[16].mxu0 %vm426_vm1, %v5183_v56  ;;  %v5242_v57 = vpack.c.bf16 %v549_v51, %v548_v46  ;;  %v5284_v46 = vpack.c.bf16 %v561_v44, %v560_v34  ;;  %v1056_v51 = vld [vmem:[#allocation2 + $0x9] sm:$0xff] }
  0x78   : > { %4188 = vmatprep.mubr.msk.bf16.mxu1 %vm426_vm1, %v5187_v62  ;;  %4340 = vmatprep.mubr.msk.bf16.mxu0 %vm426_vm1, %v5189_v2  ;;  %v1088_v7 = vpack.c.bf16 %v1057_v5, %v1056_v51 }
  0x79   : > { %4715 = vmatprep.subr.msk.bf16.mxu1 %vm679_vm0, %v5196_v4  ;;  %v2262_v4 = vld [vmem:[#allocation2 + $0x20f] sm:$0xff] }
  0x7e   : > { %4189 = vmatmul.mubr.msk.bf16.gmra.mrb[4].mxu1 %vm426_vm1, %v5206_v17 }
  0x7f   : > { %4341 = vmatmul.mubr.msk.bf16.gmra.mrb[20].mxu0 %vm426_vm1, %v5208_v18  ;;  %4192 = vmatprep.mubr.msk.bf16.mxu1 %vm426_vm1, %v5210_v19 }
  0x80   : > { %4344 = vmatprep.mubr.msk.bf16.mxu0 %vm426_vm1, %v5212_v20 }
  0x86   : > { %4193 = vmatmul.mubr.msk.bf16.gmra.mrb[8].mxu1 %vm426_vm1, %v5222_v37 }
  0x87   : > { %4345 = vmatmul.mubr.msk.bf16.gmra.mrb[24].mxu0 %vm426_vm1, %v5224_v38  ;;  %4196 = vmatprep.mubr.msk.bf16.mxu1 %vm426_vm1, %v5226_v39 }
  0x88   : > { %4348 = vmatprep.mubr.msk.bf16.mxu0 %vm426_vm1, %v5228_v42 }
  0x8e   : > { %4197 = vmatmul.mubr.msk.bf16.gmra.mrb[12].mxu1 %vm426_vm1, %v5238_v52 }
  0x8f   : > { %4349 = vmatmul.mubr.msk.bf16.gmra.mrb[28].mxu0 %vm426_vm1, %v5240_v53  ;;  %4200 = vmatprep.mubr.msk.bf16.mxu1 %vm426_vm1, %v5242_v57 }
  0x90   : > { %4354 = vmatprep.mubr.msk.bf16.mxu0 %vm426_vm1, %v5187_v62 }
  0x96   : > { %4201 = vmatmul.mubr.msk.bf16.gmra.mrb[16].mxu1 %vm426_vm1, %v5252_v8 }
  0x97   : > { %4355 = vmatmul.mubr.msk.bf16.vlgmr.msra.gmra.mrb[0].mxu0 %vm426_vm1, %v5206_v17  ;;  %4204 = vmatprep.mubr.msk.bf16.mxu1 %vm426_vm1, %v5254_v10 }
  0x98   : > { %4387 = vmatpush3.bf16.msra.mxu0 %v2626_v11  ;;  %4358 = vmatprep.mubr.msk.bf16.mxu0 %vm426_vm1, %v5210_v19 }
  0x99   : > { %4721 = vmatprep.subr.msk.bf16.mxu0 %vm679_vm0, %v3670_v16 }
  0x9e   : > { %4205 = vmatmul.mubr.msk.bf16.gmra.mrb[20].mxu1 %vm426_vm1, %v5270_v29 }
  0x9f   : > { %4359 = vmatmul.mubr.msk.bf16.gmra.mrb[4].mxu0 %vm426_vm1, %v5222_v37  ;;  %4208 = vmatprep.mubr.msk.bf16.mxu1 %vm426_vm1, %v5272_v30 }
  0xa0   : > { %4362 = vmatprep.mubr.msk.bf16.mxu0 %vm426_vm1, %v5226_v39 }
  0xa6   : > { %4209 = vmatmul.mubr.msk.bf16.gmra.mrb[24].mxu1 %vm426_vm1, %v5282_v45 }
  0xa7   : > { %4363 = vmatmul.mubr.msk.bf16.gmra.mrb[8].mxu0 %vm426_vm1, %v5238_v52  ;;  %4212 = vmatprep.mubr.msk.bf16.mxu1 %vm426_vm1, %v5284_v46 }
  0xa8   : > { %4366 = vmatprep.mubr.msk.bf16.mxu0 %vm426_vm1, %v5242_v57 }
  0xae   : > { %4213 = vmatmul.mubr.msk.bf16.gmra.mrb[28].mxu1 %vm426_vm1, %v5294_v6 }
  0xaf   : > { %4367 = vmatmul.mubr.msk.bf16.gmra.mrb[12].mxu0 %vm426_vm1, %v5252_v8  ;;  %4218 = vmatprep.mubr.msk.bf16.mxu1 %vm426_vm1, %v1088_v7 }
  0xb0   : > { %4370 = vmatprep.mubr.msk.bf16.mxu0 %vm426_vm1, %v5254_v10 }
  0xb6   : > { %4219 = vmatmul.mubr.msk.bf16.vlgmr.msra.gmra.mrb[0].mxu1 %vm426_vm1, %v5101_v48  ;;  %v2261_v48 = vld [vmem:[#allocation2 + $0x207] sm:$0xff] }
  0xb7   : > { %4251 = vmatpush3.bf16.msra.mxu1 %v1449_v36  ;;  %4371 = vmatmul.mubr.msk.bf16.gmra.mrb[16].mxu0 %vm426_vm1, %v5270_v29  ;;  %v5323_v11 = vpack.c.bf16 %v2262_v4, %v2261_v48  ;;  %v3982_v48 = vld [vmem:[%s5480_s24 + $0x18] sm:$0xff]  }
  0xb8   : > { %4222 = vmatprep.mubr.msk.bf16.mxu1 %vm426_vm1, %v5113_v59  ;;  %4374 = vmatprep.mubr.msk.bf16.mxu0 %vm426_vm1, %v5272_v30 }
  0xb9   : > { %4717 = vmatprep.subr.msk.bf16.mxu1 %vm679_vm0, %v4784_v1  ;;  %v2263_v1 = vld [vmem:[#allocation2 + $0x227] sm:$0xff] }
  0xba   : > { %v2280_v22 = vpack.c.bf16 %v2264_v21, %v2263_v1 }
  0xbe   : > { %4223 = vmatmul.mubr.msk.bf16.gmra.mrb[4].mxu1 %vm426_vm1, %v5117_v61 }
  0xbf   : > { %4375 = vmatmul.mubr.msk.bf16.gmra.mrb[20].mxu0 %vm426_vm1, %v5282_v45  ;;  %4226 = vmatprep.mubr.msk.bf16.mxu1 %vm426_vm1, %v5138_v13 }
  0xc0   : > { %4378 = vmatprep.mubr.msk.bf16.mxu0 %vm426_vm1, %v5284_v46 }
  0xc6   : > { %4227 = vmatmul.mubr.msk.bf16.gmra.mrb[8].mxu1 %vm426_vm1, %v5142_v15 }
  0xc7   : > { %4379 = vmatmul.mubr.msk.bf16.gmra.mrb[24].mxu0 %vm426_vm1, %v5294_v6  ;;  %4230 = vmatprep.mubr.msk.bf16.mxu1 %vm426_vm1, %v5154_v25 }
  0xc8   : > { %4382 = vmatprep.mubr.msk.bf16.mxu0 %vm426_vm1, %v5323_v11 }
  0xce   : > { %4231 = vmatmul.mubr.msk.bf16.gmra.mrb[12].mxu1 %vm426_vm1, %v5158_v28 }
  0xcf   : > { %4383 = vmatmul.mubr.msk.bf16.gmra.mrb[28].mxu0 %vm426_vm1, %v2280_v22  ;;  %4234 = vmatprep.mubr.msk.bf16.mxu1 %vm426_vm1, %v5170_v41  ;;  %v3981_v22 = vld [vmem:[%s5480_s24 + $0x10] sm:$0xff]  }
  0xd0   : > { %4388 = vmatprep.mubr.msk.bf16.mxu0 %vm426_vm1, %v5015_v27  ;;  %v2556_v27 = vld [vmem:[#allocation2 + $0x210] sm:$0xff] }
  0xd6   : > { %4235 = vmatmul.mubr.msk.bf16.gmra.mrb[16].mxu1 %vm426_vm1, %v5172_v43 }
  0xd7   : > { %4389 = vmatmul.mubr.msk.bf16.vlgmr.msra.gmra.mrb[0].mxu0 %vm426_vm1, %v5042_v9  ;;  %4238 = vmatprep.mubr.msk.bf16.mxu1 %vm426_vm1, %v5183_v56 }
  0xd8   : > { %4421 = vmatpush3.bf16.msra.mxu0 %v2920_v0  ;;  %4392 = vmatprep.mubr.msk.bf16.mxu0 %vm426_vm1, %v5053_v55  ;;  %v2557_v55 = vld [vmem:[#allocation2 + $0x228] sm:$0xff] }
  0xde   : > { %4239 = vmatmul.mubr.msk.bf16.gmra.mrb[20].mxu1 %vm426_vm1, %v5189_v2 }
  0xdf   : > { %4393 = vmatmul.mubr.msk.bf16.gmra.mrb[4].mxu0 %vm426_vm1, %v5060_v63  ;;  %4242 = vmatprep.mubr.msk.bf16.mxu1 %vm426_vm1, %v5208_v18  ;;  %v2558_v63 = vld [vmem:[#allocation2 + $0x230] sm:$0xff] }
  0xe0   : > { %4396 = vmatprep.mubr.msk.bf16.mxu0 %vm426_vm1, %v5080_v32  ;;  %v2574_v32 = vpack.c.bf16 %v2558_v63, %v2557_v55 }
  0xe6   : > { %4243 = vmatmul.mubr.msk.bf16.gmra.mrb[24].mxu1 %vm426_vm1, %v5212_v20 }
  0xe7   : > { %4397 = vmatmul.mubr.msk.bf16.gmra.mrb[8].mxu0 %vm426_vm1, %v5084_v35  ;;  %4246 = vmatprep.mubr.msk.bf16.mxu1 %vm426_vm1, %v5224_v38  ;;  %v1660_v35 = vld [vmem:[#allocation2 + $0x128] sm:$0xff] }
  0xe8   : > { %4400 = vmatprep.mubr.msk.bf16.mxu0 %vm426_vm1, %v5099_v47  ;;  %v1661_v47 = vld [vmem:[#allocation2 + $0x130] sm:$0xff] }
  0xee   : > { %4247 = vmatmul.mubr.msk.bf16.gmra.mrb[28].mxu1 %vm426_vm1, %v5228_v42 }
  0xef   : > { %4401 = vmatmul.mubr.msk.bf16.gmra.mrb[12].mxu0 %vm426_vm1, %v5111_v58  ;;  %4252 = vmatprep.mubr.msk.bf16.mxu1 %vm426_vm1, %v5181_v54  ;;  %v1684_v58 = vpack.c.bf16 %v1661_v47, %v1660_v35 }
  0xf0   : > { %4404 = vmatprep.mubr.msk.bf16.mxu0 %vm426_vm1, %v5115_v60  ;;  %v1663_v60 = vld [vmem:[#allocation2 + $0x150] sm:$0xff] }
  0xf6   : > { %4253 = vmatmul.mubr.msk.bf16.vlgmr.msra.gmra.mrb[0].mxu1 %vm426_vm1, %v5187_v62 }
  0xf7   : > { %4455 = vmatpush3.bf16.msra.mxu1 %v4792_v3  ;;  %4405 = vmatmul.mubr.msk.bf16.gmra.mrb[16].mxu0 %vm426_vm1, %v5136_v12  ;;  %v2555_v3 = vld [vmem:[#allocation2 + $0x208] sm:$0xff] }
  0xf8   : > { %4256 = vmatprep.mubr.msk.bf16.mxu1 %vm426_vm1, %v5206_v17  ;;  %4408 = vmatprep.mubr.msk.bf16.mxu0 %vm426_vm1, %v5140_v14  ;;  %v2573_v9 = vpack.c.bf16 %v2556_v27, %v2555_v3 }
  0xfe   : > { %4257 = vmatmul.mubr.msk.bf16.gmra.mrb[4].mxu1 %vm426_vm1, %v5210_v19 }
  0xff   : > { %4409 = vmatmul.mubr.msk.bf16.gmra.mrb[20].mxu0 %vm426_vm1, %v5152_v24  ;;  %4260 = vmatprep.mubr.msk.bf16.mxu1 %vm426_vm1, %v5222_v37 }
 0x100   : > { %4412 = vmatprep.mubr.msk.bf16.mxu0 %vm426_vm1, %v5156_v26 }
 0x106   : > { %4261 = vmatmul.mubr.msk.bf16.gmra.mrb[8].mxu1 %vm426_vm1, %v5226_v39  ;;  %v3980_v39 = vld [vmem:[%s5480_s24 + $0x8] sm:$0xff]  }
 0x107   : > { %4413 = vmatmul.mubr.msk.bf16.gmra.mrb[24].mxu0 %vm426_vm1, %v5168_v40  ;;  %4264 = vmatprep.mubr.msk.bf16.mxu1 %vm426_vm1, %v5238_v52  ;;  %v3892_v16 = vunpack.c.l.bf16 %v3980_v39 }
 0x108   : > { %4416 = vmatprep.mubr.msk.bf16.mxu0 %vm426_vm1, %v2573_v9 }
 0x10e   : > { %4265 = vmatmul.mubr.msk.bf16.gmra.mrb[12].mxu1 %vm426_vm1, %v5242_v57 }
 0x10f   : > { %4417 = vmatmul.mubr.msk.bf16.gmra.mrb[28].mxu0 %vm426_vm1, %v2574_v32  ;;  %4268 = vmatprep.mubr.msk.bf16.mxu1 %vm426_vm1, %v5252_v8  ;;  %v3900_v32 = vunpack.c.l.bf16 %v3982_v48 }
 0x110   : > { %4422 = vmatprep.mubr.msk.bf16.mxu0 %vm426_vm1, %v5113_v59  ;;  %v1662_v59 = vld [vmem:[#allocation2 + $0x148] sm:$0xff] }
 0x116   : > { %4269 = vmatmul.mubr.msk.bf16.gmra.mrb[16].mxu1 %vm426_vm1, %v5254_v10 }
 0x117   : > { %4423 = vmatmul.mubr.msk.bf16.vlgmr.msra.gmra.mrb[0].mxu0 %vm426_vm1, %v5117_v61  ;;  %4272 = vmatprep.mubr.msk.bf16.mxu1 %vm426_vm1, %v5270_v29  ;;  %v1685_v61 = vpack.c.bf16 %v1663_v60, %v1662_v59  ;;  %v3896_v60 = vunpack.c.l.bf16 %v3981_v22 }
 0x118   : > { %4426 = vmatprep.mubr.msk.bf16.mxu0 %vm426_vm1, %v5138_v13  ;;  %v2852_v13 = vld [vmem:[#allocation2 + $0x231] sm:$0xff] }
 0x11e   : > { %4273 = vmatmul.mubr.msk.bf16.gmra.mrb[20].mxu1 %vm426_vm1, %v5272_v30 }
 0x11f   : > { %4427 = vmatmul.mubr.msk.bf16.gmra.mrb[4].mxu0 %vm426_vm1, %v5142_v15  ;;  %4276 = vmatprep.mubr.msk.bf16.mxu1 %vm426_vm1, %v5282_v45  ;;  %v3893_v45 = vunpack.c.h.bf16 %v3980_v39 }
 0x120   : > { %4430 = vmatprep.mubr.msk.bf16.mxu0 %vm426_vm1, %v5154_v25 }
 0x126   : > { %4277 = vmatmul.mubr.msk.bf16.gmra.mrb[24].mxu1 %vm426_vm1, %v5284_v46 }
 0x127   : > { %4431 = vmatmul.mubr.msk.bf16.gmra.mrb[8].mxu0 %vm426_vm1, %v5158_v28  ;;  %4280 = vmatprep.mubr.msk.bf16.mxu1 %vm426_vm1, %v5294_v6 }
 0x128   : > { %4434 = vmatprep.mubr.msk.bf16.mxu0 %vm426_vm1, %v5170_v41 }
 0x12e   : > { %4281 = vmatmul.mubr.msk.bf16.gmra.mrb[28].mxu1 %vm426_vm1, %v5323_v11 }
 0x12f   : > { %4435 = vmatmul.mubr.msk.bf16.gmra.mrb[12].mxu0 %vm426_vm1, %v5172_v43  ;;  %4302 = vmatprep.mubr.msk.bf16.mxu1 %vm426_vm1, %v1684_v58 }
 0x130   : > { %4438 = vmatprep.mubr.msk.bf16.mxu0 %vm426_vm1, %v5183_v56 }
 0x136   : > { %4303 = vmatmul.mubr.msk.bf16.vlgmr.msra.gmra.mrb[16].mxu1 %vm426_vm1, %v1685_v61 }
 0x137   : > { %4439 = vmatmul.mubr.msk.bf16.gmra.mrb[16].mxu0 %vm426_vm1, %v5189_v2  ;;  %4306 = vmatprep.mubr.msk.bf16.mxu1 %vm426_vm1, %v5136_v12  ;;  %v2851_v12 = vld [vmem:[#allocation2 + $0x229] sm:$0xff] }
 0x138   : > { %4442 = vmatprep.mubr.msk.bf16.mxu0 %vm426_vm1, %v5208_v18 }
 0x13e   : > { %4307 = vmatmul.mubr.msk.bf16.gmra.mrb[20].mxu1 %vm426_vm1, %v5140_v14  ;;  %v2868_v14 = vpack.c.bf16 %v2852_v13, %v2851_v12 }
 0x13f   : > { %4443 = vmatmul.mubr.msk.bf16.gmra.mrb[20].mxu0 %vm426_vm1, %v5212_v20  ;;  %4310 = vmatprep.mubr.msk.bf16.mxu1 %vm426_vm1, %v5152_v24 }
 0x140   : > { %4446 = vmatprep.mubr.msk.bf16.mxu0 %vm426_vm1, %v5224_v38  ;;  %v5485_v38 = vld [vmem:[%s5619_s3] ss:$0 sm:$0xff] }
 0x146   : > { %4311 = vmatmul.mubr.msk.bf16.gmra.mrb[24].mxu1 %vm426_vm1, %v5156_v26 }
 0x147   : > { %4447 = vmatmul.mubr.msk.bf16.gmra.mrb[24].mxu0 %vm426_vm1, %v5228_v42  ;;  %4314 = vmatprep.mubr.msk.bf16.mxu1 %vm426_vm1, %v5168_v40 }
 0x148   : > { %4450 = vmatprep.mubr.msk.bf16.mxu0 %vm426_vm1, %v5240_v53  ;;  %v3887_v53 = vld [vmem:[%s5480_s24] sm:$0xff]  }
 0x149   : > { %v3888_v31 = vunpack.c.l.bf16 %v3887_v53  ;;  %v3889_v50 = vunpack.c.h.bf16 %v3887_v53 }
 0x14e   : > { %4315 = vmatmul.mubr.msk.bf16.gmra.mrb[28].mxu1 %vm426_vm1, %v2573_v9 }
 0x14f   : > { %4451 = vmatmul.mubr.msk.bf16.gmra.mrb[28].mxu0 %vm426_vm1, %v2868_v14  ;;  %v3901_v14 = vunpack.c.h.bf16 %v3982_v48 }
 0x1c9   : > { %v4254_v15 = vpop.f32.mrb[0].mxu1 }
 0x1ca   : > { %v1485_v24 = vpop.f32.mrb[1].mxu1 }
 0x1cb   : > { %v4255_v25 = vpop.f32.mrb[2].mxu1 }
 0x1cc   : > { %v1488_v26 = vpop.f32.mrb[3].mxu1 }
 0x1d1   : > { %v4258_v28 = vpop.f32.mrb[4].mxu1 }
 0x1d2   : > { %v1501_v41 = vpop.f32.mrb[5].mxu1 }
 0x1d3   : > { %v4259_v43 = vpop.f32.mrb[6].mxu1 }
 0x1d4   : > { %v1504_v54 = vpop.f32.mrb[7].mxu1 }
 0x1d9   : > { %v5460_v40 = vpop.f32.mrb[8].mxu1 }
 0x1da   : > { %v5462_v56 = vpop.f32.mrb[9].mxu1 }
 0x1db   : > { %v5464_v62 = vpop.f32.mrb[10].mxu1 }
 0x1dc   : > { %v5466_v2 = vpop.f32.mrb[11].mxu1 }
 0x1e1   : > { %v5468_v17 = vpop.f32.mrb[12].mxu1 }
 0x1e2   : > { %v5470_v18 = vpop.f32.mrb[13].mxu1 }
 0x1e3   : > { %v5472_v19 = vpop.f32.mrb[14].mxu1 }
 0x1e4   : > { %v5474_v20 = vpop.f32.mrb[15].mxu1 }
 0x1ea   : > { %v4424_v37 = vpop.f32.mrb[0].mxu0 }
 0x1eb   : > { %v4456_v42 = vadd.f32 %v4424_v37, %v4254_v15  ;;  %v2956_v52 = vpop.f32.mrb[1].mxu0 }
 0x1ec   : > { %v4457_v57 = vadd.f32 %v2956_v52, %v1485_v24  ;;  %v4425_v8 = vpop.f32.mrb[2].mxu0 }
 0x1ed   : > { %v3124_v10 = vadd.f32 %v4456_v42, %v5485_v38  ;;  %v4458_v23 = vadd.f32 %v4425_v8, %v4255_v25  ;;  %v2959_v29 = vpop.f32.mrb[3].mxu0  ;;  %v3897_v25 = vunpack.c.h.bf16 %v3981_v22 }
 0x1ee   : > { %v3122_v30 = vadd.f32 %v4457_v57, %v5485_v38  ;;  %v4459_v33 = vadd.f32 %v2959_v29, %v1488_v26  ;;  %v3983_v57 = vld [vmem:[%s5480_s24 + $0x20] sm:$0xff]  }
 0x1ef   : > { %v3156_v34 = vmax.f32 %v3124_v10, 0.0  ;;  %v3125_v44 = vadd.f32 %v4458_v23, %v5485_v38 }
 0x1f0   : > { %v3154_v46 = vmax.f32 %v3122_v30, 0.0  ;;  %v3123_v49 = vadd.f32 %v4459_v33, %v5485_v38 }
 0x1f1   : > { %v3252_v51 = vadd.f32 %v3892_v16, %v3156_v34  ;;  %v3157_v5 = vmax.f32 %v3125_v44, 0.0 }
 0x1f2   : > { %v3250_v6 = vadd.f32 %v3888_v31, %v3154_v46  ;;  %v3155_v7 = vmax.f32 %v3123_v49, 0.0  ;;  %v4428_v36 = vpop.f32.mrb[4].mxu0 }
 0x1f3   : > { %v3728_v4 = vpack.c.bf16 %v3252_v51, %v3252_v51  ;;  %v3253_v11 = vadd.f32 %v3893_v45, %v3157_v5  ;;  %v4460_v1 = vadd.f32 %v4428_v36, %v4258_v28  ;;  %v2972_v21 = vpop.f32.mrb[5].mxu0  ;;  %v3904_v45 = vunpack.c.l.bf16 %v3983_v57 }
 0x1f4   : > { %v3726_v0 = vpack.c.bf16 %v3250_v6, %v3250_v6  ;;  %v3251_v3 = vadd.f32 %v3889_v50, %v3155_v7  ;;  %v4461_v27 = vadd.f32 %v2972_v21, %v1501_v41  ;;  %v4429_v9 = vpop.f32.mrb[6].mxu0  ;;  %v3905_v5 = vunpack.c.h.bf16 %v3983_v57  ;;  %v3987_v57 = vld [vmem:[%s5480_s24 + $0x40] sm:$0xff]  }
 0x1f5   : > { %3413 = vst.msk [vmem:[%s5497_s30 + $0x8] sm:$0xf] %vm3410_vm2, %v3728_v4  ;;  %v3729_v55 = vpack.c.bf16 %v3253_v11, %v3253_v11  ;;  %v3128_v63 = vadd.f32 %v4460_v1, %v5485_v38  ;;  %v4462_v35 = vadd.f32 %v4429_v9, %v4259_v43  ;;  %v2975_v47 = vpop.f32.mrb[7].mxu0 }
 0x1f6   : > { %3411 = vst.msk [vmem:[%s5497_s30] sm:$0xf] %vm3410_vm2, %v3726_v0  ;;  %v3727_v58 = vpack.c.bf16 %v3251_v3, %v3251_v3  ;;  %v3126_v59 = vadd.f32 %v4461_v27, %v5485_v38  ;;  %v4463_v61 = vadd.f32 %v2975_v47, %v1504_v54  ;;  %v3984_v54 = vld [vmem:[%s5480_s24 + $0x28] sm:$0xff]   ;;  %v3985_v0 = vld [vmem:[%s5480_s24 + $0x30] sm:$0xff]  }
 0x1f7   : > { %3414 = vst.msk [vmem:[%s5497_s30 + $0xc] sm:$0xf] %vm3410_vm2, %v3729_v55  ;;  %v3160_v12 = vmax.f32 %v3128_v63, 0.0  ;;  %v3129_v13 = vadd.f32 %v4462_v35, %v5485_v38  ;;  %v3908_v31 = vunpack.c.l.bf16 %v3984_v54  ;;  %v3909_v50 = vunpack.c.h.bf16 %v3984_v54 }
 0x1f8   : > { %3412 = vst.msk [vmem:[%s5497_s30 + $0x4] sm:$0xf] %vm3410_vm2, %v3727_v58  ;;  %v3158_v15 = vmax.f32 %v3126_v59, 0.0  ;;  %v3127_v24 = vadd.f32 %v4463_v61, %v5485_v38 }
 0x1f9   : > { %v3256_v26 = vadd.f32 %v3900_v32, %v3160_v12  ;;  %v3161_v28 = vmax.f32 %v3129_v13, 0.0 }
 0x1fa   : > { %v3254_v41 = vadd.f32 %v3896_v60, %v3158_v15  ;;  %v3159_v43 = vmax.f32 %v3127_v24, 0.0  ;;  %v4432_v37 = vpop.f32.mrb[8].mxu0  ;;  %v3912_v60 = vunpack.c.l.bf16 %v3985_v0  ;;  %v3913_v15 = vunpack.c.h.bf16 %v3985_v0 }
 0x1fb   : > { %v3732_v39 = vpack.c.bf16 %v3256_v26, %v3256_v26  ;;  %v3257_v42 = vadd.f32 %v3901_v14, %v3161_v28  ;;  %v4464_v52 = vadd.f32 %v4432_v37, %v5460_v40  ;;  %v2988_v53 = vpop.f32.mrb[9].mxu0  ;;  %v3988_v37 = vld [vmem:[%s5480_s24 + $0x48] sm:$0xff]  }
 0x1fc   : > { %v3730_v8 = vpack.c.bf16 %v3254_v41, %v3254_v41  ;;  %v3255_v10 = vadd.f32 %v3897_v25, %v3159_v43  ;;  %v4465_v16 = vadd.f32 %v2988_v53, %v5462_v56  ;;  %v4433_v23 = vpop.f32.mrb[10].mxu0 }
 0x1fd   : > { %3417 = vst.msk [vmem:[%s5497_s30 + $0x18] sm:$0xf] %vm3410_vm2, %v3732_v39  ;;  %v3733_v29 = vpack.c.bf16 %v3257_v42, %v3257_v42  ;;  %v3132_v30 = vadd.f32 %v4464_v52, %v5485_v38  ;;  %v4466_v33 = vadd.f32 %v4433_v23, %v5464_v62  ;;  %v2991_v34 = vpop.f32.mrb[11].mxu0 }
 0x1fe   : > { %3415 = vst.msk [vmem:[%s5497_s30 + $0x10] sm:$0xf] %vm3410_vm2, %v3730_v8  ;;  %v3731_v40 = vpack.c.bf16 %v3255_v10, %v3255_v10  ;;  %v3130_v44 = vadd.f32 %v4465_v16, %v5485_v38  ;;  %v4467_v56 = vadd.f32 %v2991_v34, %v5466_v2  ;;  %v3986_v2 = vld [vmem:[%s5480_s24 + $0x38] sm:$0xff]  }
 0x1ff   : > { %3418 = vst.msk [vmem:[%s5497_s30 + $0x1c] sm:$0xf] %vm3410_vm2, %v3733_v29  ;;  %v3164_v46 = vmax.f32 %v3132_v30, 0.0  ;;  %v3133_v49 = vadd.f32 %v4466_v33, %v5485_v38  ;;  %v3916_v35 = vunpack.c.l.bf16 %v3986_v2  ;;  %v3917_v13 = vunpack.c.h.bf16 %v3986_v2 }
 0x200   : > { %3416 = vst.msk [vmem:[%s5497_s30 + $0x14] sm:$0xf] %vm3410_vm2, %v3731_v40  ;;  %v3162_v62 = vmax.f32 %v3130_v44, 0.0  ;;  %v3131_v51 = vadd.f32 %v4467_v56, %v5485_v38  ;;  %v3924_v33 = vunpack.c.l.bf16 %v3988_v37  ;;  %v3920_v56 = vunpack.c.l.bf16 %v3987_v57 }
 0x201   : > { %v3260_v6 = vadd.f32 %v3908_v31, %v3164_v46  ;;  %v3165_v7 = vmax.f32 %v3133_v49, 0.0 }
 0x202   : > { %v3258_v36 = vadd.f32 %v3904_v45, %v3162_v62  ;;  %v3163_v48 = vmax.f32 %v3131_v51, 0.0  ;;  %v4436_v4 = vpop.f32.mrb[12].mxu0  ;;  %v3925_v62 = vunpack.c.h.bf16 %v3988_v37 }
 0x203   : > { %v3736_v11 = vpack.c.bf16 %v3260_v6, %v3260_v6  ;;  %v3261_v1 = vadd.f32 %v3909_v50, %v3165_v7  ;;  %v4468_v21 = vadd.f32 %v4436_v4, %v5468_v17  ;;  %v3004_v22 = vpop.f32.mrb[13].mxu0  ;;  %v3921_v6 = vunpack.c.h.bf16 %v3987_v57 }
 0x204   : > { %v3734_v3 = vpack.c.bf16 %v3258_v36, %v3258_v36  ;;  %v3259_v27 = vadd.f32 %v3905_v5, %v3163_v48  ;;  %v4469_v9 = vadd.f32 %v3004_v22, %v5470_v18  ;;  %v4437_v55 = vpop.f32.mrb[14].mxu0 }
 0x205   : > { %3421 = vst.msk [vmem:[%s5497_s30 + $0x28] sm:$0xf] %vm3410_vm2, %v3736_v11  ;;  %v3737_v63 = vpack.c.bf16 %v3261_v1, %v3261_v1  ;;  %v3136_v32 = vadd.f32 %v4468_v21, %v5485_v38  ;;  %v4470_v47 = vadd.f32 %v4437_v55, %v5472_v19  ;;  %v3007_v58 = vpop.f32.mrb[15].mxu0  ;;  %v3990_v21 = vld [vmem:[%s5480_s24 + $0x58] sm:$0xff]   ;;  %v3989_v55 = vld [vmem:[%s5480_s24 + $0x50] sm:$0xff]  }
 0x206   : > { %3419 = vst.msk [vmem:[%s5497_s30 + $0x20] sm:$0xf] %vm3410_vm2, %v3734_v3  ;;  %v3735_v17 = vpack.c.bf16 %v3259_v27, %v3259_v27  ;;  %v3134_v59 = vadd.f32 %v4469_v9, %v5485_v38  ;;  %v4471_v61 = vadd.f32 %v3007_v58, %v5474_v20 }
 0x207   : > { %3422 = vst.msk [vmem:[%s5497_s30 + $0x2c] sm:$0xf] %vm3410_vm2, %v3737_v63  ;;  %v3168_v18 = vmax.f32 %v3136_v32, 0.0  ;;  %v3137_v12 = vadd.f32 %v4470_v47, %v5485_v38 }
 0x208   : > { %3420 = vst.msk [vmem:[%s5497_s30 + $0x24] sm:$0xf] %vm3410_vm2, %v3735_v17  ;;  %v3166_v14 = vmax.f32 %v3134_v59, 0.0  ;;  %v3135_v19 = vadd.f32 %v4471_v61, %v5485_v38 }
 0x209   : > { %v3264_v24 = vadd.f32 %v3916_v35, %v3168_v18  ;;  %v3169_v25 = vmax.f32 %v3137_v12, 0.0  ;;  %v4304_v26 = vpop.f32.mrb[16].mxu1 }
 0x20a   : > { %v3262_v28 = vadd.f32 %v3912_v60, %v3166_v14  ;;  %v3167_v20 = vmax.f32 %v3135_v19, 0.0  ;;  %v1843_v41 = vpop.f32.mrb[17].mxu1  ;;  %v4440_v43 = vpop.f32.mrb[16].mxu0  ;;  %v3932_v60 = vunpack.c.l.bf16 %v3990_v21  ;;  %v3928_v14 = vunpack.c.l.bf16 %v3989_v55 }
 0x20b   : > { %v3740_v54 = vpack.c.bf16 %v3264_v24, %v3264_v24  ;;  %v3265_v39 = vadd.f32 %v3917_v13, %v3169_v25  ;;  %v4472_v42 = vadd.f32 %v4440_v43, %v4304_v26  ;;  %v4305_v52 = vpop.f32.mrb[18].mxu1  ;;  %v3020_v53 = vpop.f32.mrb[17].mxu0  ;;  %v3933_v25 = vunpack.c.h.bf16 %v3990_v21 }
 0x20c   : > { %v3738_v8 = vpack.c.bf16 %v3262_v28, %v3262_v28  ;;  %v3263_v10 = vadd.f32 %v3913_v15, %v3167_v20  ;;  %v4473_v16 = vadd.f32 %v3020_v53, %v1843_v41  ;;  %v1846_v23 = vpop.f32.mrb[19].mxu1  ;;  %v4441_v29 = vpop.f32.mrb[18].mxu0  ;;  %v3929_v20 = vunpack.c.h.bf16 %v3989_v55  ;;  %v3992_v53 = vld [vmem:[%s5480_s24 + $0x68] sm:$0xff]  }
 0x20d   : > { %3425 = vst.msk [vmem:[%s5497_s30 + $0x38] sm:$0xf] %vm3410_vm2, %v3740_v54  ;;  %v3741_v30 = vpack.c.bf16 %v3265_v39, %v3265_v39  ;;  %v3140_v31 = vadd.f32 %v4472_v42, %v5485_v38  ;;  %v4474_v34 = vadd.f32 %v4441_v29, %v4305_v52  ;;  %v3023_v40 = vpop.f32.mrb[19].mxu0  ;;  %v3991_v29 = vld [vmem:[%s5480_s24 + $0x60] sm:$0xff]  }
 0x20e   : > { %3423 = vst.msk [vmem:[%s5497_s30 + $0x30] sm:$0xf] %vm3410_vm2, %v3738_v8  ;;  %v3739_v44 = vpack.c.bf16 %v3263_v10, %v3263_v10  ;;  %v3138_v45 = vadd.f32 %v4473_v16, %v5485_v38  ;;  %v4475_v46 = vadd.f32 %v3023_v40, %v1846_v23 }
 0x20f   : > { %3426 = vst.msk [vmem:[%s5497_s30 + $0x3c] sm:$0xf] %vm3410_vm2, %v3741_v30  ;;  %v3172_v49 = vmax.f32 %v3140_v31, 0.0  ;;  %v3141_v50 = vadd.f32 %v4474_v34, %v5485_v38 }
 0x210   : > { %3424 = vst.msk [vmem:[%s5497_s30 + $0x34] sm:$0xf] %vm3410_vm2, %v3739_v44  ;;  %v3170_v51 = vmax.f32 %v3138_v45, 0.0  ;;  %v3139_v5 = vadd.f32 %v4475_v46, %v5485_v38 }
 0x211   : > { %v3268_v7 = vadd.f32 %v3924_v33, %v3172_v49  ;;  %v3173_v36 = vmax.f32 %v3141_v50, 0.0  ;;  %v4308_v48 = vpop.f32.mrb[20].mxu1 }
 0x212   : > { %v3266_v4 = vadd.f32 %v3920_v56, %v3170_v51  ;;  %v3171_v2 = vmax.f32 %v3139_v5, 0.0  ;;  %v1859_v11 = vpop.f32.mrb[21].mxu1  ;;  %v4444_v1 = vpop.f32.mrb[20].mxu0  ;;  %v3940_v56 = vunpack.c.l.bf16 %v3992_v53  ;;  %v3936_v51 = vunpack.c.l.bf16 %v3991_v29 }
 0x213   : > { %v3744_v22 = vpack.c.bf16 %v3268_v7, %v3268_v7  ;;  %v3269_v0 = vadd.f32 %v3925_v62, %v3173_v36  ;;  %v4476_v3 = vadd.f32 %v4444_v1, %v4308_v48  ;;  %v4309_v27 = vpop.f32.mrb[22].mxu1  ;;  %v3036_v9 = vpop.f32.mrb[21].mxu0  ;;  %v3941_v36 = vunpack.c.h.bf16 %v3992_v53 }
 0x214   : > { %v3742_v63 = vpack.c.bf16 %v3266_v4, %v3266_v4  ;;  %v3267_v32 = vadd.f32 %v3921_v6, %v3171_v2  ;;  %v4477_v35 = vadd.f32 %v3036_v9, %v1859_v11  ;;  %v1862_v47 = vpop.f32.mrb[23].mxu1  ;;  %v4445_v58 = vpop.f32.mrb[22].mxu0  ;;  %v3937_v2 = vunpack.c.h.bf16 %v3991_v29  ;;  %v3994_v9 = vld [vmem:[%s5480_s24 + $0x78] sm:$0xff]  }
 0x215   : > { %3429 = vst.msk [vmem:[%s5497_s30 + $0x48] sm:$0xf] %vm3410_vm2, %v3744_v22  ;;  %v3745_v17 = vpack.c.bf16 %v3269_v0, %v3269_v0  ;;  %v3144_v59 = vadd.f32 %v4476_v3, %v5485_v38  ;;  %v4478_v61 = vadd.f32 %v4445_v58, %v4309_v27  ;;  %v3039_v18 = vpop.f32.mrb[23].mxu0  ;;  %v3993_v58 = vld [vmem:[%s5480_s24 + $0x70] sm:$0xff]  }
 0x216   : > { %3427 = vst.msk [vmem:[%s5497_s30 + $0x40] sm:$0xf] %vm3410_vm2, %v3742_v63  ;;  %v3743_v12 = vpack.c.bf16 %v3267_v32, %v3267_v32  ;;  %v3142_v13 = vadd.f32 %v4477_v35, %v5485_v38  ;;  %v4479_v19 = vadd.f32 %v3039_v18, %v1862_v47 }
 0x217   : > { %3430 = vst.msk [vmem:[%s5497_s30 + $0x4c] sm:$0xf] %vm3410_vm2, %v3745_v17  ;;  %v3176_v15 = vmax.f32 %v3144_v59, 0.0  ;;  %v3145_v24 = vadd.f32 %v4478_v61, %v5485_v38 }
 0x218   : > { %3428 = vst.msk [vmem:[%s5497_s30 + $0x44] sm:$0xf] %vm3410_vm2, %v3743_v12  ;;  %v3174_v26 = vmax.f32 %v3142_v13, 0.0  ;;  %v3143_v28 = vadd.f32 %v4479_v19, %v5485_v38 }
 0x219   : > { %v3272_v41 = vadd.f32 %v3932_v60, %v3176_v15  ;;  %v3177_v43 = vmax.f32 %v3145_v24, 0.0  ;;  %v4312_v37 = vpop.f32.mrb[24].mxu1 }
 0x21a   : > { %v3270_v54 = vadd.f32 %v3928_v14, %v3174_v26  ;;  %v3175_v39 = vmax.f32 %v3143_v28, 0.0  ;;  %v1875_v42 = vpop.f32.mrb[25].mxu1  ;;  %v4448_v52 = vpop.f32.mrb[24].mxu0  ;;  %v3948_v14 = vunpack.c.l.bf16 %v3994_v9  ;;  %v3944_v26 = vunpack.c.l.bf16 %v3993_v58 }
 0x21b   : > { %v3748_v57 = vpack.c.bf16 %v3272_v41, %v3272_v41  ;;  %v3273_v8 = vadd.f32 %v3933_v25, %v3177_v43  ;;  %v4480_v10 = vadd.f32 %v4448_v52, %v4312_v37  ;;  %v4313_v16 = vpop.f32.mrb[26].mxu1  ;;  %v3052_v23 = vpop.f32.mrb[25].mxu0  ;;  %v3949_v43 = vunpack.c.h.bf16 %v3994_v9 }
 0x21c   : > { %v3746_v30 = vpack.c.bf16 %v3270_v54, %v3270_v54  ;;  %v3271_v31 = vadd.f32 %v3929_v20, %v3175_v39  ;;  %v4481_v33 = vadd.f32 %v3052_v23, %v1875_v42  ;;  %v1878_v34 = vpop.f32.mrb[27].mxu1  ;;  %v4449_v40 = vpop.f32.mrb[26].mxu0  ;;  %v3945_v39 = vunpack.c.h.bf16 %v3993_v58 }
 0x21d   : > { %3433 = vst.msk [vmem:[%s5497_s30 + $0x58] sm:$0xf] %vm3410_vm2, %v3748_v57  ;;  %v3749_v44 = vpack.c.bf16 %v3273_v8, %v3273_v8  ;;  %v3148_v45 = vadd.f32 %v4480_v10, %v5485_v38  ;;  %v4482_v46 = vadd.f32 %v4449_v40, %v4313_v16  ;;  %v3055_v49 = vpop.f32.mrb[27].mxu0 }
 0x21e   : > { %3431 = vst.msk [vmem:[%s5497_s30 + $0x50] sm:$0xf] %vm3410_vm2, %v3746_v30  ;;  %v3747_v50 = vpack.c.bf16 %v3271_v31, %v3271_v31  ;;  %v3146_v62 = vadd.f32 %v4481_v33, %v5485_v38  ;;  %v4483_v5 = vadd.f32 %v3055_v49, %v1878_v34 }
 0x21f   : > { %3434 = vst.msk [vmem:[%s5497_s30 + $0x5c] sm:$0xf] %vm3410_vm2, %v3749_v44  ;;  %v3180_v6 = vmax.f32 %v3148_v45, 0.0  ;;  %v3149_v7 = vadd.f32 %v4482_v46, %v5485_v38 }
 0x220   : > { %3432 = vst.msk [vmem:[%s5497_s30 + $0x54] sm:$0xf] %vm3410_vm2, %v3747_v50  ;;  %v3178_v48 = vmax.f32 %v3146_v62, 0.0  ;;  %v3147_v4 = vadd.f32 %v4483_v5, %v5485_v38 }
 0x221   : > { %v3276_v11 = vadd.f32 %v3940_v56, %v3180_v6  ;;  %v3181_v1 = vmax.f32 %v3149_v7, 0.0  ;;  %v4316_v21 = vpop.f32.mrb[28].mxu1 }
 0x222   : > { %v3274_v22 = vadd.f32 %v3936_v51, %v3178_v48  ;;  %v3179_v0 = vmax.f32 %v3147_v4, 0.0  ;;  %v1891_v3 = vpop.f32.mrb[29].mxu1  ;;  %v4452_v27 = vpop.f32.mrb[28].mxu0 }
 0x223   : > { %v3752_v55 = vpack.c.bf16 %v3276_v11, %v3276_v11  ;;  %v3277_v63 = vadd.f32 %v3941_v36, %v3181_v1  ;;  %v4484_v32 = vadd.f32 %v4452_v27, %v4316_v21  ;;  %v4317_v35 = vpop.f32.mrb[30].mxu1  ;;  %v3068_v47 = vpop.f32.mrb[29].mxu0 }
 0x224   : > { %v3750_v17 = vpack.c.bf16 %v3274_v22, %v3274_v22  ;;  %v3275_v59 = vadd.f32 %v3937_v2, %v3179_v0  ;;  %v4485_v60 = vadd.f32 %v3068_v47, %v1891_v3  ;;  %v1894_v61 = vpop.f32.mrb[31].mxu1  ;;  %v4453_v18 = vpop.f32.mrb[30].mxu0 }
 0x225   : > { %3437 = vst.msk [vmem:[%s5497_s30 + $0x68] sm:$0xf] %vm3410_vm2, %v3752_v55  ;;  %v3753_v12 = vpack.c.bf16 %v3277_v63, %v3277_v63  ;;  %v3152_v13 = vadd.f32 %v4484_v32, %v5485_v38  ;;  %v4486_v19 = vadd.f32 %v4453_v18, %v4317_v35  ;;  %v3071_v15 = vpop.f32.mrb[31].mxu0 }
 0x226   : > { %3435 = vst.msk [vmem:[%s5497_s30 + $0x60] sm:$0xf] %vm3410_vm2, %v3750_v17  ;;  %v3751_v24 = vpack.c.bf16 %v3275_v59, %v3275_v59  ;;  %v3150_v25 = vadd.f32 %v4485_v60, %v5485_v38  ;;  %v4487_v28 = vadd.f32 %v3071_v15, %v1894_v61 }
 0x227   : > { %3438 = vst.msk [vmem:[%s5497_s30 + $0x6c] sm:$0xf] %vm3410_vm2, %v3753_v12  ;;  %v3184_v20 = vmax.f32 %v3152_v13, 0.0  ;;  %v3153_v41 = vadd.f32 %v4486_v19, %v5485_v38 }
 0x228   : > { %3436 = vst.msk [vmem:[%s5497_s30 + $0x64] sm:$0xf] %vm3410_vm2, %v3751_v24  ;;  %v3182_v37 = vmax.f32 %v3150_v25, 0.0  ;;  %v3151_v54 = vadd.f32 %v4487_v28, %v5485_v38 }
 0x229   : > { %v3280_v42 = vadd.f32 %v3948_v14, %v3184_v20  ;;  %v3185_v52 = vmax.f32 %v3153_v41, 0.0 }
 0x22a   : > { %v3278_v53 = vadd.f32 %v3944_v26, %v3182_v37  ;;  %v3183_v57 = vmax.f32 %v3151_v54, 0.0 }
 0x22b   : > { %v3756_v8 = vpack.c.bf16 %v3280_v42, %v3280_v42  ;;  %v3281_v10 = vadd.f32 %v3949_v43, %v3185_v52 }
 0x22c   : > { %v3754_v16 = vpack.c.bf16 %v3278_v53, %v3278_v53  ;;  %v3279_v23 = vadd.f32 %v3945_v39, %v3183_v57 }
 0x22d   : > { %3441 = vst.msk [vmem:[%s5497_s30 + $0x78] sm:$0xf] %vm3410_vm2, %v3756_v8  ;;  %v3757_v29 = vpack.c.bf16 %v3281_v10, %v3281_v10 }
 0x22e   : > { %3439 = vst.msk [vmem:[%s5497_s30 + $0x70] sm:$0xf] %vm3410_vm2, %v3754_v16  ;;  %v3755_v30 = vpack.c.bf16 %v3279_v23, %v3279_v23 }
 0x22f   : > { %3442 = vst.msk [vmem:[%s5497_s30 + $0x7c] sm:$0xf] %vm3410_vm2, %v3757_v29 }
 0x230   : > { %3440 = vst.msk [vmem:[%s5497_s30 + $0x74] sm:$0xf] %vm3410_vm2, %v3755_v30 }
 0x231 PF: > { %s15_s18 = sadd.s32 1, %s4737_s18  }
 0x232   : > { %p12_p4 = scmp.ge.s32.totalorder %s15_s18, 4  }
 0x234   :  { %14 = sbr.rel (!%p12_p4) target bundleno = 1 (0x1), region = 86 }

// kernel: attrunet_fwd.25
= control target key start
LH: loop header
LB: loop body
LE: loop exit
PB: predicated region body
PF: predicated region fallthrough
CT: control target
= control target key end

     0   :  { %s4286_s12 = smov 0   ;;  %s5077_s0 = inlined_call_operand.vmem [shape: bf16[2,16,16,8], index: 0, kind: input, shape index: {}]   ;;  %s5078_s1 = inlined_call_operand.vmem [shape: bf16[9,8,8], index: 1, kind: input, shape index: {}]   ;;  %s5079_s2 = inlined_call_operand.vmem [shape: f32[1,8], index: 2, kind: input, shape index: {}]   ;;  %s5080_s3 = inlined_call_operand.vmem [shape: bf16[2,256,8], index: 3, kind: output, shape index: {}]  }
   0x1 LB: > { %s3212_s13 = sadd.s32 4294967295, %s4263_s12   ;;  %p3216_p0 = scmp.ge.s32.totalorder %s4263_s12, 1  ;;  %s4263_s12 = sphi %s4286_s12, %s13_s12  }
   0x2   : > { %p137_p1 = scmp.lt.s32.totalorder %s4263_s12, 3 }
   0x4   : > { %p138_p2 = pnand %p3216_p0, %p137_p1 }
   0x5   : > { %v3221_v0 = vld [vmem:[%s5078_s1 + $0x4] sm:$0xf] (!%p138_p2)  ;;  %vm489_vm0 = vcmask (!%p138_p2), 1043456   ;;  %v4300_v1 = vld [vmem:[%s5078_s1 + $0x10] sm:$0xf] (!%p138_p2)  ;;  %vm236_vm1 = vcmask (!%p138_p2), 64512  }
   0x6   : > { %141 = sbr.rel (%p138_p2) target bundleno = 559 (0x22f), region = 32  ;;  %4238 = vmatprep.subr.msk.bf16.mxu1 (!%p138_p2), %vm489_vm0, %v3221_v0  ;;  %4242 = vmatprep.subr.msk.bf16.mxu0 (!%p138_p2), %vm489_vm0, %v4300_v1  ;;  %v491_v2 = vsel (!%p138_p2), %vm489_vm0, %v3221_v0, 0  ;;  %v4308_v3 = vsel (!%p138_p2), %vm489_vm0, %v4300_v1, 0  ;;  %p4312_p3 = scmp.lt.s32.totalorder (!%p138_p2), %s3212_s13, 1  ;;  %v4319_v4 = vld [vmem:[%s5078_s1] sm:$0xf] (!%p138_p2) }
   0x7   : > { %3675 = vmatpush3.bf16.msra.mxu1 (!%p138_p2), %v491_v2  ;;  %3811 = vmatpush3.bf16.msra.mxu0 (!%p138_p2), %v4308_v3  ;;  %v4265_v5 = vmov (!%p138_p2), 0.0   ;;  %v4469_v6 = vld [vmem:[%s5078_s1 + $0x14] sm:$0xf] (!%p138_p2)  ;;  %v703_v62 = vsel (!%p138_p2), %vm489_vm0, %v4319_v4, 0  ;;  %vm3124_vm2 = vcmask (!%p138_p2), 60416  }
   0x8   : > { %238 = vst.msk [vmem:[#allocation2 + $0x8] sm:$0xff] (!%p138_p2), %vm236_vm1, %v4265_v5  ;;  %239 = vst.msk [vmem:[#allocation2 + $0x10] sm:$0xff] (!%p138_p2), %vm236_vm1, %v4265_v5  ;;  %4239 = vmatprep.subr.msk.bf16.mxu1 (!%p138_p2), %vm489_vm0, %v4319_v4  ;;  %4244 = vmatprep.subr.msk.bf16.mxu0 (!%p138_p2), %vm489_vm0, %v4469_v6  ;;  %v3322_v4 = vld [vmem:[%s5078_s1 + $0x18] sm:$0xf] (!%p138_p2) }
   0x9   : > { %237 = vst.msk [vmem:[#allocation2] sm:$0xff] (!%p138_p2), %vm236_vm1, %v4265_v5  ;;  %240 = vst.msk [vmem:[#allocation2 + $0x18] sm:$0xff] (!%p138_p2), %vm236_vm1, %v4265_v5 }
   0xa   : > { %241 = vst.msk [vmem:[#allocation2 + $0x20] sm:$0xff] (!%p138_p2), %vm236_vm1, %v4265_v5  ;;  %242 = vst.msk [vmem:[#allocation2 + $0x28] sm:$0xff] (!%p138_p2), %vm236_vm1, %v4265_v5 }
   0xb   : > { %243 = vst.msk [vmem:[#allocation2 + $0x30] sm:$0xff] (!%p138_p2), %vm236_vm1, %v4265_v5  ;;  %244 = vst.msk [vmem:[#allocation2 + $0x38] sm:$0xff] (!%p138_p2), %vm236_vm1, %v4265_v5 }
   0xc   : > { %245 = vst.msk [vmem:[#allocation2 + $0x40] sm:$0xff] (!%p138_p2), %vm236_vm1, %v4265_v5  ;;  %246 = vst.msk [vmem:[#allocation2 + $0x48] sm:$0xff] (!%p138_p2), %vm236_vm1, %v4265_v5 }
   0xd   : > { %247 = vst.msk [vmem:[#allocation2 + $0x50] sm:$0xff] %vm236_vm1, %v4265_v5  ;;  %248 = vst.msk [vmem:[#allocation2 + $0x58] sm:$0xff] %vm236_vm1, %v4265_v5  ;;  %s5083_s13 = smov (!%p4312_p3, %s3212_s13), 1 }
   0xe   : > { %249 = vst.msk [vmem:[#allocation2 + $0x60] sm:$0xff] %vm236_vm1, %v4265_v5  ;;  %250 = vst.msk [vmem:[#allocation2 + $0x68] sm:$0xff] %vm236_vm1, %v4265_v5  ;;  %s3408_s23 = sshll.u32 %s5083_s13, 7 }
   0xf   : > { %251 = vst.msk [vmem:[#allocation2 + $0x70] sm:$0xff] %vm236_vm1, %v4265_v5  ;;  %252 = vst.msk [vmem:[#allocation2 + $0x78] sm:$0xff] %vm236_vm1, %v4265_v5  ;;  %s4487_s26 = scalar_lea.vmem %s5077_s0, %s3408_s23  ;;  %v391_v17 = vld [vmem:[#allocation2 + $0x8] sm:$0xff]  ;;  %v392_v18 = vld [vmem:[#allocation2 + $0x10] sm:$0xff]  ;;  %s4974_s16 = scalar_lea.vmem %s5080_s3, %s3408_s23 }
  0x10   : > { %253 = vst.msk [vmem:[#allocation2 + $0x80] sm:$0xff] %vm236_vm1, %v4265_v5  ;;  %254 = vst.msk [vmem:[#allocation2 + $0x88] sm:$0xff] %vm236_vm1, %v4265_v5  ;;  %v3443_v7 = vld [vmem:[%s4487_s26] sm:$0xff]   ;;  %v3506_v8 = vld [vmem:[%s4487_s26 + $0x8] sm:$0xff]   ;;  %v423_v24 = vpack.c.bf16 %v392_v18, %v391_v17 }
  0x11   : > { %255 = vst.msk [vmem:[#allocation2 + $0x90] sm:$0xff] %vm236_vm1, %v4265_v5  ;;  %256 = vst.msk [vmem:[#allocation2 + $0x98] sm:$0xff] %vm236_vm1, %v4265_v5  ;;  %v3507_v9 = vld [vmem:[%s4487_s26 + $0x10] sm:$0xff]   ;;  %v3444_v10 = vunpack.c.l.bf16 %v3443_v7  ;;  %v3445_v11 = vunpack.c.h.bf16 %v3443_v7  ;;  %v3448_v12 = vunpack.c.l.bf16 %v3506_v8  ;;  %v3449_v13 = vunpack.c.h.bf16 %v3506_v8  ;;  %v3508_v14 = vld [vmem:[%s4487_s26 + $0x18] sm:$0xff]  }
  0x12   : > { %257 = vst.msk [vmem:[#allocation2 + $0xa0] sm:$0xff] %vm236_vm1, %v4265_v5  ;;  %258 = vst.msk [vmem:[#allocation2 + $0xa8] sm:$0xff] %vm236_vm1, %v4265_v5  ;;  %v3509_v15 = vld [vmem:[%s4487_s26 + $0x20] sm:$0xff]   ;;  %v3510_v16 = vld [vmem:[%s4487_s26 + $0x28] sm:$0xff]   ;;  %v3452_v19 = vunpack.c.l.bf16 %v3507_v9  ;;  %v3453_v20 = vunpack.c.h.bf16 %v3507_v9  ;;  %v3456_v21 = vunpack.c.l.bf16 %v3508_v14  ;;  %v3457_v22 = vunpack.c.h.bf16 %v3508_v14  ;;  %3676 = vmatprep.mubr.msk.bf16.mxu1 %vm236_vm1, %v423_v24 }
  0x13   : > { %259 = vst.msk [vmem:[#allocation2 + $0xb0] sm:$0xff] %vm236_vm1, %v4265_v5  ;;  %260 = vst.msk [vmem:[#allocation2 + $0xb8] sm:$0xff] %vm236_vm1, %v4265_v5  ;;  %v3511_v23 = vld [vmem:[%s4487_s26 + $0x30] sm:$0xff]   ;;  %v3460_v25 = vunpack.c.l.bf16 %v3509_v15  ;;  %v3461_v26 = vunpack.c.h.bf16 %v3509_v15  ;;  %v3464_v27 = vunpack.c.l.bf16 %v3510_v16  ;;  %v3512_v28 = vld [vmem:[%s4487_s26 + $0x38] sm:$0xff]   ;;  %v3465_v31 = vunpack.c.h.bf16 %v3510_v16 }
  0x14   : > { %261 = vst.msk [vmem:[#allocation2 + $0xc0] sm:$0xff] %vm236_vm1, %v4265_v5  ;;  %262 = vst.msk [vmem:[#allocation2 + $0xc8] sm:$0xff] %vm236_vm1, %v4265_v5  ;;  %v3513_v29 = vld [vmem:[%s4487_s26 + $0x40] sm:$0xff]   ;;  %v3514_v30 = vld [vmem:[%s4487_s26 + $0x48] sm:$0xff]   ;;  %v3468_v32 = vunpack.c.l.bf16 %v3511_v23  ;;  %v3469_v33 = vunpack.c.h.bf16 %v3511_v23  ;;  %v3472_v34 = vunpack.c.l.bf16 %v3512_v28  ;;  %v3473_v38 = vunpack.c.h.bf16 %v3512_v28 }
  0x15   : > { %263 = vst.msk [vmem:[#allocation2 + $0xd0] sm:$0xff] %vm236_vm1, %v4265_v5  ;;  %264 = vst.msk [vmem:[#allocation2 + $0xd8] sm:$0xff] %vm236_vm1, %v4265_v5  ;;  %v3515_v35 = vld [vmem:[%s4487_s26 + $0x50] sm:$0xff]   ;;  %v3516_v36 = vld [vmem:[%s4487_s26 + $0x58] sm:$0xff]   ;;  %v3476_v39 = vunpack.c.l.bf16 %v3513_v29  ;;  %v3477_v40 = vunpack.c.h.bf16 %v3513_v29  ;;  %v3480_v41 = vunpack.c.l.bf16 %v3514_v30  ;;  %v3481_v44 = vunpack.c.h.bf16 %v3514_v30 }
  0x16   : > { %265 = vst.msk [vmem:[#allocation2 + $0xe0] sm:$0xff] %vm236_vm1, %v4265_v5  ;;  %266 = vst.msk [vmem:[#allocation2 + $0xe8] sm:$0xff] %vm236_vm1, %v4265_v5  ;;  %v3517_v37 = vld [vmem:[%s4487_s26 + $0x60] sm:$0xff]   ;;  %v3518_v42 = vld [vmem:[%s4487_s26 + $0x68] sm:$0xff]   ;;  %v3484_v45 = vunpack.c.l.bf16 %v3515_v35  ;;  %v3485_v46 = vunpack.c.h.bf16 %v3515_v35  ;;  %v3488_v47 = vunpack.c.l.bf16 %v3516_v36  ;;  %v3489_v49 = vunpack.c.h.bf16 %v3516_v36 }
  0x17   : > { %267 = vst.msk [vmem:[#allocation2 + $0xf0] sm:$0xff] %vm236_vm1, %v4265_v5  ;;  %268 = vst.msk [vmem:[#allocation2 + $0xf8] sm:$0xff] %vm236_vm1, %v4265_v5  ;;  %v3519_v43 = vld [vmem:[%s4487_s26 + $0x70] sm:$0xff]   ;;  %v3520_v48 = vld [vmem:[%s4487_s26 + $0x78] sm:$0xff]   ;;  %v3492_v50 = vunpack.c.l.bf16 %v3517_v37  ;;  %v3493_v51 = vunpack.c.h.bf16 %v3517_v37  ;;  %v3496_v52 = vunpack.c.l.bf16 %v3518_v42  ;;  %v3497_v53 = vunpack.c.h.bf16 %v3518_v42 }
  0x18   : > { %269 = vst.msk [vmem:[#allocation2 + $0x100] sm:$0xff] %vm236_vm1, %v4265_v5  ;;  %270 = vst.msk [vmem:[#allocation2 + $0x108] sm:$0xff] %vm236_vm1, %v4265_v5  ;;  %v3500_v54 = vunpack.c.l.bf16 %v3519_v43  ;;  %v3501_v55 = vunpack.c.h.bf16 %v3519_v43  ;;  %v3504_v56 = vunpack.c.l.bf16 %v3520_v48  ;;  %v3505_v57 = vunpack.c.h.bf16 %v3520_v48  ;;  %v4556_v9 = vld [vmem:[%s5078_s1 + $0x8] sm:$0xf] }
  0x19   : > { %271 = vst.msk [vmem:[#allocation2 + $0x110] sm:$0xff] %vm236_vm1, %v4265_v5  ;;  %272 = vst.msk [vmem:[#allocation2 + $0x118] sm:$0xff] %vm236_vm1, %v4265_v5  ;;  %v1847_v7 = vsel %vm489_vm0, %v4469_v6, 0 }
  0x1a   : > { %273 = vst.msk [vmem:[#allocation2 + $0x120] sm:$0xff] %vm236_vm1, %v4265_v5  ;;  %274 = vst.msk [vmem:[#allocation2 + $0x128] sm:$0xff] %vm236_vm1, %v4265_v5 }
  0x1b   : > { %275 = vst.msk [vmem:[#allocation2 + $0x130] sm:$0xff] %vm236_vm1, %v4265_v5  ;;  %276 = vst.msk [vmem:[#allocation2 + $0x138] sm:$0xff] %vm236_vm1, %v4265_v5 }
  0x1c   : > { %277 = vst.msk [vmem:[#allocation2 + $0x140] sm:$0xff] %vm236_vm1, %v4265_v5  ;;  %278 = vst.msk [vmem:[#allocation2 + $0x148] sm:$0xff] %vm236_vm1, %v4265_v5 }
  0x1d   : > { %279 = vst.msk [vmem:[#allocation2 + $0x150] sm:$0xff] %vm236_vm1, %v4265_v5  ;;  %280 = vst.msk [vmem:[#allocation2 + $0x158] sm:$0xff] %vm236_vm1, %v4265_v5 }
  0x1e   : > { %281 = vst.msk [vmem:[#allocation2 + $0x160] sm:$0xff] %vm236_vm1, %v4265_v5  ;;  %282 = vst.msk [vmem:[#allocation2 + $0x168] sm:$0xff] %vm236_vm1, %v4265_v5 }
  0x1f   : > { %283 = vst.msk [vmem:[#allocation2 + $0x170] sm:$0xff] %vm236_vm1, %v4265_v5  ;;  %284 = vst.msk [vmem:[#allocation2 + $0x178] sm:$0xff] %vm236_vm1, %v4265_v5 }
  0x20   : > { %285 = vst.msk [vmem:[#allocation2 + $0x180] sm:$0xff] %vm236_vm1, %v4265_v5  ;;  %286 = vst.msk [vmem:[#allocation2 + $0x188] sm:$0xff] %vm236_vm1, %v4265_v5 }
  0x21   : > { %287 = vst.msk [vmem:[#allocation2 + $0x190] sm:$0xff] %vm236_vm1, %v4265_v5  ;;  %288 = vst.msk [vmem:[#allocation2 + $0x198] sm:$0xff] %vm236_vm1, %v4265_v5 }
  0x22   : > { %289 = vst.msk [vmem:[#allocation2 + $0x1a0] sm:$0xff] %vm236_vm1, %v4265_v5  ;;  %290 = vst.msk [vmem:[#allocation2 + $0x1a8] sm:$0xff] %vm236_vm1, %v4265_v5 }
  0x23   : > { %291 = vst.msk [vmem:[#allocation2 + $0x1b0] sm:$0xff] %vm236_vm1, %v4265_v5  ;;  %292 = vst.msk [vmem:[#allocation2 + $0x1b8] sm:$0xff] %vm236_vm1, %v4265_v5 }
  0x24   : > { %293 = vst.msk [vmem:[#allocation2 + $0x1c0] sm:$0xff] %vm236_vm1, %v4265_v5  ;;  %294 = vst.msk [vmem:[#allocation2 + $0x1c8] sm:$0xff] %vm236_vm1, %v4265_v5 }
  0x25   : > { %295 = vst.msk [vmem:[#allocation2 + $0x1d0] sm:$0xff] %vm236_vm1, %v4265_v5  ;;  %296 = vst.msk [vmem:[#allocation2 + $0x1d8] sm:$0xff] %vm236_vm1, %v4265_v5 }
  0x26   : > { %297 = vst.msk [vmem:[#allocation2 + $0x1e0] sm:$0xff] %vm236_vm1, %v4265_v5  ;;  %298 = vst.msk [vmem:[#allocation2 + $0x1e8] sm:$0xff] %vm236_vm1, %v4265_v5 }
  0x27   : > { %299 = vst.msk [vmem:[#allocation2 + $0x1f0] sm:$0xff] %vm236_vm1, %v4265_v5  ;;  %300 = vst.msk [vmem:[#allocation2 + $0x1f8] sm:$0xff] %vm236_vm1, %v4265_v5 }
  0x28   : > { %301 = vst.msk [vmem:[#allocation2 + $0x200] sm:$0xff] %vm236_vm1, %v4265_v5  ;;  %302 = vst.msk [vmem:[#allocation2 + $0x208] sm:$0xff] %vm236_vm1, %v4265_v5 }
  0x29   : > { %303 = vst.msk [vmem:[#allocation2 + $0x210] sm:$0xff] %vm236_vm1, %v4265_v5  ;;  %304 = vst.msk [vmem:[#allocation2 + $0x218] sm:$0xff] %vm236_vm1, %v4265_v5 }
  0x2a   : > { %305 = vst.msk [vmem:[#allocation2 + $0x220] sm:$0xff] %vm236_vm1, %v4265_v5  ;;  %306 = vst.msk [vmem:[#allocation2 + $0x228] sm:$0xff] %vm236_vm1, %v4265_v5 }
  0x2b   : > { %307 = vst.msk [vmem:[#allocation2 + $0x230] sm:$0xff] %vm236_vm1, %v4265_v5  ;;  %308 = vst.msk [vmem:[#allocation2 + $0x238] sm:$0xff] %vm236_vm1, %v4265_v5 }
  0x2c   : > { %310 = vst.msk [vmem:[#allocation2 + $0x28] sm:$0xff] %vm236_vm1, %v3444_v10  ;;  %311 = vst.msk [vmem:[#allocation2 + $0x30] sm:$0xff] %vm236_vm1, %v3445_v11 }
  0x2d   : > { %312 = vst.msk [vmem:[#allocation2 + $0x48] sm:$0xff] %vm236_vm1, %v3448_v12  ;;  %313 = vst.msk [vmem:[#allocation2 + $0x50] sm:$0xff] %vm236_vm1, %v3449_v13 }
  0x2e   : > { %314 = vst.msk [vmem:[#allocation2 + $0x68] sm:$0xff] %vm236_vm1, %v3452_v19  ;;  %315 = vst.msk [vmem:[#allocation2 + $0x70] sm:$0xff] %vm236_vm1, %v3453_v20 }
  0x2f   : > { %316 = vst.msk [vmem:[#allocation2 + $0x88] sm:$0xff] %vm236_vm1, %v3456_v21  ;;  %317 = vst.msk [vmem:[#allocation2 + $0x90] sm:$0xff] %vm236_vm1, %v3457_v22 }
  0x30   : > { %318 = vst.msk [vmem:[#allocation2 + $0xa8] sm:$0xff] %vm236_vm1, %v3460_v25  ;;  %319 = vst.msk [vmem:[#allocation2 + $0xb0] sm:$0xff] %vm236_vm1, %v3461_v26 }
  0x31   : > { %320 = vst.msk [vmem:[#allocation2 + $0xc8] sm:$0xff] %vm236_vm1, %v3464_v27  ;;  %321 = vst.msk [vmem:[#allocation2 + $0xd0] sm:$0xff] %vm236_vm1, %v3465_v31 }
  0x32   : > { %322 = vst.msk [vmem:[#allocation2 + $0xe8] sm:$0xff] %vm236_vm1, %v3468_v32  ;;  %323 = vst.msk [vmem:[#allocation2 + $0xf0] sm:$0xff] %vm236_vm1, %v3469_v33 }
  0x33   : > { %324 = vst.msk [vmem:[#allocation2 + $0x108] sm:$0xff] %vm236_vm1, %v3472_v34  ;;  %325 = vst.msk [vmem:[#allocation2 + $0x110] sm:$0xff] %vm236_vm1, %v3473_v38  ;;  %v393_v58 = vld [vmem:[#allocation2 + $0x28] sm:$0xff]  ;;  %v394_v59 = vld [vmem:[#allocation2 + $0x30] sm:$0xff] }
  0x34   : > { %326 = vst.msk [vmem:[#allocation2 + $0x128] sm:$0xff] %vm236_vm1, %v3476_v39  ;;  %327 = vst.msk [vmem:[#allocation2 + $0x130] sm:$0xff] %vm236_vm1, %v3477_v40  ;;  %v1456_v60 = vld [vmem:[#allocation2 + $0x48] sm:$0xff]  ;;  %v424_v61 = vpack.c.bf16 %v394_v59, %v393_v58  ;;  %v1457_v63 = vld [vmem:[#allocation2 + $0x50] sm:$0xff]  ;;  %v2142_v39 = vsel %vm489_vm0, %v3322_v4, 0 }
  0x35   : > { %328 = vst.msk [vmem:[#allocation2 + $0x148] sm:$0xff] %vm236_vm1, %v3480_v41  ;;  %329 = vst.msk [vmem:[#allocation2 + $0x150] sm:$0xff] %vm236_vm1, %v3481_v44  ;;  %v397_v0 = vld [vmem:[#allocation2 + $0x68] sm:$0xff]  ;;  %v398_v2 = vld [vmem:[#allocation2 + $0x70] sm:$0xff]  ;;  %v4540_v5 = vpack.c.bf16 %v1457_v63, %v1456_v60 }
  0x36   : > { %330 = vst.msk [vmem:[#allocation2 + $0x168] sm:$0xff] %vm236_vm1, %v3484_v45  ;;  %331 = vst.msk [vmem:[#allocation2 + $0x170] sm:$0xff] %vm236_vm1, %v3485_v46  ;;  %v4544_v8 = vpack.c.bf16 %v398_v2, %v397_v0  ;;  %3677 = vmatmul.mubr.msk.bf16.vlgmr.msra.gmra.mrb[0].mxu1 %vm236_vm1, %v424_v61  ;;  %3812 = vmatprep.mubr.msk.bf16.mxu0 %vm236_vm1, %v424_v61  ;;  %v1460_v6 = vld [vmem:[#allocation2 + $0x88] sm:$0xff]  ;;  %v1461_v10 = vld [vmem:[#allocation2 + $0x90] sm:$0xff] }
  0x37   : > { %332 = vst.msk [vmem:[#allocation2 + $0x188] sm:$0xff] %vm236_vm1, %v3488_v47  ;;  %333 = vst.msk [vmem:[#allocation2 + $0x190] sm:$0xff] %vm236_vm1, %v3489_v49  ;;  %3709 = vmatpush3.bf16.msra.mxu1 %v703_v62  ;;  %3813 = vmatmul.mubr.msk.bf16.vlgmr.msra.gmra.mrb[0].mxu0 %vm236_vm1, %v4540_v5  ;;  %v401_v11 = vld [vmem:[#allocation2 + $0xa8] sm:$0xff]  ;;  %v402_v12 = vld [vmem:[#allocation2 + $0xb0] sm:$0xff]  ;;  %v4565_v13 = vpack.c.bf16 %v1461_v10, %v1460_v6 }
  0x38   : > { %334 = vst.msk [vmem:[#allocation2 + $0x1a8] sm:$0xff] %vm236_vm1, %v3492_v50  ;;  %335 = vst.msk [vmem:[#allocation2 + $0x1b0] sm:$0xff] %vm236_vm1, %v3493_v51  ;;  %3845 = vmatpush3.bf16.msra.mxu0 %v1847_v7  ;;  %3680 = vmatprep.mubr.msk.bf16.mxu1 %vm236_vm1, %v4540_v5  ;;  %v4567_v14 = vpack.c.bf16 %v402_v12, %v401_v11  ;;  %v1464_v15 = vld [vmem:[#allocation2 + $0xc8] sm:$0xff]  ;;  %v1465_v16 = vld [vmem:[#allocation2 + $0xd0] sm:$0xff] }
  0x39   : > { %336 = vst.msk [vmem:[#allocation2 + $0x1c8] sm:$0xff] %vm236_vm1, %v3496_v52  ;;  %337 = vst.msk [vmem:[#allocation2 + $0x1d0] sm:$0xff] %vm236_vm1, %v3497_v53  ;;  %3816 = vmatprep.mubr.msk.bf16.mxu0 %vm236_vm1, %v4544_v8  ;;  %4245 = vmatprep.subr.msk.bf16.mxu0 %vm489_vm0, %v3322_v4  ;;  %v405_v17 = vld [vmem:[#allocation2 + $0xe8] sm:$0xff]  ;;  %v406_v18 = vld [vmem:[#allocation2 + $0xf0] sm:$0xff]  ;;  %v4577_v19 = vpack.c.bf16 %v1465_v16, %v1464_v15 }
  0x3a   : > { %338 = vst.msk [vmem:[#allocation2 + $0x1e8] sm:$0xff] %vm236_vm1, %v3500_v54  ;;  %339 = vst.msk [vmem:[#allocation2 + $0x1f0] sm:$0xff] %vm236_vm1, %v3501_v55  ;;  %4240 = vmatprep.subr.msk.bf16.mxu1 %vm489_vm0, %v4556_v9  ;;  %v4579_v20 = vpack.c.bf16 %v406_v18, %v405_v17  ;;  %v1468_v21 = vld [vmem:[#allocation2 + $0x108] sm:$0xff]  ;;  %v1469_v22 = vld [vmem:[#allocation2 + $0x110] sm:$0xff] }
  0x3b   : > { %340 = vst.msk [vmem:[#allocation2 + $0x208] sm:$0xff] %vm236_vm1, %v3504_v56  ;;  %341 = vst.msk [vmem:[#allocation2 + $0x210] sm:$0xff] %vm236_vm1, %v3505_v57  ;;  %v1748_v23 = vld [vmem:[#allocation2 + $0x29] sm:$0xff]  ;;  %v1749_v24 = vld [vmem:[#allocation2 + $0x31] sm:$0xff]  ;;  %v4589_v25 = vpack.c.bf16 %v1469_v22, %v1468_v21 }
  0x3c   : > { %v4591_v26 = vpack.c.bf16 %v1749_v24, %v1748_v23  ;;  %v409_v27 = vld [vmem:[#allocation2 + $0x128] sm:$0xff]  ;;  %v410_v28 = vld [vmem:[#allocation2 + $0x130] sm:$0xff]  ;;  %v4615_v40 = vld [vmem:[%s5078_s1 + $0x1c] sm:$0xf] }
  0x3d   : > { %v1750_v29 = vld [vmem:[#allocation2 + $0x49] sm:$0xff]  ;;  %v1751_v30 = vld [vmem:[#allocation2 + $0x51] sm:$0xff]  ;;  %v4601_v35 = vpack.c.bf16 %v410_v28, %v409_v27 }
  0x3e   : > { %3681 = vmatmul.mubr.msk.bf16.gmra.mrb[4].mxu1 %vm236_vm1, %v4544_v8  ;;  %v411_v31 = vld [vmem:[#allocation2 + $0x148] sm:$0xff]  ;;  %v412_v32 = vld [vmem:[#allocation2 + $0x150] sm:$0xff]  ;;  %v4603_v36 = vpack.c.bf16 %v1751_v30, %v1750_v29 }
  0x3f   : > { %3817 = vmatmul.mubr.msk.bf16.gmra.mrb[4].mxu0 %vm236_vm1, %v4565_v13  ;;  %3684 = vmatprep.mubr.msk.bf16.mxu1 %vm236_vm1, %v4565_v13  ;;  %v1752_v33 = vld [vmem:[#allocation2 + $0x69] sm:$0xff]  ;;  %v1753_v34 = vld [vmem:[#allocation2 + $0x71] sm:$0xff]  ;;  %v4605_v37 = vpack.c.bf16 %v412_v32, %v411_v31 }
  0x40   : > { %3820 = vmatprep.mubr.msk.bf16.mxu0 %vm236_vm1, %v4567_v14  ;;  %v4607_v38 = vpack.c.bf16 %v1753_v34, %v1752_v33  ;;  %v413_v41 = vld [vmem:[#allocation2 + $0x168] sm:$0xff]  ;;  %v414_v42 = vld [vmem:[#allocation2 + $0x170] sm:$0xff]  ;;  %v965_v34 = vsel %vm489_vm0, %v4556_v9, 0 }
  0x41   : > { %v1754_v43 = vld [vmem:[#allocation2 + $0x89] sm:$0xff]  ;;  %v1755_v44 = vld [vmem:[#allocation2 + $0x91] sm:$0xff]  ;;  %v4625_v49 = vpack.c.bf16 %v414_v42, %v413_v41 }
  0x42   : > { %v415_v45 = vld [vmem:[#allocation2 + $0x188] sm:$0xff]  ;;  %v416_v46 = vld [vmem:[#allocation2 + $0x190] sm:$0xff]  ;;  %v4627_v50 = vpack.c.bf16 %v1755_v44, %v1754_v43 }
  0x43   : > { %v1756_v47 = vld [vmem:[#allocation2 + $0xa9] sm:$0xff]  ;;  %v1757_v48 = vld [vmem:[#allocation2 + $0xb1] sm:$0xff]  ;;  %v4629_v51 = vpack.c.bf16 %v416_v46, %v415_v45 }
  0x44   : > { %v4631_v52 = vpack.c.bf16 %v1757_v48, %v1756_v47  ;;  %v417_v53 = vld [vmem:[#allocation2 + $0x1a8] sm:$0xff]  ;;  %v418_v54 = vld [vmem:[#allocation2 + $0x1b0] sm:$0xff] }
  0x45   : > { %v1758_v55 = vld [vmem:[#allocation2 + $0xc9] sm:$0xff]  ;;  %v1759_v56 = vld [vmem:[#allocation2 + $0xd1] sm:$0xff]  ;;  %v4641_v61 = vpack.c.bf16 %v418_v54, %v417_v53 }
  0x46   : > { %3685 = vmatmul.mubr.msk.bf16.gmra.mrb[8].mxu1 %vm236_vm1, %v4567_v14  ;;  %v419_v57 = vld [vmem:[#allocation2 + $0x1c8] sm:$0xff]  ;;  %v420_v58 = vld [vmem:[#allocation2 + $0x1d0] sm:$0xff]  ;;  %v4643_v62 = vpack.c.bf16 %v1759_v56, %v1758_v55 }
  0x47   : > { %3821 = vmatmul.mubr.msk.bf16.gmra.mrb[8].mxu0 %vm236_vm1, %v4577_v19  ;;  %3688 = vmatprep.mubr.msk.bf16.mxu1 %vm236_vm1, %v4577_v19  ;;  %v1760_v59 = vld [vmem:[#allocation2 + $0xe9] sm:$0xff]  ;;  %v1761_v60 = vld [vmem:[#allocation2 + $0xf1] sm:$0xff]  ;;  %v4645_v63 = vpack.c.bf16 %v420_v58, %v419_v57 }
  0x48   : > { %3824 = vmatprep.mubr.msk.bf16.mxu0 %vm236_vm1, %v4579_v20  ;;  %v4647_v0 = vpack.c.bf16 %v1761_v60, %v1760_v59  ;;  %v421_v2 = vld [vmem:[#allocation2 + $0x1e8] sm:$0xff]  ;;  %v422_v7 = vld [vmem:[#allocation2 + $0x1f0] sm:$0xff] }
  0x49   : > { %v342_v4 = vld [vmem:[#allocation2 + $0x7] sm:$0xff]  ;;  %v1763_v10 = vld [vmem:[#allocation2 + $0x111] sm:$0xff]  ;;  %v4657_v16 = vpack.c.bf16 %v422_v7, %v421_v2 }
  0x4a   : > { %v1762_v6 = vld [vmem:[#allocation2 + $0x109] sm:$0xff]  ;;  %v1765_v15 = vld [vmem:[#allocation2 + $0x131] sm:$0xff] }
  0x4b   : > { %v343_v11 = vld [vmem:[#allocation2 + $0xf] sm:$0xff]  ;;  %v4659_v17 = vpack.c.bf16 %v1763_v10, %v1762_v6  ;;  %v344_v22 = vld [vmem:[#allocation2 + $0x27] sm:$0xff] }
  0x4c   : > { %v1764_v12 = vld [vmem:[#allocation2 + $0x129] sm:$0xff]  ;;  %v374_v18 = vpack.c.bf16 %v343_v11, %v342_v4  ;;  %v1767_v27 = vld [vmem:[#allocation2 + $0x151] sm:$0xff] }
  0x4d   : > { %v4661_v21 = vpack.c.bf16 %v1765_v15, %v1764_v12  ;;  %v345_v23 = vld [vmem:[#allocation2 + $0x2f] sm:$0xff]  ;;  %v346_v28 = vld [vmem:[#allocation2 + $0x47] sm:$0xff] }
  0x4e   : > { %3689 = vmatmul.mubr.msk.bf16.gmra.mrb[12].mxu1 %vm236_vm1, %v4579_v20  ;;  %v1766_v24 = vld [vmem:[#allocation2 + $0x149] sm:$0xff]  ;;  %v1769_v31 = vld [vmem:[#allocation2 + $0x171] sm:$0xff]  ;;  %v4670_v32 = vpack.c.bf16 %v345_v23, %v344_v22 }
  0x4f   : > { %3825 = vmatmul.mubr.msk.bf16.gmra.mrb[12].mxu0 %vm236_vm1, %v4589_v25  ;;  %3692 = vmatprep.mubr.msk.bf16.mxu1 %vm236_vm1, %v4589_v25  ;;  %v347_v29 = vld [vmem:[#allocation2 + $0x4f] sm:$0xff]  ;;  %v4672_v33 = vpack.c.bf16 %v1767_v27, %v1766_v24  ;;  %v348_v43 = vld [vmem:[#allocation2 + $0x67] sm:$0xff] }
  0x50   : > { %3846 = vmatprep.mubr.msk.bf16.mxu0 %vm236_vm1, %v4591_v26  ;;  %v1768_v30 = vld [vmem:[#allocation2 + $0x169] sm:$0xff]  ;;  %v1771_v9 = vld [vmem:[#allocation2 + $0x191] sm:$0xff] }
  0x51   : > { %v4678_v41 = vpack.c.bf16 %v1769_v31, %v1768_v30  ;;  %v4685_v42 = vld [vmem:[%s5078_s1 + $0xc] sm:$0xf]  ;;  %v1773_v53 = vld [vmem:[#allocation2 + $0x1b1] sm:$0xff] }
  0x52   : > { %v349_v44 = vld [vmem:[#allocation2 + $0x6f] sm:$0xff]  ;;  %v350_v46 = vld [vmem:[#allocation2 + $0x87] sm:$0xff] }
  0x53   : > { %v1770_v45 = vld [vmem:[#allocation2 + $0x189] sm:$0xff]  ;;  %v4695_v54 = vpack.c.bf16 %v349_v44, %v348_v43  ;;  %v1775_v2 = vld [vmem:[#allocation2 + $0x1d1] sm:$0xff] }
  0x54   : > { %v351_v47 = vld [vmem:[#allocation2 + $0x8f] sm:$0xff]  ;;  %v4697_v55 = vpack.c.bf16 %v1771_v9, %v1770_v45  ;;  %v352_v58 = vld [vmem:[#allocation2 + $0xa7] sm:$0xff] }
  0x55   : > { %v1772_v48 = vld [vmem:[#allocation2 + $0x1a9] sm:$0xff]  ;;  %v4699_v56 = vpack.c.bf16 %v351_v47, %v350_v46  ;;  %v1777_v10 = vld [vmem:[#allocation2 + $0x1f1] sm:$0xff] }
  0x56   : > { %3693 = vmatmul.mubr.msk.bf16.gmra.mrb[16].mxu1 %vm236_vm1, %v4601_v35  ;;  %v4701_v57 = vpack.c.bf16 %v1773_v53, %v1772_v48  ;;  %v353_v59 = vld [vmem:[#allocation2 + $0xaf] sm:$0xff]  ;;  %v354_v7 = vld [vmem:[#allocation2 + $0xc7] sm:$0xff]  ;;  %v2436_v48 = vsel %vm489_vm0, %v4615_v40, 0  ;;  %v3356_v53 = vld [vmem:[%s5078_s1 + $0x20] sm:$0xf] }
  0x57   : > { %3847 = vmatmul.mubr.msk.bf16.vlgmr.msra.gmra.mrb[0].mxu0 %vm236_vm1, %v4603_v36  ;;  %3696 = vmatprep.mubr.msk.bf16.mxu1 %vm236_vm1, %v4605_v37  ;;  %v1774_v60 = vld [vmem:[#allocation2 + $0x1c9] sm:$0xff]  ;;  %v4711_v11 = vpack.c.bf16 %v353_v59, %v352_v58  ;;  %v1779_v27 = vld [vmem:[#allocation2 + $0x211] sm:$0xff] }
  0x58   : > { %3879 = vmatpush3.bf16.msra.mxu0 %v2142_v39  ;;  %3850 = vmatprep.mubr.msk.bf16.mxu0 %vm236_vm1, %v4607_v38  ;;  %v4676_v39 = vpack.c.bf16 %v347_v29, %v346_v28  ;;  %v355_v4 = vld [vmem:[#allocation2 + $0xcf] sm:$0xff]  ;;  %v4713_v12 = vpack.c.bf16 %v1775_v2, %v1774_v60  ;;  %v356_v22 = vld [vmem:[#allocation2 + $0xe7] sm:$0xff] }
  0x59   : > { %4246 = vmatprep.subr.msk.bf16.mxu0 %vm489_vm0, %v4615_v40  ;;  %v1776_v6 = vld [vmem:[#allocation2 + $0x1e9] sm:$0xff]  ;;  %v4715_v15 = vpack.c.bf16 %v355_v4, %v354_v7 }
  0x5a   : > { %v357_v23 = vld [vmem:[#allocation2 + $0xef] sm:$0xff]  ;;  %v358_v28 = vld [vmem:[#allocation2 + $0x107] sm:$0xff] }
  0x5b   : > { %v1778_v24 = vld [vmem:[#allocation2 + $0x209] sm:$0xff]  ;;  %v4727_v30 = vpack.c.bf16 %v357_v23, %v356_v22 }
  0x5c   : > { %v359_v29 = vld [vmem:[#allocation2 + $0x10f] sm:$0xff]  ;;  %v4729_v31 = vpack.c.bf16 %v1779_v27, %v1778_v24  ;;  %v360_v43 = vld [vmem:[#allocation2 + $0x127] sm:$0xff] }
  0x5d   : > { %v361_v44 = vld [vmem:[#allocation2 + $0x12f] sm:$0xff]  ;;  %v362_v45 = vld [vmem:[#allocation2 + $0x147] sm:$0xff] }
  0x5e   : > { %3697 = vmatmul.mubr.msk.bf16.gmra.mrb[20].mxu1 %vm236_vm1, %v4625_v49  ;;  %v363_v9 = vld [vmem:[#allocation2 + $0x14f] sm:$0xff]  ;;  %v4741_v46 = vpack.c.bf16 %v361_v44, %v360_v43  ;;  %v364_v58 = vld [vmem:[#allocation2 + $0x167] sm:$0xff] }
  0x5f   : > { %3851 = vmatmul.mubr.msk.bf16.gmra.mrb[4].mxu0 %vm236_vm1, %v4627_v50  ;;  %3700 = vmatprep.mubr.msk.bf16.mxu1 %vm236_vm1, %v4629_v51  ;;  %v4743_v47 = vpack.c.bf16 %v363_v9, %v362_v45  ;;  %v365_v59 = vld [vmem:[#allocation2 + $0x16f] sm:$0xff]  ;;  %v366_v40 = vld [vmem:[#allocation2 + $0x187] sm:$0xff]  ;;  %v1259_v9 = vsel %vm489_vm0, %v4685_v42, 0 }
  0x60   : > { %3854 = vmatprep.mubr.msk.bf16.mxu0 %vm236_vm1, %v4631_v52  ;;  %v367_v60 = vld [vmem:[#allocation2 + $0x18f] sm:$0xff]  ;;  %v4759_v2 = vpack.c.bf16 %v365_v59, %v364_v58  ;;  %v368_v4 = vld [vmem:[#allocation2 + $0x1a7] sm:$0xff] }
  0x61   : > { %v4761_v7 = vpack.c.bf16 %v367_v60, %v366_v40  ;;  %v371_v22 = vld [vmem:[#allocation2 + $0x1cf] sm:$0xff]  ;;  %v372_v27 = vld [vmem:[#allocation2 + $0x1e7] sm:$0xff]  ;;  %v2730_v40 = vsel %vm489_vm0, %v3356_v53, 0 }
  0x62   : > { %v867_v43 = vld [vmem:[#allocation2 + $0x11] sm:$0xff] }
  0x63   : > { %v2074_v58 = vld [vmem:[#allocation2 + $0x22f] sm:$0xff] }
  0x66   : > { %3701 = vmatmul.mubr.msk.bf16.gmra.mrb[24].mxu1 %vm236_vm1, %v4641_v61 }
  0x67   : > { %3855 = vmatmul.mubr.msk.bf16.gmra.mrb[8].mxu0 %vm236_vm1, %v4643_v62  ;;  %3704 = vmatprep.mubr.msk.bf16.mxu1 %vm236_vm1, %v4645_v63 }
  0x68   : > { %3858 = vmatprep.mubr.msk.bf16.mxu0 %vm236_vm1, %v4647_v0 }
  0x6e   : > { %3705 = vmatmul.mubr.msk.bf16.gmra.mrb[28].mxu1 %vm236_vm1, %v4657_v16 }
  0x6f   : > { %3859 = vmatmul.mubr.msk.bf16.gmra.mrb[12].mxu0 %vm236_vm1, %v4659_v17  ;;  %3710 = vmatprep.mubr.msk.bf16.mxu1 %vm236_vm1, %v374_v18  ;;  %v4717_v18 = vpack.c.bf16 %v1777_v10, %v1776_v6  ;;  %v369_v6 = vld [vmem:[#allocation2 + $0x1af] sm:$0xff]  ;;  %v370_v10 = vld [vmem:[#allocation2 + $0x1c7] sm:$0xff] }
  0x70   : > { %3862 = vmatprep.mubr.msk.bf16.mxu0 %vm236_vm1, %v4661_v21  ;;  %v4771_v23 = vpack.c.bf16 %v369_v6, %v368_v4  ;;  %v4773_v24 = vpack.c.bf16 %v371_v22, %v370_v10 }
  0x76   : > { %3711 = vmatmul.mubr.msk.bf16.vlgmr.msra.gmra.mrb[0].mxu1 %vm236_vm1, %v4670_v32 }
  0x77   : > { %3743 = vmatpush3.bf16.msra.mxu1 %v965_v34  ;;  %3863 = vmatmul.mubr.msk.bf16.gmra.mrb[16].mxu0 %vm236_vm1, %v4672_v33  ;;  %v4731_v34 = vpack.c.bf16 %v359_v29, %v358_v28  ;;  %v373_v28 = vld [vmem:[#allocation2 + $0x1ef] sm:$0xff] }
  0x78   : > { %3714 = vmatprep.mubr.msk.bf16.mxu1 %vm236_vm1, %v4676_v39  ;;  %3866 = vmatprep.mubr.msk.bf16.mxu0 %vm236_vm1, %v4678_v41  ;;  %v866_v29 = vld [vmem:[#allocation2 + $0x9] sm:$0xff]  ;;  %v4783_v44 = vpack.c.bf16 %v373_v28, %v372_v27 }
  0x79   : > { %4241 = vmatprep.subr.msk.bf16.mxu1 %vm489_vm0, %v4685_v42  ;;  %v898_v45 = vpack.c.bf16 %v867_v43, %v866_v29  ;;  %v2072_v42 = vld [vmem:[#allocation2 + $0x20f] sm:$0xff] }
  0x7e   : > { %3715 = vmatmul.mubr.msk.bf16.gmra.mrb[4].mxu1 %vm236_vm1, %v4695_v54 }
  0x7f   : > { %3867 = vmatmul.mubr.msk.bf16.gmra.mrb[20].mxu0 %vm236_vm1, %v4697_v55  ;;  %3718 = vmatprep.mubr.msk.bf16.mxu1 %vm236_vm1, %v4699_v56 }
  0x80   : > { %3870 = vmatprep.mubr.msk.bf16.mxu0 %vm236_vm1, %v4701_v57 }
  0x86   : > { %3719 = vmatmul.mubr.msk.bf16.gmra.mrb[8].mxu1 %vm236_vm1, %v4711_v11 }
  0x87   : > { %3871 = vmatmul.mubr.msk.bf16.gmra.mrb[24].mxu0 %vm236_vm1, %v4713_v12  ;;  %3722 = vmatprep.mubr.msk.bf16.mxu1 %vm236_vm1, %v4715_v15 }
  0x88   : > { %3874 = vmatprep.mubr.msk.bf16.mxu0 %vm236_vm1, %v4717_v18 }
  0x8e   : > { %3723 = vmatmul.mubr.msk.bf16.gmra.mrb[12].mxu1 %vm236_vm1, %v4727_v30 }
  0x8f   : > { %3875 = vmatmul.mubr.msk.bf16.gmra.mrb[28].mxu0 %vm236_vm1, %v4729_v31  ;;  %3726 = vmatprep.mubr.msk.bf16.mxu1 %vm236_vm1, %v4731_v34 }
  0x90   : > { %3880 = vmatprep.mubr.msk.bf16.mxu0 %vm236_vm1, %v4676_v39 }
  0x96   : > { %3727 = vmatmul.mubr.msk.bf16.gmra.mrb[16].mxu1 %vm236_vm1, %v4741_v46 }
  0x97   : > { %3881 = vmatmul.mubr.msk.bf16.vlgmr.msra.gmra.mrb[0].mxu0 %vm236_vm1, %v4695_v54  ;;  %3730 = vmatprep.mubr.msk.bf16.mxu1 %vm236_vm1, %v4743_v47 }
  0x98   : > { %3913 = vmatpush3.bf16.msra.mxu0 %v2436_v48  ;;  %3884 = vmatprep.mubr.msk.bf16.mxu0 %vm236_vm1, %v4699_v56 }
  0x99   : > { %4247 = vmatprep.subr.msk.bf16.mxu0 %vm489_vm0, %v3356_v53 }
  0x9e   : > { %3731 = vmatmul.mubr.msk.bf16.gmra.mrb[20].mxu1 %vm236_vm1, %v4759_v2 }
  0x9f   : > { %3885 = vmatmul.mubr.msk.bf16.gmra.mrb[4].mxu0 %vm236_vm1, %v4711_v11  ;;  %3734 = vmatprep.mubr.msk.bf16.mxu1 %vm236_vm1, %v4761_v7 }
  0xa0   : > { %3888 = vmatprep.mubr.msk.bf16.mxu0 %vm236_vm1, %v4715_v15 }
  0xa6   : > { %3735 = vmatmul.mubr.msk.bf16.gmra.mrb[24].mxu1 %vm236_vm1, %v4771_v23 }
  0xa7   : > { %3889 = vmatmul.mubr.msk.bf16.gmra.mrb[8].mxu0 %vm236_vm1, %v4727_v30  ;;  %3738 = vmatprep.mubr.msk.bf16.mxu1 %vm236_vm1, %v4773_v24 }
  0xa8   : > { %3892 = vmatprep.mubr.msk.bf16.mxu0 %vm236_vm1, %v4731_v34 }
  0xae   : > { %3739 = vmatmul.mubr.msk.bf16.gmra.mrb[28].mxu1 %vm236_vm1, %v4783_v44 }
  0xaf   : > { %3893 = vmatmul.mubr.msk.bf16.gmra.mrb[12].mxu0 %vm236_vm1, %v4741_v46  ;;  %3744 = vmatprep.mubr.msk.bf16.mxu1 %vm236_vm1, %v898_v45 }
  0xb0   : > { %3896 = vmatprep.mubr.msk.bf16.mxu0 %vm236_vm1, %v4743_v47 }
  0xb6   : > { %3745 = vmatmul.mubr.msk.bf16.vlgmr.msra.gmra.mrb[0].mxu1 %vm236_vm1, %v4591_v26  ;;  %v2071_v26 = vld [vmem:[#allocation2 + $0x207] sm:$0xff] }
  0xb7   : > { %3777 = vmatpush3.bf16.msra.mxu1 %v1259_v9  ;;  %3897 = vmatmul.mubr.msk.bf16.gmra.mrb[16].mxu0 %vm236_vm1, %v4759_v2  ;;  %v4812_v48 = vpack.c.bf16 %v2072_v42, %v2071_v26 }
  0xb8   : > { %3748 = vmatprep.mubr.msk.bf16.mxu1 %vm236_vm1, %v4603_v36  ;;  %3900 = vmatprep.mubr.msk.bf16.mxu0 %vm236_vm1, %v4761_v7 }
  0xb9   : > { %4243 = vmatprep.subr.msk.bf16.mxu1 %vm489_vm0, %v4300_v1  ;;  %v2073_v1 = vld [vmem:[#allocation2 + $0x227] sm:$0xff] }
  0xba   : > { %v2090_v59 = vpack.c.bf16 %v2074_v58, %v2073_v1 }
  0xbe   : > { %3749 = vmatmul.mubr.msk.bf16.gmra.mrb[4].mxu1 %vm236_vm1, %v4607_v38 }
  0xbf   : > { %3901 = vmatmul.mubr.msk.bf16.gmra.mrb[20].mxu0 %vm236_vm1, %v4771_v23  ;;  %3752 = vmatprep.mubr.msk.bf16.mxu1 %vm236_vm1, %v4627_v50 }
  0xc0   : > { %3904 = vmatprep.mubr.msk.bf16.mxu0 %vm236_vm1, %v4773_v24 }
  0xc6   : > { %3753 = vmatmul.mubr.msk.bf16.gmra.mrb[8].mxu1 %vm236_vm1, %v4631_v52 }
  0xc7   : > { %3905 = vmatmul.mubr.msk.bf16.gmra.mrb[24].mxu0 %vm236_vm1, %v4783_v44  ;;  %3756 = vmatprep.mubr.msk.bf16.mxu1 %vm236_vm1, %v4643_v62 }
  0xc8   : > { %3908 = vmatprep.mubr.msk.bf16.mxu0 %vm236_vm1, %v4812_v48 }
  0xce   : > { %3757 = vmatmul.mubr.msk.bf16.gmra.mrb[12].mxu1 %vm236_vm1, %v4647_v0 }
  0xcf   : > { %3909 = vmatmul.mubr.msk.bf16.gmra.mrb[28].mxu0 %vm236_vm1, %v2090_v59  ;;  %3760 = vmatprep.mubr.msk.bf16.mxu1 %vm236_vm1, %v4659_v17 }
  0xd0   : > { %3914 = vmatprep.mubr.msk.bf16.mxu0 %vm236_vm1, %v4540_v5  ;;  %v2366_v5 = vld [vmem:[#allocation2 + $0x210] sm:$0xff] }
  0xd6   : > { %3761 = vmatmul.mubr.msk.bf16.gmra.mrb[16].mxu1 %vm236_vm1, %v4661_v21 }
  0xd7   : > { %3915 = vmatmul.mubr.msk.bf16.vlgmr.msra.gmra.mrb[0].mxu0 %vm236_vm1, %v4544_v8  ;;  %3764 = vmatprep.mubr.msk.bf16.mxu1 %vm236_vm1, %v4672_v33 }
  0xd8   : > { %3947 = vmatpush3.bf16.msra.mxu0 %v2730_v40  ;;  %3918 = vmatprep.mubr.msk.bf16.mxu0 %vm236_vm1, %v4565_v13  ;;  %v2367_v13 = vld [vmem:[#allocation2 + $0x228] sm:$0xff] }
  0xde   : > { %3765 = vmatmul.mubr.msk.bf16.gmra.mrb[20].mxu1 %vm236_vm1, %v4678_v41 }
  0xdf   : > { %3919 = vmatmul.mubr.msk.bf16.gmra.mrb[4].mxu0 %vm236_vm1, %v4567_v14  ;;  %3768 = vmatprep.mubr.msk.bf16.mxu1 %vm236_vm1, %v4697_v55  ;;  %v2368_v14 = vld [vmem:[#allocation2 + $0x230] sm:$0xff] }
  0xe0   : > { %3922 = vmatprep.mubr.msk.bf16.mxu0 %vm236_vm1, %v4577_v19  ;;  %v2384_v19 = vpack.c.bf16 %v2368_v14, %v2367_v13 }
  0xe6   : > { %3769 = vmatmul.mubr.msk.bf16.gmra.mrb[24].mxu1 %vm236_vm1, %v4701_v57 }
  0xe7   : > { %3923 = vmatmul.mubr.msk.bf16.gmra.mrb[8].mxu0 %vm236_vm1, %v4579_v20  ;;  %3772 = vmatprep.mubr.msk.bf16.mxu1 %vm236_vm1, %v4713_v12  ;;  %v2661_v20 = vld [vmem:[#allocation2 + $0x229] sm:$0xff] }
  0xe8   : > { %3926 = vmatprep.mubr.msk.bf16.mxu0 %vm236_vm1, %v4589_v25  ;;  %v2662_v25 = vld [vmem:[#allocation2 + $0x231] sm:$0xff] }
  0xee   : > { %3773 = vmatmul.mubr.msk.bf16.gmra.mrb[28].mxu1 %vm236_vm1, %v4717_v18 }
  0xef   : > { %3927 = vmatmul.mubr.msk.bf16.gmra.mrb[12].mxu0 %vm236_vm1, %v4601_v35  ;;  %3778 = vmatprep.mubr.msk.bf16.mxu1 %vm236_vm1, %v4670_v32 }
  0xf0   : > { %3930 = vmatprep.mubr.msk.bf16.mxu0 %vm236_vm1, %v4605_v37 }
  0xf6   : > { %3779 = vmatmul.mubr.msk.bf16.vlgmr.msra.gmra.mrb[0].mxu1 %vm236_vm1, %v4676_v39 }
  0xf7   : > { %3981 = vmatpush3.bf16.msra.mxu1 %v4308_v3  ;;  %3931 = vmatmul.mubr.msk.bf16.gmra.mrb[16].mxu0 %vm236_vm1, %v4625_v49  ;;  %v2365_v3 = vld [vmem:[#allocation2 + $0x208] sm:$0xff] }
  0xf8   : > { %3782 = vmatprep.mubr.msk.bf16.mxu1 %vm236_vm1, %v4695_v54  ;;  %3934 = vmatprep.mubr.msk.bf16.mxu0 %vm236_vm1, %v4629_v51  ;;  %v2383_v8 = vpack.c.bf16 %v2366_v5, %v2365_v3 }
  0xfe   : > { %3783 = vmatmul.mubr.msk.bf16.gmra.mrb[4].mxu1 %vm236_vm1, %v4699_v56 }
  0xff   : > { %3935 = vmatmul.mubr.msk.bf16.gmra.mrb[20].mxu0 %vm236_vm1, %v4641_v61  ;;  %3786 = vmatprep.mubr.msk.bf16.mxu1 %vm236_vm1, %v4711_v11 }
 0x100   : > { %3938 = vmatprep.mubr.msk.bf16.mxu0 %vm236_vm1, %v4645_v63 }
 0x106   : > { %3787 = vmatmul.mubr.msk.bf16.gmra.mrb[8].mxu1 %vm236_vm1, %v4715_v15 }
 0x107   : > { %3939 = vmatmul.mubr.msk.bf16.gmra.mrb[24].mxu0 %vm236_vm1, %v4657_v16  ;;  %3790 = vmatprep.mubr.msk.bf16.mxu1 %vm236_vm1, %v4727_v30 }
 0x108   : > { %3942 = vmatprep.mubr.msk.bf16.mxu0 %vm236_vm1, %v2383_v8 }
 0x10e   : > { %3791 = vmatmul.mubr.msk.bf16.gmra.mrb[12].mxu1 %vm236_vm1, %v4731_v34 }
 0x10f   : > { %3943 = vmatmul.mubr.msk.bf16.gmra.mrb[28].mxu0 %vm236_vm1, %v2384_v19  ;;  %3794 = vmatprep.mubr.msk.bf16.mxu1 %vm236_vm1, %v4741_v46 }
 0x110   : > { %3948 = vmatprep.mubr.msk.bf16.mxu0 %vm236_vm1, %v4603_v36 }
 0x116   : > { %3795 = vmatmul.mubr.msk.bf16.gmra.mrb[16].mxu1 %vm236_vm1, %v4743_v47 }
 0x117   : > { %3949 = vmatmul.mubr.msk.bf16.vlgmr.msra.gmra.mrb[0].mxu0 %vm236_vm1, %v4607_v38  ;;  %3798 = vmatprep.mubr.msk.bf16.mxu1 %vm236_vm1, %v4759_v2 }
 0x118   : > { %3952 = vmatprep.mubr.msk.bf16.mxu0 %vm236_vm1, %v4627_v50 }
 0x11e   : > { %3799 = vmatmul.mubr.msk.bf16.gmra.mrb[20].mxu1 %vm236_vm1, %v4761_v7 }
 0x11f   : > { %3953 = vmatmul.mubr.msk.bf16.gmra.mrb[4].mxu0 %vm236_vm1, %v4631_v52  ;;  %3802 = vmatprep.mubr.msk.bf16.mxu1 %vm236_vm1, %v4771_v23 }
 0x120   : > { %3956 = vmatprep.mubr.msk.bf16.mxu0 %vm236_vm1, %v4643_v62 }
 0x126   : > { %3803 = vmatmul.mubr.msk.bf16.gmra.mrb[24].mxu1 %vm236_vm1, %v4773_v24 }
 0x127   : > { %3957 = vmatmul.mubr.msk.bf16.gmra.mrb[8].mxu0 %vm236_vm1, %v4647_v0  ;;  %3806 = vmatprep.mubr.msk.bf16.mxu1 %vm236_vm1, %v4783_v44 }
 0x128   : > { %3960 = vmatprep.mubr.msk.bf16.mxu0 %vm236_vm1, %v4659_v17 }
 0x12e   : > { %3807 = vmatmul.mubr.msk.bf16.gmra.mrb[28].mxu1 %vm236_vm1, %v4812_v48 }
 0x12f   : > { %3961 = vmatmul.mubr.msk.bf16.gmra.mrb[12].mxu0 %vm236_vm1, %v4661_v21  ;;  %3828 = vmatprep.mubr.msk.bf16.mxu1 %vm236_vm1, %v4601_v35  ;;  %v2678_v35 = vpack.c.bf16 %v2662_v25, %v2661_v20 }
 0x130   : > { %3964 = vmatprep.mubr.msk.bf16.mxu0 %vm236_vm1, %v4672_v33 }
 0x136   : > { %3829 = vmatmul.mubr.msk.bf16.vlgmr.msra.gmra.mrb[16].mxu1 %vm236_vm1, %v4605_v37 }
 0x137   : > { %3965 = vmatmul.mubr.msk.bf16.gmra.mrb[16].mxu0 %vm236_vm1, %v4678_v41  ;;  %3832 = vmatprep.mubr.msk.bf16.mxu1 %vm236_vm1, %v4625_v49  ;;  %v4964_v41 = vld [vmem:[%s5079_s2] ss:$0 sm:$0xff] }
 0x138   : > { %3968 = vmatprep.mubr.msk.bf16.mxu0 %vm236_vm1, %v4697_v55 }
 0x13e   : > { %3833 = vmatmul.mubr.msk.bf16.gmra.mrb[20].mxu1 %vm236_vm1, %v4629_v51 }
 0x13f   : > { %3969 = vmatmul.mubr.msk.bf16.gmra.mrb[20].mxu0 %vm236_vm1, %v4701_v57  ;;  %3836 = vmatprep.mubr.msk.bf16.mxu1 %vm236_vm1, %v4641_v61 }
 0x140   : > { %3972 = vmatprep.mubr.msk.bf16.mxu0 %vm236_vm1, %v4713_v12 }
 0x146   : > { %3837 = vmatmul.mubr.msk.bf16.gmra.mrb[24].mxu1 %vm236_vm1, %v4645_v63 }
 0x147   : > { %3973 = vmatmul.mubr.msk.bf16.gmra.mrb[24].mxu0 %vm236_vm1, %v4717_v18  ;;  %3840 = vmatprep.mubr.msk.bf16.mxu1 %vm236_vm1, %v4657_v16 }
 0x148   : > { %3976 = vmatprep.mubr.msk.bf16.mxu0 %vm236_vm1, %v4729_v31 }
 0x14e   : > { %3841 = vmatmul.mubr.msk.bf16.gmra.mrb[28].mxu1 %vm236_vm1, %v2383_v8 }
 0x14f   : > { %3977 = vmatmul.mubr.msk.bf16.gmra.mrb[28].mxu0 %vm236_vm1, %v2678_v35 }
 0x1c9   : > { %v3780_v36 = vpop.f32.mrb[0].mxu1 }
 0x1ca   : > { %v1295_v37 = vpop.f32.mrb[1].mxu1 }
 0x1cb   : > { %v3781_v38 = vpop.f32.mrb[2].mxu1 }
 0x1cc   : > { %v1298_v49 = vpop.f32.mrb[3].mxu1 }
 0x1d1   : > { %v3784_v50 = vpop.f32.mrb[4].mxu1 }
 0x1d2   : > { %v1311_v51 = vpop.f32.mrb[5].mxu1 }
 0x1d3   : > { %v3785_v52 = vpop.f32.mrb[6].mxu1 }
 0x1d4   : > { %v1314_v61 = vpop.f32.mrb[7].mxu1 }
 0x1d9   : > { %v3788_v62 = vpop.f32.mrb[8].mxu1 }
 0x1da   : > { %v1327_v63 = vpop.f32.mrb[9].mxu1 }
 0x1db   : > { %v3789_v0 = vpop.f32.mrb[10].mxu1 }
 0x1dc   : > { %v4951_v16 = vpop.f32.mrb[11].mxu1 }
 0x1e1   : > { %v4953_v17 = vpop.f32.mrb[12].mxu1 }
 0x1e2   : > { %v4955_v21 = vpop.f32.mrb[13].mxu1 }
 0x1e3   : > { %v4957_v32 = vpop.f32.mrb[14].mxu1 }
 0x1e4   : > { %v4959_v33 = vpop.f32.mrb[15].mxu1 }
 0x1ea   : > { %v3950_v39 = vpop.f32.mrb[0].mxu0 }
 0x1eb   : > { %v3982_v54 = vadd.f32 %v3950_v39, %v3780_v36  ;;  %v2766_v55 = vpop.f32.mrb[1].mxu0 }
 0x1ec   : > { %v3983_v56 = vadd.f32 %v2766_v55, %v1295_v37  ;;  %v3951_v57 = vpop.f32.mrb[2].mxu0 }
 0x1ed   : > { %v2934_v11 = vadd.f32 %v3982_v54, %v4964_v41  ;;  %v3984_v12 = vadd.f32 %v3951_v57, %v3781_v38  ;;  %v2769_v15 = vpop.f32.mrb[3].mxu0 }
 0x1ee   : > { %v2932_v18 = vadd.f32 %v3983_v56, %v4964_v41  ;;  %v3985_v30 = vadd.f32 %v2769_v15, %v1298_v49 }
 0x1ef   : > { %v2966_v31 = vmax.f32 %v2934_v11, 0.0  ;;  %v2935_v34 = vadd.f32 %v3984_v12, %v4964_v41 }
 0x1f0   : > { %v2964_v46 = vmax.f32 %v2932_v18, 0.0  ;;  %v2933_v47 = vadd.f32 %v3985_v30, %v4964_v41 }
 0x1f1   : > { %v3412_v53 = vpack.c.bf16 %v2966_v31, %v2966_v31  ;;  %v2967_v60 = vmax.f32 %v2935_v34, 0.0 }
 0x1f2   : > { %v3410_v2 = vpack.c.bf16 %v2964_v46, %v2964_v46  ;;  %v2965_v7 = vmax.f32 %v2933_v47, 0.0  ;;  %v3954_v4 = vpop.f32.mrb[4].mxu0 }
 0x1f3   : > { %3127 = vst.msk [vmem:[%s4974_s16 + $0x8] sm:$0xf] %vm3124_vm2, %v3412_v53  ;;  %v3413_v6 = vpack.c.bf16 %v2967_v60, %v2967_v60  ;;  %v3986_v10 = vadd.f32 %v3954_v4, %v3784_v50  ;;  %v2782_v22 = vpop.f32.mrb[5].mxu0 }
 0x1f4   : > { %3125 = vst.msk [vmem:[%s4974_s16] sm:$0xf] %vm3124_vm2, %v3410_v2  ;;  %v3411_v23 = vpack.c.bf16 %v2965_v7, %v2965_v7  ;;  %v3987_v24 = vadd.f32 %v2782_v22, %v1311_v51  ;;  %v3955_v27 = vpop.f32.mrb[6].mxu0 }
 0x1f5   : > { %3128 = vst.msk [vmem:[%s4974_s16 + $0xc] sm:$0xf] %vm3124_vm2, %v3413_v6  ;;  %v2938_v28 = vadd.f32 %v3986_v10, %v4964_v41  ;;  %v3988_v29 = vadd.f32 %v3955_v27, %v3785_v52  ;;  %v2785_v43 = vpop.f32.mrb[7].mxu0 }
 0x1f6   : > { %3126 = vst.msk [vmem:[%s4974_s16 + $0x4] sm:$0xf] %vm3124_vm2, %v3411_v23  ;;  %v2936_v44 = vadd.f32 %v3987_v24, %v4964_v41  ;;  %v3989_v45 = vadd.f32 %v2785_v43, %v1314_v61 }
 0x1f7   : > { %v2970_v9 = vmax.f32 %v2938_v28, 0.0  ;;  %v2939_v26 = vadd.f32 %v3988_v29, %v4964_v41 }
 0x1f8   : > { %v2968_v42 = vmax.f32 %v2936_v44, 0.0  ;;  %v2937_v48 = vadd.f32 %v3989_v45, %v4964_v41 }
 0x1f9   : > { %v3416_v1 = vpack.c.bf16 %v2970_v9, %v2970_v9  ;;  %v2971_v58 = vmax.f32 %v2939_v26, 0.0 }
 0x1fa   : > { %v3414_v59 = vpack.c.bf16 %v2968_v42, %v2968_v42  ;;  %v2969_v40 = vmax.f32 %v2937_v48, 0.0  ;;  %v3958_v3 = vpop.f32.mrb[8].mxu0 }
 0x1fb   : > { %3131 = vst.msk [vmem:[%s4974_s16 + $0x18] sm:$0xf] %vm3124_vm2, %v3416_v1  ;;  %v3417_v5 = vpack.c.bf16 %v2971_v58, %v2971_v58  ;;  %v3990_v8 = vadd.f32 %v3958_v3, %v3788_v62  ;;  %v2798_v13 = vpop.f32.mrb[9].mxu0 }
 0x1fc   : > { %3129 = vst.msk [vmem:[%s4974_s16 + $0x10] sm:$0xf] %vm3124_vm2, %v3414_v59  ;;  %v3415_v14 = vpack.c.bf16 %v2969_v40, %v2969_v40  ;;  %v3991_v19 = vadd.f32 %v2798_v13, %v1327_v63  ;;  %v3959_v20 = vpop.f32.mrb[10].mxu0 }
 0x1fd   : > { %3132 = vst.msk [vmem:[%s4974_s16 + $0x1c] sm:$0xf] %vm3124_vm2, %v3417_v5  ;;  %v2942_v25 = vadd.f32 %v3990_v8, %v4964_v41  ;;  %v3992_v35 = vadd.f32 %v3959_v20, %v3789_v0  ;;  %v2801_v36 = vpop.f32.mrb[11].mxu0 }
 0x1fe   : > { %3130 = vst.msk [vmem:[%s4974_s16 + $0x14] sm:$0xf] %vm3124_vm2, %v3415_v14  ;;  %v2940_v37 = vadd.f32 %v3991_v19, %v4964_v41  ;;  %v3993_v38 = vadd.f32 %v2801_v36, %v4951_v16 }
 0x1ff   : > { %v2974_v49 = vmax.f32 %v2942_v25, 0.0  ;;  %v2943_v50 = vadd.f32 %v3992_v35, %v4964_v41 }
 0x200   : > { %v2972_v51 = vmax.f32 %v2940_v37, 0.0  ;;  %v2941_v52 = vadd.f32 %v3993_v38, %v4964_v41 }
 0x201   : > { %v3420_v61 = vpack.c.bf16 %v2974_v49, %v2974_v49  ;;  %v2975_v62 = vmax.f32 %v2943_v50, 0.0 }
 0x202   : > { %v3418_v63 = vpack.c.bf16 %v2972_v51, %v2972_v51  ;;  %v2973_v0 = vmax.f32 %v2941_v52, 0.0  ;;  %v3962_v39 = vpop.f32.mrb[12].mxu0 }
 0x203   : > { %3135 = vst.msk [vmem:[%s4974_s16 + $0x28] sm:$0xf] %vm3124_vm2, %v3420_v61  ;;  %v3421_v54 = vpack.c.bf16 %v2975_v62, %v2975_v62  ;;  %v3994_v55 = vadd.f32 %v3962_v39, %v4953_v17  ;;  %v2814_v56 = vpop.f32.mrb[13].mxu0 }
 0x204   : > { %3133 = vst.msk [vmem:[%s4974_s16 + $0x20] sm:$0xf] %vm3124_vm2, %v3418_v63  ;;  %v3419_v16 = vpack.c.bf16 %v2973_v0, %v2973_v0  ;;  %v3995_v57 = vadd.f32 %v2814_v56, %v4955_v21  ;;  %v3963_v11 = vpop.f32.mrb[14].mxu0 }
 0x205   : > { %3136 = vst.msk [vmem:[%s4974_s16 + $0x2c] sm:$0xf] %vm3124_vm2, %v3421_v54  ;;  %v2946_v12 = vadd.f32 %v3994_v55, %v4964_v41  ;;  %v3996_v15 = vadd.f32 %v3963_v11, %v4957_v32  ;;  %v2817_v18 = vpop.f32.mrb[15].mxu0 }
 0x206   : > { %3134 = vst.msk [vmem:[%s4974_s16 + $0x24] sm:$0xf] %vm3124_vm2, %v3419_v16  ;;  %v2944_v30 = vadd.f32 %v3995_v57, %v4964_v41  ;;  %v3997_v17 = vadd.f32 %v2817_v18, %v4959_v33 }
 0x207   : > { %v2978_v31 = vmax.f32 %v2946_v12, 0.0  ;;  %v2947_v34 = vadd.f32 %v3996_v15, %v4964_v41 }
 0x208   : > { %v2976_v21 = vmax.f32 %v2944_v30, 0.0  ;;  %v2945_v46 = vadd.f32 %v3997_v17, %v4964_v41 }
 0x209   : > { %v3424_v47 = vpack.c.bf16 %v2978_v31, %v2978_v31  ;;  %v2979_v53 = vmax.f32 %v2947_v34, 0.0  ;;  %v3830_v60 = vpop.f32.mrb[16].mxu1 }
 0x20a   : > { %v3422_v32 = vpack.c.bf16 %v2976_v21, %v2976_v21  ;;  %v2977_v2 = vmax.f32 %v2945_v46, 0.0  ;;  %v1653_v7 = vpop.f32.mrb[17].mxu1  ;;  %v3966_v4 = vpop.f32.mrb[16].mxu0 }
 0x20b   : > { %3139 = vst.msk [vmem:[%s4974_s16 + $0x38] sm:$0xf] %vm3124_vm2, %v3424_v47  ;;  %v3425_v6 = vpack.c.bf16 %v2979_v53, %v2979_v53  ;;  %v3998_v33 = vadd.f32 %v3966_v4, %v3830_v60  ;;  %v3831_v10 = vpop.f32.mrb[18].mxu1  ;;  %v2830_v22 = vpop.f32.mrb[17].mxu0 }
 0x20c   : > { %3137 = vst.msk [vmem:[%s4974_s16 + $0x30] sm:$0xf] %vm3124_vm2, %v3422_v32  ;;  %v3423_v23 = vpack.c.bf16 %v2977_v2, %v2977_v2  ;;  %v3999_v24 = vadd.f32 %v2830_v22, %v1653_v7  ;;  %v1656_v27 = vpop.f32.mrb[19].mxu1  ;;  %v3967_v28 = vpop.f32.mrb[18].mxu0 }
 0x20d   : > { %3140 = vst.msk [vmem:[%s4974_s16 + $0x3c] sm:$0xf] %vm3124_vm2, %v3425_v6  ;;  %v2950_v29 = vadd.f32 %v3998_v33, %v4964_v41  ;;  %v4000_v43 = vadd.f32 %v3967_v28, %v3831_v10  ;;  %v2833_v44 = vpop.f32.mrb[19].mxu0 }
 0x20e   : > { %3138 = vst.msk [vmem:[%s4974_s16 + $0x34] sm:$0xf] %vm3124_vm2, %v3423_v23  ;;  %v2948_v45 = vadd.f32 %v3999_v24, %v4964_v41  ;;  %v4001_v9 = vadd.f32 %v2833_v44, %v1656_v27 }
 0x20f   : > { %v2982_v26 = vmax.f32 %v2950_v29, 0.0  ;;  %v2951_v42 = vadd.f32 %v4000_v43, %v4964_v41 }
 0x210   : > { %v2980_v48 = vmax.f32 %v2948_v45, 0.0  ;;  %v2949_v1 = vadd.f32 %v4001_v9, %v4964_v41 }
 0x211   : > { %v3428_v58 = vpack.c.bf16 %v2982_v26, %v2982_v26  ;;  %v2983_v59 = vmax.f32 %v2951_v42, 0.0  ;;  %v3834_v40 = vpop.f32.mrb[20].mxu1 }
 0x212   : > { %v3426_v3 = vpack.c.bf16 %v2980_v48, %v2980_v48  ;;  %v2981_v5 = vmax.f32 %v2949_v1, 0.0  ;;  %v1669_v8 = vpop.f32.mrb[21].mxu1  ;;  %v3970_v13 = vpop.f32.mrb[20].mxu0 }
 0x213   : > { %3143 = vst.msk [vmem:[%s4974_s16 + $0x48] sm:$0xf] %vm3124_vm2, %v3428_v58  ;;  %v3429_v14 = vpack.c.bf16 %v2983_v59, %v2983_v59  ;;  %v4002_v19 = vadd.f32 %v3970_v13, %v3834_v40  ;;  %v3835_v20 = vpop.f32.mrb[22].mxu1  ;;  %v2846_v25 = vpop.f32.mrb[21].mxu0 }
 0x214   : > { %3141 = vst.msk [vmem:[%s4974_s16 + $0x40] sm:$0xf] %vm3124_vm2, %v3426_v3  ;;  %v3427_v35 = vpack.c.bf16 %v2981_v5, %v2981_v5  ;;  %v4003_v36 = vadd.f32 %v2846_v25, %v1669_v8  ;;  %v1672_v37 = vpop.f32.mrb[23].mxu1  ;;  %v3971_v38 = vpop.f32.mrb[22].mxu0 }
 0x215   : > { %3144 = vst.msk [vmem:[%s4974_s16 + $0x4c] sm:$0xf] %vm3124_vm2, %v3429_v14  ;;  %v2954_v49 = vadd.f32 %v4002_v19, %v4964_v41  ;;  %v4004_v50 = vadd.f32 %v3971_v38, %v3835_v20  ;;  %v2849_v51 = vpop.f32.mrb[23].mxu0 }
 0x216   : > { %3142 = vst.msk [vmem:[%s4974_s16 + $0x44] sm:$0xf] %vm3124_vm2, %v3427_v35  ;;  %v2952_v52 = vadd.f32 %v4003_v36, %v4964_v41  ;;  %v4005_v61 = vadd.f32 %v2849_v51, %v1672_v37 }
 0x217   : > { %v2986_v62 = vmax.f32 %v2954_v49, 0.0  ;;  %v2955_v63 = vadd.f32 %v4004_v50, %v4964_v41 }
 0x218   : > { %v2984_v0 = vmax.f32 %v2952_v52, 0.0  ;;  %v2953_v39 = vadd.f32 %v4005_v61, %v4964_v41 }
 0x219   : > { %v3432_v54 = vpack.c.bf16 %v2986_v62, %v2986_v62  ;;  %v2987_v55 = vmax.f32 %v2955_v63, 0.0  ;;  %v3838_v56 = vpop.f32.mrb[24].mxu1 }
 0x21a   : > { %v3430_v16 = vpack.c.bf16 %v2984_v0, %v2984_v0  ;;  %v2985_v57 = vmax.f32 %v2953_v39, 0.0  ;;  %v1685_v11 = vpop.f32.mrb[25].mxu1  ;;  %v3974_v12 = vpop.f32.mrb[24].mxu0 }
 0x21b   : > { %3147 = vst.msk [vmem:[%s4974_s16 + $0x58] sm:$0xf] %vm3124_vm2, %v3432_v54  ;;  %v3433_v15 = vpack.c.bf16 %v2987_v55, %v2987_v55  ;;  %v4006_v18 = vadd.f32 %v3974_v12, %v3838_v56  ;;  %v3839_v30 = vpop.f32.mrb[26].mxu1  ;;  %v2862_v17 = vpop.f32.mrb[25].mxu0 }
 0x21c   : > { %3145 = vst.msk [vmem:[%s4974_s16 + $0x50] sm:$0xf] %vm3124_vm2, %v3430_v16  ;;  %v3431_v31 = vpack.c.bf16 %v2985_v57, %v2985_v57  ;;  %v4007_v34 = vadd.f32 %v2862_v17, %v1685_v11  ;;  %v1688_v21 = vpop.f32.mrb[27].mxu1  ;;  %v3975_v46 = vpop.f32.mrb[26].mxu0 }
 0x21d   : > { %3148 = vst.msk [vmem:[%s4974_s16 + $0x5c] sm:$0xf] %vm3124_vm2, %v3433_v15  ;;  %v2958_v47 = vadd.f32 %v4006_v18, %v4964_v41  ;;  %v4008_v53 = vadd.f32 %v3975_v46, %v3839_v30  ;;  %v2865_v60 = vpop.f32.mrb[27].mxu0 }
 0x21e   : > { %3146 = vst.msk [vmem:[%s4974_s16 + $0x54] sm:$0xf] %vm3124_vm2, %v3431_v31  ;;  %v2956_v32 = vadd.f32 %v4007_v34, %v4964_v41  ;;  %v4009_v2 = vadd.f32 %v2865_v60, %v1688_v21 }
 0x21f   : > { %v2990_v7 = vmax.f32 %v2958_v47, 0.0  ;;  %v2959_v4 = vadd.f32 %v4008_v53, %v4964_v41 }
 0x220   : > { %v2988_v6 = vmax.f32 %v2956_v32, 0.0  ;;  %v2957_v33 = vadd.f32 %v4009_v2, %v4964_v41 }
 0x221   : > { %v3436_v10 = vpack.c.bf16 %v2990_v7, %v2990_v7  ;;  %v2991_v22 = vmax.f32 %v2959_v4, 0.0  ;;  %v3842_v23 = vpop.f32.mrb[28].mxu1 }
 0x222   : > { %v3434_v24 = vpack.c.bf16 %v2988_v6, %v2988_v6  ;;  %v2989_v27 = vmax.f32 %v2957_v33, 0.0  ;;  %v1701_v28 = vpop.f32.mrb[29].mxu1  ;;  %v3978_v29 = vpop.f32.mrb[28].mxu0 }
 0x223   : > { %3151 = vst.msk [vmem:[%s4974_s16 + $0x68] sm:$0xf] %vm3124_vm2, %v3436_v10  ;;  %v3437_v43 = vpack.c.bf16 %v2991_v22, %v2991_v22  ;;  %v4010_v44 = vadd.f32 %v3978_v29, %v3842_v23  ;;  %v3843_v45 = vpop.f32.mrb[30].mxu1  ;;  %v2878_v9 = vpop.f32.mrb[29].mxu0 }
 0x224   : > { %3149 = vst.msk [vmem:[%s4974_s16 + $0x60] sm:$0xf] %vm3124_vm2, %v3434_v24  ;;  %v3435_v26 = vpack.c.bf16 %v2989_v27, %v2989_v27  ;;  %v4011_v42 = vadd.f32 %v2878_v9, %v1701_v28  ;;  %v1704_v48 = vpop.f32.mrb[31].mxu1  ;;  %v3979_v1 = vpop.f32.mrb[30].mxu0 }
 0x225   : > { %3152 = vst.msk [vmem:[%s4974_s16 + $0x6c] sm:$0xf] %vm3124_vm2, %v3437_v43  ;;  %v2962_v58 = vadd.f32 %v4010_v44, %v4964_v41  ;;  %v4012_v59 = vadd.f32 %v3979_v1, %v3843_v45  ;;  %v2881_v40 = vpop.f32.mrb[31].mxu0 }
 0x226   : > { %3150 = vst.msk [vmem:[%s4974_s16 + $0x64] sm:$0xf] %vm3124_vm2, %v3435_v26  ;;  %v2960_v3 = vadd.f32 %v4011_v42, %v4964_v41  ;;  %v4013_v5 = vadd.f32 %v2881_v40, %v1704_v48 }
 0x227   : > { %v2994_v8 = vmax.f32 %v2962_v58, 0.0  ;;  %v2963_v13 = vadd.f32 %v4012_v59, %v4964_v41 }
 0x228   : > { %v2992_v14 = vmax.f32 %v2960_v3, 0.0  ;;  %v2961_v19 = vadd.f32 %v4013_v5, %v4964_v41 }
 0x229   : > { %v3440_v20 = vpack.c.bf16 %v2994_v8, %v2994_v8  ;;  %v2995_v25 = vmax.f32 %v2963_v13, 0.0 }
 0x22a   : > { %v3438_v35 = vpack.c.bf16 %v2992_v14, %v2992_v14  ;;  %v2993_v36 = vmax.f32 %v2961_v19, 0.0 }
 0x22b   : > { %3155 = vst.msk [vmem:[%s4974_s16 + $0x78] sm:$0xf] %vm3124_vm2, %v3440_v20  ;;  %v3441_v37 = vpack.c.bf16 %v2995_v25, %v2995_v25 }
 0x22c   : > { %3153 = vst.msk [vmem:[%s4974_s16 + $0x70] sm:$0xf] %vm3124_vm2, %v3438_v35  ;;  %v3439_v38 = vpack.c.bf16 %v2993_v36, %v2993_v36 }
 0x22d   : > { %3156 = vst.msk [vmem:[%s4974_s16 + $0x7c] sm:$0xf] %vm3124_vm2, %v3441_v37 }
 0x22e   : > { %3154 = vst.msk [vmem:[%s4974_s16 + $0x74] sm:$0xf] %vm3124_vm2, %v3439_v38 }
 0x22f PF: > { %s13_s12 = sadd.s32 1, %s4263_s12  }
 0x230   : > { %p10_p4 = scmp.ge.s32.totalorder %s13_s12, 4  }
 0x232   :  { %12 = sbr.rel (!%p10_p4) target bundleno = 1 (0x1), region = 72 }

// kernel: attrunet_fwd.26
= control target key start
LH: loop header
LB: loop body
LE: loop exit
PB: predicated region body
PF: predicated region fallthrough
CT: control target
= control target key end

     0   :  { %s4528_s15 = smov 0   ;;  %s5343_s0 = inlined_call_operand.vmem [shape: bf16[2,16,16,8], index: 0, kind: input, shape index: {}]   ;;  %s5344_s1 = inlined_call_operand.vmem [shape: bf16[2,16,16,8], index: 1, kind: input, shape index: {}]   ;;  %s5345_s2 = inlined_call_operand.vmem [shape: bf16[9,8,8], index: 2, kind: input, shape index: {}]   ;;  %s5346_s3 = inlined_call_operand.vmem [shape: f32[1,8], index: 3, kind: input, shape index: {}]   ;;  %s5347_s4 = inlined_call_operand.vmem [shape: bf16[2,256,8], index: 4, kind: output, shape index: {}]  }
   0x1 LB: > { %s3367_s16 = sadd.s32 4294967295, %s4500_s15   ;;  %p3371_p0 = scmp.ge.s32.totalorder %s4500_s15, 1  ;;  %s4500_s15 = sphi %s4528_s15, %s14_s15  }
   0x2   : > { %p172_p1 = scmp.lt.s32.totalorder %s4500_s15, 3 }
   0x4   : > { %p173_p2 = pnand %p3371_p0, %p172_p1 }
   0x5   : > { %v3378_v0 = vld [vmem:[%s5345_s2 + $0x4] sm:$0xf] (!%p173_p2)  ;;  %vm632_vm0 = vcmask (!%p173_p2), 1043456   ;;  %v4542_v1 = vld [vmem:[%s5345_s2 + $0x10] sm:$0xf] (!%p173_p2)  ;;  %vm379_vm1 = vcmask (!%p173_p2), 64512  }
   0x6   : > { %176 = sbr.rel (%p173_p2) target bundleno = 559 (0x22f), region = 36  ;;  %4475 = vmatprep.subr.msk.bf16.mxu1 (!%p173_p2), %vm632_vm0, %v3378_v0  ;;  %4479 = vmatprep.subr.msk.bf16.mxu0 (!%p173_p2), %vm632_vm0, %v4542_v1  ;;  %v634_v2 = vsel (!%p173_p2), %vm632_vm0, %v3378_v0, 0  ;;  %v4550_v3 = vsel (!%p173_p2), %vm632_vm0, %v4542_v1, 0  ;;  %p4554_p3 = scmp.lt.s32.totalorder (!%p173_p2), %s3367_s16, 1  ;;  %v4561_v4 = vld [vmem:[%s5345_s2] sm:$0xf] (!%p173_p2) }
   0x7   : > { %3912 = vmatpush3.bf16.msra.mxu1 (!%p173_p2), %v634_v2  ;;  %4048 = vmatpush3.bf16.msra.mxu0 (!%p173_p2), %v4550_v3  ;;  %v4502_v5 = vmov (!%p173_p2), 0.0   ;;  %v4711_v6 = vld [vmem:[%s5345_s2 + $0x14] sm:$0xf] (!%p173_p2)  ;;  %v4739_v9 = vsel (!%p173_p2), %vm632_vm0, %v4561_v4, 0  ;;  %vm3267_vm2 = vcmask (!%p173_p2), 60416  }
   0x8   : > { %381 = vst.msk [vmem:[#allocation2 + $0x8] sm:$0xff] (!%p173_p2), %vm379_vm1, %v4502_v5  ;;  %382 = vst.msk [vmem:[#allocation2 + $0x10] sm:$0xff] (!%p173_p2), %vm379_vm1, %v4502_v5  ;;  %4476 = vmatprep.subr.msk.bf16.mxu1 (!%p173_p2), %vm632_vm0, %v4561_v4  ;;  %4481 = vmatprep.subr.msk.bf16.mxu0 (!%p173_p2), %vm632_vm0, %v4711_v6 }
   0x9   : > { %380 = vst.msk [vmem:[#allocation2] sm:$0xff] (!%p173_p2), %vm379_vm1, %v4502_v5  ;;  %383 = vst.msk [vmem:[#allocation2 + $0x18] sm:$0xff] (!%p173_p2), %vm379_vm1, %v4502_v5 }
   0xa   : > { %384 = vst.msk [vmem:[#allocation2 + $0x20] sm:$0xff] (!%p173_p2), %vm379_vm1, %v4502_v5  ;;  %385 = vst.msk [vmem:[#allocation2 + $0x28] sm:$0xff] (!%p173_p2), %vm379_vm1, %v4502_v5 }
   0xb   : > { %386 = vst.msk [vmem:[#allocation2 + $0x30] sm:$0xff] (!%p173_p2), %vm379_vm1, %v4502_v5  ;;  %387 = vst.msk [vmem:[#allocation2 + $0x38] sm:$0xff] (!%p173_p2), %vm379_vm1, %v4502_v5 }
   0xc   : > { %388 = vst.msk [vmem:[#allocation2 + $0x40] sm:$0xff] (!%p173_p2), %vm379_vm1, %v4502_v5  ;;  %389 = vst.msk [vmem:[#allocation2 + $0x48] sm:$0xff] (!%p173_p2), %vm379_vm1, %v4502_v5 }
   0xd   : > { %390 = vst.msk [vmem:[#allocation2 + $0x50] sm:$0xff] %vm379_vm1, %v4502_v5  ;;  %391 = vst.msk [vmem:[#allocation2 + $0x58] sm:$0xff] %vm379_vm1, %v4502_v5  ;;  %s5350_s16 = smov (!%p4554_p3, %s3367_s16), 1 }
   0xe   : > { %392 = vst.msk [vmem:[#allocation2 + $0x60] sm:$0xff] %vm379_vm1, %v4502_v5  ;;  %393 = vst.msk [vmem:[#allocation2 + $0x68] sm:$0xff] %vm379_vm1, %v4502_v5  ;;  %s4721_s26 = sshll.u32 %s5350_s16, 7 }
   0xf   : > { %394 = vst.msk [vmem:[#allocation2 + $0x70] sm:$0xff] %vm379_vm1, %v4502_v5  ;;  %395 = vst.msk [vmem:[#allocation2 + $0x78] sm:$0xff] %vm379_vm1, %v4502_v5  ;;  %s4727_s29 = scalar_lea.vmem %s5343_s0, %s4721_s26  ;;  %s4733_s6 = scalar_lea.vmem %s5344_s1, %s4721_s26  ;;  %v534_v18 = vld [vmem:[#allocation2 + $0x8] sm:$0xff]  ;;  %v535_v19 = vld [vmem:[#allocation2 + $0x10] sm:$0xff] }
  0x10   : > { %396 = vst.msk [vmem:[#allocation2 + $0x80] sm:$0xff] %vm379_vm1, %v4502_v5  ;;  %397 = vst.msk [vmem:[#allocation2 + $0x88] sm:$0xff] %vm379_vm1, %v4502_v5  ;;  %v3601_v7 = vld [vmem:[%s4727_s29] sm:$0xff]   ;;  %v3728_v10 = vld [vmem:[%s4727_s29 + $0x8] sm:$0xff]   ;;  %v566_v25 = vpack.c.bf16 %v535_v19, %v534_v18  ;;  %s5240_s22 = scalar_lea.vmem %s5347_s4, %s4721_s26 }
  0x11   : > { %398 = vst.msk [vmem:[#allocation2 + $0x90] sm:$0xff] %vm379_vm1, %v4502_v5  ;;  %399 = vst.msk [vmem:[#allocation2 + $0x98] sm:$0xff] %vm379_vm1, %v4502_v5  ;;  %v3665_v8 = vld [vmem:[%s4733_s6] sm:$0xff]   ;;  %v3602_v11 = vunpack.c.l.bf16 %v3601_v7  ;;  %v3603_v12 = vunpack.c.h.bf16 %v3601_v7  ;;  %v3743_v15 = vld [vmem:[%s4733_s6 + $0x8] sm:$0xff]   ;;  %v3606_v20 = vunpack.c.l.bf16 %v3728_v10  ;;  %v3607_v21 = vunpack.c.h.bf16 %v3728_v10 }
  0x12   : > { %400 = vst.msk [vmem:[#allocation2 + $0xa0] sm:$0xff] %vm379_vm1, %v4502_v5  ;;  %401 = vst.msk [vmem:[#allocation2 + $0xa8] sm:$0xff] %vm379_vm1, %v4502_v5  ;;  %v3666_v13 = vunpack.c.l.bf16 %v3665_v8  ;;  %v3667_v14 = vunpack.c.h.bf16 %v3665_v8  ;;  %v3729_v16 = vld [vmem:[%s4727_s29 + $0x10] sm:$0xff]   ;;  %v3670_v22 = vunpack.c.l.bf16 %v3743_v15  ;;  %v3671_v23 = vunpack.c.h.bf16 %v3743_v15  ;;  %v3730_v24 = vld [vmem:[%s4727_s29 + $0x18] sm:$0xff]   ;;  %3913 = vmatprep.mubr.msk.bf16.mxu1 %vm379_vm1, %v566_v25 }
  0x13   : > { %402 = vst.msk [vmem:[#allocation2 + $0xb0] sm:$0xff] %vm379_vm1, %v4502_v5  ;;  %403 = vst.msk [vmem:[#allocation2 + $0xb8] sm:$0xff] %vm379_vm1, %v4502_v5  ;;  %v3744_v17 = vld [vmem:[%s4733_s6 + $0x10] sm:$0xff]   ;;  %v3610_v28 = vunpack.c.l.bf16 %v3729_v16  ;;  %v3745_v29 = vld [vmem:[%s4733_s6 + $0x18] sm:$0xff]   ;;  %v3611_v33 = vunpack.c.h.bf16 %v3729_v16  ;;  %v3614_v37 = vunpack.c.l.bf16 %v3730_v24  ;;  %v3615_v38 = vunpack.c.h.bf16 %v3730_v24 }
  0x14   : > { %404 = vst.msk [vmem:[#allocation2 + $0xc0] sm:$0xff] %vm379_vm1, %v4502_v5  ;;  %405 = vst.msk [vmem:[#allocation2 + $0xc8] sm:$0xff] %vm379_vm1, %v4502_v5  ;;  %v347_v26 = vadd.f32 %v3666_v13, %v3602_v11  ;;  %v348_v27 = vadd.f32 %v3667_v14, %v3603_v12  ;;  %v3731_v30 = vld [vmem:[%s4727_s29 + $0x20] sm:$0xff]   ;;  %v349_v31 = vadd.f32 %v3670_v22, %v3606_v20  ;;  %v3674_v34 = vunpack.c.l.bf16 %v3744_v17  ;;  %v3732_v40 = vld [vmem:[%s4727_s29 + $0x28] sm:$0xff]  }
  0x15   : > { %406 = vst.msk [vmem:[#allocation2 + $0xd0] sm:$0xff] %vm379_vm1, %v4502_v5  ;;  %407 = vst.msk [vmem:[#allocation2 + $0xd8] sm:$0xff] %vm379_vm1, %v4502_v5  ;;  %v350_v32 = vadd.f32 %v3671_v23, %v3607_v21  ;;  %v3746_v35 = vld [vmem:[%s4733_s6 + $0x20] sm:$0xff]   ;;  %v3675_v36 = vunpack.c.h.bf16 %v3744_v17  ;;  %v3678_v39 = vunpack.c.l.bf16 %v3745_v29  ;;  %v3747_v41 = vld [vmem:[%s4733_s6 + $0x28] sm:$0xff]   ;;  %v3679_v43 = vunpack.c.h.bf16 %v3745_v29 }
  0x16   : > { %408 = vst.msk [vmem:[#allocation2 + $0xe0] sm:$0xff] %vm379_vm1, %v4502_v5  ;;  %409 = vst.msk [vmem:[#allocation2 + $0xe8] sm:$0xff] %vm379_vm1, %v4502_v5  ;;  %v351_v42 = vadd.f32 %v3674_v34, %v3610_v28  ;;  %v3618_v44 = vunpack.c.l.bf16 %v3731_v30  ;;  %v3619_v45 = vunpack.c.h.bf16 %v3731_v30  ;;  %v3733_v46 = vld [vmem:[%s4727_s29 + $0x30] sm:$0xff]   ;;  %v3682_v49 = vunpack.c.l.bf16 %v3746_v35  ;;  %v3734_v56 = vld [vmem:[%s4727_s29 + $0x38] sm:$0xff]  }
  0x17   : > { %410 = vst.msk [vmem:[#allocation2 + $0xf0] sm:$0xff] %vm379_vm1, %v4502_v5  ;;  %411 = vst.msk [vmem:[#allocation2 + $0xf8] sm:$0xff] %vm379_vm1, %v4502_v5  ;;  %v352_v47 = vadd.f32 %v3675_v36, %v3611_v33  ;;  %v353_v48 = vadd.f32 %v3678_v39, %v3614_v37  ;;  %v3683_v50 = vunpack.c.h.bf16 %v3746_v35  ;;  %v3748_v51 = vld [vmem:[%s4733_s6 + $0x30] sm:$0xff]   ;;  %v354_v52 = vadd.f32 %v3679_v43, %v3615_v38  ;;  %v3749_v57 = vld [vmem:[%s4733_s6 + $0x38] sm:$0xff]  }
  0x18   : > { %412 = vst.msk [vmem:[#allocation2 + $0x100] sm:$0xff] %vm379_vm1, %v4502_v5  ;;  %413 = vst.msk [vmem:[#allocation2 + $0x108] sm:$0xff] %vm379_vm1, %v4502_v5  ;;  %v3622_v53 = vunpack.c.l.bf16 %v3732_v40  ;;  %v3623_v54 = vunpack.c.h.bf16 %v3732_v40  ;;  %v3686_v55 = vunpack.c.l.bf16 %v3747_v41  ;;  %v355_v58 = vadd.f32 %v3682_v49, %v3618_v44  ;;  %v3735_v62 = vld [vmem:[%s4727_s29 + $0x40] sm:$0xff]   ;;  %v3736_v12 = vld [vmem:[%s4727_s29 + $0x48] sm:$0xff]  }
  0x19   : > { %414 = vst.msk [vmem:[#allocation2 + $0x110] sm:$0xff] %vm379_vm1, %v4502_v5  ;;  %415 = vst.msk [vmem:[#allocation2 + $0x118] sm:$0xff] %vm379_vm1, %v4502_v5  ;;  %v356_v59 = vadd.f32 %v3683_v50, %v3619_v45  ;;  %v3687_v60 = vunpack.c.h.bf16 %v3747_v41  ;;  %v3626_v61 = vunpack.c.l.bf16 %v3733_v46  ;;  %v3627_v0 = vunpack.c.h.bf16 %v3733_v46  ;;  %v3751_v19 = vld [vmem:[%s4733_s6 + $0x48] sm:$0xff]   ;;  %v3738_v43 = vld [vmem:[%s4727_s29 + $0x58] sm:$0xff]  }
  0x1a   : > { %416 = vst.msk [vmem:[#allocation2 + $0x120] sm:$0xff] %vm379_vm1, %v4502_v5  ;;  %417 = vst.msk [vmem:[#allocation2 + $0x128] sm:$0xff] %vm379_vm1, %v4502_v5  ;;  %v357_v63 = vadd.f32 %v3686_v55, %v3622_v53  ;;  %v3690_v2 = vunpack.c.l.bf16 %v3748_v51  ;;  %v3691_v4 = vunpack.c.h.bf16 %v3748_v51  ;;  %v3630_v8 = vunpack.c.l.bf16 %v3734_v56  ;;  %v4791_v36 = vld [vmem:[%s5345_s2 + $0x8] sm:$0xf]  ;;  %v3739_v49 = vld [vmem:[%s4727_s29 + $0x60] sm:$0xff]  }
  0x1b   : > { %418 = vst.msk [vmem:[#allocation2 + $0x130] sm:$0xff] %vm379_vm1, %v4502_v5  ;;  %419 = vst.msk [vmem:[#allocation2 + $0x138] sm:$0xff] %vm379_vm1, %v4502_v5  ;;  %v358_v7 = vadd.f32 %v3687_v60, %v3623_v54  ;;  %v3631_v10 = vunpack.c.h.bf16 %v3734_v56  ;;  %v3694_v11 = vunpack.c.l.bf16 %v3749_v57  ;;  %v3695_v17 = vunpack.c.h.bf16 %v3749_v57  ;;  %v3754_v54 = vld [vmem:[%s4733_s6 + $0x60] sm:$0xff]  }
  0x1c   : > { %420 = vst.msk [vmem:[#allocation2 + $0x140] sm:$0xff] %vm379_vm1, %v4502_v5  ;;  %421 = vst.msk [vmem:[#allocation2 + $0x148] sm:$0xff] %vm379_vm1, %v4502_v5  ;;  %v359_v15 = vadd.f32 %v3690_v2, %v3626_v61  ;;  %v360_v16 = vadd.f32 %v3691_v4, %v3627_v0  ;;  %v3634_v18 = vunpack.c.l.bf16 %v3735_v62  ;;  %v3635_v24 = vunpack.c.h.bf16 %v3735_v62  ;;  %v3740_v62 = vld [vmem:[%s4727_s29 + $0x68] sm:$0xff]  }
  0x1d   : > { %422 = vst.msk [vmem:[#allocation2 + $0x150] sm:$0xff] %vm379_vm1, %v4502_v5  ;;  %423 = vst.msk [vmem:[#allocation2 + $0x158] sm:$0xff] %vm379_vm1, %v4502_v5  ;;  %v361_v23 = vadd.f32 %v3694_v11, %v3630_v8  ;;  %v1990_v28 = vsel %vm632_vm0, %v4711_v6, 0  ;;  %v362_v29 = vadd.f32 %v3695_v17, %v3631_v10  ;;  %v4786_v6 = vld [vmem:[%s5345_s2 + $0x18] sm:$0xf]  ;;  %v3638_v34 = vunpack.c.l.bf16 %v3736_v12  ;;  %v3741_v11 = vld [vmem:[%s4727_s29 + $0x70] sm:$0xff]  }
  0x1e   : > { %424 = vst.msk [vmem:[#allocation2 + $0x160] sm:$0xff] %vm379_vm1, %v4502_v5  ;;  %425 = vst.msk [vmem:[#allocation2 + $0x168] sm:$0xff] %vm379_vm1, %v4502_v5  ;;  %v3639_v35 = vunpack.c.h.bf16 %v3736_v12  ;;  %v3702_v40 = vunpack.c.l.bf16 %v3751_v19  ;;  %v3703_v41 = vunpack.c.h.bf16 %v3751_v19  ;;  %v3650_v0 = vunpack.c.l.bf16 %v3739_v49  ;;  %v3756_v12 = vld [vmem:[%s4733_s6 + $0x70] sm:$0xff]  }
  0x1f   : > { %426 = vst.msk [vmem:[#allocation2 + $0x170] sm:$0xff] %vm379_vm1, %v4502_v5  ;;  %427 = vst.msk [vmem:[#allocation2 + $0x178] sm:$0xff] %vm379_vm1, %v4502_v5  ;;  %v3651_v2 = vunpack.c.h.bf16 %v3739_v49  ;;  %v3714_v4 = vunpack.c.l.bf16 %v3754_v54  ;;  %v3715_v10 = vunpack.c.h.bf16 %v3754_v54 }
  0x20   : > { %428 = vst.msk [vmem:[#allocation2 + $0x180] sm:$0xff] %vm379_vm1, %v4502_v5  ;;  %429 = vst.msk [vmem:[#allocation2 + $0x188] sm:$0xff] %vm379_vm1, %v4502_v5  ;;  %v366_v53 = vadd.f32 %v3703_v41, %v3639_v35 }
  0x21   : > { %430 = vst.msk [vmem:[#allocation2 + $0x190] sm:$0xff] %vm379_vm1, %v4502_v5  ;;  %431 = vst.msk [vmem:[#allocation2 + $0x198] sm:$0xff] %vm379_vm1, %v4502_v5 }
  0x22   : > { %432 = vst.msk [vmem:[#allocation2 + $0x1a0] sm:$0xff] %vm379_vm1, %v4502_v5  ;;  %433 = vst.msk [vmem:[#allocation2 + $0x1a8] sm:$0xff] %vm379_vm1, %v4502_v5 }
  0x23   : > { %434 = vst.msk [vmem:[#allocation2 + $0x1b0] sm:$0xff] %vm379_vm1, %v4502_v5  ;;  %435 = vst.msk [vmem:[#allocation2 + $0x1b8] sm:$0xff] %vm379_vm1, %v4502_v5 }
  0x24   : > { %436 = vst.msk [vmem:[#allocation2 + $0x1c0] sm:$0xff] %vm379_vm1, %v4502_v5  ;;  %437 = vst.msk [vmem:[#allocation2 + $0x1c8] sm:$0xff] %vm379_vm1, %v4502_v5 }
  0x25   : > { %438 = vst.msk [vmem:[#allocation2 + $0x1d0] sm:$0xff] %vm379_vm1, %v4502_v5  ;;  %439 = vst.msk [vmem:[#allocation2 + $0x1d8] sm:$0xff] %vm379_vm1, %v4502_v5 }
  0x26   : > { %440 = vst.msk [vmem:[#allocation2 + $0x1e0] sm:$0xff] %vm379_vm1, %v4502_v5  ;;  %441 = vst.msk [vmem:[#allocation2 + $0x1e8] sm:$0xff] %vm379_vm1, %v4502_v5 }
  0x27   : > { %442 = vst.msk [vmem:[#allocation2 + $0x1f0] sm:$0xff] %vm379_vm1, %v4502_v5  ;;  %443 = vst.msk [vmem:[#allocation2 + $0x1f8] sm:$0xff] %vm379_vm1, %v4502_v5 }
  0x28   : > { %444 = vst.msk [vmem:[#allocation2 + $0x200] sm:$0xff] %vm379_vm1, %v4502_v5  ;;  %445 = vst.msk [vmem:[#allocation2 + $0x208] sm:$0xff] %vm379_vm1, %v4502_v5 }
  0x29   : > { %446 = vst.msk [vmem:[#allocation2 + $0x210] sm:$0xff] %vm379_vm1, %v4502_v5  ;;  %447 = vst.msk [vmem:[#allocation2 + $0x218] sm:$0xff] %vm379_vm1, %v4502_v5 }
  0x2a   : > { %448 = vst.msk [vmem:[#allocation2 + $0x220] sm:$0xff] %vm379_vm1, %v4502_v5  ;;  %449 = vst.msk [vmem:[#allocation2 + $0x228] sm:$0xff] %vm379_vm1, %v4502_v5 }
  0x2b   : > { %450 = vst.msk [vmem:[#allocation2 + $0x230] sm:$0xff] %vm379_vm1, %v4502_v5  ;;  %451 = vst.msk [vmem:[#allocation2 + $0x238] sm:$0xff] %vm379_vm1, %v4502_v5  ;;  %v3750_v5 = vld [vmem:[%s4733_s6 + $0x40] sm:$0xff]  }
  0x2c   : > { %453 = vst.msk [vmem:[#allocation2 + $0x28] sm:$0xff] %vm379_vm1, %v347_v26  ;;  %454 = vst.msk [vmem:[#allocation2 + $0x30] sm:$0xff] %vm379_vm1, %v348_v27  ;;  %v3698_v25 = vunpack.c.l.bf16 %v3750_v5  ;;  %v3737_v26 = vld [vmem:[%s4727_s29 + $0x50] sm:$0xff]   ;;  %v3699_v30 = vunpack.c.h.bf16 %v3750_v5  ;;  %v3755_v5 = vld [vmem:[%s4733_s6 + $0x68] sm:$0xff]  }
  0x2d   : > { %455 = vst.msk [vmem:[#allocation2 + $0x48] sm:$0xff] %vm379_vm1, %v349_v31  ;;  %456 = vst.msk [vmem:[#allocation2 + $0x50] sm:$0xff] %vm379_vm1, %v350_v32  ;;  %v3752_v31 = vld [vmem:[%s4733_s6 + $0x50] sm:$0xff]   ;;  %v3643_v45 = vunpack.c.h.bf16 %v3737_v26  ;;  %v3718_v17 = vunpack.c.l.bf16 %v3755_v5 }
  0x2e   : > { %457 = vst.msk [vmem:[#allocation2 + $0x68] sm:$0xff] %vm379_vm1, %v351_v42  ;;  %458 = vst.msk [vmem:[#allocation2 + $0x70] sm:$0xff] %vm379_vm1, %v352_v47  ;;  %v363_v33 = vadd.f32 %v3698_v25, %v3634_v18  ;;  %v364_v39 = vadd.f32 %v3699_v30, %v3635_v24  ;;  %v3642_v42 = vunpack.c.l.bf16 %v3737_v26  ;;  %v3706_v46 = vunpack.c.l.bf16 %v3752_v31 }
  0x2f   : > { %459 = vst.msk [vmem:[#allocation2 + $0x88] sm:$0xff] %vm379_vm1, %v353_v48  ;;  %460 = vst.msk [vmem:[#allocation2 + $0x90] sm:$0xff] %vm379_vm1, %v354_v52  ;;  %v3707_v47 = vunpack.c.h.bf16 %v3752_v31  ;;  %v3753_v48 = vld [vmem:[%s4733_s6 + $0x58] sm:$0xff]   ;;  %v365_v52 = vadd.f32 %v3702_v40, %v3638_v34 }
  0x30   : > { %461 = vst.msk [vmem:[#allocation2 + $0xa8] sm:$0xff] %vm379_vm1, %v355_v58  ;;  %462 = vst.msk [vmem:[#allocation2 + $0xb0] sm:$0xff] %vm379_vm1, %v356_v59  ;;  %v367_v56 = vadd.f32 %v3706_v46, %v3642_v42  ;;  %v3646_v58 = vunpack.c.l.bf16 %v3738_v43  ;;  %v3647_v59 = vunpack.c.h.bf16 %v3738_v43  ;;  %v3710_v60 = vunpack.c.l.bf16 %v3753_v48  ;;  %v3742_v31 = vld [vmem:[%s4727_s29 + $0x78] sm:$0xff]  }
  0x31   : > { %463 = vst.msk [vmem:[#allocation2 + $0xc8] sm:$0xff] %vm379_vm1, %v357_v63  ;;  %464 = vst.msk [vmem:[#allocation2 + $0xd0] sm:$0xff] %vm379_vm1, %v358_v7  ;;  %v368_v57 = vadd.f32 %v3707_v47, %v3643_v45  ;;  %v3711_v61 = vunpack.c.h.bf16 %v3753_v48  ;;  %v3757_v34 = vld [vmem:[%s4733_s6 + $0x78] sm:$0xff]  }
  0x32   : > { %465 = vst.msk [vmem:[#allocation2 + $0xe8] sm:$0xff] %vm379_vm1, %v359_v15  ;;  %466 = vst.msk [vmem:[#allocation2 + $0xf0] sm:$0xff] %vm379_vm1, %v360_v16  ;;  %v369_v7 = vadd.f32 %v3710_v60, %v3646_v58  ;;  %v372_v15 = vadd.f32 %v3715_v10, %v3651_v2  ;;  %v3655_v16 = vunpack.c.h.bf16 %v3740_v62  ;;  %v3727_v40 = vunpack.c.h.bf16 %v3757_v34 }
  0x33   : > { %v536_v13 = vld [vmem:[#allocation2 + $0x28] sm:$0xff]  ;;  %v537_v14 = vld [vmem:[#allocation2 + $0x30] sm:$0xff]  ;;  %467 = vst.msk [vmem:[#allocation2 + $0x108] sm:$0xff] %vm379_vm1, %v361_v23  ;;  %468 = vst.msk [vmem:[#allocation2 + $0x110] sm:$0xff] %vm379_vm1, %v362_v29  ;;  %v370_v8 = vadd.f32 %v3711_v61, %v3647_v59  ;;  %v3722_v23 = vunpack.c.l.bf16 %v3756_v12 }
  0x34   : > { %v567_v20 = vpack.c.bf16 %v537_v14, %v536_v13  ;;  %v1599_v21 = vld [vmem:[#allocation2 + $0x48] sm:$0xff]  ;;  %v1600_v22 = vld [vmem:[#allocation2 + $0x50] sm:$0xff]  ;;  %469 = vst.msk [vmem:[#allocation2 + $0x128] sm:$0xff] %vm379_vm1, %v363_v33  ;;  %470 = vst.msk [vmem:[#allocation2 + $0x130] sm:$0xff] %vm379_vm1, %v364_v39  ;;  %v371_v13 = vadd.f32 %v3714_v4, %v3650_v0  ;;  %v3654_v14 = vunpack.c.l.bf16 %v3740_v62  ;;  %v3726_v39 = vunpack.c.l.bf16 %v3757_v34 }
  0x35   : > { %v4773_v27 = vpack.c.bf16 %v1600_v22, %v1599_v21  ;;  %v540_v32 = vld [vmem:[#allocation2 + $0x68] sm:$0xff]  ;;  %v541_v37 = vld [vmem:[#allocation2 + $0x70] sm:$0xff]  ;;  %471 = vst.msk [vmem:[#allocation2 + $0x148] sm:$0xff] %vm379_vm1, %v365_v52  ;;  %472 = vst.msk [vmem:[#allocation2 + $0x150] sm:$0xff] %vm379_vm1, %v366_v53  ;;  %v3658_v21 = vunpack.c.l.bf16 %v3741_v11  ;;  %v3659_v22 = vunpack.c.h.bf16 %v3741_v11  ;;  %v2285_v62 = vsel %vm632_vm0, %v4786_v6, 0 }
  0x36   : > { %3914 = vmatmul.mubr.msk.bf16.vlgmr.msra.gmra.mrb[0].mxu1 %vm379_vm1, %v567_v20  ;;  %4049 = vmatprep.mubr.msk.bf16.mxu0 %vm379_vm1, %v567_v20  ;;  %v1603_v38 = vld [vmem:[#allocation2 + $0x88] sm:$0xff]  ;;  %v1604_v44 = vld [vmem:[#allocation2 + $0x90] sm:$0xff]  ;;  %473 = vst.msk [vmem:[#allocation2 + $0x168] sm:$0xff] %vm379_vm1, %v367_v56  ;;  %474 = vst.msk [vmem:[#allocation2 + $0x170] sm:$0xff] %vm379_vm1, %v368_v57  ;;  %v3719_v20 = vunpack.c.h.bf16 %v3755_v5  ;;  %v373_v26 = vadd.f32 %v3718_v17, %v3654_v14 }
  0x37   : > { %3946 = vmatpush3.bf16.msra.mxu1 %v4739_v9  ;;  %4050 = vmatmul.mubr.msk.bf16.vlgmr.msra.gmra.mrb[0].mxu0 %vm379_vm1, %v4773_v27  ;;  %v4800_v9 = vpack.c.bf16 %v541_v37, %v540_v32  ;;  %v544_v50 = vld [vmem:[#allocation2 + $0xa8] sm:$0xff]  ;;  %v545_v51 = vld [vmem:[#allocation2 + $0xb0] sm:$0xff]  ;;  %v4811_v55 = vpack.c.bf16 %v1604_v44, %v1603_v38  ;;  %475 = vst.msk [vmem:[#allocation2 + $0x188] sm:$0xff] %vm379_vm1, %v369_v7  ;;  %476 = vst.msk [vmem:[#allocation2 + $0x190] sm:$0xff] %vm379_vm1, %v370_v8  ;;  %v3662_v37 = vunpack.c.l.bf16 %v3742_v31 }
  0x38   : > { %4082 = vmatpush3.bf16.msra.mxu0 %v1990_v28  ;;  %3917 = vmatprep.mubr.msk.bf16.mxu1 %vm379_vm1, %v4773_v27  ;;  %v4818_v63 = vpack.c.bf16 %v545_v51, %v544_v50  ;;  %v1607_v18 = vld [vmem:[#allocation2 + $0xc8] sm:$0xff]  ;;  %v1608_v19 = vld [vmem:[#allocation2 + $0xd0] sm:$0xff]  ;;  %477 = vst.msk [vmem:[#allocation2 + $0x1a8] sm:$0xff] %vm379_vm1, %v371_v13  ;;  %478 = vst.msk [vmem:[#allocation2 + $0x1b0] sm:$0xff] %vm379_vm1, %v372_v15  ;;  %v3723_v28 = vunpack.c.h.bf16 %v3756_v12  ;;  %v374_v29 = vadd.f32 %v3719_v20, %v3655_v16 }
  0x39   : > { %4482 = vmatprep.subr.msk.bf16.mxu0 %vm632_vm0, %v4786_v6  ;;  %4053 = vmatprep.mubr.msk.bf16.mxu0 %vm379_vm1, %v4800_v9  ;;  %v548_v24 = vld [vmem:[#allocation2 + $0xe8] sm:$0xff]  ;;  %v549_v25 = vld [vmem:[#allocation2 + $0xf0] sm:$0xff]  ;;  %v375_v30 = vadd.f32 %v3722_v23, %v3658_v21  ;;  %v4838_v32 = vpack.c.bf16 %v1608_v19, %v1607_v18  ;;  %479 = vst.msk [vmem:[#allocation2 + $0x1c8] sm:$0xff] %vm379_vm1, %v373_v26  ;;  %v3663_v38 = vunpack.c.h.bf16 %v3742_v31  ;;  %v4884_v0 = vld [vmem:[%s5345_s2 + $0x1c] sm:$0xf] }
  0x3a   : > { %4477 = vmatprep.subr.msk.bf16.mxu1 %vm632_vm0, %v4791_v36  ;;  %v376_v33 = vadd.f32 %v3723_v28, %v3659_v22  ;;  %v4842_v35 = vpack.c.bf16 %v549_v25, %v548_v24  ;;  %480 = vst.msk [vmem:[#allocation2 + $0x1d0] sm:$0xff] %vm379_vm1, %v374_v29  ;;  %v1611_v41 = vld [vmem:[#allocation2 + $0x108] sm:$0xff]  ;;  %v1612_v42 = vld [vmem:[#allocation2 + $0x110] sm:$0xff]  ;;  %v377_v43 = vadd.f32 %v3726_v39, %v3662_v37 }
  0x3b   : > { %481 = vst.msk [vmem:[#allocation2 + $0x1e8] sm:$0xff] %vm379_vm1, %v375_v30  ;;  %v378_v44 = vadd.f32 %v3727_v40, %v3663_v38  ;;  %v1891_v45 = vld [vmem:[#allocation2 + $0x29] sm:$0xff]  ;;  %v1892_v46 = vld [vmem:[#allocation2 + $0x31] sm:$0xff]  ;;  %v4857_v47 = vpack.c.bf16 %v1612_v42, %v1611_v41 }
  0x3c   : > { %482 = vst.msk [vmem:[#allocation2 + $0x1f0] sm:$0xff] %vm379_vm1, %v376_v33  ;;  %483 = vst.msk [vmem:[#allocation2 + $0x208] sm:$0xff] %vm379_vm1, %v377_v43  ;;  %v4859_v48 = vpack.c.bf16 %v1892_v46, %v1891_v45  ;;  %v552_v49 = vld [vmem:[#allocation2 + $0x128] sm:$0xff]  ;;  %v553_v50 = vld [vmem:[#allocation2 + $0x130] sm:$0xff] }
  0x3d   : > { %484 = vst.msk [vmem:[#allocation2 + $0x210] sm:$0xff] %vm379_vm1, %v378_v44  ;;  %v1893_v51 = vld [vmem:[#allocation2 + $0x49] sm:$0xff]  ;;  %v1894_v52 = vld [vmem:[#allocation2 + $0x51] sm:$0xff]  ;;  %v4869_v58 = vpack.c.bf16 %v553_v50, %v552_v49 }
  0x3e   : > { %3918 = vmatmul.mubr.msk.bf16.gmra.mrb[4].mxu1 %vm379_vm1, %v4800_v9  ;;  %v554_v53 = vld [vmem:[#allocation2 + $0x148] sm:$0xff]  ;;  %v555_v54 = vld [vmem:[#allocation2 + $0x150] sm:$0xff]  ;;  %v4871_v59 = vpack.c.bf16 %v1894_v52, %v1893_v51 }
  0x3f   : > { %4054 = vmatmul.mubr.msk.bf16.gmra.mrb[4].mxu0 %vm379_vm1, %v4811_v55  ;;  %3921 = vmatprep.mubr.msk.bf16.mxu1 %vm379_vm1, %v4811_v55  ;;  %v1895_v56 = vld [vmem:[#allocation2 + $0x69] sm:$0xff]  ;;  %v1896_v57 = vld [vmem:[#allocation2 + $0x71] sm:$0xff]  ;;  %v4873_v60 = vpack.c.bf16 %v555_v54, %v554_v53 }
  0x40   : > { %4057 = vmatprep.mubr.msk.bf16.mxu0 %vm379_vm1, %v4818_v63  ;;  %v4875_v61 = vpack.c.bf16 %v1896_v57, %v1895_v56  ;;  %v556_v2 = vld [vmem:[#allocation2 + $0x168] sm:$0xff]  ;;  %v557_v4 = vld [vmem:[#allocation2 + $0x170] sm:$0xff]  ;;  %v1108_v57 = vsel %vm632_vm0, %v4791_v36, 0 }
  0x41   : > { %v1897_v5 = vld [vmem:[#allocation2 + $0x89] sm:$0xff]  ;;  %v1898_v6 = vld [vmem:[#allocation2 + $0x91] sm:$0xff]  ;;  %v4894_v12 = vpack.c.bf16 %v557_v4, %v556_v2 }
  0x42   : > { %v558_v7 = vld [vmem:[#allocation2 + $0x188] sm:$0xff]  ;;  %v559_v8 = vld [vmem:[#allocation2 + $0x190] sm:$0xff]  ;;  %v4896_v13 = vpack.c.bf16 %v1898_v6, %v1897_v5 }
  0x43   : > { %v1899_v10 = vld [vmem:[#allocation2 + $0xa9] sm:$0xff]  ;;  %v1900_v11 = vld [vmem:[#allocation2 + $0xb1] sm:$0xff]  ;;  %v4898_v14 = vpack.c.bf16 %v559_v8, %v558_v7 }
  0x44   : > { %v4900_v15 = vpack.c.bf16 %v1900_v11, %v1899_v10  ;;  %v560_v16 = vld [vmem:[#allocation2 + $0x1a8] sm:$0xff]  ;;  %v561_v17 = vld [vmem:[#allocation2 + $0x1b0] sm:$0xff] }
  0x45   : > { %v1901_v18 = vld [vmem:[#allocation2 + $0xc9] sm:$0xff]  ;;  %v1902_v19 = vld [vmem:[#allocation2 + $0xd1] sm:$0xff]  ;;  %v4910_v24 = vpack.c.bf16 %v561_v17, %v560_v16 }
  0x46   : > { %3922 = vmatmul.mubr.msk.bf16.gmra.mrb[8].mxu1 %vm379_vm1, %v4818_v63  ;;  %v562_v20 = vld [vmem:[#allocation2 + $0x1c8] sm:$0xff]  ;;  %v563_v21 = vld [vmem:[#allocation2 + $0x1d0] sm:$0xff]  ;;  %v4912_v25 = vpack.c.bf16 %v1902_v19, %v1901_v18 }
  0x47   : > { %4058 = vmatmul.mubr.msk.bf16.gmra.mrb[8].mxu0 %vm379_vm1, %v4838_v32  ;;  %3925 = vmatprep.mubr.msk.bf16.mxu1 %vm379_vm1, %v4838_v32  ;;  %v1903_v22 = vld [vmem:[#allocation2 + $0xe9] sm:$0xff]  ;;  %v1904_v23 = vld [vmem:[#allocation2 + $0xf1] sm:$0xff]  ;;  %v4914_v26 = vpack.c.bf16 %v563_v21, %v562_v20 }
  0x48   : > { %4061 = vmatprep.mubr.msk.bf16.mxu0 %vm379_vm1, %v4842_v35  ;;  %v4916_v28 = vpack.c.bf16 %v1904_v23, %v1903_v22  ;;  %v564_v29 = vld [vmem:[#allocation2 + $0x1e8] sm:$0xff]  ;;  %v565_v30 = vld [vmem:[#allocation2 + $0x1f0] sm:$0xff] }
  0x49   : > { %v485_v31 = vld [vmem:[#allocation2 + $0x7] sm:$0xff]  ;;  %v1906_v34 = vld [vmem:[#allocation2 + $0x111] sm:$0xff]  ;;  %v4926_v40 = vpack.c.bf16 %v565_v30, %v564_v29 }
  0x4a   : > { %v1905_v33 = vld [vmem:[#allocation2 + $0x109] sm:$0xff]  ;;  %v1908_v39 = vld [vmem:[#allocation2 + $0x131] sm:$0xff] }
  0x4b   : > { %v486_v37 = vld [vmem:[#allocation2 + $0xf] sm:$0xff]  ;;  %v4928_v41 = vpack.c.bf16 %v1906_v34, %v1905_v33  ;;  %v487_v44 = vld [vmem:[#allocation2 + $0x27] sm:$0xff] }
  0x4c   : > { %v1907_v38 = vld [vmem:[#allocation2 + $0x129] sm:$0xff]  ;;  %v517_v42 = vpack.c.bf16 %v486_v37, %v485_v31  ;;  %v1910_v49 = vld [vmem:[#allocation2 + $0x151] sm:$0xff] }
  0x4d   : > { %v4930_v43 = vpack.c.bf16 %v1908_v39, %v1907_v38  ;;  %v488_v45 = vld [vmem:[#allocation2 + $0x2f] sm:$0xff]  ;;  %v489_v50 = vld [vmem:[#allocation2 + $0x47] sm:$0xff] }
  0x4e   : > { %3926 = vmatmul.mubr.msk.bf16.gmra.mrb[12].mxu1 %vm379_vm1, %v4842_v35  ;;  %v1909_v46 = vld [vmem:[#allocation2 + $0x149] sm:$0xff]  ;;  %v1912_v53 = vld [vmem:[#allocation2 + $0x171] sm:$0xff]  ;;  %v4939_v54 = vpack.c.bf16 %v488_v45, %v487_v44 }
  0x4f   : > { %4062 = vmatmul.mubr.msk.bf16.gmra.mrb[12].mxu0 %vm379_vm1, %v4857_v47  ;;  %3929 = vmatprep.mubr.msk.bf16.mxu1 %vm379_vm1, %v4857_v47  ;;  %v490_v51 = vld [vmem:[#allocation2 + $0x4f] sm:$0xff]  ;;  %v4941_v56 = vpack.c.bf16 %v1910_v49, %v1909_v46  ;;  %v491_v5 = vld [vmem:[#allocation2 + $0x67] sm:$0xff] }
  0x50   : > { %4083 = vmatprep.mubr.msk.bf16.mxu0 %vm379_vm1, %v4859_v48  ;;  %v1911_v52 = vld [vmem:[#allocation2 + $0x169] sm:$0xff]  ;;  %v1914_v8 = vld [vmem:[#allocation2 + $0x191] sm:$0xff] }
  0x51   : > { %v4947_v2 = vpack.c.bf16 %v1912_v53, %v1911_v52  ;;  %v4954_v4 = vld [vmem:[%s5345_s2 + $0xc] sm:$0xf]  ;;  %v1916_v16 = vld [vmem:[#allocation2 + $0x1b1] sm:$0xff] }
  0x52   : > { %v492_v6 = vld [vmem:[#allocation2 + $0x6f] sm:$0xff]  ;;  %v493_v7 = vld [vmem:[#allocation2 + $0x87] sm:$0xff] }
  0x53   : > { %v1913_v36 = vld [vmem:[#allocation2 + $0x189] sm:$0xff]  ;;  %v4964_v17 = vpack.c.bf16 %v492_v6, %v491_v5  ;;  %v1918_v30 = vld [vmem:[#allocation2 + $0x1d1] sm:$0xff] }
  0x54   : > { %v494_v10 = vld [vmem:[#allocation2 + $0x8f] sm:$0xff]  ;;  %v4966_v18 = vpack.c.bf16 %v1914_v8, %v1913_v36  ;;  %v495_v21 = vld [vmem:[#allocation2 + $0xa7] sm:$0xff] }
  0x55   : > { %v1915_v11 = vld [vmem:[#allocation2 + $0x1a9] sm:$0xff]  ;;  %v4968_v19 = vpack.c.bf16 %v494_v10, %v493_v7  ;;  %v1920_v34 = vld [vmem:[#allocation2 + $0x1f1] sm:$0xff] }
  0x56   : > { %3930 = vmatmul.mubr.msk.bf16.gmra.mrb[16].mxu1 %vm379_vm1, %v4869_v58  ;;  %v4970_v20 = vpack.c.bf16 %v1916_v16, %v1915_v11  ;;  %v496_v22 = vld [vmem:[#allocation2 + $0xaf] sm:$0xff]  ;;  %v497_v23 = vld [vmem:[#allocation2 + $0xc7] sm:$0xff]  ;;  %v2579_v11 = vsel %vm632_vm0, %v4884_v0, 0  ;;  %v3513_v16 = vld [vmem:[%s5345_s2 + $0x20] sm:$0xf] }
  0x57   : > { %4084 = vmatmul.mubr.msk.bf16.vlgmr.msra.gmra.mrb[0].mxu0 %vm379_vm1, %v4871_v59  ;;  %3933 = vmatprep.mubr.msk.bf16.mxu1 %vm379_vm1, %v4873_v60  ;;  %v1917_v29 = vld [vmem:[#allocation2 + $0x1c9] sm:$0xff]  ;;  %v4980_v37 = vpack.c.bf16 %v496_v22, %v495_v21 }
  0x58   : > { %4116 = vmatpush3.bf16.msra.mxu0 %v2285_v62  ;;  %4087 = vmatprep.mubr.msk.bf16.mxu0 %vm379_vm1, %v4875_v61  ;;  %v4945_v62 = vpack.c.bf16 %v490_v51, %v489_v50  ;;  %v498_v31 = vld [vmem:[#allocation2 + $0xcf] sm:$0xff]  ;;  %v4982_v38 = vpack.c.bf16 %v1918_v30, %v1917_v29  ;;  %v499_v44 = vld [vmem:[#allocation2 + $0xe7] sm:$0xff] }
  0x59   : > { %4483 = vmatprep.subr.msk.bf16.mxu0 %vm632_vm0, %v4884_v0  ;;  %v1919_v33 = vld [vmem:[#allocation2 + $0x1e9] sm:$0xff]  ;;  %v4984_v39 = vpack.c.bf16 %v498_v31, %v497_v23  ;;  %v1922_v50 = vld [vmem:[#allocation2 + $0x211] sm:$0xff] }
  0x5a   : > { %v500_v45 = vld [vmem:[#allocation2 + $0xef] sm:$0xff]  ;;  %v501_v46 = vld [vmem:[#allocation2 + $0x107] sm:$0xff] }
  0x5b   : > { %v1921_v49 = vld [vmem:[#allocation2 + $0x209] sm:$0xff]  ;;  %v4996_v52 = vpack.c.bf16 %v500_v45, %v499_v44 }
  0x5c   : > { %v502_v51 = vld [vmem:[#allocation2 + $0x10f] sm:$0xff]  ;;  %v4998_v53 = vpack.c.bf16 %v1922_v50, %v1921_v49  ;;  %v503_v5 = vld [vmem:[#allocation2 + $0x127] sm:$0xff] }
  0x5d   : > { %v504_v6 = vld [vmem:[#allocation2 + $0x12f] sm:$0xff]  ;;  %v505_v7 = vld [vmem:[#allocation2 + $0x147] sm:$0xff] }
  0x5e   : > { %3934 = vmatmul.mubr.msk.bf16.gmra.mrb[20].mxu1 %vm379_vm1, %v4894_v12  ;;  %v506_v36 = vld [vmem:[#allocation2 + $0x14f] sm:$0xff]  ;;  %v5010_v8 = vpack.c.bf16 %v504_v6, %v503_v5  ;;  %v507_v21 = vld [vmem:[#allocation2 + $0x167] sm:$0xff] }
  0x5f   : > { %4088 = vmatmul.mubr.msk.bf16.gmra.mrb[4].mxu0 %vm379_vm1, %v4896_v13  ;;  %3937 = vmatprep.mubr.msk.bf16.mxu1 %vm379_vm1, %v4898_v14  ;;  %v5012_v10 = vpack.c.bf16 %v506_v36, %v505_v7  ;;  %v508_v22 = vld [vmem:[#allocation2 + $0x16f] sm:$0xff]  ;;  %v509_v0 = vld [vmem:[#allocation2 + $0x187] sm:$0xff]  ;;  %v1402_v36 = vsel %vm632_vm0, %v4954_v4, 0 }
  0x60   : > { %4091 = vmatprep.mubr.msk.bf16.mxu0 %vm379_vm1, %v4900_v15  ;;  %v510_v23 = vld [vmem:[#allocation2 + $0x18f] sm:$0xff]  ;;  %v5028_v29 = vpack.c.bf16 %v508_v22, %v507_v21  ;;  %v511_v31 = vld [vmem:[#allocation2 + $0x1a7] sm:$0xff] }
  0x61   : > { %v5030_v30 = vpack.c.bf16 %v510_v23, %v509_v0  ;;  %v514_v44 = vld [vmem:[#allocation2 + $0x1cf] sm:$0xff]  ;;  %v515_v49 = vld [vmem:[#allocation2 + $0x1e7] sm:$0xff]  ;;  %v2873_v0 = vsel %vm632_vm0, %v3513_v16, 0 }
  0x62   : > { %v516_v50 = vld [vmem:[#allocation2 + $0x1ef] sm:$0xff] }
  0x63   : > { %v1010_v5 = vld [vmem:[#allocation2 + $0x11] sm:$0xff]  ;;  %v5052_v6 = vpack.c.bf16 %v516_v50, %v515_v49 }
  0x64   : > { %v2217_v21 = vld [vmem:[#allocation2 + $0x22f] sm:$0xff] }
  0x66   : > { %3938 = vmatmul.mubr.msk.bf16.gmra.mrb[24].mxu1 %vm379_vm1, %v4910_v24 }
  0x67   : > { %4092 = vmatmul.mubr.msk.bf16.gmra.mrb[8].mxu0 %vm379_vm1, %v4912_v25  ;;  %3941 = vmatprep.mubr.msk.bf16.mxu1 %vm379_vm1, %v4914_v26 }
  0x68   : > { %4095 = vmatprep.mubr.msk.bf16.mxu0 %vm379_vm1, %v4916_v28 }
  0x6e   : > { %3942 = vmatmul.mubr.msk.bf16.gmra.mrb[28].mxu1 %vm379_vm1, %v4926_v40 }
  0x6f   : > { %4096 = vmatmul.mubr.msk.bf16.gmra.mrb[12].mxu0 %vm379_vm1, %v4928_v41  ;;  %3947 = vmatprep.mubr.msk.bf16.mxu1 %vm379_vm1, %v517_v42  ;;  %v4986_v42 = vpack.c.bf16 %v1920_v34, %v1919_v33  ;;  %v512_v33 = vld [vmem:[#allocation2 + $0x1af] sm:$0xff]  ;;  %v513_v34 = vld [vmem:[#allocation2 + $0x1c7] sm:$0xff] }
  0x70   : > { %4099 = vmatprep.mubr.msk.bf16.mxu0 %vm379_vm1, %v4930_v43  ;;  %v5040_v45 = vpack.c.bf16 %v512_v33, %v511_v31 }
  0x76   : > { %3948 = vmatmul.mubr.msk.bf16.vlgmr.msra.gmra.mrb[0].mxu1 %vm379_vm1, %v4939_v54 }
  0x77   : > { %3980 = vmatpush3.bf16.msra.mxu1 %v1108_v57  ;;  %4100 = vmatmul.mubr.msk.bf16.gmra.mrb[16].mxu0 %vm379_vm1, %v4941_v56  ;;  %v5000_v57 = vpack.c.bf16 %v502_v51, %v501_v46  ;;  %v5042_v46 = vpack.c.bf16 %v514_v44, %v513_v34  ;;  %v1009_v51 = vld [vmem:[#allocation2 + $0x9] sm:$0xff] }
  0x78   : > { %3951 = vmatprep.mubr.msk.bf16.mxu1 %vm379_vm1, %v4945_v62  ;;  %4103 = vmatprep.mubr.msk.bf16.mxu0 %vm379_vm1, %v4947_v2  ;;  %v1041_v7 = vpack.c.bf16 %v1010_v5, %v1009_v51 }
  0x79   : > { %4478 = vmatprep.subr.msk.bf16.mxu1 %vm632_vm0, %v4954_v4  ;;  %v2215_v4 = vld [vmem:[#allocation2 + $0x20f] sm:$0xff] }
  0x7e   : > { %3952 = vmatmul.mubr.msk.bf16.gmra.mrb[4].mxu1 %vm379_vm1, %v4964_v17 }
  0x7f   : > { %4104 = vmatmul.mubr.msk.bf16.gmra.mrb[20].mxu0 %vm379_vm1, %v4966_v18  ;;  %3955 = vmatprep.mubr.msk.bf16.mxu1 %vm379_vm1, %v4968_v19 }
  0x80   : > { %4107 = vmatprep.mubr.msk.bf16.mxu0 %vm379_vm1, %v4970_v20 }
  0x86   : > { %3956 = vmatmul.mubr.msk.bf16.gmra.mrb[8].mxu1 %vm379_vm1, %v4980_v37 }
  0x87   : > { %4108 = vmatmul.mubr.msk.bf16.gmra.mrb[24].mxu0 %vm379_vm1, %v4982_v38  ;;  %3959 = vmatprep.mubr.msk.bf16.mxu1 %vm379_vm1, %v4984_v39 }
  0x88   : > { %4111 = vmatprep.mubr.msk.bf16.mxu0 %vm379_vm1, %v4986_v42 }
  0x8e   : > { %3960 = vmatmul.mubr.msk.bf16.gmra.mrb[12].mxu1 %vm379_vm1, %v4996_v52 }
  0x8f   : > { %4112 = vmatmul.mubr.msk.bf16.gmra.mrb[28].mxu0 %vm379_vm1, %v4998_v53  ;;  %3963 = vmatprep.mubr.msk.bf16.mxu1 %vm379_vm1, %v5000_v57 }
  0x90   : > { %4117 = vmatprep.mubr.msk.bf16.mxu0 %vm379_vm1, %v4945_v62 }
  0x96   : > { %3964 = vmatmul.mubr.msk.bf16.gmra.mrb[16].mxu1 %vm379_vm1, %v5010_v8 }
  0x97   : > { %4118 = vmatmul.mubr.msk.bf16.vlgmr.msra.gmra.mrb[0].mxu0 %vm379_vm1, %v4964_v17  ;;  %3967 = vmatprep.mubr.msk.bf16.mxu1 %vm379_vm1, %v5012_v10 }
  0x98   : > { %4150 = vmatpush3.bf16.msra.mxu0 %v2579_v11  ;;  %4121 = vmatprep.mubr.msk.bf16.mxu0 %vm379_vm1, %v4968_v19 }
  0x99   : > { %4484 = vmatprep.subr.msk.bf16.mxu0 %vm632_vm0, %v3513_v16 }
  0x9e   : > { %3968 = vmatmul.mubr.msk.bf16.gmra.mrb[20].mxu1 %vm379_vm1, %v5028_v29 }
  0x9f   : > { %4122 = vmatmul.mubr.msk.bf16.gmra.mrb[4].mxu0 %vm379_vm1, %v4980_v37  ;;  %3971 = vmatprep.mubr.msk.bf16.mxu1 %vm379_vm1, %v5030_v30 }
  0xa0   : > { %4125 = vmatprep.mubr.msk.bf16.mxu0 %vm379_vm1, %v4984_v39 }
  0xa6   : > { %3972 = vmatmul.mubr.msk.bf16.gmra.mrb[24].mxu1 %vm379_vm1, %v5040_v45 }
  0xa7   : > { %4126 = vmatmul.mubr.msk.bf16.gmra.mrb[8].mxu0 %vm379_vm1, %v4996_v52  ;;  %3975 = vmatprep.mubr.msk.bf16.mxu1 %vm379_vm1, %v5042_v46 }
  0xa8   : > { %4129 = vmatprep.mubr.msk.bf16.mxu0 %vm379_vm1, %v5000_v57 }
  0xae   : > { %3976 = vmatmul.mubr.msk.bf16.gmra.mrb[28].mxu1 %vm379_vm1, %v5052_v6 }
  0xaf   : > { %4130 = vmatmul.mubr.msk.bf16.gmra.mrb[12].mxu0 %vm379_vm1, %v5010_v8  ;;  %3981 = vmatprep.mubr.msk.bf16.mxu1 %vm379_vm1, %v1041_v7 }
  0xb0   : > { %4133 = vmatprep.mubr.msk.bf16.mxu0 %vm379_vm1, %v5012_v10 }
  0xb6   : > { %3982 = vmatmul.mubr.msk.bf16.vlgmr.msra.gmra.mrb[0].mxu1 %vm379_vm1, %v4859_v48  ;;  %v2214_v48 = vld [vmem:[#allocation2 + $0x207] sm:$0xff] }
  0xb7   : > { %4014 = vmatpush3.bf16.msra.mxu1 %v1402_v36  ;;  %4134 = vmatmul.mubr.msk.bf16.gmra.mrb[16].mxu0 %vm379_vm1, %v5028_v29  ;;  %v5081_v11 = vpack.c.bf16 %v2215_v4, %v2214_v48 }
  0xb8   : > { %3985 = vmatprep.mubr.msk.bf16.mxu1 %vm379_vm1, %v4871_v59  ;;  %4137 = vmatprep.mubr.msk.bf16.mxu0 %vm379_vm1, %v5030_v30 }
  0xb9   : > { %4480 = vmatprep.subr.msk.bf16.mxu1 %vm632_vm0, %v4542_v1  ;;  %v2216_v1 = vld [vmem:[#allocation2 + $0x227] sm:$0xff] }
  0xba   : > { %v2233_v22 = vpack.c.bf16 %v2217_v21, %v2216_v1 }
  0xbe   : > { %3986 = vmatmul.mubr.msk.bf16.gmra.mrb[4].mxu1 %vm379_vm1, %v4875_v61 }
  0xbf   : > { %4138 = vmatmul.mubr.msk.bf16.gmra.mrb[20].mxu0 %vm379_vm1, %v5040_v45  ;;  %3989 = vmatprep.mubr.msk.bf16.mxu1 %vm379_vm1, %v4896_v13 }
  0xc0   : > { %4141 = vmatprep.mubr.msk.bf16.mxu0 %vm379_vm1, %v5042_v46 }
  0xc6   : > { %3990 = vmatmul.mubr.msk.bf16.gmra.mrb[8].mxu1 %vm379_vm1, %v4900_v15 }
  0xc7   : > { %4142 = vmatmul.mubr.msk.bf16.gmra.mrb[24].mxu0 %vm379_vm1, %v5052_v6  ;;  %3993 = vmatprep.mubr.msk.bf16.mxu1 %vm379_vm1, %v4912_v25 }
  0xc8   : > { %4145 = vmatprep.mubr.msk.bf16.mxu0 %vm379_vm1, %v5081_v11 }
  0xce   : > { %3994 = vmatmul.mubr.msk.bf16.gmra.mrb[12].mxu1 %vm379_vm1, %v4916_v28 }
  0xcf   : > { %4146 = vmatmul.mubr.msk.bf16.gmra.mrb[28].mxu0 %vm379_vm1, %v2233_v22  ;;  %3997 = vmatprep.mubr.msk.bf16.mxu1 %vm379_vm1, %v4928_v41 }
  0xd0   : > { %4151 = vmatprep.mubr.msk.bf16.mxu0 %vm379_vm1, %v4773_v27  ;;  %v2509_v27 = vld [vmem:[#allocation2 + $0x210] sm:$0xff] }
  0xd6   : > { %3998 = vmatmul.mubr.msk.bf16.gmra.mrb[16].mxu1 %vm379_vm1, %v4930_v43 }
  0xd7   : > { %4152 = vmatmul.mubr.msk.bf16.vlgmr.msra.gmra.mrb[0].mxu0 %vm379_vm1, %v4800_v9  ;;  %4001 = vmatprep.mubr.msk.bf16.mxu1 %vm379_vm1, %v4941_v56 }
  0xd8   : > { %4184 = vmatpush3.bf16.msra.mxu0 %v2873_v0  ;;  %4155 = vmatprep.mubr.msk.bf16.mxu0 %vm379_vm1, %v4811_v55  ;;  %v2510_v55 = vld [vmem:[#allocation2 + $0x228] sm:$0xff] }
  0xde   : > { %4002 = vmatmul.mubr.msk.bf16.gmra.mrb[20].mxu1 %vm379_vm1, %v4947_v2 }
  0xdf   : > { %4156 = vmatmul.mubr.msk.bf16.gmra.mrb[4].mxu0 %vm379_vm1, %v4818_v63  ;;  %4005 = vmatprep.mubr.msk.bf16.mxu1 %vm379_vm1, %v4966_v18  ;;  %v2511_v63 = vld [vmem:[#allocation2 + $0x230] sm:$0xff] }
  0xe0   : > { %4159 = vmatprep.mubr.msk.bf16.mxu0 %vm379_vm1, %v4838_v32  ;;  %v2527_v32 = vpack.c.bf16 %v2511_v63, %v2510_v55 }
  0xe6   : > { %4006 = vmatmul.mubr.msk.bf16.gmra.mrb[24].mxu1 %vm379_vm1, %v4970_v20 }
  0xe7   : > { %4160 = vmatmul.mubr.msk.bf16.gmra.mrb[8].mxu0 %vm379_vm1, %v4842_v35  ;;  %4009 = vmatprep.mubr.msk.bf16.mxu1 %vm379_vm1, %v4982_v38  ;;  %v1613_v35 = vld [vmem:[#allocation2 + $0x128] sm:$0xff] }
  0xe8   : > { %4163 = vmatprep.mubr.msk.bf16.mxu0 %vm379_vm1, %v4857_v47  ;;  %v1614_v47 = vld [vmem:[#allocation2 + $0x130] sm:$0xff] }
  0xee   : > { %4010 = vmatmul.mubr.msk.bf16.gmra.mrb[28].mxu1 %vm379_vm1, %v4986_v42 }
  0xef   : > { %4164 = vmatmul.mubr.msk.bf16.gmra.mrb[12].mxu0 %vm379_vm1, %v4869_v58  ;;  %4015 = vmatprep.mubr.msk.bf16.mxu1 %vm379_vm1, %v4939_v54  ;;  %v1637_v58 = vpack.c.bf16 %v1614_v47, %v1613_v35 }
  0xf0   : > { %4167 = vmatprep.mubr.msk.bf16.mxu0 %vm379_vm1, %v4873_v60  ;;  %v1616_v60 = vld [vmem:[#allocation2 + $0x150] sm:$0xff] }
  0xf6   : > { %4016 = vmatmul.mubr.msk.bf16.vlgmr.msra.gmra.mrb[0].mxu1 %vm379_vm1, %v4945_v62 }
  0xf7   : > { %4218 = vmatpush3.bf16.msra.mxu1 %v4550_v3  ;;  %4168 = vmatmul.mubr.msk.bf16.gmra.mrb[16].mxu0 %vm379_vm1, %v4894_v12  ;;  %v2508_v3 = vld [vmem:[#allocation2 + $0x208] sm:$0xff] }
  0xf8   : > { %4019 = vmatprep.mubr.msk.bf16.mxu1 %vm379_vm1, %v4964_v17  ;;  %4171 = vmatprep.mubr.msk.bf16.mxu0 %vm379_vm1, %v4898_v14  ;;  %v2526_v9 = vpack.c.bf16 %v2509_v27, %v2508_v3 }
  0xfe   : > { %4020 = vmatmul.mubr.msk.bf16.gmra.mrb[4].mxu1 %vm379_vm1, %v4968_v19 }
  0xff   : > { %4172 = vmatmul.mubr.msk.bf16.gmra.mrb[20].mxu0 %vm379_vm1, %v4910_v24  ;;  %4023 = vmatprep.mubr.msk.bf16.mxu1 %vm379_vm1, %v4980_v37 }
 0x100   : > { %4175 = vmatprep.mubr.msk.bf16.mxu0 %vm379_vm1, %v4914_v26 }
 0x106   : > { %4024 = vmatmul.mubr.msk.bf16.gmra.mrb[8].mxu1 %vm379_vm1, %v4984_v39 }
 0x107   : > { %4176 = vmatmul.mubr.msk.bf16.gmra.mrb[24].mxu0 %vm379_vm1, %v4926_v40  ;;  %4027 = vmatprep.mubr.msk.bf16.mxu1 %vm379_vm1, %v4996_v52 }
 0x108   : > { %4179 = vmatprep.mubr.msk.bf16.mxu0 %vm379_vm1, %v2526_v9 }
 0x10e   : > { %4028 = vmatmul.mubr.msk.bf16.gmra.mrb[12].mxu1 %vm379_vm1, %v5000_v57 }
 0x10f   : > { %4180 = vmatmul.mubr.msk.bf16.gmra.mrb[28].mxu0 %vm379_vm1, %v2527_v32  ;;  %4031 = vmatprep.mubr.msk.bf16.mxu1 %vm379_vm1, %v5010_v8 }
 0x110   : > { %4185 = vmatprep.mubr.msk.bf16.mxu0 %vm379_vm1, %v4871_v59  ;;  %v1615_v59 = vld [vmem:[#allocation2 + $0x148] sm:$0xff] }
 0x116   : > { %4032 = vmatmul.mubr.msk.bf16.gmra.mrb[16].mxu1 %vm379_vm1, %v5012_v10 }
 0x117   : > { %4186 = vmatmul.mubr.msk.bf16.vlgmr.msra.gmra.mrb[0].mxu0 %vm379_vm1, %v4875_v61  ;;  %4035 = vmatprep.mubr.msk.bf16.mxu1 %vm379_vm1, %v5028_v29  ;;  %v1638_v61 = vpack.c.bf16 %v1616_v60, %v1615_v59 }
 0x118   : > { %4189 = vmatprep.mubr.msk.bf16.mxu0 %vm379_vm1, %v4896_v13  ;;  %v2805_v13 = vld [vmem:[#allocation2 + $0x231] sm:$0xff] }
 0x11e   : > { %4036 = vmatmul.mubr.msk.bf16.gmra.mrb[20].mxu1 %vm379_vm1, %v5030_v30 }
 0x11f   : > { %4190 = vmatmul.mubr.msk.bf16.gmra.mrb[4].mxu0 %vm379_vm1, %v4900_v15  ;;  %4039 = vmatprep.mubr.msk.bf16.mxu1 %vm379_vm1, %v5040_v45 }
 0x120   : > { %4193 = vmatprep.mubr.msk.bf16.mxu0 %vm379_vm1, %v4912_v25 }
 0x126   : > { %4040 = vmatmul.mubr.msk.bf16.gmra.mrb[24].mxu1 %vm379_vm1, %v5042_v46 }
 0x127   : > { %4194 = vmatmul.mubr.msk.bf16.gmra.mrb[8].mxu0 %vm379_vm1, %v4916_v28  ;;  %4043 = vmatprep.mubr.msk.bf16.mxu1 %vm379_vm1, %v5052_v6 }
 0x128   : > { %4197 = vmatprep.mubr.msk.bf16.mxu0 %vm379_vm1, %v4928_v41 }
 0x12e   : > { %4044 = vmatmul.mubr.msk.bf16.gmra.mrb[28].mxu1 %vm379_vm1, %v5081_v11 }
 0x12f   : > { %4198 = vmatmul.mubr.msk.bf16.gmra.mrb[12].mxu0 %vm379_vm1, %v4930_v43  ;;  %4065 = vmatprep.mubr.msk.bf16.mxu1 %vm379_vm1, %v1637_v58 }
 0x130   : > { %4201 = vmatprep.mubr.msk.bf16.mxu0 %vm379_vm1, %v4941_v56 }
 0x136   : > { %4066 = vmatmul.mubr.msk.bf16.vlgmr.msra.gmra.mrb[16].mxu1 %vm379_vm1, %v1638_v61 }
 0x137   : > { %4202 = vmatmul.mubr.msk.bf16.gmra.mrb[16].mxu0 %vm379_vm1, %v4947_v2  ;;  %4069 = vmatprep.mubr.msk.bf16.mxu1 %vm379_vm1, %v4894_v12  ;;  %v2804_v12 = vld [vmem:[#allocation2 + $0x229] sm:$0xff] }
 0x138   : > { %4205 = vmatprep.mubr.msk.bf16.mxu0 %vm379_vm1, %v4966_v18 }
 0x13e   : > { %4070 = vmatmul.mubr.msk.bf16.gmra.mrb[20].mxu1 %vm379_vm1, %v4898_v14  ;;  %v2821_v14 = vpack.c.bf16 %v2805_v13, %v2804_v12 }
 0x13f   : > { %4206 = vmatmul.mubr.msk.bf16.gmra.mrb[20].mxu0 %vm379_vm1, %v4970_v20  ;;  %4073 = vmatprep.mubr.msk.bf16.mxu1 %vm379_vm1, %v4910_v24 }
 0x140   : > { %4209 = vmatprep.mubr.msk.bf16.mxu0 %vm379_vm1, %v4982_v38  ;;  %v5231_v38 = vld [vmem:[%s5346_s3] ss:$0 sm:$0xff] }
 0x146   : > { %4074 = vmatmul.mubr.msk.bf16.gmra.mrb[24].mxu1 %vm379_vm1, %v4914_v26 }
 0x147   : > { %4210 = vmatmul.mubr.msk.bf16.gmra.mrb[24].mxu0 %vm379_vm1, %v4986_v42  ;;  %4077 = vmatprep.mubr.msk.bf16.mxu1 %vm379_vm1, %v4926_v40 }
 0x148   : > { %4213 = vmatprep.mubr.msk.bf16.mxu0 %vm379_vm1, %v4998_v53 }
 0x14e   : > { %4078 = vmatmul.mubr.msk.bf16.gmra.mrb[28].mxu1 %vm379_vm1, %v2526_v9 }
 0x14f   : > { %4214 = vmatmul.mubr.msk.bf16.gmra.mrb[28].mxu0 %vm379_vm1, %v2821_v14 }
 0x1c9   : > { %v4017_v15 = vpop.f32.mrb[0].mxu1 }
 0x1ca   : > { %v1438_v24 = vpop.f32.mrb[1].mxu1 }
 0x1cb   : > { %v4018_v25 = vpop.f32.mrb[2].mxu1 }
 0x1cc   : > { %v1441_v26 = vpop.f32.mrb[3].mxu1 }
 0x1d1   : > { %v4021_v28 = vpop.f32.mrb[4].mxu1 }
 0x1d2   : > { %v1454_v41 = vpop.f32.mrb[5].mxu1 }
 0x1d3   : > { %v4022_v43 = vpop.f32.mrb[6].mxu1 }
 0x1d4   : > { %v1457_v54 = vpop.f32.mrb[7].mxu1 }
 0x1d9   : > { %v4025_v56 = vpop.f32.mrb[8].mxu1 }
 0x1da   : > { %v1470_v40 = vpop.f32.mrb[9].mxu1 }
 0x1db   : > { %v4026_v62 = vpop.f32.mrb[10].mxu1 }
 0x1dc   : > { %v5218_v2 = vpop.f32.mrb[11].mxu1 }
 0x1e1   : > { %v5220_v17 = vpop.f32.mrb[12].mxu1 }
 0x1e2   : > { %v5222_v18 = vpop.f32.mrb[13].mxu1 }
 0x1e3   : > { %v5224_v19 = vpop.f32.mrb[14].mxu1 }
 0x1e4   : > { %v5226_v20 = vpop.f32.mrb[15].mxu1 }
 0x1ea   : > { %v4187_v37 = vpop.f32.mrb[0].mxu0 }
 0x1eb   : > { %v4219_v39 = vadd.f32 %v4187_v37, %v4017_v15  ;;  %v2909_v42 = vpop.f32.mrb[1].mxu0 }
 0x1ec   : > { %v4220_v52 = vadd.f32 %v2909_v42, %v1438_v24  ;;  %v4188_v53 = vpop.f32.mrb[2].mxu0 }
 0x1ed   : > { %v3077_v57 = vadd.f32 %v4219_v39, %v5231_v38  ;;  %v4221_v8 = vadd.f32 %v4188_v53, %v4018_v25  ;;  %v2912_v10 = vpop.f32.mrb[3].mxu0 }
 0x1ee   : > { %v3075_v16 = vadd.f32 %v4220_v52, %v5231_v38  ;;  %v4222_v23 = vadd.f32 %v2912_v10, %v1441_v26 }
 0x1ef   : > { %v3109_v29 = vmax.f32 %v3077_v57, 0.0  ;;  %v3078_v30 = vadd.f32 %v4221_v8, %v5231_v38 }
 0x1f0   : > { %v3107_v31 = vmax.f32 %v3075_v16, 0.0  ;;  %v3076_v33 = vadd.f32 %v4222_v23, %v5231_v38 }
 0x1f1   : > { %v3570_v34 = vpack.c.bf16 %v3109_v29, %v3109_v29  ;;  %v3110_v44 = vmax.f32 %v3078_v30, 0.0 }
 0x1f2   : > { %v3568_v45 = vpack.c.bf16 %v3107_v31, %v3107_v31  ;;  %v3108_v46 = vmax.f32 %v3076_v33, 0.0  ;;  %v4191_v49 = vpop.f32.mrb[4].mxu0 }
 0x1f3   : > { %3270 = vst.msk [vmem:[%s5240_s22 + $0x8] sm:$0xf] %vm3267_vm2, %v3570_v34  ;;  %v3571_v50 = vpack.c.bf16 %v3110_v44, %v3110_v44  ;;  %v4223_v51 = vadd.f32 %v4191_v49, %v4021_v28  ;;  %v2925_v5 = vpop.f32.mrb[5].mxu0 }
 0x1f4   : > { %3268 = vst.msk [vmem:[%s5240_s22] sm:$0xf] %vm3267_vm2, %v3568_v45  ;;  %v3569_v6 = vpack.c.bf16 %v3108_v46, %v3108_v46  ;;  %v4224_v7 = vadd.f32 %v2925_v5, %v1454_v41  ;;  %v4192_v36 = vpop.f32.mrb[6].mxu0 }
 0x1f5   : > { %3271 = vst.msk [vmem:[%s5240_s22 + $0xc] sm:$0xf] %vm3267_vm2, %v3571_v50  ;;  %v3081_v48 = vadd.f32 %v4223_v51, %v5231_v38  ;;  %v4225_v4 = vadd.f32 %v4192_v36, %v4022_v43  ;;  %v2928_v11 = vpop.f32.mrb[7].mxu0 }
 0x1f6   : > { %3269 = vst.msk [vmem:[%s5240_s22 + $0x4] sm:$0xf] %vm3267_vm2, %v3569_v6  ;;  %v3079_v1 = vadd.f32 %v4224_v7, %v5231_v38  ;;  %v4226_v21 = vadd.f32 %v2928_v11, %v1457_v54 }
 0x1f7   : > { %v3113_v22 = vmax.f32 %v3081_v48, 0.0  ;;  %v3082_v0 = vadd.f32 %v4225_v4, %v5231_v38 }
 0x1f8   : > { %v3111_v3 = vmax.f32 %v3079_v1, 0.0  ;;  %v3080_v27 = vadd.f32 %v4226_v21, %v5231_v38 }
 0x1f9   : > { %v3574_v9 = vpack.c.bf16 %v3113_v22, %v3113_v22  ;;  %v3114_v55 = vmax.f32 %v3082_v0, 0.0 }
 0x1fa   : > { %v3572_v63 = vpack.c.bf16 %v3111_v3, %v3111_v3  ;;  %v3112_v32 = vmax.f32 %v3080_v27, 0.0  ;;  %v4195_v35 = vpop.f32.mrb[8].mxu0 }
 0x1fb   : > { %3274 = vst.msk [vmem:[%s5240_s22 + $0x18] sm:$0xf] %vm3267_vm2, %v3574_v9  ;;  %v3575_v47 = vpack.c.bf16 %v3114_v55, %v3114_v55  ;;  %v4227_v58 = vadd.f32 %v4195_v35, %v4025_v56  ;;  %v2941_v59 = vpop.f32.mrb[9].mxu0 }
 0x1fc   : > { %3272 = vst.msk [vmem:[%s5240_s22 + $0x10] sm:$0xf] %vm3267_vm2, %v3572_v63  ;;  %v3573_v60 = vpack.c.bf16 %v3112_v32, %v3112_v32  ;;  %v4228_v61 = vadd.f32 %v2941_v59, %v1470_v40  ;;  %v4196_v12 = vpop.f32.mrb[10].mxu0 }
 0x1fd   : > { %3275 = vst.msk [vmem:[%s5240_s22 + $0x1c] sm:$0xf] %vm3267_vm2, %v3575_v47  ;;  %v3085_v13 = vadd.f32 %v4227_v58, %v5231_v38  ;;  %v4229_v14 = vadd.f32 %v4196_v12, %v4026_v62  ;;  %v2944_v15 = vpop.f32.mrb[11].mxu0 }
 0x1fe   : > { %3273 = vst.msk [vmem:[%s5240_s22 + $0x14] sm:$0xf] %vm3267_vm2, %v3573_v60  ;;  %v3083_v24 = vadd.f32 %v4228_v61, %v5231_v38  ;;  %v4230_v25 = vadd.f32 %v2944_v15, %v5218_v2 }
 0x1ff   : > { %v3117_v26 = vmax.f32 %v3085_v13, 0.0  ;;  %v3086_v28 = vadd.f32 %v4229_v14, %v5231_v38 }
 0x200   : > { %v3115_v41 = vmax.f32 %v3083_v24, 0.0  ;;  %v3084_v43 = vadd.f32 %v4230_v25, %v5231_v38 }
 0x201   : > { %v3578_v54 = vpack.c.bf16 %v3117_v26, %v3117_v26  ;;  %v3118_v56 = vmax.f32 %v3086_v28, 0.0 }
 0x202   : > { %v3576_v40 = vpack.c.bf16 %v3115_v41, %v3115_v41  ;;  %v3116_v62 = vmax.f32 %v3084_v43, 0.0  ;;  %v4199_v37 = vpop.f32.mrb[12].mxu0 }
 0x203   : > { %3278 = vst.msk [vmem:[%s5240_s22 + $0x28] sm:$0xf] %vm3267_vm2, %v3578_v54  ;;  %v3579_v39 = vpack.c.bf16 %v3118_v56, %v3118_v56  ;;  %v4231_v42 = vadd.f32 %v4199_v37, %v5220_v17  ;;  %v2957_v52 = vpop.f32.mrb[13].mxu0 }
 0x204   : > { %3276 = vst.msk [vmem:[%s5240_s22 + $0x20] sm:$0xf] %vm3267_vm2, %v3576_v40  ;;  %v3577_v2 = vpack.c.bf16 %v3116_v62, %v3116_v62  ;;  %v4232_v53 = vadd.f32 %v2957_v52, %v5222_v18  ;;  %v4200_v57 = vpop.f32.mrb[14].mxu0 }
 0x205   : > { %3279 = vst.msk [vmem:[%s5240_s22 + $0x2c] sm:$0xf] %vm3267_vm2, %v3579_v39  ;;  %v3089_v8 = vadd.f32 %v4231_v42, %v5231_v38  ;;  %v4233_v10 = vadd.f32 %v4200_v57, %v5224_v19  ;;  %v2960_v16 = vpop.f32.mrb[15].mxu0 }
 0x206   : > { %3277 = vst.msk [vmem:[%s5240_s22 + $0x24] sm:$0xf] %vm3267_vm2, %v3577_v2  ;;  %v3087_v23 = vadd.f32 %v4232_v53, %v5231_v38  ;;  %v4234_v17 = vadd.f32 %v2960_v16, %v5226_v20 }
 0x207   : > { %v3121_v29 = vmax.f32 %v3089_v8, 0.0  ;;  %v3090_v30 = vadd.f32 %v4233_v10, %v5231_v38 }
 0x208   : > { %v3119_v18 = vmax.f32 %v3087_v23, 0.0  ;;  %v3088_v31 = vadd.f32 %v4234_v17, %v5231_v38 }
 0x209   : > { %v3582_v33 = vpack.c.bf16 %v3121_v29, %v3121_v29  ;;  %v3122_v34 = vmax.f32 %v3090_v30, 0.0  ;;  %v4067_v44 = vpop.f32.mrb[16].mxu1 }
 0x20a   : > { %v3580_v19 = vpack.c.bf16 %v3119_v18, %v3119_v18  ;;  %v3120_v45 = vmax.f32 %v3088_v31, 0.0  ;;  %v1796_v46 = vpop.f32.mrb[17].mxu1  ;;  %v4203_v49 = vpop.f32.mrb[16].mxu0 }
 0x20b   : > { %3282 = vst.msk [vmem:[%s5240_s22 + $0x38] sm:$0xf] %vm3267_vm2, %v3582_v33  ;;  %v3583_v50 = vpack.c.bf16 %v3122_v34, %v3122_v34  ;;  %v4235_v20 = vadd.f32 %v4203_v49, %v4067_v44  ;;  %v4068_v51 = vpop.f32.mrb[18].mxu1  ;;  %v2973_v5 = vpop.f32.mrb[17].mxu0 }
 0x20c   : > { %3280 = vst.msk [vmem:[%s5240_s22 + $0x30] sm:$0xf] %vm3267_vm2, %v3580_v19  ;;  %v3581_v6 = vpack.c.bf16 %v3120_v45, %v3120_v45  ;;  %v4236_v7 = vadd.f32 %v2973_v5, %v1796_v46  ;;  %v1799_v36 = vpop.f32.mrb[19].mxu1  ;;  %v4204_v48 = vpop.f32.mrb[18].mxu0 }
 0x20d   : > { %3283 = vst.msk [vmem:[%s5240_s22 + $0x3c] sm:$0xf] %vm3267_vm2, %v3583_v50  ;;  %v3093_v4 = vadd.f32 %v4235_v20, %v5231_v38  ;;  %v4237_v11 = vadd.f32 %v4204_v48, %v4068_v51  ;;  %v2976_v1 = vpop.f32.mrb[19].mxu0 }
 0x20e   : > { %3281 = vst.msk [vmem:[%s5240_s22 + $0x34] sm:$0xf] %vm3267_vm2, %v3581_v6  ;;  %v3091_v21 = vadd.f32 %v4236_v7, %v5231_v38  ;;  %v4238_v22 = vadd.f32 %v2976_v1, %v1799_v36 }
 0x20f   : > { %v3125_v0 = vmax.f32 %v3093_v4, 0.0  ;;  %v3094_v3 = vadd.f32 %v4237_v11, %v5231_v38 }
 0x210   : > { %v3123_v27 = vmax.f32 %v3091_v21, 0.0  ;;  %v3092_v9 = vadd.f32 %v4238_v22, %v5231_v38 }
 0x211   : > { %v3586_v55 = vpack.c.bf16 %v3125_v0, %v3125_v0  ;;  %v3126_v63 = vmax.f32 %v3094_v3, 0.0  ;;  %v4071_v32 = vpop.f32.mrb[20].mxu1 }
 0x212   : > { %v3584_v35 = vpack.c.bf16 %v3123_v27, %v3123_v27  ;;  %v3124_v47 = vmax.f32 %v3092_v9, 0.0  ;;  %v1812_v58 = vpop.f32.mrb[21].mxu1  ;;  %v4207_v59 = vpop.f32.mrb[20].mxu0 }
 0x213   : > { %3286 = vst.msk [vmem:[%s5240_s22 + $0x48] sm:$0xf] %vm3267_vm2, %v3586_v55  ;;  %v3587_v60 = vpack.c.bf16 %v3126_v63, %v3126_v63  ;;  %v4239_v61 = vadd.f32 %v4207_v59, %v4071_v32  ;;  %v4072_v12 = vpop.f32.mrb[22].mxu1  ;;  %v2989_v13 = vpop.f32.mrb[21].mxu0 }
 0x214   : > { %3284 = vst.msk [vmem:[%s5240_s22 + $0x40] sm:$0xf] %vm3267_vm2, %v3584_v35  ;;  %v3585_v14 = vpack.c.bf16 %v3124_v47, %v3124_v47  ;;  %v4240_v15 = vadd.f32 %v2989_v13, %v1812_v58  ;;  %v1815_v24 = vpop.f32.mrb[23].mxu1  ;;  %v4208_v25 = vpop.f32.mrb[22].mxu0 }
 0x215   : > { %3287 = vst.msk [vmem:[%s5240_s22 + $0x4c] sm:$0xf] %vm3267_vm2, %v3587_v60  ;;  %v3097_v26 = vadd.f32 %v4239_v61, %v5231_v38  ;;  %v4241_v28 = vadd.f32 %v4208_v25, %v4072_v12  ;;  %v2992_v41 = vpop.f32.mrb[23].mxu0 }
 0x216   : > { %3285 = vst.msk [vmem:[%s5240_s22 + $0x44] sm:$0xf] %vm3267_vm2, %v3585_v14  ;;  %v3095_v43 = vadd.f32 %v4240_v15, %v5231_v38  ;;  %v4242_v54 = vadd.f32 %v2992_v41, %v1815_v24 }
 0x217   : > { %v3129_v56 = vmax.f32 %v3097_v26, 0.0  ;;  %v3098_v40 = vadd.f32 %v4241_v28, %v5231_v38 }
 0x218   : > { %v3127_v62 = vmax.f32 %v3095_v43, 0.0  ;;  %v3096_v37 = vadd.f32 %v4242_v54, %v5231_v38 }
 0x219   : > { %v3590_v39 = vpack.c.bf16 %v3129_v56, %v3129_v56  ;;  %v3130_v42 = vmax.f32 %v3098_v40, 0.0  ;;  %v4075_v52 = vpop.f32.mrb[24].mxu1 }
 0x21a   : > { %v3588_v2 = vpack.c.bf16 %v3127_v62, %v3127_v62  ;;  %v3128_v53 = vmax.f32 %v3096_v37, 0.0  ;;  %v1828_v57 = vpop.f32.mrb[25].mxu1  ;;  %v4211_v8 = vpop.f32.mrb[24].mxu0 }
 0x21b   : > { %3290 = vst.msk [vmem:[%s5240_s22 + $0x58] sm:$0xf] %vm3267_vm2, %v3590_v39  ;;  %v3591_v10 = vpack.c.bf16 %v3130_v42, %v3130_v42  ;;  %v4243_v16 = vadd.f32 %v4211_v8, %v4075_v52  ;;  %v4076_v23 = vpop.f32.mrb[26].mxu1  ;;  %v3005_v17 = vpop.f32.mrb[25].mxu0 }
 0x21c   : > { %3288 = vst.msk [vmem:[%s5240_s22 + $0x50] sm:$0xf] %vm3267_vm2, %v3588_v2  ;;  %v3589_v29 = vpack.c.bf16 %v3128_v53, %v3128_v53  ;;  %v4244_v30 = vadd.f32 %v3005_v17, %v1828_v57  ;;  %v1831_v18 = vpop.f32.mrb[27].mxu1  ;;  %v4212_v31 = vpop.f32.mrb[26].mxu0 }
 0x21d   : > { %3291 = vst.msk [vmem:[%s5240_s22 + $0x5c] sm:$0xf] %vm3267_vm2, %v3591_v10  ;;  %v3101_v33 = vadd.f32 %v4243_v16, %v5231_v38  ;;  %v4245_v34 = vadd.f32 %v4212_v31, %v4076_v23  ;;  %v3008_v44 = vpop.f32.mrb[27].mxu0 }
 0x21e   : > { %3289 = vst.msk [vmem:[%s5240_s22 + $0x54] sm:$0xf] %vm3267_vm2, %v3589_v29  ;;  %v3099_v19 = vadd.f32 %v4244_v30, %v5231_v38  ;;  %v4246_v45 = vadd.f32 %v3008_v44, %v1831_v18 }
 0x21f   : > { %v3133_v46 = vmax.f32 %v3101_v33, 0.0  ;;  %v3102_v49 = vadd.f32 %v4245_v34, %v5231_v38 }
 0x220   : > { %v3131_v50 = vmax.f32 %v3099_v19, 0.0  ;;  %v3100_v20 = vadd.f32 %v4246_v45, %v5231_v38 }
 0x221   : > { %v3594_v51 = vpack.c.bf16 %v3133_v46, %v3133_v46  ;;  %v3134_v5 = vmax.f32 %v3102_v49, 0.0  ;;  %v4079_v6 = vpop.f32.mrb[28].mxu1 }
 0x222   : > { %v3592_v7 = vpack.c.bf16 %v3131_v50, %v3131_v50  ;;  %v3132_v36 = vmax.f32 %v3100_v20, 0.0  ;;  %v1844_v48 = vpop.f32.mrb[29].mxu1  ;;  %v4215_v4 = vpop.f32.mrb[28].mxu0 }
 0x223   : > { %3294 = vst.msk [vmem:[%s5240_s22 + $0x68] sm:$0xf] %vm3267_vm2, %v3594_v51  ;;  %v3595_v11 = vpack.c.bf16 %v3134_v5, %v3134_v5  ;;  %v4247_v1 = vadd.f32 %v4215_v4, %v4079_v6  ;;  %v4080_v21 = vpop.f32.mrb[30].mxu1  ;;  %v3021_v22 = vpop.f32.mrb[29].mxu0 }
 0x224   : > { %3292 = vst.msk [vmem:[%s5240_s22 + $0x60] sm:$0xf] %vm3267_vm2, %v3592_v7  ;;  %v3593_v0 = vpack.c.bf16 %v3132_v36, %v3132_v36  ;;  %v4248_v3 = vadd.f32 %v3021_v22, %v1844_v48  ;;  %v1847_v27 = vpop.f32.mrb[31].mxu1  ;;  %v4216_v9 = vpop.f32.mrb[30].mxu0 }
 0x225   : > { %3295 = vst.msk [vmem:[%s5240_s22 + $0x6c] sm:$0xf] %vm3267_vm2, %v3595_v11  ;;  %v3105_v55 = vadd.f32 %v4247_v1, %v5231_v38  ;;  %v4249_v63 = vadd.f32 %v4216_v9, %v4080_v21  ;;  %v3024_v32 = vpop.f32.mrb[31].mxu0 }
 0x226   : > { %3293 = vst.msk [vmem:[%s5240_s22 + $0x64] sm:$0xf] %vm3267_vm2, %v3593_v0  ;;  %v3103_v35 = vadd.f32 %v4248_v3, %v5231_v38  ;;  %v4250_v47 = vadd.f32 %v3024_v32, %v1847_v27 }
 0x227   : > { %v3137_v58 = vmax.f32 %v3105_v55, 0.0  ;;  %v3106_v59 = vadd.f32 %v4249_v63, %v5231_v38 }
 0x228   : > { %v3135_v60 = vmax.f32 %v3103_v35, 0.0  ;;  %v3104_v61 = vadd.f32 %v4250_v47, %v5231_v38 }
 0x229   : > { %v3598_v12 = vpack.c.bf16 %v3137_v58, %v3137_v58  ;;  %v3138_v13 = vmax.f32 %v3106_v59, 0.0 }
 0x22a   : > { %v3596_v14 = vpack.c.bf16 %v3135_v60, %v3135_v60  ;;  %v3136_v15 = vmax.f32 %v3104_v61, 0.0 }
 0x22b   : > { %3298 = vst.msk [vmem:[%s5240_s22 + $0x78] sm:$0xf] %vm3267_vm2, %v3598_v12  ;;  %v3599_v24 = vpack.c.bf16 %v3138_v13, %v3138_v13 }
 0x22c   : > { %3296 = vst.msk [vmem:[%s5240_s22 + $0x70] sm:$0xf] %vm3267_vm2, %v3596_v14  ;;  %v3597_v25 = vpack.c.bf16 %v3136_v15, %v3136_v15 }
 0x22d   : > { %3299 = vst.msk [vmem:[%s5240_s22 + $0x7c] sm:$0xf] %vm3267_vm2, %v3599_v24 }
 0x22e   : > { %3297 = vst.msk [vmem:[%s5240_s22 + $0x74] sm:$0xf] %vm3267_vm2, %v3597_v25 }
 0x22f PF: > { %s14_s15 = sadd.s32 1, %s4500_s15  }
 0x230   : > { %p11_p4 = scmp.ge.s32.totalorder %s14_s15, 4  }
 0x232   :  { %13 = sbr.rel (!%p11_p4) target bundleno = 1 (0x1), region = 79 }

// kernel: attrunet_fwd.31
= control target key start
LH: loop header
LB: loop body
LE: loop exit
PB: predicated region body
PF: predicated region fallthrough
CT: control target
= control target key end

     0   :  { %s485_s12 = smov 0   ;;  %s516_s0 = inlined_call_operand.vmem [shape: bf16[128,8], index: 0, kind: input, shape index: {}]   ;;  %s517_s1 = inlined_call_operand.vmem [shape: bf16[8,16], index: 1, kind: input, shape index: {}]   ;;  %s518_s2 = inlined_call_operand.vmem [shape: f32[1,16], index: 2, kind: input, shape index: {}]   ;;  %s519_s3 = inlined_call_operand.vmem [shape: bf16[128,16], index: 3, kind: output, shape index: {}]  }
   0x1 LB: > { %s390_s13 = sadd.s32 4294967295, %s463_s12   ;;  %p394_p0 = scmp.ge.s32.totalorder %s463_s12, 1  ;;  %s463_s12 = sphi %s485_s12, %s13_s12  }
   0x2   : > { %p138_p1 = scmp.lt.s32.totalorder %s463_s12, 3 }
   0x4   : > { %p139_p2 = pnand %p394_p0, %p138_p1 }
   0x5   : > { %v183_v0 = vld [vmem:[%s517_s1] sm:$0xf] (!%p139_p2)  ;;  %vm224_vm0 = vcmask (!%p139_p2), 1043456   ;;  %s395_s16 = sshll.u32 (!%p139_p2), %s390_s13, 3  ;;  %vm211_vm1 = vcmask (!%p139_p2), 64512   ;;  %vm325_vm2 = vcmask (!%p139_p2), 125952  }
   0x6   : > { %142 = sbr.rel (%p139_p2) target bundleno = 238 (0xee), region = 32  ;;  %443 = vmatprep.subr.msk.bf16.mxu0 (!%p139_p2), %vm224_vm0, %v183_v0  ;;  %444 = vmatprep.subr.msk.bf16.mxu1 (!%p139_p2), %vm224_vm0, %v183_v0  ;;  %v226_v1 = vsel (!%p139_p2), %vm224_vm0, %v183_v0, 0  ;;  %p163_p3 = scmp.lt.s32.totalorder (!%p139_p2), %s395_s16, 15  ;;  %v399_v6 = vld [vmem:[%s518_s2] ss:$0 sm:$0xff] (!%p139_p2) }
   0x7   : > { %432 = vmatpush3.bf16.msra.mxu0 (!%p139_p2), %v226_v1  ;;  %442 = vmatpush3.bf16.msra.mxu1 (!%p139_p2), %v226_v1 }
   0xd   : > { %s521_s16 = smov (!%p163_p3, %s395_s16), 15 }
   0xe   : > { %s396_s17 = sshll.u32 %s521_s16, 2 }
   0xf   : > { %s166_s20 = scalar_lea.vmem %s516_s0, %s396_s17  ;;  %s172_s25 = scalar_lea.vmem %s519_s3, %s396_s17 }
  0x10   : > { %v453_v2 = vld [vmem:[%s166_s20] sm:$0xff]   ;;  %v454_v3 = vld [vmem:[%s166_s20 + $0x10] sm:$0xff]   ;;  %v455_v4 = vld [vmem:[%s166_s20 + $0x8] sm:$0xff]  }
  0x11   : > { %433 = vmatprep.mubr.msk.bf16.mxu0 %vm211_vm1, %v453_v2  ;;  %437 = vmatprep.mubr.msk.bf16.mxu1 %vm211_vm1, %v454_v3  ;;  %v456_v5 = vld [vmem:[%s166_s20 + $0x18] sm:$0xff]  }
  0x12   : > { %434 = vmatmul.mubr.msk.bf16.vlgmr.msra.gmra.mrb[0].mxu0 %vm211_vm1, %v455_v4  ;;  %438 = vmatmul.mubr.msk.bf16.vlgmr.msra.gmra.mrb[0].mxu1 %vm211_vm1, %v456_v5 }
  0xe5   : > { %v435_v7 = vpop.f32.mrb[0].mxu0  ;;  %v439_v9 = vpop.f32.mrb[0].mxu1 }
  0xe6   : > { %v271_v8 = vadd.f32 %v435_v7, %v399_v6  ;;  %v262_v10 = vpop.f32.mrb[1].mxu0  ;;  %v287_v11 = vadd.f32 %v439_v9, %v399_v6  ;;  %v278_v13 = vpop.f32.mrb[1].mxu1 }
  0xe7   : > { %v263_v12 = vadd.f32 %v399_v6, %v262_v10  ;;  %v436_v14 = vpop.f32.mrb[2].mxu0  ;;  %v279_v16 = vadd.f32 %v399_v6, %v278_v13  ;;  %v440_v18 = vpop.f32.mrb[2].mxu1 }
  0xe8   : > { %v420_v15 = vpack.c.bf16 %v271_v8, %v271_v8  ;;  %v274_v17 = vadd.f32 %v436_v14, %v399_v6  ;;  %v265_v19 = vpop.f32.mrb[3].mxu0  ;;  %v424_v20 = vpack.c.bf16 %v287_v11, %v287_v11  ;;  %v290_v22 = vadd.f32 %v440_v18, %v399_v6  ;;  %v281_v24 = vpop.f32.mrb[3].mxu1 }
  0xe9   : > { %v418_v21 = vpack.c.bf16 %v263_v12, %v263_v12  ;;  %v266_v23 = vadd.f32 %v399_v6, %v265_v19  ;;  %v422_v25 = vpack.c.bf16 %v279_v16, %v279_v16  ;;  %v282_v27 = vadd.f32 %v399_v6, %v281_v24 }
  0xea   : > { %328 = vst.msk [vmem:[%s172_s25 + $0x8] sm:$0xf] %vm325_vm2, %v420_v15  ;;  %v421_v26 = vpack.c.bf16 %v274_v17, %v274_v17  ;;  %332 = vst.msk [vmem:[%s172_s25 + $0x18] sm:$0xf] %vm325_vm2, %v424_v20  ;;  %v425_v28 = vpack.c.bf16 %v290_v22, %v290_v22 }
  0xeb   : > { %326 = vst.msk [vmem:[%s172_s25] sm:$0xf] %vm325_vm2, %v418_v21  ;;  %v419_v29 = vpack.c.bf16 %v266_v23, %v266_v23  ;;  %330 = vst.msk [vmem:[%s172_s25 + $0x10] sm:$0xf] %vm325_vm2, %v422_v25  ;;  %v423_v30 = vpack.c.bf16 %v282_v27, %v282_v27 }
  0xec   : > { %329 = vst.msk [vmem:[%s172_s25 + $0xc] sm:$0xf] %vm325_vm2, %v421_v26  ;;  %333 = vst.msk [vmem:[%s172_s25 + $0x1c] sm:$0xf] %vm325_vm2, %v425_v28 }
  0xed   : > { %327 = vst.msk [vmem:[%s172_s25 + $0x4] sm:$0xf] %vm325_vm2, %v419_v29  ;;  %331 = vst.msk [vmem:[%s172_s25 + $0x14] sm:$0xf] %vm325_vm2, %v423_v30 }
  0xee PF: > { %s13_s12 = sadd.s32 1, %s463_s12  }
  0xef   : > { %p10_p4 = scmp.ge.s32.totalorder %s13_s12, 4  }
  0xf1   :  { %12 = sbr.rel (!%p10_p4) target bundleno = 1 (0x1), region = 62 }

// kernel: attrunet_fwd.32
= control target key start
LH: loop header
LB: loop body
LE: loop exit
PB: predicated region body
PF: predicated region fallthrough
CT: control target
= control target key end

     0   :  { %s1643_s12 = smov 0   ;;  %s1815_s0 = inlined_call_operand.vmem [shape: bf16[2,8,8,16], index: 0, kind: input, shape index: {}]   ;;  %s1816_s1 = inlined_call_operand.vmem [shape: bf16[9,16,16], index: 1, kind: input, shape index: {}]   ;;  %s1817_s2 = inlined_call_operand.vmem [shape: f32[1,16], index: 2, kind: input, shape index: {}]   ;;  %s1818_s3 = inlined_call_operand.vmem [shape: bf16[2,64,16], index: 3, kind: output, shape index: {}]  }
   0x1 LB: > { %s1285_s13 = sadd.s32 4294967295, %s1620_s12   ;;  %p1289_p0 = scmp.ge.s32.totalorder %s1620_s12, 1  ;;  %s1620_s12 = sphi %s1643_s12, %s13_s12  }
   0x2   : > { %p137_p1 = scmp.lt.s32.totalorder %s1620_s12, 3 }
   0x4   : > { %p138_p2 = pnand %p1289_p0, %p137_p1 }
   0x5   : > { %v1605_v0 = vld [vmem:[%s1816_s1 + $0x8] sm:$0xff] (!%p138_p2)   ;;  %p161_p3 = scmp.lt.s32.totalorder (!%p138_p2), %s1285_s13, 1  ;;  %v1657_v1 = vld [vmem:[%s1816_s1 + $0x20] sm:$0xff] (!%p138_p2)   ;;  %vm188_vm0 = vcmask (!%p138_p2), 130048   ;;  %v1622_v2 = vmov (!%p138_p2), 0.0   ;;  %v1609_v31 = vld [vmem:[%s1816_s1 + $0x30] sm:$0xff] (!%p138_p2)  }
   0x6   : > { %141 = sbr.rel (%p138_p2) target bundleno = 324 (0x144), region = 32  ;;  %1440 = vmatprep.subr.bf16.mxu1 (!%p138_p2), %v1605_v0  ;;  %1480 = vmatprep.subr.bf16.mxu0 (!%p138_p2), %v1657_v1  ;;  %190 = vst.msk [vmem:[#allocation2 + $0x8] sm:$0xff] (!%p138_p2), %vm188_vm0, %v1622_v2  ;;  %193 = vst.msk [vmem:[#allocation2 + $0x20] sm:$0xff] (!%p138_p2), %vm188_vm0, %v1622_v2  ;;  %v1607_v3 = vld [vmem:[%s1816_s1] sm:$0xff] (!%p138_p2)   ;;  %v1608_v4 = vld [vmem:[%s1816_s1 + $0x28] sm:$0xff] (!%p138_p2)   ;;  %vm1221_vm1 = vcmask (!%p138_p2), 125952  }
   0x7   : > { %1441 = vmatpush3.bf16.msra.mxu1 (!%p138_p2), %v1605_v0  ;;  %189 = vst.msk [vmem:[#allocation2] sm:$0xff] (!%p138_p2), %vm188_vm0, %v1622_v2  ;;  %191 = vst.msk [vmem:[#allocation2 + $0x10] sm:$0xff] (!%p138_p2), %vm188_vm0, %v1622_v2  ;;  %1481 = vmatpush3.bf16.msra.mxu0 (!%p138_p2), %v1657_v1  ;;  %v1610_v32 = vld [vmem:[%s1816_s1 + $0x10] sm:$0xff] (!%p138_p2)   ;;  %v1611_v49 = vld [vmem:[%s1816_s1 + $0x38] sm:$0xff] (!%p138_p2)  }
   0x8   : > { %192 = vst.msk [vmem:[#allocation2 + $0x18] sm:$0xff] (!%p138_p2), %vm188_vm0, %v1622_v2  ;;  %194 = vst.msk [vmem:[#allocation2 + $0x28] sm:$0xff] (!%p138_p2), %vm188_vm0, %v1622_v2  ;;  %1450 = vmatprep.subr.bf16.mxu1 (!%p138_p2), %v1607_v3  ;;  %1490 = vmatprep.subr.bf16.mxu0 (!%p138_p2), %v1608_v4  ;;  %v1612_v54 = vld [vmem:[%s1816_s1 + $0x18] sm:$0xff] (!%p138_p2)   ;;  %v1613_v61 = vld [vmem:[%s1816_s1 + $0x40] sm:$0xff] (!%p138_p2)  }
   0x9   : > { %195 = vst.msk [vmem:[#allocation2 + $0x30] sm:$0xff] (!%p138_p2), %vm188_vm0, %v1622_v2  ;;  %196 = vst.msk [vmem:[#allocation2 + $0x38] sm:$0xff] (!%p138_p2), %vm188_vm0, %v1622_v2 }
   0xa   : > { %197 = vst.msk [vmem:[#allocation2 + $0x40] sm:$0xff] (!%p138_p2), %vm188_vm0, %v1622_v2  ;;  %198 = vst.msk [vmem:[#allocation2 + $0x48] sm:$0xff] (!%p138_p2), %vm188_vm0, %v1622_v2 }
   0xb   : > { %199 = vst.msk [vmem:[#allocation2 + $0x50] sm:$0xff] (!%p138_p2), %vm188_vm0, %v1622_v2  ;;  %200 = vst.msk [vmem:[#allocation2 + $0x58] sm:$0xff] (!%p138_p2), %vm188_vm0, %v1622_v2 }
   0xc   : > { %201 = vst.msk [vmem:[#allocation2 + $0x60] sm:$0xff] (!%p138_p2), %vm188_vm0, %v1622_v2  ;;  %202 = vst.msk [vmem:[#allocation2 + $0x68] sm:$0xff] (!%p138_p2), %vm188_vm0, %v1622_v2 }
   0xd   : > { %s1820_s13 = smov (!%p161_p3, %s1285_s13), 1  ;;  %203 = vst.msk [vmem:[#allocation2 + $0x70] sm:$0xff] %vm188_vm0, %v1622_v2  ;;  %204 = vst.msk [vmem:[#allocation2 + $0x78] sm:$0xff] %vm188_vm0, %v1622_v2  ;;  %v242_v17 = vld [vmem:[#allocation2 + $0x8] sm:$0xff] }
   0xe   : > { %205 = vst.msk [vmem:[#allocation2 + $0x80] sm:$0xff] %vm188_vm0, %v1622_v2  ;;  %206 = vst.msk [vmem:[#allocation2 + $0x88] sm:$0xff] %vm188_vm0, %v1622_v2  ;;  %s1366_s20 = sshll.u32 %s1820_s13, 5  ;;  %v228_v35 = vld [vmem:[#allocation2 + $0x7] sm:$0xff] }
   0xf   : > { %207 = vst.msk [vmem:[#allocation2 + $0x90] sm:$0xff] %vm188_vm0, %v1622_v2  ;;  %208 = vst.msk [vmem:[#allocation2 + $0x98] sm:$0xff] %vm188_vm0, %v1622_v2  ;;  %s165_s25 = scalar_lea.vmem %s1815_s0, %s1366_s20  ;;  %v423_v58 = vld [vmem:[#allocation2 + $0x9] sm:$0xff]  ;;  %s1794_s15 = scalar_lea.vmem %s1818_s3, %s1366_s20 }
  0x10   : > { %209 = vst.msk [vmem:[#allocation2 + $0xa0] sm:$0xff] %vm188_vm0, %v1622_v2  ;;  %210 = vst.msk [vmem:[#allocation2 + $0xa8] sm:$0xff] %vm188_vm0, %v1622_v2  ;;  %v1377_v5 = vld [vmem:[%s165_s25] sm:$0xff]   ;;  %v1392_v6 = vld [vmem:[%s165_s25 + $0x8] sm:$0xff]  }
  0x11   : > { %211 = vst.msk [vmem:[#allocation2 + $0xb0] sm:$0xff] %vm188_vm0, %v1622_v2  ;;  %212 = vst.msk [vmem:[#allocation2 + $0xb8] sm:$0xff] %vm188_vm0, %v1622_v2  ;;  %v1393_v7 = vld [vmem:[%s165_s25 + $0x10] sm:$0xff]   ;;  %v1378_v8 = vunpack.c.l.bf16 %v1377_v5  ;;  %v1379_v9 = vunpack.c.h.bf16 %v1377_v5  ;;  %v1382_v10 = vunpack.c.l.bf16 %v1392_v6  ;;  %v1383_v11 = vunpack.c.h.bf16 %v1392_v6  ;;  %v1394_v12 = vld [vmem:[%s165_s25 + $0x18] sm:$0xff]  }
  0x12   : > { %213 = vst.msk [vmem:[#allocation2 + $0xc0] sm:$0xff] %vm188_vm0, %v1622_v2  ;;  %214 = vst.msk [vmem:[#allocation2 + $0xc8] sm:$0xff] %vm188_vm0, %v1622_v2  ;;  %v1386_v13 = vunpack.c.l.bf16 %v1393_v7  ;;  %v1387_v14 = vunpack.c.h.bf16 %v1393_v7  ;;  %v1390_v15 = vunpack.c.l.bf16 %v1394_v12  ;;  %v1391_v16 = vunpack.c.h.bf16 %v1394_v12 }
  0x13   : > { %215 = vst.msk [vmem:[#allocation2 + $0xd0] sm:$0xff] %vm188_vm0, %v1622_v2  ;;  %216 = vst.msk [vmem:[#allocation2 + $0xd8] sm:$0xff] %vm188_vm0, %v1622_v2 }
  0x14   : > { %217 = vst.msk [vmem:[#allocation2 + $0xe0] sm:$0xff] %vm188_vm0, %v1622_v2  ;;  %218 = vst.msk [vmem:[#allocation2 + $0xe8] sm:$0xff] %vm188_vm0, %v1622_v2 }
  0x15   : > { %220 = vst.msk [vmem:[#allocation2 + $0x20] sm:$0xff] %vm188_vm0, %v1378_v8  ;;  %221 = vst.msk [vmem:[#allocation2 + $0x38] sm:$0xff] %vm188_vm0, %v1379_v9 }
  0x16   : > { %222 = vst.msk [vmem:[#allocation2 + $0x50] sm:$0xff] %vm188_vm0, %v1382_v10  ;;  %223 = vst.msk [vmem:[#allocation2 + $0x68] sm:$0xff] %vm188_vm0, %v1383_v11 }
  0x17   : > { %224 = vst.msk [vmem:[#allocation2 + $0x80] sm:$0xff] %vm188_vm0, %v1386_v13  ;;  %225 = vst.msk [vmem:[#allocation2 + $0x98] sm:$0xff] %vm188_vm0, %v1387_v14 }
  0x18   : > { %226 = vst.msk [vmem:[#allocation2 + $0xb0] sm:$0xff] %vm188_vm0, %v1390_v15  ;;  %227 = vst.msk [vmem:[#allocation2 + $0xc8] sm:$0xff] %vm188_vm0, %v1391_v16 }
  0x1b   : > { %v855_v0 = vld [vmem:[#allocation2 + $0xdf] sm:$0xff] }
  0x1c   : > { %v243_v18 = vld [vmem:[#allocation2 + $0x20] sm:$0xff]  ;;  %v636_v19 = vld [vmem:[#allocation2 + $0x38] sm:$0xff] }
  0x1d   : > { %v245_v20 = vld [vmem:[#allocation2 + $0x50] sm:$0xff]  ;;  %v250_v21 = vpack.c.bf16 %v243_v18, %v242_v17  ;;  %v643_v22 = vpack.c.bf16 %v636_v19, %v243_v18  ;;  %v638_v24 = vld [vmem:[#allocation2 + $0x68] sm:$0xff]  ;;  %v742_v29 = vld [vmem:[#allocation2 + $0x39] sm:$0xff] }
  0x1e   : > { %v1713_v23 = vpack.c.bf16 %v245_v20, %v636_v19  ;;  %v1715_v25 = vld [vmem:[#allocation2 + $0x80] sm:$0xff]  ;;  %v644_v26 = vpack.c.bf16 %v638_v24, %v245_v20  ;;  %v1731_v33 = vld [vmem:[#allocation2 + $0x98] sm:$0xff]  ;;  %v744_v39 = vld [vmem:[#allocation2 + $0x69] sm:$0xff] }
  0x1f   : > { %v1718_v27 = vpack.c.bf16 %v1715_v25, %v638_v24  ;;  %v741_v28 = vld [vmem:[#allocation2 + $0x21] sm:$0xff]  ;;  %1442 = vmatprep.mubr.msk.bf16.mxu1 %vm188_vm0, %v250_v21  ;;  %1482 = vmatprep.mubr.msk.bf16.mxu0 %vm188_vm0, %v643_v22  ;;  %v1733_v34 = vld [vmem:[#allocation2 + $0xb0] sm:$0xff]  ;;  %v746_v42 = vld [vmem:[#allocation2 + $0x99] sm:$0xff]  ;;  %v645_v12 = vpack.c.bf16 %v1731_v33, %v1715_v25 }
  0x20   : > { %v749_v30 = vpack.c.bf16 %v742_v29, %v741_v28  ;;  %1443 = vmatmul.mubr.msk.bf16.vlgmr.msra.gmra.mrb[0].mxu1 %vm188_vm0, %v1713_v23  ;;  %1483 = vmatmul.mubr.msk.bf16.vlgmr.msra.gmra.mrb[0].mxu0 %vm188_vm0, %v644_v26  ;;  %v229_v36 = vld [vmem:[#allocation2 + $0x1f] sm:$0xff]  ;;  %v253_v37 = vpack.c.bf16 %v1733_v34, %v1731_v33  ;;  %v743_v38 = vld [vmem:[#allocation2 + $0x51] sm:$0xff]  ;;  %v232_v47 = vld [vmem:[#allocation2 + $0x67] sm:$0xff]  ;;  %v431_v60 = vpack.c.bf16 %v741_v28, %v423_v58 }
  0x21   : > { %1451 = vmatpush3.bf16.msra.mxu1 %v1607_v3  ;;  %1491 = vmatpush3.bf16.msra.mxu0 %v1608_v4  ;;  %v236_v40 = vpack.c.bf16 %v229_v36, %v228_v35  ;;  %v745_v41 = vld [vmem:[#allocation2 + $0x81] sm:$0xff]  ;;  %v750_v43 = vpack.c.bf16 %v744_v39, %v743_v38  ;;  %v230_v44 = vld [vmem:[#allocation2 + $0x37] sm:$0xff]  ;;  %v231_v45 = vld [vmem:[#allocation2 + $0x4f] sm:$0xff]  ;;  %v432_v62 = vpack.c.bf16 %v743_v38, %v742_v29 }
  0x22   : > { %1446 = vmatprep.mubr.msk.bf16.mxu1 %vm188_vm0, %v1718_v27  ;;  %1492 = vmatprep.mubr.msk.bf16.mxu0 %vm188_vm0, %v749_v30  ;;  %v751_v46 = vpack.c.bf16 %v746_v42, %v745_v41  ;;  %v233_v48 = vld [vmem:[#allocation2 + $0x7f] sm:$0xff]  ;;  %v237_v50 = vpack.c.bf16 %v231_v45, %v230_v44  ;;  %v747_v51 = vld [vmem:[#allocation2 + $0xb1] sm:$0xff]  ;;  %v748_v52 = vld [vmem:[#allocation2 + $0xc9] sm:$0xff]  ;;  %v433_v2 = vpack.c.bf16 %v745_v41, %v744_v39 }
  0x23   : > { %1500 = vmatprep.subr.bf16.mxu0 %v1609_v31  ;;  %1460 = vmatprep.subr.bf16.mxu1 %v1610_v32  ;;  %v238_v53 = vpack.c.bf16 %v233_v48, %v232_v47  ;;  %v752_v55 = vpack.c.bf16 %v748_v52, %v747_v51  ;;  %v234_v56 = vld [vmem:[#allocation2 + $0x97] sm:$0xff]  ;;  %v235_v57 = vld [vmem:[#allocation2 + $0xaf] sm:$0xff]  ;;  %v854_v63 = vld [vmem:[#allocation2 + $0xc7] sm:$0xff]  ;;  %v434_v4 = vpack.c.bf16 %v747_v51, %v746_v42 }
  0x24   : > { %v239_v59 = vpack.c.bf16 %v235_v57, %v234_v56  ;;  %v859_v3 = vpack.c.bf16 %v855_v0, %v854_v63  ;;  %v537_v5 = vpack.c.bf16 %v230_v44, %v229_v36  ;;  %v538_v6 = vpack.c.bf16 %v232_v47, %v231_v45  ;;  %v960_v7 = vld [vmem:[#allocation2 + $0xc8] sm:$0xff]  ;;  %v961_v8 = vld [vmem:[#allocation2 + $0xe0] sm:$0xff] }
  0x25   : > { %v539_v9 = vpack.c.bf16 %v234_v56, %v233_v48  ;;  %v965_v10 = vpack.c.bf16 %v961_v8, %v960_v7  ;;  %v540_v11 = vpack.c.bf16 %v854_v63, %v235_v57  ;;  %v1067_v13 = vld [vmem:[#allocation2 + $0xe1] sm:$0xff]  ;;  %v1355_v20 = vld [vmem:[%s1817_s2] ss:$0 sm:$0xff] }
  0x26   : > { %v1071_v14 = vpack.c.bf16 %v1067_v13, %v748_v52 }
  0x28   : > { %1447 = vmatmul.mubr.msk.bf16.gmra.mrb[4].mxu1 %vm188_vm0, %v253_v37 }
  0x29   : > { %1452 = vmatprep.mubr.msk.bf16.mxu1 %vm188_vm0, %v236_v40 }
  0x2c   : > { %1493 = vmatmul.mubr.msk.bf16.vlgmr.msra.gmra.mrb[0].mxu0 %vm188_vm0, %v750_v43 }
  0x2d   : > { %1501 = vmatpush3.bf16.msra.mxu0 %v1609_v31  ;;  %1496 = vmatprep.mubr.msk.bf16.mxu0 %vm188_vm0, %v751_v46 }
  0x2e   : > { %1510 = vmatprep.subr.bf16.mxu0 %v1611_v49 }
  0x30   : > { %1453 = vmatmul.mubr.msk.bf16.vlgmr.msra.gmra.mrb[0].mxu1 %vm188_vm0, %v237_v50 }
  0x31   : > { %1461 = vmatpush3.bf16.msra.mxu1 %v1610_v32  ;;  %1456 = vmatprep.mubr.msk.bf16.mxu1 %vm188_vm0, %v238_v53 }
  0x32   : > { %1470 = vmatprep.subr.bf16.mxu1 %v1612_v54 }
  0x34   : > { %1497 = vmatmul.mubr.msk.bf16.gmra.mrb[4].mxu0 %vm188_vm0, %v752_v55 }
  0x35   : > { %1502 = vmatprep.mubr.msk.bf16.mxu0 %vm188_vm0, %v237_v50 }
  0x38   : > { %1457 = vmatmul.mubr.msk.bf16.gmra.mrb[4].mxu1 %vm188_vm0, %v239_v59 }
  0x39   : > { %1462 = vmatprep.mubr.msk.bf16.mxu1 %vm188_vm0, %v431_v60 }
  0x3c   : > { %1503 = vmatmul.mubr.msk.bf16.vlgmr.msra.gmra.mrb[0].mxu0 %vm188_vm0, %v238_v53 }
  0x3d   : > { %1511 = vmatpush3.bf16.msra.mxu0 %v1611_v49  ;;  %1506 = vmatprep.mubr.msk.bf16.mxu0 %vm188_vm0, %v239_v59 }
  0x3e   : > { %1520 = vmatprep.subr.bf16.mxu0 %v1613_v61 }
  0x40   : > { %1463 = vmatmul.mubr.msk.bf16.vlgmr.msra.gmra.mrb[0].mxu1 %vm188_vm0, %v432_v62 }
  0x41   : > { %1471 = vmatpush3.bf16.msra.mxu1 %v1612_v54  ;;  %1466 = vmatprep.mubr.msk.bf16.mxu1 %vm188_vm0, %v433_v2 }
  0x42   : > { %1530 = vmatprep.subr.bf16.mxu1 %v1657_v1 }
  0x44   : > { %1507 = vmatmul.mubr.msk.bf16.gmra.mrb[4].mxu0 %vm188_vm0, %v859_v3 }
  0x45   : > { %1512 = vmatprep.mubr.msk.bf16.mxu0 %vm188_vm0, %v1713_v23 }
  0x48   : > { %1467 = vmatmul.mubr.msk.bf16.gmra.mrb[4].mxu1 %vm188_vm0, %v434_v4 }
  0x49   : > { %1472 = vmatprep.mubr.msk.bf16.mxu1 %vm188_vm0, %v537_v5 }
  0x4c   : > { %1513 = vmatmul.mubr.msk.bf16.vlgmr.msra.gmra.mrb[0].mxu0 %vm188_vm0, %v1718_v27 }
  0x4d   : > { %1521 = vmatpush3.bf16.msra.mxu0 %v1613_v61  ;;  %1516 = vmatprep.mubr.msk.bf16.mxu0 %vm188_vm0, %v253_v37 }
  0x50   : > { %1473 = vmatmul.mubr.msk.bf16.vlgmr.msra.gmra.mrb[0].mxu1 %vm188_vm0, %v538_v6 }
  0x51   : > { %1531 = vmatpush3.bf16.msra.mxu1 %v1657_v1  ;;  %1476 = vmatprep.mubr.msk.bf16.mxu1 %vm188_vm0, %v539_v9  ;;  %v646_v1 = vpack.c.bf16 %v960_v7, %v1733_v34 }
  0x54   : > { %1517 = vmatmul.mubr.msk.bf16.gmra.mrb[4].mxu0 %vm188_vm0, %v965_v10 }
  0x55   : > { %1522 = vmatprep.mubr.msk.bf16.mxu0 %vm188_vm0, %v432_v62 }
  0x58   : > { %1477 = vmatmul.mubr.msk.bf16.gmra.mrb[4].mxu1 %vm188_vm0, %v540_v11 }
  0x59   : > { %1486 = vmatprep.mubr.msk.bf16.mxu1 %vm188_vm0, %v645_v12 }
  0x5c   : > { %1523 = vmatmul.mubr.msk.bf16.vlgmr.msra.gmra.mrb[0].mxu0 %vm188_vm0, %v433_v2 }
  0x5d   : > { %1526 = vmatprep.mubr.msk.bf16.mxu0 %vm188_vm0, %v434_v4 }
  0x64   : > { %1487 = vmatmul.mubr.msk.bf16.vlgmr.msra.gmra.mrb[4].mxu1 %vm188_vm0, %v646_v1  ;;  %1527 = vmatmul.mubr.msk.bf16.gmra.mrb[4].mxu0 %vm188_vm0, %v1071_v14 }
 0x123   : > { %v1474_v15 = vpop.f32.mrb[0].mxu1 }
 0x124   : > { %v596_v16 = vpop.f32.mrb[1].mxu1 }
 0x125   : > { %v1475_v17 = vpop.f32.mrb[2].mxu1 }
 0x126   : > { %v599_v18 = vpop.f32.mrb[3].mxu1 }
 0x12f   : > { %v1524_v19 = vpop.f32.mrb[0].mxu0 }
 0x130   : > { %v1532_v21 = vadd.f32 %v1524_v19, %v1474_v15  ;;  %v1127_v22 = vpop.f32.mrb[1].mxu0 }
 0x131   : > { %v1533_v23 = vadd.f32 %v1127_v22, %v596_v16  ;;  %v1525_v24 = vpop.f32.mrb[2].mxu0 }
 0x132   : > { %v1175_v25 = vadd.f32 %v1532_v21, %v1355_v20  ;;  %v1534_v26 = vadd.f32 %v1525_v24, %v1475_v17  ;;  %v1130_v27 = vpop.f32.mrb[3].mxu0 }
 0x133   : > { %v1173_v28 = vadd.f32 %v1533_v23, %v1355_v20  ;;  %v1535_v29 = vadd.f32 %v1130_v27, %v599_v18 }
 0x134   : > { %v1183_v30 = vmax.f32 %v1175_v25, 0.0  ;;  %v1176_v31 = vadd.f32 %v1534_v26, %v1355_v20 }
 0x135   : > { %v1181_v32 = vmax.f32 %v1173_v28, 0.0  ;;  %v1174_v33 = vadd.f32 %v1535_v29, %v1355_v20 }
 0x136   : > { %v1370_v34 = vpack.c.bf16 %v1183_v30, %v1183_v30  ;;  %v1184_v35 = vmax.f32 %v1176_v31, 0.0 }
 0x137   : > { %v1368_v36 = vpack.c.bf16 %v1181_v32, %v1181_v32  ;;  %v1182_v37 = vmax.f32 %v1174_v33, 0.0  ;;  %v1488_v38 = vpop.f32.mrb[4].mxu1  ;;  %v1528_v39 = vpop.f32.mrb[4].mxu0 }
 0x138   : > { %1224 = vst.msk [vmem:[%s1794_s15 + $0x8] sm:$0xf] %vm1221_vm1, %v1370_v34  ;;  %v1371_v40 = vpack.c.bf16 %v1184_v35, %v1184_v35  ;;  %v1536_v41 = vadd.f32 %v1528_v39, %v1488_v38  ;;  %v718_v42 = vpop.f32.mrb[5].mxu1  ;;  %v1143_v43 = vpop.f32.mrb[5].mxu0 }
 0x139   : > { %1222 = vst.msk [vmem:[%s1794_s15] sm:$0xf] %vm1221_vm1, %v1368_v36  ;;  %v1369_v44 = vpack.c.bf16 %v1182_v37, %v1182_v37  ;;  %v1537_v45 = vadd.f32 %v1143_v43, %v718_v42  ;;  %v1489_v46 = vpop.f32.mrb[6].mxu1  ;;  %v1529_v47 = vpop.f32.mrb[6].mxu0 }
 0x13a   : > { %1225 = vst.msk [vmem:[%s1794_s15 + $0xc] sm:$0xf] %vm1221_vm1, %v1371_v40  ;;  %v1179_v48 = vadd.f32 %v1536_v41, %v1355_v20  ;;  %v1538_v49 = vadd.f32 %v1529_v47, %v1489_v46  ;;  %v721_v50 = vpop.f32.mrb[7].mxu1  ;;  %v1146_v51 = vpop.f32.mrb[7].mxu0 }
 0x13b   : > { %1223 = vst.msk [vmem:[%s1794_s15 + $0x4] sm:$0xf] %vm1221_vm1, %v1369_v44  ;;  %v1177_v52 = vadd.f32 %v1537_v45, %v1355_v20  ;;  %v1539_v53 = vadd.f32 %v1146_v51, %v721_v50 }
 0x13c   : > { %v1187_v54 = vmax.f32 %v1179_v48, 0.0  ;;  %v1180_v55 = vadd.f32 %v1538_v49, %v1355_v20 }
 0x13d   : > { %v1185_v56 = vmax.f32 %v1177_v52, 0.0  ;;  %v1178_v57 = vadd.f32 %v1539_v53, %v1355_v20 }
 0x13e   : > { %v1374_v58 = vpack.c.bf16 %v1187_v54, %v1187_v54  ;;  %v1188_v59 = vmax.f32 %v1180_v55, 0.0 }
 0x13f   : > { %v1372_v60 = vpack.c.bf16 %v1185_v56, %v1185_v56  ;;  %v1186_v61 = vmax.f32 %v1178_v57, 0.0 }
 0x140   : > { %1228 = vst.msk [vmem:[%s1794_s15 + $0x18] sm:$0xf] %vm1221_vm1, %v1374_v58  ;;  %v1375_v62 = vpack.c.bf16 %v1188_v59, %v1188_v59 }
 0x141   : > { %1226 = vst.msk [vmem:[%s1794_s15 + $0x10] sm:$0xf] %vm1221_vm1, %v1372_v60  ;;  %v1373_v63 = vpack.c.bf16 %v1186_v61, %v1186_v61 }
 0x142   : > { %1229 = vst.msk [vmem:[%s1794_s15 + $0x1c] sm:$0xf] %vm1221_vm1, %v1375_v62 }
 0x143   : > { %1227 = vst.msk [vmem:[%s1794_s15 + $0x14] sm:$0xf] %vm1221_vm1, %v1373_v63 }
 0x144 PF: > { %s13_s12 = sadd.s32 1, %s1620_s12  }
 0x145   : > { %p10_p4 = scmp.ge.s32.totalorder %s13_s12, 4  }
 0x147   :  { %12 = sbr.rel (!%p10_p4) target bundleno = 1 (0x1), region = 72 }

// kernel: attrunet_fwd.33
= control target key start
LH: loop header
LB: loop body
LE: loop exit
PB: predicated region body
PF: predicated region fallthrough
CT: control target
= control target key end

     0   :  { %s1753_s15 = smov 0   ;;  %s1941_s0 = inlined_call_operand.vmem [shape: bf16[2,8,8,16], index: 0, kind: input, shape index: {}]   ;;  %s1942_s1 = inlined_call_operand.vmem [shape: bf16[2,8,8,16], index: 1, kind: input, shape index: {}]   ;;  %s1943_s2 = inlined_call_operand.vmem [shape: bf16[9,16,16], index: 2, kind: input, shape index: {}]   ;;  %s1944_s3 = inlined_call_operand.vmem [shape: f32[1,16], index: 3, kind: input, shape index: {}]   ;;  %s1945_s4 = inlined_call_operand.vmem [shape: bf16[2,64,16], index: 4, kind: output, shape index: {}]  }
   0x1 LB: > { %s1368_s16 = sadd.s32 4294967295, %s1725_s15   ;;  %p1372_p0 = scmp.ge.s32.totalorder %s1725_s15, 1  ;;  %s1725_s15 = sphi %s1753_s15, %s14_s15  }
   0x2   : > { %p172_p1 = scmp.lt.s32.totalorder %s1725_s15, 3 }
   0x4   : > { %p173_p2 = pnand %p1372_p0, %p172_p1 }
   0x5   : > { %v1710_v0 = vld [vmem:[%s1943_s2 + $0x8] sm:$0xff] (!%p173_p2)   ;;  %p203_p3 = scmp.lt.s32.totalorder (!%p173_p2), %s1368_s16, 1  ;;  %v1767_v1 = vld [vmem:[%s1943_s2 + $0x20] sm:$0xff] (!%p173_p2)   ;;  %vm259_vm0 = vcmask (!%p173_p2), 130048   ;;  %v1727_v2 = vmov (!%p173_p2), 0.0   ;;  %v1714_v51 = vld [vmem:[%s1943_s2 + $0x30] sm:$0xff] (!%p173_p2)  }
   0x6   : > { %176 = sbr.rel (%p173_p2) target bundleno = 326 (0x146), region = 36  ;;  %1545 = vmatprep.subr.bf16.mxu1 (!%p173_p2), %v1710_v0  ;;  %1585 = vmatprep.subr.bf16.mxu0 (!%p173_p2), %v1767_v1  ;;  %261 = vst.msk [vmem:[#allocation2 + $0x8] sm:$0xff] (!%p173_p2), %vm259_vm0, %v1727_v2  ;;  %264 = vst.msk [vmem:[#allocation2 + $0x20] sm:$0xff] (!%p173_p2), %vm259_vm0, %v1727_v2  ;;  %v1805_v3 = vld [vmem:[%s1943_s2] sm:$0xff] (!%p173_p2)   ;;  %v1814_v4 = vld [vmem:[%s1943_s2 + $0x28] sm:$0xff] (!%p173_p2)   ;;  %vm1292_vm1 = vcmask (!%p173_p2), 125952  }
   0x7   : > { %1546 = vmatpush3.bf16.msra.mxu1 (!%p173_p2), %v1710_v0  ;;  %260 = vst.msk [vmem:[#allocation2] sm:$0xff] (!%p173_p2), %vm259_vm0, %v1727_v2  ;;  %262 = vst.msk [vmem:[#allocation2 + $0x10] sm:$0xff] (!%p173_p2), %vm259_vm0, %v1727_v2  ;;  %1586 = vmatpush3.bf16.msra.mxu0 (!%p173_p2), %v1767_v1  ;;  %v1715_v52 = vld [vmem:[%s1943_s2 + $0x10] sm:$0xff] (!%p173_p2)  }
   0x8   : > { %263 = vst.msk [vmem:[#allocation2 + $0x18] sm:$0xff] (!%p173_p2), %vm259_vm0, %v1727_v2  ;;  %265 = vst.msk [vmem:[#allocation2 + $0x28] sm:$0xff] (!%p173_p2), %vm259_vm0, %v1727_v2  ;;  %1555 = vmatprep.subr.bf16.mxu1 (!%p173_p2), %v1805_v3  ;;  %1595 = vmatprep.subr.bf16.mxu0 (!%p173_p2), %v1814_v4 }
   0x9   : > { %266 = vst.msk [vmem:[#allocation2 + $0x30] sm:$0xff] (!%p173_p2), %vm259_vm0, %v1727_v2  ;;  %267 = vst.msk [vmem:[#allocation2 + $0x38] sm:$0xff] (!%p173_p2), %vm259_vm0, %v1727_v2 }
   0xa   : > { %268 = vst.msk [vmem:[#allocation2 + $0x40] sm:$0xff] (!%p173_p2), %vm259_vm0, %v1727_v2  ;;  %269 = vst.msk [vmem:[#allocation2 + $0x48] sm:$0xff] (!%p173_p2), %vm259_vm0, %v1727_v2 }
   0xb   : > { %270 = vst.msk [vmem:[#allocation2 + $0x50] sm:$0xff] (!%p173_p2), %vm259_vm0, %v1727_v2  ;;  %271 = vst.msk [vmem:[#allocation2 + $0x58] sm:$0xff] (!%p173_p2), %vm259_vm0, %v1727_v2 }
   0xc   : > { %272 = vst.msk [vmem:[#allocation2 + $0x60] sm:$0xff] (!%p173_p2), %vm259_vm0, %v1727_v2  ;;  %273 = vst.msk [vmem:[#allocation2 + $0x68] sm:$0xff] (!%p173_p2), %vm259_vm0, %v1727_v2 }
   0xd   : > { %s1947_s16 = smov (!%p203_p3, %s1368_s16), 1  ;;  %274 = vst.msk [vmem:[#allocation2 + $0x70] sm:$0xff] %vm259_vm0, %v1727_v2  ;;  %275 = vst.msk [vmem:[#allocation2 + $0x78] sm:$0xff] %vm259_vm0, %v1727_v2  ;;  %v313_v37 = vld [vmem:[#allocation2 + $0x8] sm:$0xff] }
   0xe   : > { %276 = vst.msk [vmem:[#allocation2 + $0x80] sm:$0xff] %vm259_vm0, %v1727_v2  ;;  %277 = vst.msk [vmem:[#allocation2 + $0x88] sm:$0xff] %vm259_vm0, %v1727_v2  ;;  %s1809_s23 = sshll.u32 %s1947_s16, 5  ;;  %v299_v55 = vld [vmem:[#allocation2 + $0x7] sm:$0xff] }
   0xf   : > { %278 = vst.msk [vmem:[#allocation2 + $0x90] sm:$0xff] %vm259_vm0, %v1727_v2  ;;  %279 = vst.msk [vmem:[#allocation2 + $0x98] sm:$0xff] %vm259_vm0, %v1727_v2  ;;  %s207_s28 = scalar_lea.vmem %s1941_s0, %s1809_s23  ;;  %s212_s5 = scalar_lea.vmem %s1942_s1, %s1809_s23 }
  0x10   : > { %280 = vst.msk [vmem:[#allocation2 + $0xa0] sm:$0xff] %vm259_vm0, %v1727_v2  ;;  %281 = vst.msk [vmem:[#allocation2 + $0xa8] sm:$0xff] %vm259_vm0, %v1727_v2  ;;  %v1463_v5 = vld [vmem:[%s207_s28] sm:$0xff]   ;;  %v1494_v7 = vld [vmem:[%s207_s28 + $0x8] sm:$0xff]   ;;  %s1920_s21 = scalar_lea.vmem %s1945_s4, %s1809_s23 }
  0x11   : > { %282 = vst.msk [vmem:[#allocation2 + $0xb0] sm:$0xff] %vm259_vm0, %v1727_v2  ;;  %283 = vst.msk [vmem:[#allocation2 + $0xb8] sm:$0xff] %vm259_vm0, %v1727_v2  ;;  %v1479_v6 = vld [vmem:[%s212_s5] sm:$0xff]   ;;  %v1464_v8 = vunpack.c.l.bf16 %v1463_v5  ;;  %v1465_v10 = vunpack.c.h.bf16 %v1463_v5  ;;  %v1497_v12 = vld [vmem:[%s212_s5 + $0x8] sm:$0xff]   ;;  %v1468_v15 = vunpack.c.l.bf16 %v1494_v7  ;;  %v1469_v17 = vunpack.c.h.bf16 %v1494_v7 }
  0x12   : > { %284 = vst.msk [vmem:[#allocation2 + $0xc0] sm:$0xff] %vm259_vm0, %v1727_v2  ;;  %285 = vst.msk [vmem:[#allocation2 + $0xc8] sm:$0xff] %vm259_vm0, %v1727_v2  ;;  %v1480_v9 = vunpack.c.l.bf16 %v1479_v6  ;;  %v1481_v11 = vunpack.c.h.bf16 %v1479_v6  ;;  %v1495_v13 = vld [vmem:[%s207_s28 + $0x10] sm:$0xff]   ;;  %v1484_v16 = vunpack.c.l.bf16 %v1497_v12  ;;  %v1485_v18 = vunpack.c.h.bf16 %v1497_v12  ;;  %v1496_v19 = vld [vmem:[%s207_s28 + $0x18] sm:$0xff]  }
  0x13   : > { %286 = vst.msk [vmem:[#allocation2 + $0xd0] sm:$0xff] %vm259_vm0, %v1727_v2  ;;  %287 = vst.msk [vmem:[#allocation2 + $0xd8] sm:$0xff] %vm259_vm0, %v1727_v2  ;;  %v1498_v14 = vld [vmem:[%s212_s5 + $0x10] sm:$0xff]   ;;  %v1499_v20 = vld [vmem:[%s212_s5 + $0x18] sm:$0xff]   ;;  %v1472_v23 = vunpack.c.l.bf16 %v1495_v13  ;;  %v1473_v27 = vunpack.c.h.bf16 %v1495_v13  ;;  %v1476_v28 = vunpack.c.l.bf16 %v1496_v19  ;;  %v1477_v32 = vunpack.c.h.bf16 %v1496_v19 }
  0x14   : > { %288 = vst.msk [vmem:[#allocation2 + $0xe0] sm:$0xff] %vm259_vm0, %v1727_v2  ;;  %289 = vst.msk [vmem:[#allocation2 + $0xe8] sm:$0xff] %vm259_vm0, %v1727_v2  ;;  %v251_v21 = vadd.f32 %v1480_v9, %v1464_v8  ;;  %v252_v22 = vadd.f32 %v1481_v11, %v1465_v10  ;;  %v1488_v24 = vunpack.c.l.bf16 %v1498_v14  ;;  %v253_v25 = vadd.f32 %v1484_v16, %v1468_v15  ;;  %v1716_v6 = vld [vmem:[%s1943_s2 + $0x38] sm:$0xff]   ;;  %v494_v15 = vld [vmem:[#allocation2 + $0x9] sm:$0xff] }
  0x15   : > { %v254_v26 = vadd.f32 %v1485_v18, %v1469_v17  ;;  %v1489_v30 = vunpack.c.h.bf16 %v1498_v14  ;;  %v1492_v31 = vunpack.c.l.bf16 %v1499_v20  ;;  %v1493_v33 = vunpack.c.h.bf16 %v1499_v20  ;;  %v1717_v11 = vld [vmem:[%s1943_s2 + $0x18] sm:$0xff]   ;;  %v1718_v18 = vld [vmem:[%s1943_s2 + $0x40] sm:$0xff]  }
  0x16   : > { %291 = vst.msk [vmem:[#allocation2 + $0x20] sm:$0xff] %vm259_vm0, %v251_v21  ;;  %292 = vst.msk [vmem:[#allocation2 + $0x38] sm:$0xff] %vm259_vm0, %v252_v22  ;;  %v255_v29 = vadd.f32 %v1488_v24, %v1472_v23 }
  0x17   : > { %293 = vst.msk [vmem:[#allocation2 + $0x50] sm:$0xff] %vm259_vm0, %v253_v25  ;;  %294 = vst.msk [vmem:[#allocation2 + $0x68] sm:$0xff] %vm259_vm0, %v254_v26  ;;  %v256_v34 = vadd.f32 %v1489_v30, %v1473_v27  ;;  %v257_v35 = vadd.f32 %v1492_v31, %v1476_v28  ;;  %v258_v36 = vadd.f32 %v1493_v33, %v1477_v32 }
  0x18   : > { %295 = vst.msk [vmem:[#allocation2 + $0x80] sm:$0xff] %vm259_vm0, %v255_v29 }
  0x19   : > { %296 = vst.msk [vmem:[#allocation2 + $0x98] sm:$0xff] %vm259_vm0, %v256_v34  ;;  %297 = vst.msk [vmem:[#allocation2 + $0xb0] sm:$0xff] %vm259_vm0, %v257_v35 }
  0x1a   : > { %298 = vst.msk [vmem:[#allocation2 + $0xc8] sm:$0xff] %vm259_vm0, %v258_v36 }
  0x1b   : > { %v926_v21 = vld [vmem:[#allocation2 + $0xdf] sm:$0xff] }
  0x1c   : > { %v1032_v28 = vld [vmem:[#allocation2 + $0xe0] sm:$0xff] }
  0x1d   : > { %v314_v38 = vld [vmem:[#allocation2 + $0x20] sm:$0xff]  ;;  %v707_v39 = vld [vmem:[#allocation2 + $0x38] sm:$0xff] }
  0x1e   : > { %v1834_v40 = vld [vmem:[#allocation2 + $0x21] sm:$0xff]  ;;  %v321_v41 = vpack.c.bf16 %v314_v38, %v313_v37  ;;  %v714_v42 = vpack.c.bf16 %v707_v39, %v314_v38  ;;  %v316_v43 = vld [vmem:[#allocation2 + $0x50] sm:$0xff]  ;;  %v813_v45 = vld [vmem:[#allocation2 + $0x39] sm:$0xff] }
  0x1f   : > { %v709_v44 = vld [vmem:[#allocation2 + $0x68] sm:$0xff]  ;;  %v1836_v46 = vpack.c.bf16 %v316_v43, %v707_v39  ;;  %v1838_v48 = vld [vmem:[#allocation2 + $0x80] sm:$0xff]  ;;  %v820_v49 = vpack.c.bf16 %v813_v45, %v1834_v40  ;;  %v814_v58 = vld [vmem:[#allocation2 + $0x51] sm:$0xff]  ;;  %v502_v17 = vpack.c.bf16 %v1834_v40, %v494_v15 }
  0x20   : > { %v715_v47 = vpack.c.bf16 %v709_v44, %v316_v43  ;;  %1547 = vmatprep.mubr.msk.bf16.mxu1 %vm259_vm0, %v321_v41  ;;  %1587 = vmatprep.mubr.msk.bf16.mxu0 %vm259_vm0, %v714_v42  ;;  %v1844_v50 = vpack.c.bf16 %v1838_v48, %v709_v44  ;;  %v1857_v53 = vld [vmem:[#allocation2 + $0x98] sm:$0xff]  ;;  %v1859_v54 = vld [vmem:[#allocation2 + $0xb0] sm:$0xff]  ;;  %v816_v61 = vld [vmem:[#allocation2 + $0x81] sm:$0xff]  ;;  %v503_v19 = vpack.c.bf16 %v814_v58, %v813_v45 }
  0x21   : > { %1548 = vmatmul.mubr.msk.bf16.vlgmr.msra.gmra.mrb[0].mxu1 %vm259_vm0, %v1836_v46  ;;  %v300_v56 = vld [vmem:[#allocation2 + $0x1f] sm:$0xff]  ;;  %v324_v57 = vpack.c.bf16 %v1859_v54, %v1857_v53  ;;  %v815_v59 = vld [vmem:[#allocation2 + $0x69] sm:$0xff]  ;;  %v301_v0 = vld [vmem:[#allocation2 + $0x37] sm:$0xff]  ;;  %v716_v32 = vpack.c.bf16 %v1857_v53, %v1838_v48 }
  0x22   : > { %1588 = vmatmul.mubr.msk.bf16.vlgmr.msra.gmra.mrb[0].mxu0 %vm259_vm0, %v715_v47  ;;  %1556 = vmatpush3.bf16.msra.mxu1 %v1805_v3  ;;  %v307_v60 = vpack.c.bf16 %v300_v56, %v299_v55  ;;  %v817_v62 = vld [vmem:[#allocation2 + $0x99] sm:$0xff]  ;;  %v821_v63 = vpack.c.bf16 %v815_v59, %v814_v58  ;;  %v302_v2 = vld [vmem:[#allocation2 + $0x4f] sm:$0xff]  ;;  %v925_v20 = vld [vmem:[#allocation2 + $0xc7] sm:$0xff]  ;;  %v504_v22 = vpack.c.bf16 %v816_v61, %v815_v59 }
  0x23   : > { %1596 = vmatpush3.bf16.msra.mxu0 %v1814_v4  ;;  %1551 = vmatprep.mubr.msk.bf16.mxu1 %vm259_vm0, %v1844_v50  ;;  %v822_v3 = vpack.c.bf16 %v817_v62, %v816_v61  ;;  %v303_v4 = vld [vmem:[#allocation2 + $0x67] sm:$0xff]  ;;  %v304_v5 = vld [vmem:[#allocation2 + $0x7f] sm:$0xff]  ;;  %v308_v7 = vpack.c.bf16 %v302_v2, %v301_v0  ;;  %v818_v8 = vld [vmem:[#allocation2 + $0xb1] sm:$0xff]  ;;  %v930_v23 = vpack.c.bf16 %v926_v21, %v925_v20 }
  0x24   : > { %1597 = vmatprep.mubr.msk.bf16.mxu0 %vm259_vm0, %v820_v49  ;;  %1605 = vmatprep.subr.bf16.mxu0 %v1714_v51  ;;  %v819_v9 = vld [vmem:[#allocation2 + $0xc9] sm:$0xff]  ;;  %v309_v10 = vpack.c.bf16 %v304_v5, %v303_v4  ;;  %v305_v13 = vld [vmem:[#allocation2 + $0x97] sm:$0xff]  ;;  %v505_v24 = vpack.c.bf16 %v818_v8, %v817_v62  ;;  %v608_v25 = vpack.c.bf16 %v301_v0, %v300_v56  ;;  %v1138_v33 = vld [vmem:[#allocation2 + $0xe1] sm:$0xff] }
  0x25   : > { %1565 = vmatprep.subr.bf16.mxu1 %v1715_v52  ;;  %v823_v12 = vpack.c.bf16 %v819_v9, %v818_v8  ;;  %v306_v14 = vld [vmem:[#allocation2 + $0xaf] sm:$0xff]  ;;  %v609_v26 = vpack.c.bf16 %v303_v4, %v302_v2  ;;  %v610_v29 = vpack.c.bf16 %v305_v13, %v304_v5  ;;  %v1142_v34 = vpack.c.bf16 %v1138_v33, %v819_v9  ;;  %v1440_v40 = vld [vmem:[%s1944_s3] ss:$0 sm:$0xff] }
  0x26   : > { %v310_v16 = vpack.c.bf16 %v306_v14, %v305_v13  ;;  %v1031_v27 = vld [vmem:[#allocation2 + $0xc8] sm:$0xff]  ;;  %v611_v31 = vpack.c.bf16 %v925_v20, %v306_v14 }
  0x27   : > { %v1036_v30 = vpack.c.bf16 %v1032_v28, %v1031_v27 }
  0x29   : > { %1552 = vmatmul.mubr.msk.bf16.gmra.mrb[4].mxu1 %vm259_vm0, %v324_v57 }
  0x2a   : > { %1557 = vmatprep.mubr.msk.bf16.mxu1 %vm259_vm0, %v307_v60 }
  0x2e   : > { %1598 = vmatmul.mubr.msk.bf16.vlgmr.msra.gmra.mrb[0].mxu0 %vm259_vm0, %v821_v63 }
  0x2f   : > { %1606 = vmatpush3.bf16.msra.mxu0 %v1714_v51  ;;  %1601 = vmatprep.mubr.msk.bf16.mxu0 %vm259_vm0, %v822_v3 }
  0x30   : > { %1615 = vmatprep.subr.bf16.mxu0 %v1716_v6 }
  0x31   : > { %1558 = vmatmul.mubr.msk.bf16.vlgmr.msra.gmra.mrb[0].mxu1 %vm259_vm0, %v308_v7 }
  0x32   : > { %1566 = vmatpush3.bf16.msra.mxu1 %v1715_v52  ;;  %1561 = vmatprep.mubr.msk.bf16.mxu1 %vm259_vm0, %v309_v10 }
  0x33   : > { %1575 = vmatprep.subr.bf16.mxu1 %v1717_v11 }
  0x36   : > { %1602 = vmatmul.mubr.msk.bf16.gmra.mrb[4].mxu0 %vm259_vm0, %v823_v12 }
  0x37   : > { %1607 = vmatprep.mubr.msk.bf16.mxu0 %vm259_vm0, %v308_v7 }
  0x39   : > { %1562 = vmatmul.mubr.msk.bf16.gmra.mrb[4].mxu1 %vm259_vm0, %v310_v16 }
  0x3a   : > { %1567 = vmatprep.mubr.msk.bf16.mxu1 %vm259_vm0, %v502_v17 }
  0x3e   : > { %1608 = vmatmul.mubr.msk.bf16.vlgmr.msra.gmra.mrb[0].mxu0 %vm259_vm0, %v309_v10 }
  0x3f   : > { %1616 = vmatpush3.bf16.msra.mxu0 %v1716_v6  ;;  %1611 = vmatprep.mubr.msk.bf16.mxu0 %vm259_vm0, %v310_v16 }
  0x40   : > { %1625 = vmatprep.subr.bf16.mxu0 %v1718_v18 }
  0x41   : > { %1568 = vmatmul.mubr.msk.bf16.vlgmr.msra.gmra.mrb[0].mxu1 %vm259_vm0, %v503_v19 }
  0x42   : > { %1576 = vmatpush3.bf16.msra.mxu1 %v1717_v11  ;;  %1571 = vmatprep.mubr.msk.bf16.mxu1 %vm259_vm0, %v504_v22 }
  0x43   : > { %1635 = vmatprep.subr.bf16.mxu1 %v1767_v1 }
  0x46   : > { %1612 = vmatmul.mubr.msk.bf16.gmra.mrb[4].mxu0 %vm259_vm0, %v930_v23 }
  0x47   : > { %1617 = vmatprep.mubr.msk.bf16.mxu0 %vm259_vm0, %v1836_v46 }
  0x49   : > { %1572 = vmatmul.mubr.msk.bf16.gmra.mrb[4].mxu1 %vm259_vm0, %v505_v24 }
  0x4a   : > { %1577 = vmatprep.mubr.msk.bf16.mxu1 %vm259_vm0, %v608_v25 }
  0x4e   : > { %1618 = vmatmul.mubr.msk.bf16.vlgmr.msra.gmra.mrb[0].mxu0 %vm259_vm0, %v1844_v50 }
  0x4f   : > { %1626 = vmatpush3.bf16.msra.mxu0 %v1718_v18  ;;  %1621 = vmatprep.mubr.msk.bf16.mxu0 %vm259_vm0, %v324_v57 }
  0x51   : > { %1578 = vmatmul.mubr.msk.bf16.vlgmr.msra.gmra.mrb[0].mxu1 %vm259_vm0, %v609_v26 }
  0x52   : > { %1636 = vmatpush3.bf16.msra.mxu1 %v1767_v1  ;;  %1581 = vmatprep.mubr.msk.bf16.mxu1 %vm259_vm0, %v610_v29  ;;  %v717_v1 = vpack.c.bf16 %v1031_v27, %v1859_v54 }
  0x56   : > { %1622 = vmatmul.mubr.msk.bf16.gmra.mrb[4].mxu0 %vm259_vm0, %v1036_v30 }
  0x57   : > { %1627 = vmatprep.mubr.msk.bf16.mxu0 %vm259_vm0, %v503_v19 }
  0x59   : > { %1582 = vmatmul.mubr.msk.bf16.gmra.mrb[4].mxu1 %vm259_vm0, %v611_v31 }
  0x5a   : > { %1591 = vmatprep.mubr.msk.bf16.mxu1 %vm259_vm0, %v716_v32 }
  0x5e   : > { %1628 = vmatmul.mubr.msk.bf16.vlgmr.msra.gmra.mrb[0].mxu0 %vm259_vm0, %v504_v22 }
  0x5f   : > { %1631 = vmatprep.mubr.msk.bf16.mxu0 %vm259_vm0, %v505_v24 }
  0x65   : > { %1592 = vmatmul.mubr.msk.bf16.vlgmr.msra.gmra.mrb[4].mxu1 %vm259_vm0, %v717_v1 }
  0x66   : > { %1632 = vmatmul.mubr.msk.bf16.gmra.mrb[4].mxu0 %vm259_vm0, %v1142_v34 }
 0x124   : > { %v1579_v35 = vpop.f32.mrb[0].mxu1 }
 0x125   : > { %v667_v36 = vpop.f32.mrb[1].mxu1 }
 0x126   : > { %v1580_v37 = vpop.f32.mrb[2].mxu1 }
 0x127   : > { %v670_v38 = vpop.f32.mrb[3].mxu1 }
 0x131   : > { %v1629_v39 = vpop.f32.mrb[0].mxu0 }
 0x132   : > { %v1637_v41 = vadd.f32 %v1629_v39, %v1579_v35  ;;  %v1198_v42 = vpop.f32.mrb[1].mxu0 }
 0x133   : > { %v1638_v43 = vadd.f32 %v1198_v42, %v667_v36  ;;  %v1630_v44 = vpop.f32.mrb[2].mxu0 }
 0x134   : > { %v1246_v45 = vadd.f32 %v1637_v41, %v1440_v40  ;;  %v1639_v46 = vadd.f32 %v1630_v44, %v1580_v37  ;;  %v1201_v47 = vpop.f32.mrb[3].mxu0 }
 0x135   : > { %v1244_v48 = vadd.f32 %v1638_v43, %v1440_v40  ;;  %v1640_v49 = vadd.f32 %v1201_v47, %v670_v38 }
 0x136   : > { %v1254_v50 = vmax.f32 %v1246_v45, 0.0  ;;  %v1247_v51 = vadd.f32 %v1639_v46, %v1440_v40 }
 0x137   : > { %v1252_v52 = vmax.f32 %v1244_v48, 0.0  ;;  %v1245_v53 = vadd.f32 %v1640_v49, %v1440_v40 }
 0x138   : > { %v1456_v54 = vpack.c.bf16 %v1254_v50, %v1254_v50  ;;  %v1255_v55 = vmax.f32 %v1247_v51, 0.0  ;;  %v1593_v58 = vpop.f32.mrb[4].mxu1 }
 0x139   : > { %v1454_v56 = vpack.c.bf16 %v1252_v52, %v1252_v52  ;;  %v1253_v57 = vmax.f32 %v1245_v53, 0.0  ;;  %v1633_v59 = vpop.f32.mrb[4].mxu0  ;;  %v789_v62 = vpop.f32.mrb[5].mxu1 }
 0x13a   : > { %1295 = vst.msk [vmem:[%s1920_s21 + $0x8] sm:$0xf] %vm1292_vm1, %v1456_v54  ;;  %v1457_v60 = vpack.c.bf16 %v1255_v55, %v1255_v55  ;;  %v1641_v61 = vadd.f32 %v1633_v59, %v1593_v58  ;;  %v1214_v63 = vpop.f32.mrb[5].mxu0  ;;  %v1594_v3 = vpop.f32.mrb[6].mxu1 }
 0x13b   : > { %1293 = vst.msk [vmem:[%s1920_s21] sm:$0xf] %vm1292_vm1, %v1454_v56  ;;  %v1455_v0 = vpack.c.bf16 %v1253_v57, %v1253_v57  ;;  %v1642_v2 = vadd.f32 %v1214_v63, %v789_v62  ;;  %v1634_v4 = vpop.f32.mrb[6].mxu0  ;;  %v792_v7 = vpop.f32.mrb[7].mxu1 }
 0x13c   : > { %1296 = vst.msk [vmem:[%s1920_s21 + $0xc] sm:$0xf] %vm1292_vm1, %v1457_v60  ;;  %v1250_v5 = vadd.f32 %v1641_v61, %v1440_v40  ;;  %v1643_v6 = vadd.f32 %v1634_v4, %v1594_v3  ;;  %v1217_v8 = vpop.f32.mrb[7].mxu0 }
 0x13d   : > { %1294 = vst.msk [vmem:[%s1920_s21 + $0x4] sm:$0xf] %vm1292_vm1, %v1455_v0  ;;  %v1248_v9 = vadd.f32 %v1642_v2, %v1440_v40  ;;  %v1644_v10 = vadd.f32 %v1217_v8, %v792_v7 }
 0x13e   : > { %v1258_v11 = vmax.f32 %v1250_v5, 0.0  ;;  %v1251_v12 = vadd.f32 %v1643_v6, %v1440_v40 }
 0x13f   : > { %v1256_v13 = vmax.f32 %v1248_v9, 0.0  ;;  %v1249_v14 = vadd.f32 %v1644_v10, %v1440_v40 }
 0x140   : > { %v1460_v15 = vpack.c.bf16 %v1258_v11, %v1258_v11  ;;  %v1259_v16 = vmax.f32 %v1251_v12, 0.0 }
 0x141   : > { %v1458_v17 = vpack.c.bf16 %v1256_v13, %v1256_v13  ;;  %v1257_v18 = vmax.f32 %v1249_v14, 0.0 }
 0x142   : > { %1299 = vst.msk [vmem:[%s1920_s21 + $0x18] sm:$0xf] %vm1292_vm1, %v1460_v15  ;;  %v1461_v19 = vpack.c.bf16 %v1259_v16, %v1259_v16 }
 0x143   : > { %1297 = vst.msk [vmem:[%s1920_s21 + $0x10] sm:$0xf] %vm1292_vm1, %v1458_v17  ;;  %v1459_v20 = vpack.c.bf16 %v1257_v18, %v1257_v18 }
 0x144   : > { %1300 = vst.msk [vmem:[%s1920_s21 + $0x1c] sm:$0xf] %vm1292_vm1, %v1461_v19 }
 0x145   : > { %1298 = vst.msk [vmem:[%s1920_s21 + $0x14] sm:$0xf] %vm1292_vm1, %v1459_v20 }
 0x146 PF: > { %s14_s15 = sadd.s32 1, %s1725_s15  }
 0x147   : > { %p11_p4 = scmp.ge.s32.totalorder %s14_s15, 4  }
 0x149   :  { %13 = sbr.rel (!%p11_p4) target bundleno = 1 (0x1), region = 79 }

// kernel: attrunet_fwd.38
= control target key start
LH: loop header
LB: loop body
LE: loop exit
PB: predicated region body
PF: predicated region fallthrough
CT: control target
= control target key end

     0   :  { %s488_s12 = smov 0   ;;  %s519_s0 = inlined_call_operand.vmem [shape: bf16[128,16], index: 0, kind: input, shape index: {}]   ;;  %s520_s1 = inlined_call_operand.vmem [shape: bf16[16,32], index: 1, kind: input, shape index: {}]   ;;  %s521_s2 = inlined_call_operand.vmem [shape: f32[1,32], index: 2, kind: input, shape index: {}]   ;;  %s522_s3 = inlined_call_operand.vmem [shape: bf16[128,32], index: 3, kind: output, shape index: {}]  }
   0x1 LB: > { %s393_s13 = sadd.s32 4294967295, %s466_s12   ;;  %p397_p0 = scmp.ge.s32.totalorder %s466_s12, 1  ;;  %s466_s12 = sphi %s488_s12, %s13_s12  }
   0x2   : > { %p138_p1 = scmp.lt.s32.totalorder %s466_s12, 3 }
   0x4   : > { %p139_p2 = pnand %p397_p0, %p138_p1 }
   0x5   : > { %v455_v0 = vld [vmem:[%s520_s1] sm:$0xff] (!%p139_p2)   ;;  %s398_s16 = sshll.u32 (!%p139_p2), %s393_s13, 3  ;;  %vm218_vm0 = vcmask (!%p139_p2), 130048   ;;  %vm328_vm1 = vcmask (!%p139_p2), 257024  }
   0x6   : > { %142 = sbr.rel (%p139_p2) target bundleno = 238 (0xee), region = 32  ;;  %p163_p3 = scmp.lt.s32.totalorder (!%p139_p2), %s398_s16, 15  ;;  %435 = vmatprep.subr.bf16.mxu0 (!%p139_p2), %v455_v0  ;;  %445 = vmatprep.subr.bf16.mxu1 (!%p139_p2), %v455_v0  ;;  %v402_v5 = vld [vmem:[%s521_s2] ss:$0 sm:$0xff] (!%p139_p2) }
   0x7   : > { %436 = vmatpush3.bf16.msra.mxu0 (!%p139_p2), %v455_v0  ;;  %446 = vmatpush3.bf16.msra.mxu1 (!%p139_p2), %v455_v0 }
   0xd   : > { %s524_s16 = smov (!%p163_p3, %s398_s16), 15 }
   0xe   : > { %s399_s17 = sshll.u32 %s524_s16, 2 }
   0xf   : > { %s166_s20 = scalar_lea.vmem %s519_s0, %s399_s17  ;;  %s172_s25 = scalar_lea.vmem %s522_s3, %s399_s17 }
  0x10   : > { %v456_v1 = vld [vmem:[%s166_s20] sm:$0xff]   ;;  %v457_v2 = vld [vmem:[%s166_s20 + $0x10] sm:$0xff]   ;;  %v458_v3 = vld [vmem:[%s166_s20 + $0x8] sm:$0xff]  }
  0x11   : > { %437 = vmatprep.mubr.msk.bf16.mxu0 %vm218_vm0, %v456_v1  ;;  %441 = vmatprep.mubr.msk.bf16.mxu1 %vm218_vm0, %v457_v2  ;;  %v459_v4 = vld [vmem:[%s166_s20 + $0x18] sm:$0xff]  }
  0x12   : > { %438 = vmatmul.mubr.msk.bf16.vlgmr.msra.gmra.mrb[0].mxu0 %vm218_vm0, %v458_v3  ;;  %442 = vmatmul.mubr.msk.bf16.vlgmr.msra.gmra.mrb[0].mxu1 %vm218_vm0, %v459_v4 }
  0xe5   : > { %v439_v6 = vpop.f32.mrb[0].mxu0  ;;  %v443_v8 = vpop.f32.mrb[0].mxu1 }
  0xe6   : > { %v274_v7 = vadd.f32 %v439_v6, %v402_v5  ;;  %v265_v9 = vpop.f32.mrb[1].mxu0  ;;  %v290_v10 = vadd.f32 %v443_v8, %v402_v5  ;;  %v281_v12 = vpop.f32.mrb[1].mxu1 }
  0xe7   : > { %v266_v11 = vadd.f32 %v402_v5, %v265_v9  ;;  %v440_v13 = vpop.f32.mrb[2].mxu0  ;;  %v282_v15 = vadd.f32 %v402_v5, %v281_v12  ;;  %v444_v17 = vpop.f32.mrb[2].mxu1 }
  0xe8   : > { %v424_v14 = vpack.c.bf16 %v274_v7, %v274_v7  ;;  %v277_v16 = vadd.f32 %v440_v13, %v402_v5  ;;  %v268_v18 = vpop.f32.mrb[3].mxu0  ;;  %v428_v19 = vpack.c.bf16 %v290_v10, %v290_v10  ;;  %v293_v21 = vadd.f32 %v444_v17, %v402_v5  ;;  %v284_v23 = vpop.f32.mrb[3].mxu1 }
  0xe9   : > { %v422_v20 = vpack.c.bf16 %v266_v11, %v266_v11  ;;  %v269_v22 = vadd.f32 %v402_v5, %v268_v18  ;;  %v426_v24 = vpack.c.bf16 %v282_v15, %v282_v15  ;;  %v285_v26 = vadd.f32 %v402_v5, %v284_v23 }
  0xea   : > { %331 = vst.msk [vmem:[%s172_s25 + $0x8] sm:$0xf] %vm328_vm1, %v424_v14  ;;  %v425_v25 = vpack.c.bf16 %v277_v16, %v277_v16  ;;  %335 = vst.msk [vmem:[%s172_s25 + $0x18] sm:$0xf] %vm328_vm1, %v428_v19  ;;  %v429_v27 = vpack.c.bf16 %v293_v21, %v293_v21 }
  0xeb   : > { %329 = vst.msk [vmem:[%s172_s25] sm:$0xf] %vm328_vm1, %v422_v20  ;;  %v423_v28 = vpack.c.bf16 %v269_v22, %v269_v22  ;;  %333 = vst.msk [vmem:[%s172_s25 + $0x10] sm:$0xf] %vm328_vm1, %v426_v24  ;;  %v427_v29 = vpack.c.bf16 %v285_v26, %v285_v26 }
  0xec   : > { %332 = vst.msk [vmem:[%s172_s25 + $0xc] sm:$0xf] %vm328_vm1, %v425_v25  ;;  %336 = vst.msk [vmem:[%s172_s25 + $0x1c] sm:$0xf] %vm328_vm1, %v429_v27 }
  0xed   : > { %330 = vst.msk [vmem:[%s172_s25 + $0x4] sm:$0xf] %vm328_vm1, %v423_v28  ;;  %334 = vst.msk [vmem:[%s172_s25 + $0x14] sm:$0xf] %vm328_vm1, %v427_v29 }
  0xee PF: > { %s13_s12 = sadd.s32 1, %s466_s12  }
  0xef   : > { %p10_p4 = scmp.ge.s32.totalorder %s13_s12, 4  }
  0xf1   :  { %12 = sbr.rel (!%p10_p4) target bundleno = 1 (0x1), region = 62 }

// kernel: attrunet_fwd.37
= control target key start
LH: loop header
LB: loop body
LE: loop exit
PB: predicated region body
PF: predicated region fallthrough
CT: control target
= control target key end

     0   :  { %s1863_s18 = smov 0   ;;  %s2061_s0 = inlined_call_operand.vmem [shape: bf16[2,8,8,16], index: 0, kind: input, shape index: {}]   ;;  %s2062_s1 = inlined_call_operand.vmem [shape: bf16[2,8,8,16], index: 1, kind: input, shape index: {}]   ;;  %s2063_s2 = inlined_call_operand.vmem [shape: bf16[9,16,16], index: 2, kind: input, shape index: {}]   ;;  %s2064_s3 = inlined_call_operand.vmem [shape: f32[1,16], index: 3, kind: input, shape index: {}]   ;;  %s2065_s4 = inlined_call_operand.vmem [shape: bf16[2,8,8,16], index: 4, kind: input, shape index: {}]   ;;  %s2066_s5 = inlined_call_operand.vmem [shape: bf16[2,64,16], index: 5, kind: output, shape index: {}]  }
   0x1 LB: > { %s1451_s19 = sadd.s32 4294967295, %s1830_s18   ;;  %p1455_p0 = scmp.ge.s32.totalorder %s1830_s18, 1  ;;  %s1830_s18 = sphi %s1863_s18, %s15_s18  }
   0x2   : > { %p207_p1 = scmp.lt.s32.totalorder %s1830_s18, 3 }
   0x4   : > { %p208_p2 = pnand %p1455_p0, %p207_p1 }
   0x5   : > { %v1815_v0 = vld [vmem:[%s2063_s2 + $0x8] sm:$0xff] (!%p208_p2)   ;;  %p245_p3 = scmp.lt.s32.totalorder (!%p208_p2), %s1451_s19, 1  ;;  %v1877_v1 = vld [vmem:[%s2063_s2 + $0x20] sm:$0xff] (!%p208_p2)   ;;  %vm306_vm0 = vcmask (!%p208_p2), 130048   ;;  %v1832_v2 = vmov (!%p208_p2), 0.0   ;;  %v1819_v51 = vld [vmem:[%s2063_s2 + $0x30] sm:$0xff] (!%p208_p2)  }
   0x6   : > { %211 = sbr.rel (%p208_p2) target bundleno = 328 (0x148), region = 40  ;;  %1650 = vmatprep.subr.bf16.mxu1 (!%p208_p2), %v1815_v0  ;;  %1690 = vmatprep.subr.bf16.mxu0 (!%p208_p2), %v1877_v1  ;;  %308 = vst.msk [vmem:[#allocation2 + $0x8] sm:$0xff] (!%p208_p2), %vm306_vm0, %v1832_v2  ;;  %311 = vst.msk [vmem:[#allocation2 + $0x20] sm:$0xff] (!%p208_p2), %vm306_vm0, %v1832_v2  ;;  %v1915_v3 = vld [vmem:[%s2063_s2] sm:$0xff] (!%p208_p2)   ;;  %v1924_v4 = vld [vmem:[%s2063_s2 + $0x28] sm:$0xff] (!%p208_p2)   ;;  %vm1363_vm1 = vcmask (!%p208_p2), 125952  }
   0x7   : > { %1651 = vmatpush3.bf16.msra.mxu1 (!%p208_p2), %v1815_v0  ;;  %307 = vst.msk [vmem:[#allocation2] sm:$0xff] (!%p208_p2), %vm306_vm0, %v1832_v2  ;;  %309 = vst.msk [vmem:[#allocation2 + $0x10] sm:$0xff] (!%p208_p2), %vm306_vm0, %v1832_v2  ;;  %1691 = vmatpush3.bf16.msra.mxu0 (!%p208_p2), %v1877_v1  ;;  %v1820_v52 = vld [vmem:[%s2063_s2 + $0x10] sm:$0xff] (!%p208_p2)  }
   0x8   : > { %310 = vst.msk [vmem:[#allocation2 + $0x18] sm:$0xff] (!%p208_p2), %vm306_vm0, %v1832_v2  ;;  %312 = vst.msk [vmem:[#allocation2 + $0x28] sm:$0xff] (!%p208_p2), %vm306_vm0, %v1832_v2  ;;  %1660 = vmatprep.subr.bf16.mxu1 (!%p208_p2), %v1915_v3  ;;  %1700 = vmatprep.subr.bf16.mxu0 (!%p208_p2), %v1924_v4 }
   0x9   : > { %313 = vst.msk [vmem:[#allocation2 + $0x30] sm:$0xff] (!%p208_p2), %vm306_vm0, %v1832_v2  ;;  %314 = vst.msk [vmem:[#allocation2 + $0x38] sm:$0xff] (!%p208_p2), %vm306_vm0, %v1832_v2 }
   0xa   : > { %315 = vst.msk [vmem:[#allocation2 + $0x40] sm:$0xff] (!%p208_p2), %vm306_vm0, %v1832_v2  ;;  %316 = vst.msk [vmem:[#allocation2 + $0x48] sm:$0xff] (!%p208_p2), %vm306_vm0, %v1832_v2 }
   0xb   : > { %317 = vst.msk [vmem:[#allocation2 + $0x50] sm:$0xff] (!%p208_p2), %vm306_vm0, %v1832_v2  ;;  %318 = vst.msk [vmem:[#allocation2 + $0x58] sm:$0xff] (!%p208_p2), %vm306_vm0, %v1832_v2 }
   0xc   : > { %319 = vst.msk [vmem:[#allocation2 + $0x60] sm:$0xff] (!%p208_p2), %vm306_vm0, %v1832_v2  ;;  %320 = vst.msk [vmem:[#allocation2 + $0x68] sm:$0xff] (!%p208_p2), %vm306_vm0, %v1832_v2 }
   0xd   : > { %s2068_s19 = smov (!%p245_p3, %s1451_s19), 1  ;;  %321 = vst.msk [vmem:[#allocation2 + $0x70] sm:$0xff] %vm306_vm0, %v1832_v2  ;;  %322 = vst.msk [vmem:[#allocation2 + $0x78] sm:$0xff] %vm306_vm0, %v1832_v2  ;;  %v360_v37 = vld [vmem:[#allocation2 + $0x8] sm:$0xff] }
   0xe   : > { %323 = vst.msk [vmem:[#allocation2 + $0x80] sm:$0xff] %vm306_vm0, %v1832_v2  ;;  %324 = vst.msk [vmem:[#allocation2 + $0x88] sm:$0xff] %vm306_vm0, %v1832_v2  ;;  %s1919_s26 = sshll.u32 %s2068_s19, 5  ;;  %v346_v55 = vld [vmem:[#allocation2 + $0x7] sm:$0xff] }
   0xf   : > { %325 = vst.msk [vmem:[#allocation2 + $0x90] sm:$0xff] %vm306_vm0, %v1832_v2  ;;  %326 = vst.msk [vmem:[#allocation2 + $0x98] sm:$0xff] %vm306_vm0, %v1832_v2  ;;  %s249_s6 = scalar_lea.vmem %s2061_s0, %s1919_s26  ;;  %s254_s9 = scalar_lea.vmem %s2062_s1, %s1919_s26 }
  0x10   : > { %327 = vst.msk [vmem:[#allocation2 + $0xa0] sm:$0xff] %vm306_vm0, %v1832_v2  ;;  %328 = vst.msk [vmem:[#allocation2 + $0xa8] sm:$0xff] %vm306_vm0, %v1832_v2  ;;  %v1549_v5 = vld [vmem:[%s249_s6] sm:$0xff]   ;;  %v1596_v7 = vld [vmem:[%s249_s6 + $0x8] sm:$0xff]   ;;  %s2027_s23 = scalar_lea.vmem %s2065_s4, %s1919_s26  ;;  %s2038_s29 = scalar_lea.vmem %s2066_s5, %s1919_s26 }
  0x11   : > { %329 = vst.msk [vmem:[#allocation2 + $0xb0] sm:$0xff] %vm306_vm0, %v1832_v2  ;;  %330 = vst.msk [vmem:[#allocation2 + $0xb8] sm:$0xff] %vm306_vm0, %v1832_v2  ;;  %v1565_v6 = vld [vmem:[%s254_s9] sm:$0xff]   ;;  %v1550_v8 = vunpack.c.l.bf16 %v1549_v5  ;;  %v1551_v10 = vunpack.c.h.bf16 %v1549_v5  ;;  %v1599_v12 = vld [vmem:[%s254_s9 + $0x8] sm:$0xff]   ;;  %v1554_v15 = vunpack.c.l.bf16 %v1596_v7  ;;  %v1555_v17 = vunpack.c.h.bf16 %v1596_v7 }
  0x12   : > { %331 = vst.msk [vmem:[#allocation2 + $0xc0] sm:$0xff] %vm306_vm0, %v1832_v2  ;;  %332 = vst.msk [vmem:[#allocation2 + $0xc8] sm:$0xff] %vm306_vm0, %v1832_v2  ;;  %v1566_v9 = vunpack.c.l.bf16 %v1565_v6  ;;  %v1567_v11 = vunpack.c.h.bf16 %v1565_v6  ;;  %v1597_v13 = vld [vmem:[%s249_s6 + $0x10] sm:$0xff]   ;;  %v1570_v16 = vunpack.c.l.bf16 %v1599_v12  ;;  %v1571_v18 = vunpack.c.h.bf16 %v1599_v12  ;;  %v1598_v19 = vld [vmem:[%s249_s6 + $0x18] sm:$0xff]  }
  0x13   : > { %333 = vst.msk [vmem:[#allocation2 + $0xd0] sm:$0xff] %vm306_vm0, %v1832_v2  ;;  %334 = vst.msk [vmem:[#allocation2 + $0xd8] sm:$0xff] %vm306_vm0, %v1832_v2  ;;  %v1600_v14 = vld [vmem:[%s254_s9 + $0x10] sm:$0xff]   ;;  %v1601_v20 = vld [vmem:[%s254_s9 + $0x18] sm:$0xff]   ;;  %v1558_v23 = vunpack.c.l.bf16 %v1597_v13  ;;  %v1559_v27 = vunpack.c.h.bf16 %v1597_v13  ;;  %v1562_v28 = vunpack.c.l.bf16 %v1598_v19  ;;  %v1563_v32 = vunpack.c.h.bf16 %v1598_v19 }
  0x14   : > { %335 = vst.msk [vmem:[#allocation2 + $0xe0] sm:$0xff] %vm306_vm0, %v1832_v2  ;;  %336 = vst.msk [vmem:[#allocation2 + $0xe8] sm:$0xff] %vm306_vm0, %v1832_v2  ;;  %v298_v21 = vadd.f32 %v1566_v9, %v1550_v8  ;;  %v299_v22 = vadd.f32 %v1567_v11, %v1551_v10  ;;  %v1574_v24 = vunpack.c.l.bf16 %v1600_v14  ;;  %v300_v25 = vadd.f32 %v1570_v16, %v1554_v15  ;;  %v1821_v6 = vld [vmem:[%s2063_s2 + $0x38] sm:$0xff]   ;;  %v541_v15 = vld [vmem:[#allocation2 + $0x9] sm:$0xff] }
  0x15   : > { %v301_v26 = vadd.f32 %v1571_v18, %v1555_v17  ;;  %v1575_v30 = vunpack.c.h.bf16 %v1600_v14  ;;  %v1578_v31 = vunpack.c.l.bf16 %v1601_v20  ;;  %v1579_v33 = vunpack.c.h.bf16 %v1601_v20  ;;  %v1822_v11 = vld [vmem:[%s2063_s2 + $0x18] sm:$0xff]   ;;  %v1823_v18 = vld [vmem:[%s2063_s2 + $0x40] sm:$0xff]  }
  0x16   : > { %338 = vst.msk [vmem:[#allocation2 + $0x20] sm:$0xff] %vm306_vm0, %v298_v21  ;;  %339 = vst.msk [vmem:[#allocation2 + $0x38] sm:$0xff] %vm306_vm0, %v299_v22  ;;  %v302_v29 = vadd.f32 %v1574_v24, %v1558_v23 }
  0x17   : > { %340 = vst.msk [vmem:[#allocation2 + $0x50] sm:$0xff] %vm306_vm0, %v300_v25  ;;  %341 = vst.msk [vmem:[#allocation2 + $0x68] sm:$0xff] %vm306_vm0, %v301_v26  ;;  %v303_v34 = vadd.f32 %v1575_v30, %v1559_v27  ;;  %v304_v35 = vadd.f32 %v1578_v31, %v1562_v28  ;;  %v305_v36 = vadd.f32 %v1579_v33, %v1563_v32 }
  0x18   : > { %342 = vst.msk [vmem:[#allocation2 + $0x80] sm:$0xff] %vm306_vm0, %v302_v29 }
  0x19   : > { %343 = vst.msk [vmem:[#allocation2 + $0x98] sm:$0xff] %vm306_vm0, %v303_v34  ;;  %344 = vst.msk [vmem:[#allocation2 + $0xb0] sm:$0xff] %vm306_vm0, %v304_v35 }
  0x1a   : > { %345 = vst.msk [vmem:[#allocation2 + $0xc8] sm:$0xff] %vm306_vm0, %v305_v36 }
  0x1b   : > { %v973_v21 = vld [vmem:[#allocation2 + $0xdf] sm:$0xff] }
  0x1c   : > { %v1079_v28 = vld [vmem:[#allocation2 + $0xe0] sm:$0xff] }
  0x1d   : > { %v361_v38 = vld [vmem:[#allocation2 + $0x20] sm:$0xff]  ;;  %v754_v39 = vld [vmem:[#allocation2 + $0x38] sm:$0xff] }
  0x1e   : > { %v1944_v40 = vld [vmem:[#allocation2 + $0x21] sm:$0xff]  ;;  %v368_v41 = vpack.c.bf16 %v361_v38, %v360_v37  ;;  %v761_v42 = vpack.c.bf16 %v754_v39, %v361_v38  ;;  %v363_v43 = vld [vmem:[#allocation2 + $0x50] sm:$0xff]  ;;  %v860_v45 = vld [vmem:[#allocation2 + $0x39] sm:$0xff] }
  0x1f   : > { %v756_v44 = vld [vmem:[#allocation2 + $0x68] sm:$0xff]  ;;  %v1946_v46 = vpack.c.bf16 %v363_v43, %v754_v39  ;;  %v1948_v48 = vld [vmem:[#allocation2 + $0x80] sm:$0xff]  ;;  %v867_v49 = vpack.c.bf16 %v860_v45, %v1944_v40  ;;  %v861_v58 = vld [vmem:[#allocation2 + $0x51] sm:$0xff]  ;;  %v549_v17 = vpack.c.bf16 %v1944_v40, %v541_v15 }
  0x20   : > { %v762_v47 = vpack.c.bf16 %v756_v44, %v363_v43  ;;  %1652 = vmatprep.mubr.msk.bf16.mxu1 %vm306_vm0, %v368_v41  ;;  %1692 = vmatprep.mubr.msk.bf16.mxu0 %vm306_vm0, %v761_v42  ;;  %v1954_v50 = vpack.c.bf16 %v1948_v48, %v756_v44  ;;  %v1967_v53 = vld [vmem:[#allocation2 + $0x98] sm:$0xff]  ;;  %v1969_v54 = vld [vmem:[#allocation2 + $0xb0] sm:$0xff]  ;;  %v863_v61 = vld [vmem:[#allocation2 + $0x81] sm:$0xff]  ;;  %v550_v19 = vpack.c.bf16 %v861_v58, %v860_v45 }
  0x21   : > { %1653 = vmatmul.mubr.msk.bf16.vlgmr.msra.gmra.mrb[0].mxu1 %vm306_vm0, %v1946_v46  ;;  %v347_v56 = vld [vmem:[#allocation2 + $0x1f] sm:$0xff]  ;;  %v371_v57 = vpack.c.bf16 %v1969_v54, %v1967_v53  ;;  %v862_v59 = vld [vmem:[#allocation2 + $0x69] sm:$0xff]  ;;  %v348_v0 = vld [vmem:[#allocation2 + $0x37] sm:$0xff]  ;;  %v763_v32 = vpack.c.bf16 %v1967_v53, %v1948_v48 }
  0x22   : > { %1693 = vmatmul.mubr.msk.bf16.vlgmr.msra.gmra.mrb[0].mxu0 %vm306_vm0, %v762_v47  ;;  %1661 = vmatpush3.bf16.msra.mxu1 %v1915_v3  ;;  %v354_v60 = vpack.c.bf16 %v347_v56, %v346_v55  ;;  %v864_v62 = vld [vmem:[#allocation2 + $0x99] sm:$0xff]  ;;  %v868_v63 = vpack.c.bf16 %v862_v59, %v861_v58  ;;  %v349_v2 = vld [vmem:[#allocation2 + $0x4f] sm:$0xff]  ;;  %v972_v20 = vld [vmem:[#allocation2 + $0xc7] sm:$0xff]  ;;  %v551_v22 = vpack.c.bf16 %v863_v61, %v862_v59 }
  0x23   : > { %1701 = vmatpush3.bf16.msra.mxu0 %v1924_v4  ;;  %1656 = vmatprep.mubr.msk.bf16.mxu1 %vm306_vm0, %v1954_v50  ;;  %v869_v3 = vpack.c.bf16 %v864_v62, %v863_v61  ;;  %v350_v4 = vld [vmem:[#allocation2 + $0x67] sm:$0xff]  ;;  %v351_v5 = vld [vmem:[#allocation2 + $0x7f] sm:$0xff]  ;;  %v355_v7 = vpack.c.bf16 %v349_v2, %v348_v0  ;;  %v865_v8 = vld [vmem:[#allocation2 + $0xb1] sm:$0xff]  ;;  %v977_v23 = vpack.c.bf16 %v973_v21, %v972_v20 }
  0x24   : > { %1702 = vmatprep.mubr.msk.bf16.mxu0 %vm306_vm0, %v867_v49  ;;  %1710 = vmatprep.subr.bf16.mxu0 %v1819_v51  ;;  %v866_v9 = vld [vmem:[#allocation2 + $0xc9] sm:$0xff]  ;;  %v356_v10 = vpack.c.bf16 %v351_v5, %v350_v4  ;;  %v352_v13 = vld [vmem:[#allocation2 + $0x97] sm:$0xff]  ;;  %v552_v24 = vpack.c.bf16 %v865_v8, %v864_v62  ;;  %v655_v25 = vpack.c.bf16 %v348_v0, %v347_v56  ;;  %v1525_v40 = vld [vmem:[%s2064_s3] ss:$0 sm:$0xff] }
  0x25   : > { %1670 = vmatprep.subr.bf16.mxu1 %v1820_v52  ;;  %v870_v12 = vpack.c.bf16 %v866_v9, %v865_v8  ;;  %v353_v14 = vld [vmem:[#allocation2 + $0xaf] sm:$0xff]  ;;  %v656_v26 = vpack.c.bf16 %v350_v4, %v349_v2  ;;  %v657_v29 = vpack.c.bf16 %v352_v13, %v351_v5  ;;  %v1581_v44 = vld [vmem:[%s2027_s23] sm:$0xff]  }
  0x26   : > { %v357_v16 = vpack.c.bf16 %v353_v14, %v352_v13  ;;  %v1078_v27 = vld [vmem:[#allocation2 + $0xc8] sm:$0xff]  ;;  %v658_v31 = vpack.c.bf16 %v972_v20, %v353_v14  ;;  %v1583_v59 = vunpack.c.h.bf16 %v1581_v44 }
  0x27   : > { %v1083_v30 = vpack.c.bf16 %v1079_v28, %v1078_v27  ;;  %v764_v33 = vpack.c.bf16 %v1078_v27, %v1969_v54  ;;  %v1602_v41 = vld [vmem:[%s2027_s23 + $0x8] sm:$0xff]  }
  0x28   : > { %v1586_v48 = vunpack.c.l.bf16 %v1602_v41  ;;  %v1587_v56 = vunpack.c.h.bf16 %v1602_v41 }
  0x29   : > { %1657 = vmatmul.mubr.msk.bf16.gmra.mrb[4].mxu1 %vm306_vm0, %v371_v57 }
  0x2a   : > { %1662 = vmatprep.mubr.msk.bf16.mxu1 %vm306_vm0, %v354_v60 }
  0x2e   : > { %1703 = vmatmul.mubr.msk.bf16.vlgmr.msra.gmra.mrb[0].mxu0 %vm306_vm0, %v868_v63 }
  0x2f   : > { %1711 = vmatpush3.bf16.msra.mxu0 %v1819_v51  ;;  %1706 = vmatprep.mubr.msk.bf16.mxu0 %vm306_vm0, %v869_v3  ;;  %v1604_v3 = vld [vmem:[%s2027_s23 + $0x18] sm:$0xff]  }
  0x30   : > { %1720 = vmatprep.subr.bf16.mxu0 %v1821_v6  ;;  %v1595_v27 = vunpack.c.h.bf16 %v1604_v3 }
  0x31   : > { %1663 = vmatmul.mubr.msk.bf16.vlgmr.msra.gmra.mrb[0].mxu1 %vm306_vm0, %v355_v7 }
  0x32   : > { %1671 = vmatpush3.bf16.msra.mxu1 %v1820_v52  ;;  %1666 = vmatprep.mubr.msk.bf16.mxu1 %vm306_vm0, %v356_v10  ;;  %v1582_v52 = vunpack.c.l.bf16 %v1581_v44 }
  0x33   : > { %1680 = vmatprep.subr.bf16.mxu1 %v1822_v11 }
  0x36   : > { %1707 = vmatmul.mubr.msk.bf16.gmra.mrb[4].mxu0 %vm306_vm0, %v870_v12 }
  0x37   : > { %1712 = vmatprep.mubr.msk.bf16.mxu0 %vm306_vm0, %v355_v7 }
  0x39   : > { %1667 = vmatmul.mubr.msk.bf16.gmra.mrb[4].mxu1 %vm306_vm0, %v357_v16 }
  0x3a   : > { %1672 = vmatprep.mubr.msk.bf16.mxu1 %vm306_vm0, %v549_v17  ;;  %v1594_v17 = vunpack.c.l.bf16 %v1604_v3 }
  0x3e   : > { %1713 = vmatmul.mubr.msk.bf16.vlgmr.msra.gmra.mrb[0].mxu0 %vm306_vm0, %v356_v10 }
  0x3f   : > { %1721 = vmatpush3.bf16.msra.mxu0 %v1821_v6  ;;  %1716 = vmatprep.mubr.msk.bf16.mxu0 %vm306_vm0, %v357_v16 }
  0x40   : > { %1730 = vmatprep.subr.bf16.mxu0 %v1823_v18 }
  0x41   : > { %1673 = vmatmul.mubr.msk.bf16.vlgmr.msra.gmra.mrb[0].mxu1 %vm306_vm0, %v550_v19 }
  0x42   : > { %1681 = vmatpush3.bf16.msra.mxu1 %v1822_v11  ;;  %1676 = vmatprep.mubr.msk.bf16.mxu1 %vm306_vm0, %v551_v22 }
  0x43   : > { %1740 = vmatprep.subr.bf16.mxu1 %v1877_v1 }
  0x46   : > { %1717 = vmatmul.mubr.msk.bf16.gmra.mrb[4].mxu0 %vm306_vm0, %v977_v23 }
  0x47   : > { %1722 = vmatprep.mubr.msk.bf16.mxu0 %vm306_vm0, %v1946_v46 }
  0x49   : > { %1677 = vmatmul.mubr.msk.bf16.gmra.mrb[4].mxu1 %vm306_vm0, %v552_v24 }
  0x4a   : > { %1682 = vmatprep.mubr.msk.bf16.mxu1 %vm306_vm0, %v655_v25 }
  0x4e   : > { %1723 = vmatmul.mubr.msk.bf16.vlgmr.msra.gmra.mrb[0].mxu0 %vm306_vm0, %v1954_v50 }
  0x4f   : > { %1731 = vmatpush3.bf16.msra.mxu0 %v1823_v18  ;;  %1726 = vmatprep.mubr.msk.bf16.mxu0 %vm306_vm0, %v371_v57 }
  0x51   : > { %1683 = vmatmul.mubr.msk.bf16.vlgmr.msra.gmra.mrb[0].mxu1 %vm306_vm0, %v656_v26 }
  0x52   : > { %1741 = vmatpush3.bf16.msra.mxu1 %v1877_v1  ;;  %1686 = vmatprep.mubr.msk.bf16.mxu1 %vm306_vm0, %v657_v29  ;;  %v1185_v1 = vld [vmem:[#allocation2 + $0xe1] sm:$0xff] }
  0x53   : > { %v1189_v34 = vpack.c.bf16 %v1185_v1, %v866_v9  ;;  %v1603_v9 = vld [vmem:[%s2027_s23 + $0x10] sm:$0xff]  }
  0x54   : > { %v1590_v23 = vunpack.c.l.bf16 %v1603_v9 }
  0x56   : > { %1727 = vmatmul.mubr.msk.bf16.gmra.mrb[4].mxu0 %vm306_vm0, %v1083_v30  ;;  %v1591_v30 = vunpack.c.h.bf16 %v1603_v9 }
  0x57   : > { %1732 = vmatprep.mubr.msk.bf16.mxu0 %vm306_vm0, %v550_v19 }
  0x59   : > { %1687 = vmatmul.mubr.msk.bf16.gmra.mrb[4].mxu1 %vm306_vm0, %v658_v31 }
  0x5a   : > { %1696 = vmatprep.mubr.msk.bf16.mxu1 %vm306_vm0, %v763_v32 }
  0x5e   : > { %1733 = vmatmul.mubr.msk.bf16.vlgmr.msra.gmra.mrb[0].mxu0 %vm306_vm0, %v551_v22 }
  0x5f   : > { %1736 = vmatprep.mubr.msk.bf16.mxu0 %vm306_vm0, %v552_v24 }
  0x65   : > { %1697 = vmatmul.mubr.msk.bf16.vlgmr.msra.gmra.mrb[4].mxu1 %vm306_vm0, %v764_v33 }
  0x66   : > { %1737 = vmatmul.mubr.msk.bf16.gmra.mrb[4].mxu0 %vm306_vm0, %v1189_v34 }
 0x124   : > { %v1684_v35 = vpop.f32.mrb[0].mxu1 }
 0x125   : > { %v714_v36 = vpop.f32.mrb[1].mxu1 }
 0x126   : > { %v1685_v37 = vpop.f32.mrb[2].mxu1 }
 0x127   : > { %v717_v38 = vpop.f32.mrb[3].mxu1 }
 0x131   : > { %v1734_v39 = vpop.f32.mrb[0].mxu0 }
 0x132   : > { %v1742_v42 = vadd.f32 %v1734_v39, %v1684_v35  ;;  %v1245_v43 = vpop.f32.mrb[1].mxu0 }
 0x133   : > { %v1743_v45 = vadd.f32 %v1245_v43, %v714_v36  ;;  %v1735_v46 = vpop.f32.mrb[2].mxu0 }
 0x134   : > { %v1293_v47 = vadd.f32 %v1742_v42, %v1525_v40  ;;  %v1744_v49 = vadd.f32 %v1735_v46, %v1685_v37  ;;  %v1248_v50 = vpop.f32.mrb[3].mxu0 }
 0x135   : > { %v1291_v51 = vadd.f32 %v1743_v45, %v1525_v40  ;;  %v1745_v53 = vadd.f32 %v1248_v50, %v717_v38 }
 0x136   : > { %v1301_v54 = vmax.f32 %v1293_v47, 0.0  ;;  %v1294_v55 = vadd.f32 %v1744_v49, %v1525_v40 }
 0x137   : > { %v1299_v57 = vmax.f32 %v1291_v51, 0.0  ;;  %v1292_v58 = vadd.f32 %v1745_v53, %v1525_v40 }
 0x138   : > { %v1325_v60 = vadd.f32 %v1586_v48, %v1301_v54  ;;  %v1302_v61 = vmax.f32 %v1294_v55, 0.0  ;;  %v1698_v0 = vpop.f32.mrb[4].mxu1 }
 0x139   : > { %v1323_v62 = vadd.f32 %v1582_v52, %v1299_v57  ;;  %v1300_v63 = vmax.f32 %v1292_v58, 0.0  ;;  %v1738_v2 = vpop.f32.mrb[4].mxu0  ;;  %v836_v7 = vpop.f32.mrb[5].mxu1 }
 0x13a   : > { %v1542_v4 = vpack.c.bf16 %v1325_v60, %v1325_v60  ;;  %v1326_v5 = vadd.f32 %v1587_v56, %v1302_v61  ;;  %v1746_v6 = vadd.f32 %v1738_v2, %v1698_v0  ;;  %v1261_v8 = vpop.f32.mrb[5].mxu0  ;;  %v1699_v13 = vpop.f32.mrb[6].mxu1 }
 0x13b   : > { %v1540_v10 = vpack.c.bf16 %v1323_v62, %v1323_v62  ;;  %v1324_v11 = vadd.f32 %v1583_v59, %v1300_v63  ;;  %v1747_v12 = vadd.f32 %v1261_v8, %v836_v7  ;;  %v1739_v14 = vpop.f32.mrb[6].mxu0  ;;  %v839_v19 = vpop.f32.mrb[7].mxu1 }
 0x13c   : > { %1366 = vst.msk [vmem:[%s2038_s29 + $0x8] sm:$0xf] %vm1363_vm1, %v1542_v4  ;;  %v1543_v15 = vpack.c.bf16 %v1326_v5, %v1326_v5  ;;  %v1297_v16 = vadd.f32 %v1746_v6, %v1525_v40  ;;  %v1748_v18 = vadd.f32 %v1739_v14, %v1699_v13  ;;  %v1264_v20 = vpop.f32.mrb[7].mxu0 }
 0x13d   : > { %1364 = vst.msk [vmem:[%s2038_s29] sm:$0xf] %vm1363_vm1, %v1540_v10  ;;  %v1541_v21 = vpack.c.bf16 %v1324_v11, %v1324_v11  ;;  %v1295_v22 = vadd.f32 %v1747_v12, %v1525_v40  ;;  %v1749_v24 = vadd.f32 %v1264_v20, %v839_v19 }
 0x13e   : > { %1367 = vst.msk [vmem:[%s2038_s29 + $0xc] sm:$0xf] %vm1363_vm1, %v1543_v15  ;;  %v1305_v25 = vmax.f32 %v1297_v16, 0.0  ;;  %v1298_v26 = vadd.f32 %v1748_v18, %v1525_v40 }
 0x13f   : > { %1365 = vst.msk [vmem:[%s2038_s29 + $0x4] sm:$0xf] %vm1363_vm1, %v1541_v21  ;;  %v1303_v28 = vmax.f32 %v1295_v22, 0.0  ;;  %v1296_v29 = vadd.f32 %v1749_v24, %v1525_v40 }
 0x140   : > { %v1329_v31 = vadd.f32 %v1594_v17, %v1305_v25  ;;  %v1306_v32 = vmax.f32 %v1298_v26, 0.0 }
 0x141   : > { %v1327_v1 = vadd.f32 %v1590_v23, %v1303_v28  ;;  %v1304_v33 = vmax.f32 %v1296_v29, 0.0 }
 0x142   : > { %v1546_v34 = vpack.c.bf16 %v1329_v31, %v1329_v31  ;;  %v1330_v35 = vadd.f32 %v1595_v27, %v1306_v32 }
 0x143   : > { %v1544_v36 = vpack.c.bf16 %v1327_v1, %v1327_v1  ;;  %v1328_v37 = vadd.f32 %v1591_v30, %v1304_v33 }
 0x144   : > { %1370 = vst.msk [vmem:[%s2038_s29 + $0x18] sm:$0xf] %vm1363_vm1, %v1546_v34  ;;  %v1547_v38 = vpack.c.bf16 %v1330_v35, %v1330_v35 }
 0x145   : > { %1368 = vst.msk [vmem:[%s2038_s29 + $0x10] sm:$0xf] %vm1363_vm1, %v1544_v36  ;;  %v1545_v39 = vpack.c.bf16 %v1328_v37, %v1328_v37 }
 0x146   : > { %1371 = vst.msk [vmem:[%s2038_s29 + $0x1c] sm:$0xf] %vm1363_vm1, %v1547_v38 }
 0x147   : > { %1369 = vst.msk [vmem:[%s2038_s29 + $0x14] sm:$0xf] %vm1363_vm1, %v1545_v39 }
 0x148 PF: > { %s15_s18 = sadd.s32 1, %s1830_s18  }
 0x149   : > { %p12_p4 = scmp.ge.s32.totalorder %s15_s18, 4  }
 0x14b   :  { %14 = sbr.rel (!%p12_p4) target bundleno = 1 (0x1), region = 86 }

// kernel: attrunet_fwd.40
= control target key start
LH: loop header
LB: loop body
LE: loop exit
PB: predicated region body
PF: predicated region fallthrough
CT: control target
= control target key end

     0   :  { %s944_s12 = smov 0   ;;  %s1108_s0 = inlined_call_operand.vmem [shape: bf16[512,16], index: 0, kind: input, shape index: {}]   ;;  %s1109_s1 = inlined_call_operand.vmem [shape: bf16[16,8], index: 1, kind: input, shape index: {}]   ;;  %s1110_s2 = inlined_call_operand.vmem [shape: f32[1,8], index: 2, kind: input, shape index: {}]   ;;  %s1111_s3 = inlined_call_operand.vmem [shape: bf16[512,8], index: 3, kind: output, shape index: {}]  }
   0x1 LB: > { %s729_s13 = sadd.s32 4294967295, %s922_s12   ;;  %p733_p0 = scmp.ge.s32.totalorder %s922_s12, 1  ;;  %s922_s12 = sphi %s944_s12, %s13_s12  }
   0x2   : > { %p138_p1 = scmp.lt.s32.totalorder %s922_s12, 3 }
   0x4   : > { %p139_p2 = pnand %p733_p0, %p138_p1 }
   0x5   : > { %v899_v0 = vld [vmem:[%s1109_s1] sm:$0xff] (!%p139_p2)   ;;  %s734_s16 = sshll.u32 (!%p139_p2), %s729_s13, 5  ;;  %vm302_vm0 = vcmask (!%p139_p2), 130048   ;;  %vm640_vm1 = vcmask (!%p139_p2), 60416  }
   0x6   : > { %142 = sbr.rel (%p139_p2) target bundleno = 263 (0x107), region = 32  ;;  %p163_p3 = scmp.lt.s32.totalorder (!%p139_p2), %s734_s16, 63  ;;  %855 = vmatprep.subr.bf16.mxu0 (!%p139_p2), %v899_v0  ;;  %889 = vmatprep.subr.bf16.mxu1 (!%p139_p2), %v899_v0  ;;  %v1000_v17 = vld [vmem:[%s1110_s2] ss:$0 sm:$0xff] (!%p139_p2) }
   0x7   : > { %856 = vmatpush3.bf16.msra.mxu0 (!%p139_p2), %v899_v0  ;;  %890 = vmatpush3.bf16.msra.mxu1 (!%p139_p2), %v899_v0 }
   0xd   : > { %s1113_s16 = smov (!%p163_p3, %s734_s16), 63 }
   0xe   : > { %s735_s17 = sshll.u32 %s1113_s16, 2 }
   0xf   : > { %s963_s20 = scalar_lea.vmem %s1108_s0, %s735_s17  ;;  %s1008_s25 = scalar_lea.vmem %s1111_s3, %s735_s17 }
  0x10   : > { %v900_v1 = vld [vmem:[%s963_s20] sm:$0xff]   ;;  %v902_v3 = vld [vmem:[%s963_s20 + $0x8] sm:$0xff]   ;;  %v904_v5 = vld [vmem:[%s963_s20 + $0x10] sm:$0xff]  }
  0x11   : > { %v901_v2 = vld [vmem:[%s963_s20 + $0x40] sm:$0xff]   ;;  %857 = vmatprep.mubr.msk.bf16.mxu0 %vm302_vm0, %v900_v1  ;;  %v903_v4 = vld [vmem:[%s963_s20 + $0x48] sm:$0xff]   ;;  %v905_v6 = vld [vmem:[%s963_s20 + $0x50] sm:$0xff]  }
  0x12   : > { %873 = vmatprep.mubr.msk.bf16.mxu1 %vm302_vm0, %v901_v2  ;;  %858 = vmatmul.mubr.msk.bf16.vlgmr.msra.gmra.mrb[0].mxu0 %vm302_vm0, %v902_v3  ;;  %v906_v7 = vld [vmem:[%s963_s20 + $0x18] sm:$0xff]   ;;  %v908_v9 = vld [vmem:[%s963_s20 + $0x20] sm:$0xff]   ;;  %v910_v11 = vld [vmem:[%s963_s20 + $0x28] sm:$0xff]  }
  0x13   : > { %874 = vmatmul.mubr.msk.bf16.vlgmr.msra.gmra.mrb[0].mxu1 %vm302_vm0, %v903_v4  ;;  %861 = vmatprep.mubr.msk.bf16.mxu0 %vm302_vm0, %v904_v5  ;;  %v907_v8 = vld [vmem:[%s963_s20 + $0x58] sm:$0xff]   ;;  %v909_v10 = vld [vmem:[%s963_s20 + $0x60] sm:$0xff]   ;;  %v911_v12 = vld [vmem:[%s963_s20 + $0x68] sm:$0xff]  }
  0x14   : > { %877 = vmatprep.mubr.msk.bf16.mxu1 %vm302_vm0, %v905_v6  ;;  %v912_v13 = vld [vmem:[%s963_s20 + $0x30] sm:$0xff]   ;;  %v914_v15 = vld [vmem:[%s963_s20 + $0x38] sm:$0xff]  }
  0x15   : > { %v913_v14 = vld [vmem:[%s963_s20 + $0x70] sm:$0xff]   ;;  %v915_v16 = vld [vmem:[%s963_s20 + $0x78] sm:$0xff]  }
  0x1a   : > { %862 = vmatmul.mubr.msk.bf16.gmra.mrb[4].mxu0 %vm302_vm0, %v906_v7 }
  0x1b   : > { %878 = vmatmul.mubr.msk.bf16.gmra.mrb[4].mxu1 %vm302_vm0, %v907_v8  ;;  %865 = vmatprep.mubr.msk.bf16.mxu0 %vm302_vm0, %v908_v9 }
  0x1c   : > { %881 = vmatprep.mubr.msk.bf16.mxu1 %vm302_vm0, %v909_v10 }
  0x22   : > { %866 = vmatmul.mubr.msk.bf16.gmra.mrb[8].mxu0 %vm302_vm0, %v910_v11 }
  0x23   : > { %882 = vmatmul.mubr.msk.bf16.gmra.mrb[8].mxu1 %vm302_vm0, %v911_v12  ;;  %869 = vmatprep.mubr.msk.bf16.mxu0 %vm302_vm0, %v912_v13 }
  0x24   : > { %885 = vmatprep.mubr.msk.bf16.mxu1 %vm302_vm0, %v913_v14 }
  0x2a   : > { %870 = vmatmul.mubr.msk.bf16.gmra.mrb[12].mxu0 %vm302_vm0, %v914_v15 }
  0x2b   : > { %886 = vmatmul.mubr.msk.bf16.gmra.mrb[12].mxu1 %vm302_vm0, %v915_v16 }
  0xe5   : > { %v859_v18 = vpop.f32.mrb[0].mxu0 }
  0xe6   : > { %v394_v19 = vadd.f32 %v859_v18, %v1000_v17  ;;  %v875_v20 = vpop.f32.mrb[0].mxu1  ;;  %v385_v21 = vpop.f32.mrb[1].mxu0 }
  0xe7   : > { %v458_v22 = vadd.f32 %v875_v20, %v1000_v17  ;;  %v386_v23 = vadd.f32 %v1000_v17, %v385_v21  ;;  %v449_v24 = vpop.f32.mrb[1].mxu1  ;;  %v860_v25 = vpop.f32.mrb[2].mxu0 }
  0xe8   : > { %v808_v26 = vpack.c.bf16 %v394_v19, %v394_v19  ;;  %v450_v27 = vadd.f32 %v1000_v17, %v449_v24  ;;  %v397_v28 = vadd.f32 %v860_v25, %v1000_v17  ;;  %v876_v29 = vpop.f32.mrb[2].mxu1  ;;  %v388_v30 = vpop.f32.mrb[3].mxu0 }
  0xe9   : > { %v824_v31 = vpack.c.bf16 %v458_v22, %v458_v22  ;;  %v806_v32 = vpack.c.bf16 %v386_v23, %v386_v23  ;;  %v461_v33 = vadd.f32 %v876_v29, %v1000_v17  ;;  %v389_v34 = vadd.f32 %v1000_v17, %v388_v30  ;;  %v452_v35 = vpop.f32.mrb[3].mxu1 }
  0xea   : > { %643 = vst.msk [vmem:[%s1008_s25 + $0x8] sm:$0xf] %vm640_vm1, %v808_v26  ;;  %v822_v36 = vpack.c.bf16 %v450_v27, %v450_v27  ;;  %v809_v37 = vpack.c.bf16 %v397_v28, %v397_v28  ;;  %v453_v38 = vadd.f32 %v1000_v17, %v452_v35 }
  0xeb   : > { %659 = vst.msk [vmem:[%s1008_s25 + $0x48] sm:$0xf] %vm640_vm1, %v824_v31  ;;  %641 = vst.msk [vmem:[%s1008_s25] sm:$0xf] %vm640_vm1, %v806_v32  ;;  %v825_v39 = vpack.c.bf16 %v461_v33, %v461_v33  ;;  %v807_v40 = vpack.c.bf16 %v389_v34, %v389_v34 }
  0xec   : > { %657 = vst.msk [vmem:[%s1008_s25 + $0x40] sm:$0xf] %vm640_vm1, %v822_v36  ;;  %644 = vst.msk [vmem:[%s1008_s25 + $0xc] sm:$0xf] %vm640_vm1, %v809_v37  ;;  %v823_v41 = vpack.c.bf16 %v453_v38, %v453_v38 }
  0xed   : > { %660 = vst.msk [vmem:[%s1008_s25 + $0x4c] sm:$0xf] %vm640_vm1, %v825_v39  ;;  %642 = vst.msk [vmem:[%s1008_s25 + $0x4] sm:$0xf] %vm640_vm1, %v807_v40  ;;  %v863_v42 = vpop.f32.mrb[4].mxu0 }
  0xee   : > { %658 = vst.msk [vmem:[%s1008_s25 + $0x44] sm:$0xf] %vm640_vm1, %v823_v41  ;;  %v410_v43 = vadd.f32 %v863_v42, %v1000_v17  ;;  %v879_v44 = vpop.f32.mrb[4].mxu1  ;;  %v401_v45 = vpop.f32.mrb[5].mxu0 }
  0xef   : > { %v474_v46 = vadd.f32 %v879_v44, %v1000_v17  ;;  %v402_v47 = vadd.f32 %v1000_v17, %v401_v45  ;;  %v465_v48 = vpop.f32.mrb[5].mxu1  ;;  %v864_v49 = vpop.f32.mrb[6].mxu0 }
  0xf0   : > { %v812_v50 = vpack.c.bf16 %v410_v43, %v410_v43  ;;  %v466_v51 = vadd.f32 %v1000_v17, %v465_v48  ;;  %v413_v52 = vadd.f32 %v864_v49, %v1000_v17  ;;  %v880_v53 = vpop.f32.mrb[6].mxu1  ;;  %v404_v54 = vpop.f32.mrb[7].mxu0 }
  0xf1   : > { %v828_v55 = vpack.c.bf16 %v474_v46, %v474_v46  ;;  %v810_v56 = vpack.c.bf16 %v402_v47, %v402_v47  ;;  %v477_v57 = vadd.f32 %v880_v53, %v1000_v17  ;;  %v405_v58 = vadd.f32 %v1000_v17, %v404_v54  ;;  %v468_v59 = vpop.f32.mrb[7].mxu1 }
  0xf2   : > { %647 = vst.msk [vmem:[%s1008_s25 + $0x18] sm:$0xf] %vm640_vm1, %v812_v50  ;;  %v826_v60 = vpack.c.bf16 %v466_v51, %v466_v51  ;;  %v813_v61 = vpack.c.bf16 %v413_v52, %v413_v52  ;;  %v469_v62 = vadd.f32 %v1000_v17, %v468_v59 }
  0xf3   : > { %663 = vst.msk [vmem:[%s1008_s25 + $0x58] sm:$0xf] %vm640_vm1, %v828_v55  ;;  %645 = vst.msk [vmem:[%s1008_s25 + $0x10] sm:$0xf] %vm640_vm1, %v810_v56  ;;  %v829_v63 = vpack.c.bf16 %v477_v57, %v477_v57  ;;  %v811_v0 = vpack.c.bf16 %v405_v58, %v405_v58 }
  0xf4   : > { %661 = vst.msk [vmem:[%s1008_s25 + $0x50] sm:$0xf] %vm640_vm1, %v826_v60  ;;  %648 = vst.msk [vmem:[%s1008_s25 + $0x1c] sm:$0xf] %vm640_vm1, %v813_v61  ;;  %v827_v1 = vpack.c.bf16 %v469_v62, %v469_v62 }
  0xf5   : > { %664 = vst.msk [vmem:[%s1008_s25 + $0x5c] sm:$0xf] %vm640_vm1, %v829_v63  ;;  %646 = vst.msk [vmem:[%s1008_s25 + $0x14] sm:$0xf] %vm640_vm1, %v811_v0  ;;  %v867_v2 = vpop.f32.mrb[8].mxu0 }
  0xf6   : > { %662 = vst.msk [vmem:[%s1008_s25 + $0x54] sm:$0xf] %vm640_vm1, %v827_v1  ;;  %v426_v3 = vadd.f32 %v867_v2, %v1000_v17  ;;  %v883_v4 = vpop.f32.mrb[8].mxu1  ;;  %v417_v5 = vpop.f32.mrb[9].mxu0 }
  0xf7   : > { %v490_v6 = vadd.f32 %v883_v4, %v1000_v17  ;;  %v418_v7 = vadd.f32 %v1000_v17, %v417_v5  ;;  %v481_v8 = vpop.f32.mrb[9].mxu1  ;;  %v868_v9 = vpop.f32.mrb[10].mxu0 }
  0xf8   : > { %v816_v10 = vpack.c.bf16 %v426_v3, %v426_v3  ;;  %v482_v11 = vadd.f32 %v1000_v17, %v481_v8  ;;  %v429_v12 = vadd.f32 %v868_v9, %v1000_v17  ;;  %v884_v13 = vpop.f32.mrb[10].mxu1  ;;  %v420_v14 = vpop.f32.mrb[11].mxu0 }
  0xf9   : > { %v832_v15 = vpack.c.bf16 %v490_v6, %v490_v6  ;;  %v814_v16 = vpack.c.bf16 %v418_v7, %v418_v7  ;;  %v493_v18 = vadd.f32 %v884_v13, %v1000_v17  ;;  %v421_v19 = vadd.f32 %v1000_v17, %v420_v14  ;;  %v484_v20 = vpop.f32.mrb[11].mxu1 }
  0xfa   : > { %651 = vst.msk [vmem:[%s1008_s25 + $0x28] sm:$0xf] %vm640_vm1, %v816_v10  ;;  %v830_v21 = vpack.c.bf16 %v482_v11, %v482_v11  ;;  %v817_v22 = vpack.c.bf16 %v429_v12, %v429_v12  ;;  %v485_v23 = vadd.f32 %v1000_v17, %v484_v20 }
  0xfb   : > { %667 = vst.msk [vmem:[%s1008_s25 + $0x68] sm:$0xf] %vm640_vm1, %v832_v15  ;;  %649 = vst.msk [vmem:[%s1008_s25 + $0x20] sm:$0xf] %vm640_vm1, %v814_v16  ;;  %v833_v24 = vpack.c.bf16 %v493_v18, %v493_v18  ;;  %v815_v25 = vpack.c.bf16 %v421_v19, %v421_v19 }
  0xfc   : > { %665 = vst.msk [vmem:[%s1008_s25 + $0x60] sm:$0xf] %vm640_vm1, %v830_v21  ;;  %652 = vst.msk [vmem:[%s1008_s25 + $0x2c] sm:$0xf] %vm640_vm1, %v817_v22  ;;  %v831_v26 = vpack.c.bf16 %v485_v23, %v485_v23 }
  0xfd   : > { %668 = vst.msk [vmem:[%s1008_s25 + $0x6c] sm:$0xf] %vm640_vm1, %v833_v24  ;;  %650 = vst.msk [vmem:[%s1008_s25 + $0x24] sm:$0xf] %vm640_vm1, %v815_v25  ;;  %v871_v27 = vpop.f32.mrb[12].mxu0 }
  0xfe   : > { %666 = vst.msk [vmem:[%s1008_s25 + $0x64] sm:$0xf] %vm640_vm1, %v831_v26  ;;  %v442_v28 = vadd.f32 %v871_v27, %v1000_v17  ;;  %v887_v29 = vpop.f32.mrb[12].mxu1  ;;  %v433_v30 = vpop.f32.mrb[13].mxu0 }
  0xff   : > { %v506_v31 = vadd.f32 %v887_v29, %v1000_v17  ;;  %v434_v32 = vadd.f32 %v1000_v17, %v433_v30  ;;  %v497_v33 = vpop.f32.mrb[13].mxu1  ;;  %v872_v34 = vpop.f32.mrb[14].mxu0 }
 0x100   : > { %v820_v35 = vpack.c.bf16 %v442_v28, %v442_v28  ;;  %v498_v36 = vadd.f32 %v1000_v17, %v497_v33  ;;  %v445_v37 = vadd.f32 %v872_v34, %v1000_v17  ;;  %v888_v38 = vpop.f32.mrb[14].mxu1  ;;  %v436_v39 = vpop.f32.mrb[15].mxu0 }
 0x101   : > { %v836_v40 = vpack.c.bf16 %v506_v31, %v506_v31  ;;  %v818_v41 = vpack.c.bf16 %v434_v32, %v434_v32  ;;  %v509_v42 = vadd.f32 %v888_v38, %v1000_v17  ;;  %v437_v43 = vadd.f32 %v1000_v17, %v436_v39  ;;  %v500_v44 = vpop.f32.mrb[15].mxu1 }
 0x102   : > { %655 = vst.msk [vmem:[%s1008_s25 + $0x38] sm:$0xf] %vm640_vm1, %v820_v35  ;;  %v834_v45 = vpack.c.bf16 %v498_v36, %v498_v36  ;;  %v821_v46 = vpack.c.bf16 %v445_v37, %v445_v37  ;;  %v501_v47 = vadd.f32 %v1000_v17, %v500_v44 }
 0x103   : > { %671 = vst.msk [vmem:[%s1008_s25 + $0x78] sm:$0xf] %vm640_vm1, %v836_v40  ;;  %653 = vst.msk [vmem:[%s1008_s25 + $0x30] sm:$0xf] %vm640_vm1, %v818_v41  ;;  %v837_v48 = vpack.c.bf16 %v509_v42, %v509_v42  ;;  %v819_v49 = vpack.c.bf16 %v437_v43, %v437_v43 }
 0x104   : > { %669 = vst.msk [vmem:[%s1008_s25 + $0x70] sm:$0xf] %vm640_vm1, %v834_v45  ;;  %656 = vst.msk [vmem:[%s1008_s25 + $0x3c] sm:$0xf] %vm640_vm1, %v821_v46  ;;  %v835_v50 = vpack.c.bf16 %v501_v47, %v501_v47 }
 0x105   : > { %672 = vst.msk [vmem:[%s1008_s25 + $0x7c] sm:$0xf] %vm640_vm1, %v837_v48  ;;  %654 = vst.msk [vmem:[%s1008_s25 + $0x34] sm:$0xf] %vm640_vm1, %v819_v49 }
 0x106   : > { %670 = vst.msk [vmem:[%s1008_s25 + $0x74] sm:$0xf] %vm640_vm1, %v835_v50 }
 0x107 PF: > { %s13_s12 = sadd.s32 1, %s922_s12  }
 0x108   : > { %p10_p4 = scmp.ge.s32.totalorder %s13_s12, 4  }
 0x10a   :  { %12 = sbr.rel (!%p10_p4) target bundleno = 1 (0x1), region = 62 }

// kernel: attrunet_fwd.47
= control target key start
LH: loop header
LB: loop body
LE: loop exit
PB: predicated region body
PF: predicated region fallthrough
CT: control target
= control target key end

     0   :  { %s749_s12 = smov 0   ;;  %s910_s0 = inlined_call_operand.vmem [shape: bf16[512,8], index: 0, kind: input, shape index: {}]   ;;  %s911_s1 = inlined_call_operand.vmem [shape: bf16[8,3], index: 1, kind: input, shape index: {}]   ;;  %s912_s2 = inlined_call_operand.vmem [shape: f32[1,3], index: 2, kind: input, shape index: {}]   ;;  %s913_s3 = inlined_call_operand.vmem [shape: f32[512,3], index: 3, kind: output, shape index: {}]  }
   0x1 LB: > { %s598_s13 = sadd.s32 4294967295, %s727_s12   ;;  %p602_p0 = scmp.ge.s32.totalorder %s727_s12, 1  ;;  %s727_s12 = sphi %s749_s12, %s13_s12  }
   0x2   : > { %p138_p1 = scmp.lt.s32.totalorder %s727_s12, 3 }
   0x4   : > { %p139_p2 = pnand %p602_p0, %p138_p1 }
   0x5   : > { %v207_v0 = vld [vmem:[%s911_s1] sm:$0xf] (!%p139_p2)  ;;  %vm344_vm0 = vcmask (!%p139_p2), 1043456   ;;  %s603_s16 = sshll.u32 (!%p139_p2), %s598_s13, 5  ;;  %vm295_vm1 = vcmask (!%p139_p2), 64512   ;;  %vm509_vm2 = vcmask (!%p139_p2), 23552  }
   0x6   : > { %142 = sbr.rel (%p139_p2) target bundleno = 261 (0x105), region = 32  ;;  %695 = vmatprep.subr.msk.bf16.mxu0 (!%p139_p2), %vm344_vm0, %v207_v0  ;;  %696 = vmatprep.subr.msk.bf16.mxu1 (!%p139_p2), %vm344_vm0, %v207_v0  ;;  %v346_v1 = vsel (!%p139_p2), %vm344_vm0, %v207_v0, 0  ;;  %p163_p3 = scmp.lt.s32.totalorder (!%p139_p2), %s603_s16, 63  ;;  %v804_v18 = vld [vmem:[%s912_s2] ss:$0 sm:$0xff] (!%p139_p2) }
   0x7   : > { %660 = vmatpush3.bf16.msra.mxu0 (!%p139_p2), %v346_v1  ;;  %694 = vmatpush3.bf16.msra.mxu1 (!%p139_p2), %v346_v1 }
   0xd   : > { %s915_s16 = smov (!%p163_p3, %s603_s16), 63 }
   0xe   : > { %s604_s17 = sshll.u32 %s915_s16, 2  ;;  %s606_s21 = sshll.u32 %s915_s16, 3 }
   0xf   : > { %s766_s20 = scalar_lea.vmem %s910_s0, %s604_s17  ;;  %s809_s26 = scalar_lea.vmem %s913_s3, %s606_s21 }
  0x10   : > { %v705_v2 = vld [vmem:[%s766_s20] sm:$0xff]   ;;  %v707_v4 = vld [vmem:[%s766_s20 + $0x8] sm:$0xff]   ;;  %v709_v6 = vld [vmem:[%s766_s20 + $0x10] sm:$0xff]  }
  0x11   : > { %v706_v3 = vld [vmem:[%s766_s20 + $0x40] sm:$0xff]   ;;  %661 = vmatprep.mubr.msk.bf16.mxu0 %vm295_vm1, %v705_v2  ;;  %v708_v5 = vld [vmem:[%s766_s20 + $0x48] sm:$0xff]   ;;  %v710_v7 = vld [vmem:[%s766_s20 + $0x50] sm:$0xff]  }
  0x12   : > { %677 = vmatprep.mubr.msk.bf16.mxu1 %vm295_vm1, %v706_v3  ;;  %662 = vmatmul.mubr.msk.bf16.vlgmr.msra.gmra.mrb[0].mxu0 %vm295_vm1, %v707_v4  ;;  %v711_v8 = vld [vmem:[%s766_s20 + $0x18] sm:$0xff]   ;;  %v713_v10 = vld [vmem:[%s766_s20 + $0x20] sm:$0xff]   ;;  %v715_v12 = vld [vmem:[%s766_s20 + $0x28] sm:$0xff]  }
  0x13   : > { %678 = vmatmul.mubr.msk.bf16.vlgmr.msra.gmra.mrb[0].mxu1 %vm295_vm1, %v708_v5  ;;  %665 = vmatprep.mubr.msk.bf16.mxu0 %vm295_vm1, %v709_v6  ;;  %v712_v9 = vld [vmem:[%s766_s20 + $0x58] sm:$0xff]   ;;  %v714_v11 = vld [vmem:[%s766_s20 + $0x60] sm:$0xff]   ;;  %v716_v13 = vld [vmem:[%s766_s20 + $0x68] sm:$0xff]  }
  0x14   : > { %681 = vmatprep.mubr.msk.bf16.mxu1 %vm295_vm1, %v710_v7  ;;  %v717_v14 = vld [vmem:[%s766_s20 + $0x30] sm:$0xff]   ;;  %v719_v16 = vld [vmem:[%s766_s20 + $0x38] sm:$0xff]  }
  0x15   : > { %v718_v15 = vld [vmem:[%s766_s20 + $0x70] sm:$0xff]   ;;  %v720_v17 = vld [vmem:[%s766_s20 + $0x78] sm:$0xff]  }
  0x1a   : > { %666 = vmatmul.mubr.msk.bf16.gmra.mrb[4].mxu0 %vm295_vm1, %v711_v8 }
  0x1b   : > { %682 = vmatmul.mubr.msk.bf16.gmra.mrb[4].mxu1 %vm295_vm1, %v712_v9  ;;  %669 = vmatprep.mubr.msk.bf16.mxu0 %vm295_vm1, %v713_v10 }
  0x1c   : > { %685 = vmatprep.mubr.msk.bf16.mxu1 %vm295_vm1, %v714_v11 }
  0x22   : > { %670 = vmatmul.mubr.msk.bf16.gmra.mrb[8].mxu0 %vm295_vm1, %v715_v12 }
  0x23   : > { %686 = vmatmul.mubr.msk.bf16.gmra.mrb[8].mxu1 %vm295_vm1, %v716_v13  ;;  %673 = vmatprep.mubr.msk.bf16.mxu0 %vm295_vm1, %v717_v14 }
  0x24   : > { %689 = vmatprep.mubr.msk.bf16.mxu1 %vm295_vm1, %v718_v15 }
  0x2a   : > { %674 = vmatmul.mubr.msk.bf16.gmra.mrb[12].mxu0 %vm295_vm1, %v719_v16 }
  0x2b   : > { %690 = vmatmul.mubr.msk.bf16.gmra.mrb[12].mxu1 %vm295_vm1, %v720_v17 }
  0xe5   : > { %v663_v19 = vpop.f32.mrb[0].mxu0 }
  0xe6   : > { %v391_v20 = vadd.f32 %v663_v19, %v804_v18  ;;  %v679_v21 = vpop.f32.mrb[0].mxu1  ;;  %v382_v22 = vpop.f32.mrb[1].mxu0 }
  0xe7   : > { %v455_v23 = vadd.f32 %v679_v21, %v804_v18  ;;  %v383_v24 = vadd.f32 %v804_v18, %v382_v22  ;;  %v446_v25 = vpop.f32.mrb[1].mxu1  ;;  %v664_v26 = vpop.f32.mrb[2].mxu0 }
  0xe8   : > { %512 = vst.msk [vmem:[%s809_s26 + $0x10] sm:$0xff] %vm509_vm2, %v391_v20  ;;  %v447_v27 = vadd.f32 %v804_v18, %v446_v25  ;;  %v394_v28 = vadd.f32 %v664_v26, %v804_v18  ;;  %v680_v29 = vpop.f32.mrb[2].mxu1  ;;  %v385_v30 = vpop.f32.mrb[3].mxu0 }
  0xe9   : > { %528 = vst.msk [vmem:[%s809_s26 + $0x90] sm:$0xff] %vm509_vm2, %v455_v23  ;;  %510 = vst.msk [vmem:[%s809_s26] sm:$0xff] %vm509_vm2, %v383_v24  ;;  %v458_v31 = vadd.f32 %v680_v29, %v804_v18  ;;  %v386_v32 = vadd.f32 %v804_v18, %v385_v30  ;;  %v449_v33 = vpop.f32.mrb[3].mxu1 }
  0xea   : > { %526 = vst.msk [vmem:[%s809_s26 + $0x80] sm:$0xff] %vm509_vm2, %v447_v27  ;;  %513 = vst.msk [vmem:[%s809_s26 + $0x18] sm:$0xff] %vm509_vm2, %v394_v28  ;;  %v450_v34 = vadd.f32 %v804_v18, %v449_v33 }
  0xeb   : > { %529 = vst.msk [vmem:[%s809_s26 + $0x98] sm:$0xff] %vm509_vm2, %v458_v31  ;;  %511 = vst.msk [vmem:[%s809_s26 + $0x8] sm:$0xff] %vm509_vm2, %v386_v32 }
  0xec   : > { %527 = vst.msk [vmem:[%s809_s26 + $0x88] sm:$0xff] %vm509_vm2, %v450_v34 }
  0xed   : > { %v667_v35 = vpop.f32.mrb[4].mxu0 }
  0xee   : > { %v407_v36 = vadd.f32 %v667_v35, %v804_v18  ;;  %v683_v37 = vpop.f32.mrb[4].mxu1  ;;  %v398_v38 = vpop.f32.mrb[5].mxu0 }
  0xef   : > { %v471_v39 = vadd.f32 %v683_v37, %v804_v18  ;;  %v399_v40 = vadd.f32 %v804_v18, %v398_v38  ;;  %v462_v41 = vpop.f32.mrb[5].mxu1  ;;  %v668_v42 = vpop.f32.mrb[6].mxu0 }
  0xf0   : > { %516 = vst.msk [vmem:[%s809_s26 + $0x30] sm:$0xff] %vm509_vm2, %v407_v36  ;;  %v463_v43 = vadd.f32 %v804_v18, %v462_v41  ;;  %v410_v44 = vadd.f32 %v668_v42, %v804_v18  ;;  %v684_v45 = vpop.f32.mrb[6].mxu1  ;;  %v401_v46 = vpop.f32.mrb[7].mxu0 }
  0xf1   : > { %532 = vst.msk [vmem:[%s809_s26 + $0xb0] sm:$0xff] %vm509_vm2, %v471_v39  ;;  %514 = vst.msk [vmem:[%s809_s26 + $0x20] sm:$0xff] %vm509_vm2, %v399_v40  ;;  %v474_v47 = vadd.f32 %v684_v45, %v804_v18  ;;  %v402_v48 = vadd.f32 %v804_v18, %v401_v46  ;;  %v465_v49 = vpop.f32.mrb[7].mxu1 }
  0xf2   : > { %530 = vst.msk [vmem:[%s809_s26 + $0xa0] sm:$0xff] %vm509_vm2, %v463_v43  ;;  %517 = vst.msk [vmem:[%s809_s26 + $0x38] sm:$0xff] %vm509_vm2, %v410_v44  ;;  %v466_v50 = vadd.f32 %v804_v18, %v465_v49 }
  0xf3   : > { %533 = vst.msk [vmem:[%s809_s26 + $0xb8] sm:$0xff] %vm509_vm2, %v474_v47  ;;  %515 = vst.msk [vmem:[%s809_s26 + $0x28] sm:$0xff] %vm509_vm2, %v402_v48 }
  0xf4   : > { %531 = vst.msk [vmem:[%s809_s26 + $0xa8] sm:$0xff] %vm509_vm2, %v466_v50 }
  0xf5   : > { %v671_v51 = vpop.f32.mrb[8].mxu0 }
  0xf6   : > { %v423_v52 = vadd.f32 %v671_v51, %v804_v18  ;;  %v687_v53 = vpop.f32.mrb[8].mxu1  ;;  %v414_v54 = vpop.f32.mrb[9].mxu0 }
  0xf7   : > { %v487_v55 = vadd.f32 %v687_v53, %v804_v18  ;;  %v415_v56 = vadd.f32 %v804_v18, %v414_v54  ;;  %v478_v57 = vpop.f32.mrb[9].mxu1  ;;  %v672_v58 = vpop.f32.mrb[10].mxu0 }
  0xf8   : > { %520 = vst.msk [vmem:[%s809_s26 + $0x50] sm:$0xff] %vm509_vm2, %v423_v52  ;;  %v479_v59 = vadd.f32 %v804_v18, %v478_v57  ;;  %v426_v60 = vadd.f32 %v672_v58, %v804_v18  ;;  %v688_v61 = vpop.f32.mrb[10].mxu1  ;;  %v417_v62 = vpop.f32.mrb[11].mxu0 }
  0xf9   : > { %536 = vst.msk [vmem:[%s809_s26 + $0xd0] sm:$0xff] %vm509_vm2, %v487_v55  ;;  %518 = vst.msk [vmem:[%s809_s26 + $0x40] sm:$0xff] %vm509_vm2, %v415_v56  ;;  %v490_v63 = vadd.f32 %v688_v61, %v804_v18  ;;  %v418_v0 = vadd.f32 %v804_v18, %v417_v62  ;;  %v481_v1 = vpop.f32.mrb[11].mxu1 }
  0xfa   : > { %534 = vst.msk [vmem:[%s809_s26 + $0xc0] sm:$0xff] %vm509_vm2, %v479_v59  ;;  %521 = vst.msk [vmem:[%s809_s26 + $0x58] sm:$0xff] %vm509_vm2, %v426_v60  ;;  %v482_v2 = vadd.f32 %v804_v18, %v481_v1 }
  0xfb   : > { %537 = vst.msk [vmem:[%s809_s26 + $0xd8] sm:$0xff] %vm509_vm2, %v490_v63  ;;  %519 = vst.msk [vmem:[%s809_s26 + $0x48] sm:$0xff] %vm509_vm2, %v418_v0 }
  0xfc   : > { %535 = vst.msk [vmem:[%s809_s26 + $0xc8] sm:$0xff] %vm509_vm2, %v482_v2 }
  0xfd   : > { %v675_v3 = vpop.f32.mrb[12].mxu0 }
  0xfe   : > { %v439_v4 = vadd.f32 %v675_v3, %v804_v18  ;;  %v691_v5 = vpop.f32.mrb[12].mxu1  ;;  %v430_v6 = vpop.f32.mrb[13].mxu0 }
  0xff   : > { %v503_v7 = vadd.f32 %v691_v5, %v804_v18  ;;  %v431_v8 = vadd.f32 %v804_v18, %v430_v6  ;;  %v494_v9 = vpop.f32.mrb[13].mxu1  ;;  %v676_v10 = vpop.f32.mrb[14].mxu0 }
 0x100   : > { %524 = vst.msk [vmem:[%s809_s26 + $0x70] sm:$0xff] %vm509_vm2, %v439_v4  ;;  %v495_v11 = vadd.f32 %v804_v18, %v494_v9  ;;  %v442_v12 = vadd.f32 %v676_v10, %v804_v18  ;;  %v692_v13 = vpop.f32.mrb[14].mxu1  ;;  %v433_v14 = vpop.f32.mrb[15].mxu0 }
 0x101   : > { %540 = vst.msk [vmem:[%s809_s26 + $0xf0] sm:$0xff] %vm509_vm2, %v503_v7  ;;  %522 = vst.msk [vmem:[%s809_s26 + $0x60] sm:$0xff] %vm509_vm2, %v431_v8  ;;  %v506_v15 = vadd.f32 %v692_v13, %v804_v18  ;;  %v434_v16 = vadd.f32 %v804_v18, %v433_v14  ;;  %v497_v17 = vpop.f32.mrb[15].mxu1 }
 0x102   : > { %538 = vst.msk [vmem:[%s809_s26 + $0xe0] sm:$0xff] %vm509_vm2, %v495_v11  ;;  %525 = vst.msk [vmem:[%s809_s26 + $0x78] sm:$0xff] %vm509_vm2, %v442_v12  ;;  %v498_v19 = vadd.f32 %v804_v18, %v497_v17 }
 0x103   : > { %541 = vst.msk [vmem:[%s809_s26 + $0xf8] sm:$0xff] %vm509_vm2, %v506_v15  ;;  %523 = vst.msk [vmem:[%s809_s26 + $0x68] sm:$0xff] %vm509_vm2, %v434_v16 }
 0x104   : > { %539 = vst.msk [vmem:[%s809_s26 + $0xe8] sm:$0xff] %vm509_vm2, %v498_v19 }
 0x105 PF: > { %s13_s12 = sadd.s32 1, %s727_s12  }
 0x106   : > { %p10_p4 = scmp.ge.s32.totalorder %s13_s12, 4  }
 0x108   :  { %12 = sbr.rel (!%p10_p4) target bundleno = 1 (0x1), region = 62 }

// kernel: attrunet_fwd.39
= control target key start
LH: loop header
LB: loop body
LE: loop exit
PB: predicated region body
PF: predicated region fallthrough
CT: control target
= control target key end

     0   :  { %s2654_s29 = smov 0   ;;  %s3007_s0 = inlined_call_operand.vmem [shape: bf16[512,8], index: 0, kind: input, shape index: {}]   ;;  %s3008_s1 = inlined_call_operand.vmem [shape: bf16[512,8], index: 1, kind: input, shape index: {}]   ;;  %s3009_s2 = inlined_call_operand.vmem [shape: bf16[8,4], index: 2, kind: input, shape index: {}]   ;;  %s3010_s3 = inlined_call_operand.vmem [shape: f32[1,4], index: 3, kind: input, shape index: {}]   ;;  %s3011_s4 = inlined_call_operand.vmem [shape: bf16[8,4], index: 4, kind: input, shape index: {}]   ;;  %s3012_s5 = inlined_call_operand.vmem [shape: f32[1,4], index: 5, kind: input, shape index: {}]   ;;  %s3013_s6 = inlined_call_operand.vmem [shape: bf16[4,1], index: 6, kind: input, shape index: {}]   ;;  %s3014_s7 = inlined_call_operand.<no memory space> [shape: f32[1,1], index: 7, kind: input, shape index: {}]   ;;  %s3015_s8 = inlined_call_operand.vmem [shape: bf16[512,8], index: 8, kind: output, shape index: {}]  }
   0x1   :  { %v13_v0 = vstv %s3014_s7 }
   0x2   :  { %14 = vst [vmem:[#allocation2] sm:$0x1] %v13_v0 }
   0x3 LB: > { %s1947_s30 = sadd.s32 4294967295, %s2603_s29   ;;  %p1951_p0 = scmp.ge.s32.totalorder %s2603_s29, 1  ;;  %s2603_s29 = sphi %s2654_s29, %s20_s29  }
   0x4   : > { %p276_p1 = scmp.lt.s32.totalorder %s2603_s29, 3 }
   0x6   : > { %p277_p2 = pnand %p1951_p0, %p276_p1 }
   0x7   : > { %v366_v1 = vld [vmem:[%s3009_s2] sm:$0xf] (!%p277_p2)  ;;  %vm503_vm0 = vcmask (!%p277_p2), 1043456   ;;  %s1952_s7 = sshll.u32 (!%p277_p2), %s1947_s30, 5  ;;  %vm1137_vm1 = vcmask (!%p277_p2), 1041408   ;;  %vm454_vm2 = vcmask (!%p277_p2), 64512  }
   0x8   : > { %280 = sbr.rel (%p277_p2) target bundleno = 713 (0x2c9), region = 52  ;;  %2390 = vmatprep.subr.msk.bf16.mxu0 (!%p277_p2), %vm503_vm0, %v366_v1  ;;  %v505_v2 = vsel (!%p277_p2), %vm503_vm0, %v366_v1, 0  ;;  %p316_p3 = scmp.lt.s32.totalorder (!%p277_p2), %s1952_s7, 63  ;;  %v700_v3 = vld [vmem:[%s3011_s4] sm:$0xf] (!%p277_p2)  ;;  %2391 = vmatprep.subr.msk.bf16.mxu1 (!%p277_p2), %vm503_vm0, %v366_v1  ;;  %vm1088_vm3 = vcmask (!%p277_p2), 31744  }
   0x9   : > { %v1080_v4 = vld [vmem:[%s3013_s6] sm:$0x3] (!%p277_p2)  ;;  %2191 = vmatpush3.bf16.msra.mxu0 (!%p277_p2), %v505_v2  ;;  %2293 = vmatpush3.bf16.msra.mxu1 (!%p277_p2), %v505_v2  ;;  %v837_v7 = vsel (!%p277_p2), %vm503_vm0, %v700_v3, 0  ;;  %vm1846_vm4 = vcmask (!%p277_p2), 60416  }
   0xa   : > { %2392 = vmatprep.subr.msk.bf16.mxu0 (!%p277_p2), %vm503_vm0, %v700_v3  ;;  %2393 = vmatprep.subr.msk.bf16.mxu1 (!%p277_p2), %vm1137_vm1, %v1080_v4  ;;  %v1139_v13 = vsel (!%p277_p2), %vm1137_vm1, %v1080_v4, 0  ;;  %v2777_v48 = vld [vmem:[%s3010_s3] ss:$0 sm:$0xff] (!%p277_p2) }
   0xb   : > { %v2782_v49 = vld [vmem:[%s3012_s5] ss:$0 sm:$0xff] (!%p277_p2) }
   0xc   : > { %v2792_v53 = vadd.f32 (!%p277_p2), %v2782_v49, %v2777_v48 }
   0xf   : > { %s3017_s7 = smov (!%p316_p3, %s1952_s7), 63 }
  0x10   : > { %s2676_s15 = sshll.u32 %s3017_s7, 2 }
  0x11   : > { %s2682_s18 = scalar_lea.vmem %s3007_s0, %s2676_s15  ;;  %s2708_s21 = scalar_lea.vmem %s3008_s1, %s2676_s15 }
  0x12   : > { %v2405_v5 = vld [vmem:[%s2682_s18] sm:$0xff]   ;;  %v2406_v6 = vld [vmem:[%s2682_s18 + $0x8] sm:$0xff]   ;;  %v2407_v8 = vld [vmem:[%s2682_s18 + $0x10] sm:$0xff]   ;;  %s2924_s28 = scalar_lea.vmem %s3015_s8, %s2676_s15 }
  0x13   : > { %2192 = vmatprep.mubr.msk.bf16.mxu0 %vm454_vm2, %v2405_v5  ;;  %v2408_v9 = vld [vmem:[%s2682_s18 + $0x18] sm:$0xff]   ;;  %v2409_v10 = vld [vmem:[%s2682_s18 + $0x20] sm:$0xff]   ;;  %v2422_v12 = vld [vmem:[%s2682_s18 + $0x48] sm:$0xff]  }
  0x14   : > { %2193 = vmatmul.mubr.msk.bf16.vlgmr.msra.gmra.mrb[0].mxu0 %vm454_vm2, %v2406_v6  ;;  %v2420_v11 = vld [vmem:[%s2682_s18 + $0x40] sm:$0xff]   ;;  %v2424_v14 = vld [vmem:[%s2682_s18 + $0x50] sm:$0xff]   ;;  %v2410_v15 = vld [vmem:[%s2682_s18 + $0x28] sm:$0xff]  }
  0x15   : > { %2225 = vmatpush3.bf16.msra.mxu0 %v837_v7  ;;  %2196 = vmatprep.mubr.msk.bf16.mxu0 %vm454_vm2, %v2407_v8  ;;  %v2411_v16 = vld [vmem:[%s2682_s18 + $0x30] sm:$0xff]   ;;  %v2426_v17 = vld [vmem:[%s2682_s18 + $0x58] sm:$0xff]   ;;  %v2428_v18 = vld [vmem:[%s2682_s18 + $0x60] sm:$0xff]  }
  0x16   : > { %2208 = vmatprep.mubr.msk.bf16.mxu1 %vm454_vm2, %v2420_v11  ;;  %v668_v19 = vld [vmem:[%s2708_s21] sm:$0xff]   ;;  %v2412_v20 = vld [vmem:[%s2682_s18 + $0x38] sm:$0xff]   ;;  %v2430_v21 = vld [vmem:[%s2682_s18 + $0x68] sm:$0xff]  }
  0x17   : > { %2209 = vmatmul.mubr.msk.bf16.vlgmr.msra.gmra.mrb[0].mxu1 %vm454_vm2, %v2422_v12  ;;  %v2432_v22 = vld [vmem:[%s2682_s18 + $0x70] sm:$0xff]   ;;  %v670_v23 = vld [vmem:[%s2708_s21 + $0x8] sm:$0xff]   ;;  %v2434_v25 = vld [vmem:[%s2682_s18 + $0x78] sm:$0xff]  }
  0x18   : > { %2212 = vmatprep.mubr.msk.bf16.mxu1 %vm454_vm2, %v2424_v14  ;;  %2259 = vmatpush3.bf16.msra.mxu1 %v1139_v13  ;;  %v672_v24 = vld [vmem:[%s2708_s21 + $0x10] sm:$0xff]   ;;  %v674_v26 = vld [vmem:[%s2708_s21 + $0x18] sm:$0xff]   ;;  %v676_v27 = vld [vmem:[%s2708_s21 + $0x20] sm:$0xff]  }
  0x19   : > { %v678_v28 = vld [vmem:[%s2708_s21 + $0x28] sm:$0xff]   ;;  %v680_v29 = vld [vmem:[%s2708_s21 + $0x30] sm:$0xff]   ;;  %v682_v30 = vld [vmem:[%s2708_s21 + $0x38] sm:$0xff]  }
  0x1a   : > { %v684_v31 = vld [vmem:[%s2708_s21 + $0x40] sm:$0xff]   ;;  %v686_v32 = vld [vmem:[%s2708_s21 + $0x48] sm:$0xff]   ;;  %v688_v33 = vld [vmem:[%s2708_s21 + $0x50] sm:$0xff]  }
  0x1b   : > { %v690_v34 = vld [vmem:[%s2708_s21 + $0x58] sm:$0xff]   ;;  %v692_v35 = vld [vmem:[%s2708_s21 + $0x60] sm:$0xff]   ;;  %v694_v36 = vld [vmem:[%s2708_s21 + $0x68] sm:$0xff]  }
  0x1c   : > { %2197 = vmatmul.mubr.msk.bf16.gmra.mrb[4].mxu0 %vm454_vm2, %v2408_v9  ;;  %v696_v37 = vld [vmem:[%s2708_s21 + $0x70] sm:$0xff]   ;;  %v698_v38 = vld [vmem:[%s2708_s21 + $0x78] sm:$0xff]  }
  0x1d   : > { %2200 = vmatprep.mubr.msk.bf16.mxu0 %vm454_vm2, %v2409_v10 }
  0x1f   : > { %2213 = vmatmul.mubr.msk.bf16.gmra.mrb[4].mxu1 %vm454_vm2, %v2426_v17 }
  0x20   : > { %2216 = vmatprep.mubr.msk.bf16.mxu1 %vm454_vm2, %v2428_v18 }
  0x24   : > { %2201 = vmatmul.mubr.msk.bf16.gmra.mrb[8].mxu0 %vm454_vm2, %v2410_v15 }
  0x25   : > { %2204 = vmatprep.mubr.msk.bf16.mxu0 %vm454_vm2, %v2411_v16 }
  0x27   : > { %2217 = vmatmul.mubr.msk.bf16.gmra.mrb[8].mxu1 %vm454_vm2, %v2430_v21 }
  0x28   : > { %2220 = vmatprep.mubr.msk.bf16.mxu1 %vm454_vm2, %v2432_v22 }
  0x2c   : > { %2205 = vmatmul.mubr.msk.bf16.gmra.mrb[12].mxu0 %vm454_vm2, %v2412_v20 }
  0x2d   : > { %2226 = vmatprep.mubr.msk.bf16.mxu0 %vm454_vm2, %v668_v19 }
  0x2f   : > { %2221 = vmatmul.mubr.msk.bf16.gmra.mrb[12].mxu1 %vm454_vm2, %v2434_v25 }
  0x34   : > { %2227 = vmatmul.mubr.msk.bf16.vlgmr.msra.gmra.mrb[0].mxu0 %vm454_vm2, %v670_v23 }
  0x35   : > { %2230 = vmatprep.mubr.msk.bf16.mxu0 %vm454_vm2, %v672_v24 }
  0x3c   : > { %2231 = vmatmul.mubr.msk.bf16.gmra.mrb[4].mxu0 %vm454_vm2, %v674_v26 }
  0x3d   : > { %2234 = vmatprep.mubr.msk.bf16.mxu0 %vm454_vm2, %v676_v27 }
  0x44   : > { %2235 = vmatmul.mubr.msk.bf16.gmra.mrb[8].mxu0 %vm454_vm2, %v678_v28 }
  0x45   : > { %2238 = vmatprep.mubr.msk.bf16.mxu0 %vm454_vm2, %v680_v29 }
  0x4c   : > { %2239 = vmatmul.mubr.msk.bf16.gmra.mrb[12].mxu0 %vm454_vm2, %v682_v30 }
  0x4d   : > { %2242 = vmatprep.mubr.msk.bf16.mxu0 %vm454_vm2, %v684_v31 }
  0x54   : > { %2243 = vmatmul.mubr.msk.bf16.gmra.mrb[16].mxu0 %vm454_vm2, %v686_v32 }
  0x55   : > { %2246 = vmatprep.mubr.msk.bf16.mxu0 %vm454_vm2, %v688_v33 }
  0x5c   : > { %2247 = vmatmul.mubr.msk.bf16.gmra.mrb[20].mxu0 %vm454_vm2, %v690_v34 }
  0x5d   : > { %2250 = vmatprep.mubr.msk.bf16.mxu0 %vm454_vm2, %v692_v35 }
  0x64   : > { %2251 = vmatmul.mubr.msk.bf16.gmra.mrb[24].mxu0 %vm454_vm2, %v694_v36 }
  0x65   : > { %2254 = vmatprep.mubr.msk.bf16.mxu0 %vm454_vm2, %v696_v37 }
  0x6c   : > { %2255 = vmatmul.mubr.msk.bf16.gmra.mrb[28].mxu0 %vm454_vm2, %v698_v38 }
  0xea   : > { %v2756_v39 = vpop.f32.mrb[0].mxu1 }
  0xeb   : > { %v2758_v40 = vpop.f32.mrb[1].mxu1 }
  0xec   : > { %v2760_v41 = vpop.f32.mrb[2].mxu1 }
  0xed   : > { %v2762_v42 = vpop.f32.mrb[3].mxu1 }
  0xf2   : > { %v2764_v43 = vpop.f32.mrb[4].mxu1 }
  0xf3   : > { %v2766_v44 = vpop.f32.mrb[5].mxu1 }
  0xf4   : > { %v2768_v45 = vpop.f32.mrb[6].mxu1 }
  0xf5   : > { %v2770_v46 = vpop.f32.mrb[7].mxu1 }
  0xfa   : > { %v2772_v47 = vpop.f32.mrb[8].mxu1 }
  0xfb   : > { %v2784_v50 = vpop.f32.mrb[9].mxu1 }
  0xfc   : > { %v2786_v51 = vpop.f32.mrb[10].mxu1 }
  0xfd   : > { %v2788_v52 = vpop.f32.mrb[11].mxu1 }
 0x102   : > { %v2798_v62 = vpop.f32.mrb[12].mxu1 }
 0x103   : > { %v2802_v1 = vpop.f32.mrb[13].mxu1 }
 0x104   : > { %v2804_v4 = vpop.f32.mrb[14].mxu1 }
 0x105   : > { %v2806_v7 = vpop.f32.mrb[15].mxu1 }
 0x107   : > { %v2228_v54 = vpop.f32.mrb[0].mxu0 }
 0x108   : > { %v2294_v55 = vadd.f32 %v2228_v54, %v2777_v48  ;;  %v873_v56 = vpop.f32.mrb[1].mxu0 }
 0x109   : > { %v2296_v57 = vadd.f32 %v2777_v48, %v873_v56  ;;  %v2229_v58 = vpop.f32.mrb[2].mxu0 }
 0x10a   : > { %v2295_v59 = vadd.f32 %v2294_v55, %v2782_v49  ;;  %v2299_v60 = vadd.f32 %v2792_v53, %v2229_v58  ;;  %v876_v61 = vpop.f32.mrb[3].mxu0  ;;  %v614_v55 = vadd.f32 %v2756_v39, %v2777_v48  ;;  %v606_v58 = vadd.f32 %v2777_v48, %v2758_v40 }
 0x10b   : > { %v2297_v63 = vadd.f32 %v2296_v57, %v2782_v49  ;;  %v2301_v0 = vadd.f32 %v2792_v53, %v876_v61  ;;  %v617_v39 = vadd.f32 %v2760_v41, %v2777_v48  ;;  %v609_v40 = vadd.f32 %v2777_v48, %v2762_v42 }
 0x10c   : > { %v1034_v2 = vmax.f32 %v2295_v59, 0.0  ;;  %v1035_v3 = vmax.f32 %v2299_v60, 0.0 }
 0x10d   : > { %v1032_v5 = vmax.f32 %v2297_v63, 0.0  ;;  %v1033_v6 = vmax.f32 %v2301_v0, 0.0  ;;  %v2336_v42 = vadd.f32 %v2782_v49, %v609_v40 }
 0x10e   : > { %v1065_v8 = vpack.c.bf16 %v1035_v3, %v1034_v2  ;;  %v2327_v3 = vadd.f32 %v2782_v49, %v614_v55 }
 0x10f   : > { %v1064_v9 = vpack.c.bf16 %v1033_v6, %v1032_v5  ;;  %v2232_v10 = vpop.f32.mrb[4].mxu0 }
 0x110   : > { %v2303_v11 = vadd.f32 %v2792_v53, %v2232_v10  ;;  %v889_v12 = vpop.f32.mrb[5].mxu0 }
 0x111   : > { %v2305_v13 = vadd.f32 %v2792_v53, %v889_v12  ;;  %v2233_v14 = vpop.f32.mrb[6].mxu0  ;;  %2260 = vmatprep.mubr.msk.bf16.mxu1 %vm1088_vm3, %v1064_v9 }
 0x112   : > { %v2307_v15 = vadd.f32 %v2792_v53, %v2233_v14  ;;  %v892_v16 = vpop.f32.mrb[7].mxu0  ;;  %2261 = vmatmul.mubr.msk.bf16.vlgmr.msra.gmra.mrb[16].mxu1 %vm1088_vm3, %v1065_v8  ;;  %v1038_v18 = vmax.f32 %v2303_v11, 0.0  ;;  %v2330_v8 = vadd.f32 %v2782_v49, %v606_v58  ;;  %v2333_v14 = vadd.f32 %v2782_v49, %v617_v39 }
 0x113   : > { %v2309_v17 = vadd.f32 %v2792_v53, %v892_v16  ;;  %v1036_v20 = vmax.f32 %v2305_v13, 0.0 }
 0x114   : > { %v1039_v19 = vmax.f32 %v2307_v15, 0.0  ;;  %v622_v15 = vadd.f32 %v2777_v48, %v2766_v44  ;;  %v625_v44 = vadd.f32 %v2777_v48, %v2770_v46 }
 0x115   : > { %v1037_v21 = vmax.f32 %v2309_v17, 0.0 }
 0x116   : > { %v1067_v22 = vpack.c.bf16 %v1039_v19, %v1038_v18  ;;  %v2348_v46 = vadd.f32 %v2782_v49, %v625_v44 }
 0x117   : > { %v1066_v23 = vpack.c.bf16 %v1037_v21, %v1036_v20  ;;  %v2236_v24 = vpop.f32.mrb[8].mxu0 }
 0x118   : > { %v2311_v25 = vadd.f32 %v2792_v53, %v2236_v24  ;;  %v905_v26 = vpop.f32.mrb[9].mxu0 }
 0x119   : > { %v2313_v27 = vadd.f32 %v2792_v53, %v905_v26  ;;  %v2237_v28 = vpop.f32.mrb[10].mxu0  ;;  %2264 = vmatprep.mubr.msk.bf16.mxu1 %vm1088_vm3, %v1066_v23 }
 0x11a   : > { %v2315_v29 = vadd.f32 %v2792_v53, %v2237_v28  ;;  %v908_v30 = vpop.f32.mrb[11].mxu0  ;;  %2265 = vmatmul.mubr.msk.bf16.gmra.mrb[20].mxu1 %vm1088_vm3, %v1067_v22  ;;  %v1042_v32 = vmax.f32 %v2311_v25, 0.0  ;;  %v2342_v25 = vadd.f32 %v2782_v49, %v622_v15 }
 0x11b   : > { %v2317_v31 = vadd.f32 %v2792_v53, %v908_v30  ;;  %v1040_v34 = vmax.f32 %v2313_v27, 0.0  ;;  %v646_v30 = vadd.f32 %v2772_v47, %v2777_v48  ;;  %v649_v47 = vadd.f32 %v2786_v51, %v2777_v48 }
 0x11c   : > { %v1043_v33 = vmax.f32 %v2315_v29, 0.0 }
 0x11d   : > { %v1041_v35 = vmax.f32 %v2317_v31, 0.0  ;;  %v2351_v55 = vadd.f32 %v2782_v49, %v646_v30  ;;  %v2357_v39 = vadd.f32 %v2782_v49, %v649_v47 }
 0x11e   : > { %v1069_v36 = vpack.c.bf16 %v1043_v33, %v1042_v32  ;;  %v638_v33 = vadd.f32 %v2777_v48, %v2784_v50  ;;  %v641_v50 = vadd.f32 %v2777_v48, %v2788_v52 }
 0x11f   : > { %v1068_v37 = vpack.c.bf16 %v1041_v35, %v1040_v34  ;;  %v2240_v38 = vpop.f32.mrb[12].mxu0 }
 0x120   : > { %v2319_v54 = vadd.f32 %v2792_v53, %v2240_v38  ;;  %v921_v56 = vpop.f32.mrb[13].mxu0  ;;  %v2354_v58 = vadd.f32 %v2782_v49, %v638_v33  ;;  %v2360_v52 = vadd.f32 %v2782_v49, %v641_v50 }
 0x121   : > { %v2321_v57 = vadd.f32 %v2792_v53, %v921_v56  ;;  %v2241_v59 = vpop.f32.mrb[14].mxu0  ;;  %2268 = vmatprep.mubr.msk.bf16.mxu1 %vm1088_vm3, %v1068_v37 }
 0x122   : > { %v2323_v60 = vadd.f32 %v2792_v53, %v2241_v59  ;;  %v924_v61 = vpop.f32.mrb[15].mxu0  ;;  %2269 = vmatmul.mubr.msk.bf16.gmra.mrb[24].mxu1 %vm1088_vm3, %v1069_v36  ;;  %v1046_v0 = vmax.f32 %v2319_v54, 0.0 }
 0x123   : > { %v2325_v63 = vadd.f32 %v2792_v53, %v924_v61  ;;  %v1044_v5 = vmax.f32 %v2321_v57, 0.0  ;;  %v630_v53 = vadd.f32 %v2764_v43, %v2777_v48  ;;  %v633_v43 = vadd.f32 %v2768_v45, %v2777_v48 }
 0x124   : > { %v1047_v2 = vmax.f32 %v2323_v60, 0.0 }
 0x125   : > { %v1045_v6 = vmax.f32 %v2325_v63, 0.0  ;;  %v2339_v22 = vadd.f32 %v2782_v49, %v630_v53  ;;  %v2345_v32 = vadd.f32 %v2782_v49, %v633_v43 }
 0x126   : > { %v1071_v9 = vpack.c.bf16 %v1047_v2, %v1046_v0  ;;  %v662_v0 = vadd.f32 %v2798_v62, %v2777_v48  ;;  %v665_v62 = vadd.f32 %v2804_v4, %v2777_v48 }
 0x127   : > { %v1070_v10 = vpack.c.bf16 %v1045_v6, %v1044_v5  ;;  %v2244_v11 = vpop.f32.mrb[16].mxu0 }
 0x128   : > { %v2328_v12 = vadd.f32 %v2327_v3, %v2244_v11  ;;  %v937_v13 = vpop.f32.mrb[17].mxu0  ;;  %v654_v3 = vadd.f32 %v2777_v48, %v2802_v1  ;;  %v2363_v11 = vadd.f32 %v2782_v49, %v662_v0  ;;  %v657_v1 = vadd.f32 %v2777_v48, %v2806_v7 }
 0x129   : > { %v2331_v41 = vadd.f32 %v2330_v8, %v937_v13  ;;  %v2245_v16 = vpop.f32.mrb[18].mxu0  ;;  %2272 = vmatprep.mubr.msk.bf16.mxu1 %vm1088_vm3, %v1070_v10 }
 0x12a   : > { %v2334_v17 = vadd.f32 %v2333_v14, %v2245_v16  ;;  %v940_v18 = vpop.f32.mrb[19].mxu0  ;;  %2273 = vmatmul.mubr.msk.bf16.gmra.mrb[28].mxu1 %vm1088_vm3, %v1071_v9  ;;  %v1050_v20 = vmax.f32 %v2328_v12, 0.0  ;;  %v2366_v13 = vadd.f32 %v2782_v49, %v654_v3  ;;  %v2372_v4 = vadd.f32 %v2782_v49, %v657_v1 }
 0x12b   : > { %v2337_v19 = vadd.f32 %v2336_v42, %v940_v18  ;;  %v1048_v23 = vmax.f32 %v2331_v41, 0.0 }
 0x12c   : > { %v1051_v21 = vmax.f32 %v2334_v17, 0.0  ;;  %v2369_v17 = vadd.f32 %v2782_v49, %v665_v62 }
 0x12d   : > { %v1049_v24 = vmax.f32 %v2337_v19, 0.0 }
 0x12e   : > { %v1073_v26 = vpack.c.bf16 %v1051_v21, %v1050_v20 }
 0x12f   : > { %v1072_v27 = vpack.c.bf16 %v1049_v24, %v1048_v23  ;;  %v2248_v28 = vpop.f32.mrb[20].mxu0 }
 0x130   : > { %v2340_v29 = vadd.f32 %v2339_v22, %v2248_v28  ;;  %v953_v31 = vpop.f32.mrb[21].mxu0 }
 0x131   : > { %v2343_v45 = vadd.f32 %v2342_v25, %v953_v31  ;;  %v2249_v34 = vpop.f32.mrb[22].mxu0  ;;  %2276 = vmatprep.mubr.msk.bf16.mxu1 %vm1088_vm3, %v1072_v27  ;;  %v2605_v25 = vmov 0  }
 0x132   : > { %v2346_v35 = vadd.f32 %v2345_v32, %v2249_v34  ;;  %v956_v36 = vpop.f32.mrb[23].mxu0  ;;  %2277 = vmatmul.mubr.msk.bf16.gmra.mrb[32].mxu1 %vm1088_vm3, %v1073_v26  ;;  %v1054_v38 = vmax.f32 %v2340_v29, 0.0  ;;  %2403 = vset.pattern.permute.xlu1 %v2605_v25  ;;  %v2884_v26 = vld [vmem:[#allocation2] ss:$0 sm:$0xff] }
 0x133   : > { %v2349_v37 = vadd.f32 %v2348_v46, %v956_v36  ;;  %v1052_v56 = vmax.f32 %v2343_v45, 0.0  ;;  %2404 = vset.pattern.permute.xlu0 %v2605_v25 }
 0x134   : > { %v1055_v54 = vmax.f32 %v2346_v35, 0.0 }
 0x135   : > { %v1053_v57 = vmax.f32 %v2349_v37, 0.0 }
 0x136   : > { %v1075_v59 = vpack.c.bf16 %v1055_v54, %v1054_v38 }
 0x137   : > { %v1074_v60 = vpack.c.bf16 %v1053_v57, %v1052_v56  ;;  %v2252_v61 = vpop.f32.mrb[24].mxu0 }
 0x138   : > { %v2352_v63 = vadd.f32 %v2351_v55, %v2252_v61  ;;  %v969_v2 = vpop.f32.mrb[25].mxu0 }
 0x139   : > { %v2355_v51 = vadd.f32 %v2354_v58, %v969_v2  ;;  %v2253_v5 = vpop.f32.mrb[26].mxu0  ;;  %2280 = vmatprep.mubr.msk.bf16.mxu1 %vm1088_vm3, %v1074_v60 }
 0x13a   : > { %v2358_v6 = vadd.f32 %v2357_v39, %v2253_v5  ;;  %v972_v40 = vpop.f32.mrb[27].mxu0  ;;  %2281 = vmatmul.mubr.msk.bf16.gmra.mrb[36].mxu1 %vm1088_vm3, %v1075_v59  ;;  %v1058_v9 = vmax.f32 %v2352_v63, 0.0 }
 0x13b   : > { %v2361_v8 = vadd.f32 %v2360_v52, %v972_v40  ;;  %v1056_v12 = vmax.f32 %v2355_v51, 0.0 }
 0x13c   : > { %v1059_v10 = vmax.f32 %v2358_v6, 0.0 }
 0x13d   : > { %v1057_v53 = vmax.f32 %v2361_v8, 0.0 }
 0x13e   : > { %v1077_v14 = vpack.c.bf16 %v1059_v10, %v1058_v9 }
 0x13f   : > { %v1076_v41 = vpack.c.bf16 %v1057_v53, %v1056_v12  ;;  %v2256_v15 = vpop.f32.mrb[28].mxu0 }
 0x140   : > { %v2364_v16 = vadd.f32 %v2363_v11, %v2256_v15  ;;  %v985_v42 = vpop.f32.mrb[29].mxu0 }
 0x141   : > { %v2367_v18 = vadd.f32 %v2366_v13, %v985_v42  ;;  %v2257_v19 = vpop.f32.mrb[30].mxu0  ;;  %2284 = vmatprep.mubr.msk.bf16.mxu1 %vm1088_vm3, %v1076_v41 }
 0x142   : > { %v2370_v20 = vadd.f32 %v2369_v17, %v2257_v19  ;;  %v988_v21 = vpop.f32.mrb[31].mxu0  ;;  %2285 = vmatmul.mubr.msk.bf16.gmra.mrb[40].mxu1 %vm1088_vm3, %v1077_v14  ;;  %v1062_v7 = vmax.f32 %v2364_v16, 0.0 }
 0x143   : > { %v2373_v48 = vadd.f32 %v2372_v4, %v988_v21  ;;  %v1060_v22 = vmax.f32 %v2367_v18, 0.0 }
 0x144   : > { %v1063_v43 = vmax.f32 %v2370_v20, 0.0 }
 0x145   : > { %v1061_v23 = vmax.f32 %v2373_v48, 0.0 }
 0x146   : > { %v1079_v24 = vpack.c.bf16 %v1063_v43, %v1062_v7 }
 0x147   : > { %v1078_v44 = vpack.c.bf16 %v1061_v23, %v1060_v22 }
 0x149   : > { %2288 = vmatprep.mubr.msk.bf16.mxu1 %vm1088_vm3, %v1078_v44 }
 0x14a   : > { %2289 = vmatmul.mubr.msk.bf16.gmra.mrb[44].mxu1 %vm1088_vm3, %v1079_v24 }
 0x1e5   : > { %v2262_v49 = vpop.f32.mrb[16].mxu1 }
 0x1e6   : > { %v1184_v27 = vadd.f32 %v2262_v49, %v2884_v26  ;;  %v1175_v28 = vpop.f32.mrb[17].mxu1 }
 0x1e7   : > { %v1176_v29 = vadd.f32 %v2884_v26, %v1175_v28  ;;  %v2263_v30 = vpop.f32.mrb[18].mxu1 }
 0x1e8   : > { %v2043_v31 = vmul.f32 -1.442695, %v1184_v27  ;;  %v1187_v32 = vadd.f32 %v2263_v30, %v2884_v26  ;;  %v1178_v45 = vpop.f32.mrb[19].mxu1 }
 0x1e9   : > { %v2041_v33 = vmul.f32 -1.442695, %v1176_v29  ;;  %v1179_v34 = vadd.f32 %v2884_v26, %v1178_v45 }
 0x1ea   : > { %2453 = vpow2.f32 %v2043_v31  ;;  %v2044_v46 = vmul.f32 -1.442695, %v1187_v32 }
 0x1eb   : > { %2455 = vpow2.f32 %v2041_v33  ;;  %v2042_v35 = vmul.f32 -1.442695, %v1179_v34 }
 0x1ec   : > { %2457 = vpow2.f32 %v2044_v46 }
 0x1ed   : > { %2459 = vpow2.f32 %v2042_v35  ;;  %v2266_v36 = vpop.f32.mrb[20].mxu1 }
 0x1ee   : > { %v1200_v37 = vadd.f32 %v2266_v36, %v2884_v26  ;;  %v1191_v38 = vpop.f32.mrb[21].mxu1 }
 0x1ef   : > { %v1192_v54 = vadd.f32 %v2884_v26, %v1191_v38  ;;  %v2267_v47 = vpop.f32.mrb[22].mxu1 }
 0x1f0   : > { %v2047_v55 = vmul.f32 -1.442695, %v1200_v37  ;;  %v1203_v56 = vadd.f32 %v2267_v47, %v2884_v26  ;;  %v1194_v57 = vpop.f32.mrb[23].mxu1 }
 0x1f1   : > { %v2045_v50 = vmul.f32 -1.442695, %v1192_v54  ;;  %v1195_v58 = vadd.f32 %v2884_v26, %v1194_v57 }
 0x1f2   : > { %2461 = vpow2.f32 %v2047_v55  ;;  %v2048_v59 = vmul.f32 -1.442695, %v1203_v56 }
 0x1f3   : > { %2463 = vpow2.f32 %v2045_v50  ;;  %v2046_v60 = vmul.f32 -1.442695, %v1195_v58 }
 0x1f4   : > { %v2454_v61 = vpop.eup %2453  ;;  %2465 = vpow2.f32 %v2048_v59 }
 0x1f5   : > { %v2456_v63 = vpop.eup %2455  ;;  %v1400_v0 = vadd.f32 1.0, %v2454_v61  ;;  %2467 = vpow2.f32 %v2046_v60  ;;  %v2270_v2 = vpop.f32.mrb[24].mxu1 }
 0x1f6   : > { %v2458_v39 = vpop.eup %2457  ;;  %v1398_v51 = vadd.f32 1.0, %v2456_v63  ;;  %v1216_v3 = vadd.f32 %v2270_v2, %v2884_v26  ;;  %v1207_v5 = vpop.f32.mrb[25].mxu1 }
 0x1f7   : > { %v2460_v52 = vpop.eup %2459  ;;  %2469 = vrcp.f32 %v1400_v0  ;;  %v1401_v6 = vadd.f32 1.0, %v2458_v39  ;;  %v1208_v40 = vadd.f32 %v2884_v26, %v1207_v5  ;;  %v2271_v8 = vpop.f32.mrb[26].mxu1 }
 0x1f8   : > { %2471 = vrcp.f32 %v1398_v51  ;;  %v1399_v9 = vadd.f32 1.0, %v2460_v52  ;;  %v2051_v10 = vmul.f32 -1.442695, %v1216_v3  ;;  %v1219_v62 = vadd.f32 %v2271_v8, %v2884_v26  ;;  %v1210_v11 = vpop.f32.mrb[27].mxu1 }
 0x1f9   : > { %2473 = vrcp.f32 %v1401_v6  ;;  %v2049_v12 = vmul.f32 -1.442695, %v1208_v40  ;;  %v1211_v53 = vadd.f32 %v2884_v26, %v1210_v11 }
 0x1fa   : > { %2475 = vrcp.f32 %v1399_v9  ;;  %v2052_v1 = vmul.f32 -1.442695, %v1219_v62 }
 0x1fb   : > { %2477 = vpow2.f32 %v2051_v10  ;;  %v2050_v13 = vmul.f32 -1.442695, %v1211_v53 }
 0x1fc   : > { %v2462_v14 = vpop.eup %2461  ;;  %2479 = vpow2.f32 %v2049_v12 }
 0x1fd   : > { %v2464_v41 = vpop.eup %2463  ;;  %v1404_v15 = vadd.f32 1.0, %v2462_v14  ;;  %2481 = vpow2.f32 %v2052_v1  ;;  %v2274_v16 = vpop.f32.mrb[28].mxu1 }
 0x1fe   : > { %v2466_v42 = vpop.eup %2465  ;;  %v1402_v17 = vadd.f32 1.0, %v2464_v41  ;;  %2483 = vpow2.f32 %v2050_v13  ;;  %v1232_v18 = vadd.f32 %v2274_v16, %v2884_v26  ;;  %v1223_v19 = vpop.f32.mrb[29].mxu1 }
 0x1ff   : > { %v2468_v4 = vpop.eup %2467  ;;  %2485 = vrcp.f32 %v1404_v15  ;;  %v1405_v20 = vadd.f32 1.0, %v2466_v42  ;;  %v1224_v21 = vadd.f32 %v2884_v26, %v1223_v19  ;;  %v2275_v48 = vpop.f32.mrb[30].mxu1 }
 0x200   : > { %2487 = vrcp.f32 %v1402_v17  ;;  %v1403_v7 = vadd.f32 1.0, %v2468_v4  ;;  %v2055_v43 = vmul.f32 -1.442695, %v1232_v18  ;;  %v1235_v22 = vadd.f32 %v2275_v48, %v2884_v26  ;;  %v1226_v23 = vpop.f32.mrb[31].mxu1 }
 0x201   : > { %v2470_v24 = vpop.eup %2469  ;;  %2489 = vrcp.f32 %v1405_v20  ;;  %v2053_v44 = vmul.f32 -1.442695, %v1224_v21  ;;  %v1227_v25 = vadd.f32 %v2884_v26, %v1226_v23 }
 0x202   : > { %v2472_v49 = vpop.eup %2471  ;;  %2491 = vrcp.f32 %v1403_v7  ;;  %v2056_v27 = vmul.f32 -1.442695, %v1235_v22  ;;  %1538 = vperm.xlu1 %2403, %v2470_v24  }
 0x203   : > { %v2474_v28 = vpop.eup %2473  ;;  %2493 = vpow2.f32 %v2055_v43  ;;  %v2054_v29 = vmul.f32 -1.442695, %v1227_v25  ;;  %1528 = vperm.xlu0 %2404, %v2472_v49  }
 0x204   : > { %v2476_v30 = vpop.eup %2475  ;;  %2495 = vpow2.f32 %v2053_v44 }
 0x205   : > { %v2478_v31 = vpop.eup %2477  ;;  %2497 = vpow2.f32 %v2056_v27  ;;  %v2278_v32 = vpop.f32.mrb[32].mxu1 }
 0x206   : > { %v2480_v45 = vpop.eup %2479  ;;  %v1408_v33 = vadd.f32 1.0, %v2478_v31  ;;  %2499 = vpow2.f32 %v2054_v29  ;;  %v1248_v34 = vadd.f32 %v2278_v32, %v2884_v26  ;;  %1543 = vperm.xlu1 %2403, %v2474_v28   ;;  %v1239_v46 = vpop.f32.mrb[33].mxu1 }
 0x207   : > { %v2482_v35 = vpop.eup %2481  ;;  %v1406_v36 = vadd.f32 1.0, %v2480_v45  ;;  %v1240_v37 = vadd.f32 %v2884_v26, %v1239_v46  ;;  %1533 = vperm.xlu0 %2404, %v2476_v30   ;;  %v2279_v38 = vpop.f32.mrb[34].mxu1 }
 0x208   : > { %v2484_v54 = vpop.eup %2483  ;;  %2501 = vrcp.f32 %v1408_v33  ;;  %v1409_v47 = vadd.f32 1.0, %v2482_v35  ;;  %v2059_v55 = vmul.f32 -1.442695, %v1248_v34  ;;  %v1251_v56 = vadd.f32 %v2279_v38, %v2884_v26  ;;  %v1242_v57 = vpop.f32.mrb[35].mxu1 }
 0x209   : > { %v2486_v50 = vpop.eup %2485  ;;  %2503 = vrcp.f32 %v1406_v36  ;;  %v1407_v58 = vadd.f32 1.0, %v2484_v54  ;;  %v2057_v59 = vmul.f32 -1.442695, %v1240_v37  ;;  %v1243_v60 = vadd.f32 %v2884_v26, %v1242_v57 }
 0x20a   : > { %v2488_v61 = vpop.eup %2487  ;;  %2505 = vrcp.f32 %v1409_v47  ;;  %v2060_v63 = vmul.f32 -1.442695, %v1251_v56 }
 0x20b   : > { %v2490_v0 = vpop.eup %2489  ;;  %2507 = vrcp.f32 %v1407_v58  ;;  %v2058_v2 = vmul.f32 -1.442695, %v1243_v60  ;;  %1558 = vperm.xlu0 %2404, %v2486_v50  }
 0x20c   : > { %v2492_v39 = vpop.eup %2491  ;;  %2509 = vpow2.f32 %v2059_v55  ;;  %1563 = vperm.xlu1 %2403, %v2490_v0  }
 0x20d   : > { %v2494_v51 = vpop.eup %2493  ;;  %2511 = vpow2.f32 %v2057_v59  ;;  %v2282_v3 = vpop.f32.mrb[36].mxu1 }
 0x20e   : > { %v2496_v5 = vpop.eup %2495  ;;  %v1412_v52 = vadd.f32 1.0, %v2494_v51  ;;  %2513 = vpow2.f32 %v2060_v63  ;;  %v1264_v6 = vadd.f32 %v2282_v3, %v2884_v26  ;;  %v1255_v40 = vpop.f32.mrb[37].mxu1 }
 0x20f   : > { %v2498_v8 = vpop.eup %2497  ;;  %v1410_v9 = vadd.f32 1.0, %v2496_v5  ;;  %2515 = vpow2.f32 %v2058_v2  ;;  %v1256_v10 = vadd.f32 %v2884_v26, %v1255_v40  ;;  %1548 = vperm.xlu0 %2404, %v2488_v61   ;;  %v2283_v62 = vpop.f32.mrb[38].mxu1 }
 0x210   : > { %v2500_v11 = vpop.eup %2499  ;;  %2517 = vrcp.f32 %v1412_v52  ;;  %v1413_v12 = vadd.f32 1.0, %v2498_v8  ;;  %v2063_v53 = vmul.f32 -1.442695, %v1264_v6  ;;  %v1267_v1 = vadd.f32 %v2283_v62, %v2884_v26  ;;  %1553 = vperm.xlu1 %2403, %v2492_v39   ;;  %v1258_v13 = vpop.f32.mrb[39].mxu1 }
 0x211   : > { %2519 = vrcp.f32 %v1410_v9  ;;  %v1411_v14 = vadd.f32 1.0, %v2500_v11  ;;  %v2061_v41 = vmul.f32 -1.442695, %v1256_v10  ;;  %v1259_v15 = vadd.f32 %v2884_v26, %v1258_v13 }
 0x212   : > { %v2502_v16 = vpop.eup %2501  ;;  %2521 = vrcp.f32 %v1413_v12  ;;  %v2064_v42 = vmul.f32 -1.442695, %v1267_v1 }
 0x213   : > { %v2504_v17 = vpop.eup %2503  ;;  %2523 = vrcp.f32 %v1411_v14  ;;  %v2062_v18 = vmul.f32 -1.442695, %v1259_v15  ;;  %1578 = vperm.xlu0 %2404, %v2502_v16  }
 0x214   : > { %v2506_v19 = vpop.eup %2505  ;;  %2525 = vpow2.f32 %v2063_v53 }
 0x215   : > { %v2508_v4 = vpop.eup %2507  ;;  %2527 = vpow2.f32 %v2061_v41  ;;  %1583 = vperm.xlu1 %2403, %v2506_v19   ;;  %v2286_v20 = vpop.f32.mrb[40].mxu1 }
 0x216   : > { %v2510_v21 = vpop.eup %2509  ;;  %2529 = vpow2.f32 %v2064_v42  ;;  %v1280_v48 = vadd.f32 %v2286_v20, %v2884_v26  ;;  %v1271_v7 = vpop.f32.mrb[41].mxu1 }
 0x217   : > { %v2512_v43 = vpop.eup %2511  ;;  %v1416_v22 = vadd.f32 1.0, %v2510_v21  ;;  %2531 = vpow2.f32 %v2062_v18  ;;  %v1272_v23 = vadd.f32 %v2884_v26, %v1271_v7  ;;  %1568 = vperm.xlu0 %2404, %v2504_v17   ;;  %v2287_v24 = vpop.f32.mrb[42].mxu1 }
 0x218   : > { %v2514_v44 = vpop.eup %2513  ;;  %v1414_v25 = vadd.f32 1.0, %v2512_v43  ;;  %v1283_v49 = vadd.f32 %v2287_v24, %v2884_v26  ;;  %v1274_v27 = vpop.f32.mrb[43].mxu1  ;;  %v2067_v30 = vmul.f32 -1.442695, %v1280_v48 }
 0x219   : > { %v2516_v28 = vpop.eup %2515  ;;  %2533 = vrcp.f32 %v1416_v22  ;;  %v1417_v29 = vadd.f32 1.0, %v2514_v44  ;;  %1573 = vperm.xlu1 %2403, %v2508_v4   ;;  %v1275_v31 = vadd.f32 %v2884_v26, %v1274_v27  ;;  %v2065_v33 = vmul.f32 -1.442695, %v1272_v23 }
 0x21a   : > { %v2518_v32 = vpop.eup %2517  ;;  %2535 = vrcp.f32 %v1414_v25  ;;  %v1415_v45 = vadd.f32 1.0, %v2516_v28  ;;  %v2068_v46 = vmul.f32 -1.442695, %v1283_v49  ;;  %v2581_v28 = vld [vmem:[%s2708_s21 + $0x8] sm:$0xff]  }
 0x21b   : > { %v2520_v34 = vpop.eup %2519  ;;  %2537 = vrcp.f32 %v1417_v29  ;;  %1598 = vperm.xlu0 %2404, %v2518_v32   ;;  %v2066_v36 = vmul.f32 -1.442695, %v1275_v31  ;;  %v1496_v29 = vunpack.c.l.bf16 %v2581_v28 }
 0x21c   : > { %v2522_v35 = vpop.eup %2521  ;;  %2539 = vrcp.f32 %v1415_v45 }
 0x21d   : > { %v2524_v37 = vpop.eup %2523  ;;  %2541 = vpow2.f32 %v2067_v30  ;;  %1603 = vperm.xlu1 %2403, %v2522_v35   ;;  %v2290_v38 = vpop.f32.mrb[44].mxu1  ;;  %v2582_v30 = vld [vmem:[%s2708_s21] sm:$0xff]  }
 0x21e   : > { %v2526_v54 = vpop.eup %2525  ;;  %2543 = vpow2.f32 %v2065_v33  ;;  %v1296_v47 = vadd.f32 %v2290_v38, %v2884_v26  ;;  %v1287_v55 = vpop.f32.mrb[45].mxu1  ;;  %v1494_v31 = vunpack.c.l.bf16 %v2582_v30  ;;  %v1495_v35 = vunpack.c.h.bf16 %v2582_v30 }
 0x21f   : > { %v2528_v56 = vpop.eup %2527  ;;  %v1420_v57 = vadd.f32 1.0, %v2526_v54  ;;  %2545 = vpow2.f32 %v2068_v46  ;;  %v1288_v50 = vadd.f32 %v2884_v26, %v1287_v55  ;;  %1588 = vperm.xlu0 %2404, %v2520_v34   ;;  %v2291_v58 = vpop.f32.mrb[46].mxu1  ;;  %v1497_v34 = vunpack.c.h.bf16 %v2581_v28 }
 0x220   : > { %v2530_v59 = vpop.eup %2529  ;;  %v1418_v60 = vadd.f32 1.0, %v2528_v56  ;;  %2547 = vpow2.f32 %v2066_v36  ;;  %v1299_v61 = vadd.f32 %v2291_v58, %v2884_v26  ;;  %v1290_v63 = vpop.f32.mrb[47].mxu1  ;;  %v2071_v39 = vmul.f32 -1.442695, %v1296_v47  ;;  %v2583_v56 = vld [vmem:[%s2708_s21 + $0x18] sm:$0xff]  }
 0x221   : > { %v2532_v0 = vpop.eup %2531  ;;  %2549 = vrcp.f32 %v1420_v57  ;;  %v1421_v2 = vadd.f32 1.0, %v2530_v59  ;;  %1593 = vperm.xlu1 %2403, %v2524_v37   ;;  %v1291_v51 = vadd.f32 %v2884_v26, %v1290_v63  ;;  %v2069_v5 = vmul.f32 -1.442695, %v1288_v50 }
 0x222   : > { %2551 = vrcp.f32 %v1418_v60  ;;  %v1419_v3 = vadd.f32 1.0, %v2532_v0  ;;  %v2072_v6 = vmul.f32 -1.442695, %v1299_v61  ;;  %v1500_v57 = vunpack.c.l.bf16 %v2583_v56  ;;  %v2584_v0 = vld [vmem:[%s2708_s21 + $0x10] sm:$0xff]  }
 0x223   : > { %v2534_v52 = vpop.eup %2533  ;;  %2553 = vrcp.f32 %v1421_v2  ;;  %v2070_v8 = vmul.f32 -1.442695, %v1291_v51  ;;  %v1501_v58 = vunpack.c.h.bf16 %v2583_v56  ;;  %v1498_v2 = vunpack.c.l.bf16 %v2584_v0 }
 0x224   : > { %v2536_v40 = vpop.eup %2535  ;;  %2555 = vrcp.f32 %v1419_v3  ;;  %1618 = vperm.xlu0 %2404, %v2534_v52   ;;  %v1499_v51 = vunpack.c.h.bf16 %v2584_v0 }
 0x225   : > { %v2538_v9 = vpop.eup %2537  ;;  %2557 = vpow2.f32 %v2071_v39 }
 0x226   : > { %v2540_v10 = vpop.eup %2539  ;;  %2559 = vpow2.f32 %v2069_v5  ;;  %1623 = vperm.xlu1 %2403, %v2538_v9  }
 0x227   : > { %v2542_v62 = vpop.eup %2541  ;;  %2561 = vpow2.f32 %v2072_v6 }
 0x228   : > { %v2544_v11 = vpop.eup %2543  ;;  %v1424_v12 = vadd.f32 1.0, %v2542_v62  ;;  %2563 = vpow2.f32 %v2070_v8  ;;  %1608 = vperm.xlu0 %2404, %v2536_v40   ;;  %v2585_v8 = vld [vmem:[%s2708_s21 + $0x28] sm:$0xff]  }
 0x229   : > { %v2546_v26 = vpop.eup %2545  ;;  %v1422_v1 = vadd.f32 1.0, %v2544_v11  ;;  %v1504_v9 = vunpack.c.l.bf16 %v2585_v8  ;;  %v1505_v11 = vunpack.c.h.bf16 %v2585_v8 }
 0x22a   : > { %v2548_v53 = vpop.eup %2547  ;;  %2565 = vrcp.f32 %v1424_v12  ;;  %v1425_v13 = vadd.f32 1.0, %v2546_v26  ;;  %1613 = vperm.xlu1 %2403, %v2540_v10  }
 0x22b   : > { %v2550_v14 = vpop.eup %2549  ;;  %v1423_v15 = vadd.f32 1.0, %v2548_v53 }
 0x22c   : > { %v2552_v41 = vpop.eup %2551  ;;  %2567 = vrcp.f32 %v1425_v13  ;;  %1638 = vperm.xlu0 %2404, %v2550_v14  }
 0x22d   : > { %v2554_v16 = vpop.eup %2553  ;;  %2569 = vrcp.f32 %v1422_v1  ;;  %v2586_v1 = vld [vmem:[%s2708_s21 + $0x20] sm:$0xff]  }
 0x22e   : > { %v2556_v42 = vpop.eup %2555  ;;  %1643 = vperm.xlu1 %2403, %v2554_v16   ;;  %2571 = vrcp.f32 %v1423_v15  ;;  %v1502_v13 = vunpack.c.l.bf16 %v2586_v1  ;;  %v1503_v16 = vunpack.c.h.bf16 %v2586_v1  ;;  %v2593_v1 = vld [vmem:[%s2708_s21 + $0x68] sm:$0xff]  }
 0x22f   : > { %v2558_v17 = vpop.eup %2557 }
 0x230   : > { %v2560_v18 = vpop.eup %2559  ;;  %1628 = vperm.xlu0 %2404, %v2552_v41   ;;  %v1428_v21 = vadd.f32 1.0, %v2558_v17 }
 0x231   : > { %v2562_v19 = vpop.eup %2561  ;;  %v1426_v4 = vadd.f32 1.0, %v2560_v18 }
 0x232   : > { %v2564_v20 = vpop.eup %2563  ;;  %1633 = vperm.xlu1 %2403, %v2556_v42   ;;  %v1429_v43 = vadd.f32 1.0, %v2562_v19  ;;  %v2587_v19 = vld [vmem:[%s2708_s21 + $0x38] sm:$0xff]  }
 0x233   : > { %2573 = vrcp.f32 %v1426_v4  ;;  %v1427_v48 = vadd.f32 1.0, %v2564_v20  ;;  %v1508_v4 = vunpack.c.l.bf16 %v2587_v19 }
 0x234   : > { %v2566_v7 = vpop.eup %2565 }
 0x235   : > { %2575 = vrcp.f32 %v1427_v48  ;;  %1658 = vperm.xlu0 %2404, %v2566_v7   ;;  %v1509_v7 = vunpack.c.h.bf16 %v2587_v19 }
 0x236   : > { %v2568_v22 = vpop.eup %2567  ;;  %2577 = vrcp.f32 %v1428_v21 }
 0x237   : > { %1663 = vperm.xlu1 %2403, %v2568_v22   ;;  %v2570_v23 = vpop.eup %2569  ;;  %2579 = vrcp.f32 %v1429_v43 }
 0x238   : > { %v2572_v24 = vpop.eup %2571 }
 0x239   : > { %1648 = vperm.xlu0 %2404, %v2570_v23  }
 0x23b   : > { %1653 = vperm.xlu1 %2403, %v2572_v24   ;;  %v2588_v24 = vld [vmem:[%s2708_s21 + $0x30] sm:$0xff]  }
 0x23c   : > { %v1507_v28 = vunpack.c.h.bf16 %v2588_v24 }
 0x23d   : > { %v2574_v44 = vpop.eup %2573 }
 0x23e   : > { %1668 = vperm.xlu0 %2404, %v2574_v44   ;;  %v1506_v44 = vunpack.c.l.bf16 %v2588_v24  ;;  %v2595_v24 = vld [vmem:[%s2708_s21 + $0x70] sm:$0xff]  }
 0x23f   : > { %v2576_v25 = vpop.eup %2575 }
 0x240   : > { %1673 = vperm.xlu1 %2403, %v2576_v25   ;;  %v2578_v49 = vpop.eup %2577 }
 0x241   : > { %v2580_v27 = vpop.eup %2579 }
 0x242   : > { %1678 = vperm.xlu0 %2404, %v2578_v49  }
 0x244   : > { %1683 = vperm.xlu1 %2403, %v2580_v27  }
 0x281   : > { %v1539_v32 = vpop.permute.xlu1 %1538 }
 0x282   : > { %v1688_v45 = vmul.f32 %v1539_v32, %v1496_v29  ;;  %v1529_v33 = vpop.permute.xlu0 %1528 }
 0x283   : > { %v1686_v46 = vmul.f32 %v1529_v33, %v1494_v31 }
 0x284   : > { %v2109_v36 = vpack.c.bf16 %v1688_v45, %v1688_v45  ;;  %v2589_v45 = vld [vmem:[%s2708_s21 + $0x48] sm:$0xff]  }
 0x285   : > { %v2107_v37 = vpack.c.bf16 %v1686_v46, %v1686_v46  ;;  %v1544_v38 = vpop.permute.xlu1 %1543  ;;  %v1512_v33 = vunpack.c.l.bf16 %v2589_v45 }
 0x286   : > { %1849 = vst.msk [vmem:[%s2924_s28 + $0x8] sm:$0xf] %vm1846_vm4, %v2109_v36  ;;  %v1689_v54 = vmul.f32 %v1544_v38, %v1497_v34  ;;  %v1534_v47 = vpop.permute.xlu0 %1533 }
 0x287   : > { %1847 = vst.msk [vmem:[%s2924_s28] sm:$0xf] %vm1846_vm4, %v2107_v37  ;;  %v1687_v55 = vmul.f32 %v1534_v47, %v1495_v35  ;;  %v1513_v35 = vunpack.c.h.bf16 %v2589_v45 }
 0x288   : > { %v2110_v50 = vpack.c.bf16 %v1689_v54, %v1689_v54  ;;  %v2590_v54 = vld [vmem:[%s2708_s21 + $0x40] sm:$0xff]  }
 0x289   : > { %v2108_v59 = vpack.c.bf16 %v1687_v55, %v1687_v55  ;;  %v1510_v47 = vunpack.c.l.bf16 %v2590_v54 }
 0x28a   : > { %1850 = vst.msk [vmem:[%s2924_s28 + $0xc] sm:$0xf] %vm1846_vm4, %v2110_v50  ;;  %v1559_v60 = vpop.permute.xlu0 %1558  ;;  %v1511_v50 = vunpack.c.h.bf16 %v2590_v54 }
 0x28b   : > { %1848 = vst.msk [vmem:[%s2924_s28 + $0x4] sm:$0xf] %vm1846_vm4, %v2108_v59  ;;  %v1692_v61 = vmul.f32 %v1559_v60, %v1500_v57  ;;  %v1564_v63 = vpop.permute.xlu1 %1563 }
 0x28c   : > { %v1693_v39 = vmul.f32 %v1564_v63, %v1501_v58 }
 0x28d   : > { %v2113_v3 = vpack.c.bf16 %v1692_v61, %v1692_v61  ;;  %v2591_v61 = vld [vmem:[%s2708_s21 + $0x58] sm:$0xff]  }
 0x28e   : > { %v2114_v5 = vpack.c.bf16 %v1693_v39, %v1693_v39  ;;  %v1549_v52 = vpop.permute.xlu0 %1548  ;;  %v1516_v63 = vunpack.c.l.bf16 %v2591_v61 }
 0x28f   : > { %1853 = vst.msk [vmem:[%s2924_s28 + $0x18] sm:$0xf] %vm1846_vm4, %v2113_v3  ;;  %v1690_v6 = vmul.f32 %v1549_v52, %v1498_v2  ;;  %v1554_v40 = vpop.permute.xlu1 %1553 }
 0x290   : > { %1854 = vst.msk [vmem:[%s2924_s28 + $0x1c] sm:$0xf] %vm1846_vm4, %v2114_v5  ;;  %v1691_v10 = vmul.f32 %v1554_v40, %v1499_v51  ;;  %v1517_v51 = vunpack.c.h.bf16 %v2591_v61 }
 0x291   : > { %v2111_v62 = vpack.c.bf16 %v1690_v6, %v1690_v6  ;;  %v2592_v6 = vld [vmem:[%s2708_s21 + $0x50] sm:$0xff]  }
 0x292   : > { %v2112_v12 = vpack.c.bf16 %v1691_v10, %v1691_v10  ;;  %v1579_v26 = vpop.permute.xlu0 %1578  ;;  %v1514_v40 = vunpack.c.l.bf16 %v2592_v6 }
 0x293   : > { %1851 = vst.msk [vmem:[%s2924_s28 + $0x10] sm:$0xf] %vm1846_vm4, %v2111_v62  ;;  %v1696_v53 = vmul.f32 %v1579_v26, %v1504_v9  ;;  %v1515_v62 = vunpack.c.h.bf16 %v2592_v6 }
 0x294   : > { %1852 = vst.msk [vmem:[%s2924_s28 + $0x14] sm:$0xf] %vm1846_vm4, %v2112_v12  ;;  %v1584_v14 = vpop.permute.xlu1 %1583 }
 0x295   : > { %v2117_v41 = vpack.c.bf16 %v1696_v53, %v1696_v53  ;;  %v1697_v15 = vmul.f32 %v1584_v14, %v1505_v11 }
 0x296   : > { %v1569_v42 = vpop.permute.xlu0 %1568 }
 0x297   : > { %1857 = vst.msk [vmem:[%s2924_s28 + $0x28] sm:$0xf] %vm1846_vm4, %v2117_v41  ;;  %v2118_v17 = vpack.c.bf16 %v1697_v15, %v1697_v15  ;;  %v1694_v18 = vmul.f32 %v1569_v42, %v1502_v13  ;;  %v1520_v13 = vunpack.c.l.bf16 %v2593_v1  ;;  %v1521_v15 = vunpack.c.h.bf16 %v2593_v1 }
 0x298   : > { %v1574_v20 = vpop.permute.xlu1 %1573 }
 0x299   : > { %1858 = vst.msk [vmem:[%s2924_s28 + $0x2c] sm:$0xf] %vm1846_vm4, %v2118_v17  ;;  %v2115_v21 = vpack.c.bf16 %v1694_v18, %v1694_v18  ;;  %v1695_v48 = vmul.f32 %v1574_v20, %v1503_v16  ;;  %v2594_v18 = vld [vmem:[%s2708_s21 + $0x60] sm:$0xff]  }
 0x29a   : > { %v1599_v43 = vpop.permute.xlu0 %1598  ;;  %v1518_v19 = vunpack.c.l.bf16 %v2594_v18 }
 0x29b   : > { %1855 = vst.msk [vmem:[%s2924_s28 + $0x20] sm:$0xf] %vm1846_vm4, %v2115_v21  ;;  %v2116_v22 = vpack.c.bf16 %v1695_v48, %v1695_v48  ;;  %v1700_v23 = vmul.f32 %v1599_v43, %v1508_v4  ;;  %v1519_v48 = vunpack.c.h.bf16 %v2594_v18 }
 0x29c   : > { %v1604_v25 = vpop.permute.xlu1 %1603 }
 0x29d   : > { %1856 = vst.msk [vmem:[%s2924_s28 + $0x24] sm:$0xf] %vm1846_vm4, %v2116_v22  ;;  %v2121_v49 = vpack.c.bf16 %v1700_v23, %v1700_v23  ;;  %v1701_v27 = vmul.f32 %v1604_v25, %v1509_v7 }
 0x29e   : > { %v1589_v29 = vpop.permute.xlu0 %1588 }
 0x29f   : > { %1861 = vst.msk [vmem:[%s2924_s28 + $0x38] sm:$0xf] %vm1846_vm4, %v2121_v49  ;;  %v2122_v30 = vpack.c.bf16 %v1701_v27, %v1701_v27  ;;  %v1698_v31 = vmul.f32 %v1589_v29, %v1506_v44  ;;  %v1522_v44 = vunpack.c.l.bf16 %v2595_v24  ;;  %v1523_v27 = vunpack.c.h.bf16 %v2595_v24 }
 0x2a0   : > { %v1594_v32 = vpop.permute.xlu1 %1593 }
 0x2a1   : > { %1862 = vst.msk [vmem:[%s2924_s28 + $0x3c] sm:$0xf] %vm1846_vm4, %v2122_v30  ;;  %v2119_v34 = vpack.c.bf16 %v1698_v31, %v1698_v31  ;;  %v1699_v46 = vmul.f32 %v1594_v32, %v1507_v28  ;;  %v2596_v31 = vld [vmem:[%s2708_s21 + $0x78] sm:$0xff]  }
 0x2a2   : > { %v1524_v32 = vunpack.c.l.bf16 %v2596_v31 }
 0x2a3   : > { %1859 = vst.msk [vmem:[%s2924_s28 + $0x30] sm:$0xf] %vm1846_vm4, %v2119_v34  ;;  %v2120_v36 = vpack.c.bf16 %v1699_v46, %v1699_v46  ;;  %v1619_v37 = vpop.permute.xlu0 %1618  ;;  %v1525_v46 = vunpack.c.h.bf16 %v2596_v31 }
 0x2a4   : > { %v1704_v38 = vmul.f32 %v1619_v37, %v1512_v33 }
 0x2a5   : > { %1860 = vst.msk [vmem:[%s2924_s28 + $0x34] sm:$0xf] %vm1846_vm4, %v2120_v36  ;;  %v1624_v55 = vpop.permute.xlu1 %1623 }
 0x2a6   : > { %v2125_v56 = vpack.c.bf16 %v1704_v38, %v1704_v38  ;;  %v1705_v57 = vmul.f32 %v1624_v55, %v1513_v35 }
 0x2a7   : > { %v1609_v58 = vpop.permute.xlu0 %1608 }
 0x2a8   : > { %1865 = vst.msk [vmem:[%s2924_s28 + $0x48] sm:$0xf] %vm1846_vm4, %v2125_v56  ;;  %v2126_v59 = vpack.c.bf16 %v1705_v57, %v1705_v57  ;;  %v1702_v60 = vmul.f32 %v1609_v58, %v1510_v47 }
 0x2a9   : > { %v1614_v0 = vpop.permute.xlu1 %1613 }
 0x2aa   : > { %1866 = vst.msk [vmem:[%s2924_s28 + $0x4c] sm:$0xf] %vm1846_vm4, %v2126_v59  ;;  %v2123_v2 = vpack.c.bf16 %v1702_v60, %v1702_v60  ;;  %v1703_v39 = vmul.f32 %v1614_v0, %v1511_v50 }
 0x2ab   : > { %v1639_v3 = vpop.permute.xlu0 %1638 }
 0x2ac   : > { %1863 = vst.msk [vmem:[%s2924_s28 + $0x40] sm:$0xf] %vm1846_vm4, %v2123_v2  ;;  %v2124_v5 = vpack.c.bf16 %v1703_v39, %v1703_v39  ;;  %v1708_v52 = vmul.f32 %v1639_v3, %v1516_v63 }
 0x2ad   : > { %v1644_v8 = vpop.permute.xlu1 %1643 }
 0x2ae   : > { %1864 = vst.msk [vmem:[%s2924_s28 + $0x44] sm:$0xf] %vm1846_vm4, %v2124_v5  ;;  %v2129_v9 = vpack.c.bf16 %v1708_v52, %v1708_v52  ;;  %v1709_v10 = vmul.f32 %v1644_v8, %v1517_v51 }
 0x2af   : > { %v1629_v11 = vpop.permute.xlu0 %1628 }
 0x2b0   : > { %1869 = vst.msk [vmem:[%s2924_s28 + $0x58] sm:$0xf] %vm1846_vm4, %v2129_v9  ;;  %v2130_v12 = vpack.c.bf16 %v1709_v10, %v1709_v10  ;;  %v1706_v26 = vmul.f32 %v1629_v11, %v1514_v40 }
 0x2b1   : > { %v1634_v53 = vpop.permute.xlu1 %1633 }
 0x2b2   : > { %1870 = vst.msk [vmem:[%s2924_s28 + $0x5c] sm:$0xf] %vm1846_vm4, %v2130_v12  ;;  %v2127_v14 = vpack.c.bf16 %v1706_v26, %v1706_v26  ;;  %v1707_v41 = vmul.f32 %v1634_v53, %v1515_v62 }
 0x2b4   : > { %1867 = vst.msk [vmem:[%s2924_s28 + $0x50] sm:$0xf] %vm1846_vm4, %v2127_v14  ;;  %v2128_v16 = vpack.c.bf16 %v1707_v41, %v1707_v41  ;;  %v1659_v42 = vpop.permute.xlu0 %1658 }
 0x2b5   : > { %v1712_v17 = vmul.f32 %v1659_v42, %v1520_v13 }
 0x2b6   : > { %1868 = vst.msk [vmem:[%s2924_s28 + $0x54] sm:$0xf] %vm1846_vm4, %v2128_v16  ;;  %v1664_v4 = vpop.permute.xlu1 %1663 }
 0x2b7   : > { %v2133_v20 = vpack.c.bf16 %v1712_v17, %v1712_v17  ;;  %v1713_v21 = vmul.f32 %v1664_v4, %v1521_v15 }
 0x2b8   : > { %v1649_v7 = vpop.permute.xlu0 %1648 }
 0x2b9   : > { %1873 = vst.msk [vmem:[%s2924_s28 + $0x68] sm:$0xf] %vm1846_vm4, %v2133_v20  ;;  %v2134_v43 = vpack.c.bf16 %v1713_v21, %v1713_v21  ;;  %v1710_v22 = vmul.f32 %v1649_v7, %v1518_v19 }
 0x2ba   : > { %v1654_v23 = vpop.permute.xlu1 %1653 }
 0x2bb   : > { %1874 = vst.msk [vmem:[%s2924_s28 + $0x6c] sm:$0xf] %vm1846_vm4, %v2134_v43  ;;  %v2131_v25 = vpack.c.bf16 %v1710_v22, %v1710_v22  ;;  %v1711_v49 = vmul.f32 %v1654_v23, %v1519_v48 }
 0x2bd   : > { %1871 = vst.msk [vmem:[%s2924_s28 + $0x60] sm:$0xf] %vm1846_vm4, %v2131_v25  ;;  %v2132_v28 = vpack.c.bf16 %v1711_v49, %v1711_v49  ;;  %v1669_v29 = vpop.permute.xlu0 %1668 }
 0x2be   : > { %v1714_v30 = vmul.f32 %v1669_v29, %v1522_v44 }
 0x2bf   : > { %1872 = vst.msk [vmem:[%s2924_s28 + $0x64] sm:$0xf] %vm1846_vm4, %v2132_v28  ;;  %v1674_v45 = vpop.permute.xlu1 %1673 }
 0x2c0   : > { %v2135_v33 = vpack.c.bf16 %v1714_v30, %v1714_v30  ;;  %v1715_v34 = vmul.f32 %v1674_v45, %v1523_v27 }
 0x2c1   : > { %v1679_v35 = vpop.permute.xlu0 %1678 }
 0x2c2   : > { %1875 = vst.msk [vmem:[%s2924_s28 + $0x70] sm:$0xf] %vm1846_vm4, %v2135_v33  ;;  %v2136_v36 = vpack.c.bf16 %v1715_v34, %v1715_v34  ;;  %v1716_v37 = vmul.f32 %v1679_v35, %v1524_v32 }
 0x2c3   : > { %v1684_v38 = vpop.permute.xlu1 %1683 }
 0x2c4   : > { %1876 = vst.msk [vmem:[%s2924_s28 + $0x74] sm:$0xf] %vm1846_vm4, %v2136_v36  ;;  %v2137_v54 = vpack.c.bf16 %v1716_v37, %v1716_v37  ;;  %v1717_v47 = vmul.f32 %v1684_v38, %v1525_v46 }
 0x2c6   : > { %1877 = vst.msk [vmem:[%s2924_s28 + $0x78] sm:$0xf] %vm1846_vm4, %v2137_v54  ;;  %v2138_v55 = vpack.c.bf16 %v1717_v47, %v1717_v47 }
 0x2c8   : > { %1878 = vst.msk [vmem:[%s2924_s28 + $0x7c] sm:$0xf] %vm1846_vm4, %v2138_v55 }
 0x2c9 PF: > { %s20_s29 = sadd.s32 1, %s2603_s29  }
 0x2ca   : > { %p17_p4 = scmp.ge.s32.totalorder %s20_s29, 4  }
 0x2cc   :  { %19 = sbr.rel (!%p17_p4) target bundleno = 3 (0x3), region = 85 }

</bundles_post_ra>
